<compile_context>
chip_gen: v6e
topology: v6e:2x2x1
jax: 0.10.0
libtpu: 0.0.40
codegen_flags: <defaults>
</compile_context>

<pallas_src>
import functools

import numpy as np
import jax
import jax.numpy as jnp
from jax.experimental import pallas as pl
from jax.experimental.pallas import tpu as pltpu

LEAK = 0.1
BN_EPS = 1e-5

_VMEM = pl.BlockSpec(memory_space=pltpu.MemorySpace.VMEM)
_HBM = pl.BlockSpec(memory_space=pl.ANY)


def _round_up(x, m):
    return ((x + m - 1) // m) * m


# ----------------------------- Pallas kernel ------------------------------- #

def _generator_kernel(z_ref, lw_ref, lb_ref,
                      m1_hbm, sc1_ref, g1_ref, g1t_ref, ga1_ref, be1_ref,
                      m2_hbm, sc2_ref, g2_ref, g2t_ref, ga2_ref, be2_ref,
                      m3_hbm, t3_ref, b3_ref,
                      o_ref,
                      x_scr, a1_scr, a2_scr, a3_scr,
                      m1_vmem, m2_vmem, m3_vmem, dma_sem,
                      *, dims, n_bn1, n_bn2):
    f32 = jnp.float32
    bf16 = jnp.bfloat16
    batch, h1, wc1p, r1 = dims

    # Manually prefetch the large expanded conv matrices so their HBM->VMEM
    # DMAs overlap with earlier compute instead of landing serially up front.
    cp_m1 = pltpu.make_async_copy(m1_hbm, m1_vmem, dma_sem.at[0])
    cp_m2 = pltpu.make_async_copy(m2_hbm, m2_vmem, dma_sem.at[1])
    cp_m3 = pltpu.make_async_copy(m3_hbm, m3_vmem, dma_sem.at[2])
    cp_m1.start()
    cp_m2.start()
    cp_m3.start()

    def lrelu(v):
        return jnp.where(v >= 0.0, v, LEAK * v)

    def tap_conv(x_bf16, m_vmem, a_scr, s_ref):
        # Per-tap lane matmuls (bf16 operands, f32 accumulation) stored into a
        # row-stacked scratch, then ONE merged row-select matmul that realizes
        # the stride/shift placement AND the sum over taps:
        #     Y = [S_0 | S_1 | ...] @ [A_0; A_1; ...]
        n_taps = m_vmem.shape[0]
        blk = a_scr.shape[0] // n_taps
        for k in range(n_taps):
            a = jnp.dot(x_bf16, m_vmem[k], preferred_element_type=f32)
            a_scr[k * blk:(k + 1) * blk, :] = a.astype(bf16)
        return jnp.dot(s_ref[...], a_scr[...], preferred_element_type=f32)

    def bn_lrelu(y, g_ref, gt_ref, gamma_ref, beta_ref, n):
        # Training-mode BatchNorm2d (biased var, eps=1e-5), single pass.
        # Per-channel reduce / re-broadcast over the folded (W*C) lane axis is
        # done with one fused f32 matmul each (stats kept f32 for accuracy).
        colsum = jnp.sum(y, axis=0, keepdims=True)
        colsq = jnp.sum(y * y, axis=0, keepdims=True)
        stats = jnp.concatenate([colsum, colsq], axis=0)                   # (2, L)
        ch = jnp.dot(stats, g_ref[...], preferred_element_type=f32)        # (2, C)
        inv_n = 1.0 / n
        mean = ch[0:1, :] * inv_n
        var = ch[1:2, :] * inv_n - mean * mean
        scale = gamma_ref[...] * jax.lax.rsqrt(var + BN_EPS)               # (1, C)
        shift = beta_ref[...] - mean * scale                               # (1, C)
        ss = jnp.dot(jnp.concatenate([scale, shift], axis=0), gt_ref[...],
                     preferred_element_type=f32)                           # (2, L)
        return lrelu(y * ss[0:1, :] + ss[1:2, :])

    # ---- Linear + LeakyReLU: ONE lane-dense dot, then unfold the per-H
    #      blocks into the (rows=(i,b), lanes=(j,c)) slab via static stores.
    z_bf = z_ref[...].astype(bf16)
    xf = jnp.dot(z_bf, lw_ref[...], preferred_element_type=f32) + lb_ref[...]
    xf = lrelu(xf).astype(bf16)                                            # (B, h1*wc1p)
    for i in range(h1):
        x_scr[i * batch:(i + 1) * batch, :] = xf[:, i * wc1p:(i + 1) * wc1p]
    if r1 > h1 * batch:  # zero the row padding so the MXU never sees garbage
        x_scr[h1 * batch:r1, :] = jnp.zeros((r1 - h1 * batch, wc1p), bf16)

    # ---- ConvTranspose2d(64->32, k3, s2) + BatchNorm + LeakyReLU
    #      (conv bias dropped: it is cancelled exactly by the BN mean.)
    cp_m1.wait()
    y1 = tap_conv(x_scr[...], m1_vmem, a1_scr, sc1_ref)
    y1 = bn_lrelu(y1, g1_ref, g1t_ref, ga1_ref, be1_ref, n_bn1)

    # ---- ConvTranspose2d(32->16, k3, s2) + BatchNorm + LeakyReLU
    cp_m2.wait()
    y2 = tap_conv(y1.astype(bf16), m2_vmem, a2_scr, sc2_ref)
    y2 = bn_lrelu(y2, g2_ref, g2t_ref, ga2_ref, be2_ref, n_bn2)

    # ---- Conv2d(16->out_channel, k4, valid) + bias
    cp_m3.wait()
    y3 = tap_conv(y2.astype(bf16), m3_vmem, a3_scr, t3_ref)
    o_ref[...] = y3 + b3_ref[...]


# --------------------- static matrix builders (prep) ----------------------- #

def _deconv_lane_mats(w_t, w_in, k_pad, n_pad):
    """Per-kh lane matrices for ConvTranspose2d (stride 2, no padding).
    w_t: (Cin, Cout, KH, KW).  M[kh, j*Cin+ci, (2j+kw)*Cout+co] = w_t[ci,co,kh,kw]."""
    w = np.asarray(w_t, np.float32)
    cin, cout, kh, kw = w.shape
    m = np.zeros((kh, k_pad, n_pad), np.float32)
    for h in range(kh):
        for j in range(w_in):
            for kk in range(kw):
                q = 2 * j + kk
                m[h, j * cin:(j + 1) * cin, q * cout:(q + 1) * cout] += w[:, :, h, kk]
    return jnp.asarray(m, dtype=jnp.bfloat16)


def _conv_lane_mats(w_c, w_in, k_pad, n_pad):
    """Per-kh lane matrices for Conv2d (stride 1, valid).
    w_c: (Cout, Cin, KH, KW).  M[kh, (q+kw)*Cin+ci, q*Cout+co] = w_c[co,ci,kh,kw]."""
    w = np.asarray(w_c, np.float32)
    cout, cin, kh, kw = w.shape
    w_out = w_in - kw + 1
    m = np.zeros((kh, k_pad, n_pad), np.float32)
    for h in range(kh):
        for q in range(w_out):
            for kk in range(kw):
                j = q + kk
                m[h, j * cin:(j + 1) * cin, q * cout:(q + 1) * cout] += w[:, :, h, kk].T
    return jnp.asarray(m, dtype=jnp.bfloat16)


def _deconv_row_select_cat(batch, h_in, kh, blk_in, rows_out, *, in_row_major_b):
    """Merged 0/1 matrix [S_0|S_1|S_2] realizing stride-2 H placement + tap sum."""
    h_out = 2 * (h_in - 1) + kh
    s = np.zeros((rows_out, kh * blk_in), np.float32)
    for b in range(batch):
        for i in range(h_in):
            for k in range(kh):
                r_in = (b * h_in + i) if in_row_major_b else (i * batch + b)
                s[b * h_out + 2 * i + k, k * blk_in + r_in] = 1.0
    return jnp.asarray(s, dtype=jnp.bfloat16)


def _conv_row_select_cat(batch, h_in, kh, blk_in, rows_out):
    h_out = h_in - kh + 1
    t = np.zeros((rows_out, kh * blk_in), np.float32)
    for b in range(batch):
        for p in range(h_out):
            for k in range(kh):
                t[b * h_out + p, k * blk_in + b * h_in + p + k] = 1.0
    return jnp.asarray(t, dtype=jnp.bfloat16)


def _channel_group_mats(w_valid, c, lanes_pad):
    g = np.zeros((lanes_pad, c), np.float32)
    for q in range(w_valid):
        g[q * c:(q + 1) * c, :] = np.eye(c, dtype=np.float32)
    return jnp.asarray(g), jnp.asarray(g.T.copy())


# ------------------------------ JAX wrapper -------------------------------- #

def init_params(key, latent_dim, out_channel=1, width=28, height=28):
    """Parameters in PyTorch layouts."""
    ks = jax.random.split(key, 8)
    feat = 64 * (width // 4) * (height // 4)
    s = 0.05
    return {
        "lin_w": jax.random.normal(ks[0], (latent_dim, feat), jnp.float32) * s,
        "lin_b": jax.random.normal(ks[1], (feat,), jnp.float32) * s,
        "dc1_w": jax.random.normal(ks[2], (64, 32, 3, 3), jnp.float32) * s,   # (Cin,Cout,KH,KW)
        "dc1_b": jax.random.normal(ks[3], (32,), jnp.float32) * s,            # cancelled by BN
        "bn1_g": jnp.ones((32,), jnp.float32),
        "bn1_b": jnp.zeros((32,), jnp.float32),
        "dc2_w": jax.random.normal(ks[4], (32, 16, 3, 3), jnp.float32) * s,
        "dc2_b": jax.random.normal(ks[5], (16,), jnp.float32) * s,            # cancelled by BN
        "bn2_g": jnp.ones((16,), jnp.float32),
        "bn2_b": jnp.zeros((16,), jnp.float32),
        "c3_w": jax.random.normal(ks[6], (out_channel, 16, 4, 4), jnp.float32) * s,  # OIHW
        "c3_b": jax.random.normal(ks[7], (out_channel,), jnp.float32) * s,
    }


def _derive_dims(batch, out_channel, width, height):
    h1, w1 = width // 4, height // 4
    c1, c2, c3 = 64, 32, 16
    h2, w2 = 2 * (h1 - 1) + 3, 2 * (w1 - 1) + 3
    h3, w3 = 2 * (h2 - 1) + 3, 2 * (w2 - 1) + 3
    h4, w4 = h3 - 4 + 1, w3 - 4 + 1
    wc1p = _round_up(w1 * c1, 128)
    wc2p = _round_up(w2 * c2, 128)
    wc3p = _round_up(w3 * c3, 128)
    wc4p = _round_up(w4 * out_channel, 128)
    r1 = _round_up(batch * h1, 16)
    r2 = _round_up(batch * h2, 16)
    r3 = _round_up(batch * h3, 16)
    return (h1, w1, c1, c2, c3, h2, w2, h3, w3, h4, w4,
            wc1p, wc2p, wc3p, wc4p, r1, r2, r3)


def prepare_params(params, batch, *, out_channel=1, width=28, height=28):
    """One-time parameter preprocessing (outside the hot path).  Expanded
    matmul operands are bf16 (0/1 selection matrices are exact in bf16);
    BN gamma/beta, biases and channel-group matrices stay f32."""
    (h1, w1, c1, c2, c3, h2, w2, h3, w3, h4, w4,
     wc1p, wc2p, wc3p, wc4p, r1, r2, r3) = _derive_dims(batch, out_channel, width, height)

    latent = params["lin_w"].shape[0]

    # Linear weight -> single lane-dense (latent, h1*wc1p) matrix; lane block i
    # holds the (j, c)-ordered weights of output H row i (pad lanes are zero).
    lw = params["lin_w"].reshape(latent, c1, h1, w1)
    lw = jnp.transpose(lw, (0, 2, 3, 1)).reshape(latent, h1, w1 * c1)
    lw = jnp.pad(lw, ((0, 0), (0, 0), (0, wc1p - w1 * c1)))
    lw = lw.reshape(latent, h1 * wc1p).astype(jnp.bfloat16)
    lb = params["lin_b"].reshape(c1, h1, w1)
    lb = jnp.transpose(lb, (1, 2, 0)).reshape(h1, w1 * c1)
    lb = jnp.pad(lb, ((0, 0), (0, wc1p - w1 * c1))).reshape(1, h1 * wc1p)

    g1, g1t = _channel_group_mats(w2, c2, wc2p)
    g2, g2t = _channel_group_mats(w3, c3, wc3p)

    b3 = jnp.tile(params["c3_b"], w4)
    b3 = jnp.pad(b3, (0, wc4p - w4 * out_channel)).reshape(1, wc4p)

    return dict(
        lw=lw, lb=lb.astype(jnp.float32),
        m1=_deconv_lane_mats(params["dc1_w"], w1, wc1p, wc2p),
        sc1=_deconv_row_select_cat(batch, h1, 3, r1, r2, in_row_major_b=False),
        g1=g1, g1t=g1t,
        ga1=params["bn1_g"].reshape(1, c2), be1=params["bn1_b"].reshape(1, c2),
        m2=_deconv_lane_mats(params["dc2_w"], w2, wc2p, wc3p),
        sc2=_deconv_row_select_cat(batch, h2, 3, r2, r3, in_row_major_b=True),
        g2=g2, g2t=g2t,
        ga2=params["bn2_g"].reshape(1, c3), be2=params["bn2_b"].reshape(1, c3),
        m3=_conv_lane_mats(params["c3_w"], w3, wc3p, wc4p),
        t3=_conv_row_select_cat(batch, h3, 4, r3, batch * h4),
        b3=b3.astype(jnp.float32),
    )


def generator_forward(prep, z, *, out_channel=1, width=28, height=28):
    batch = z.shape[0]
    (h1, w1, c1, c2, c3, h2, w2, h3, w3, h4, w4,
     wc1p, wc2p, wc3p, wc4p, r1, r2, r3) = _derive_dims(batch, out_channel, width, height)

    kern = functools.partial(
        _generator_kernel,
        dims=(batch, h1, wc1p, r1),
        n_bn1=float(batch * h2 * w2),
        n_bn2=float(batch * h3 * w3))

    in_specs = [_VMEM, _VMEM, _VMEM,                         # z, lw, lb
                _HBM, _VMEM, _VMEM, _VMEM, _VMEM, _VMEM,     # m1, sc1, g1, g1t, ga1, be1
                _HBM, _VMEM, _VMEM, _VMEM, _VMEM, _VMEM,     # m2, sc2, g2, g2t, ga2, be2
                _HBM, _VMEM, _VMEM]                          # m3, t3, b3

    out2d = pl.pallas_call(
        kern,
        out_shape=jax.ShapeDtypeStruct((batch * h4, wc4p), jnp.float32),
        in_specs=in_specs,
        out_specs=_VMEM,
        scratch_shapes=[
            pltpu.VMEM((r1, wc1p), jnp.bfloat16),        # linear-output slab
            pltpu.VMEM((3 * r1, wc2p), jnp.bfloat16),    # deconv1 tap stack
            pltpu.VMEM((3 * r2, wc3p), jnp.bfloat16),    # deconv2 tap stack
            pltpu.VMEM((4 * r3, wc4p), jnp.bfloat16),    # conv3 tap stack
            pltpu.VMEM((3, wc1p, wc2p), jnp.bfloat16),   # m1 prefetch buffer
            pltpu.VMEM((3, wc2p, wc3p), jnp.bfloat16),   # m2 prefetch buffer
            pltpu.VMEM((4, wc3p, wc4p), jnp.bfloat16),   # m3 prefetch buffer
            pltpu.SemaphoreType.DMA((3,)),
        ],
        compiler_params=pltpu.CompilerParams(vmem_limit_bytes=32 * 1024 * 1024),
    )(z, prep["lw"], prep["lb"],
      prep["m1"], prep["sc1"], prep["g1"], prep["g1t"], prep["ga1"], prep["be1"],
      prep["m2"], prep["sc2"], prep["g2"], prep["g2t"], prep["ga2"], prep["be2"],
      prep["m3"], prep["t3"], prep["b3"])

    out = out2d[:, :w4 * out_channel].reshape(batch, h4, w4, out_channel)
    return jnp.transpose(out, (0, 3, 1, 2))              # NCHW, like PyTorch


if __name__ == "__main__":
    latent_dim = 32
    batch = 2
    out_channel = 1
    width = height = 28

    key = jax.random.PRNGKey(0)
    pkey, zkey = jax.random.split(key)
    params = init_params(pkey, latent_dim, out_channel, width, height)
    z = jax.random.normal(zkey, (batch, latent_dim), jnp.float32)

    prep = prepare_params(params, batch, out_channel=out_channel,
                          width=width, height=height)

    fwd = jax.jit(functools.partial(generator_forward, out_channel=out_channel,
                                    width=width, height=height))
    out = jax.block_until_ready(fwd(prep, z))

    assert out.shape == (batch, out_channel, height, width), out.shape
    assert out.dtype == jnp.float32
    assert bool(jnp.all(jnp.isfinite(out)))
    print("KERNEL_OK")
</pallas_src>

<mosaic_0001>
module attributes {stable_mosaic.version = 11 : i64} {
  func.func @_generator_kernel(%arg0: memref<2x32xf32, #tpu.memory_space<vmem>>, %arg1: memref<32x3584xbf16, #tpu.memory_space<vmem>>, %arg2: memref<1x3584xf32, #tpu.memory_space<vmem>>, %arg3: memref<3x512x512xbf16, #tpu.memory_space<any>>, %arg4: memref<32x48xbf16, #tpu.memory_space<vmem>>, %arg5: memref<512x32xf32, #tpu.memory_space<vmem>>, %arg6: memref<32x512xf32, #tpu.memory_space<vmem>>, %arg7: memref<1x32xf32, #tpu.memory_space<vmem>>, %arg8: memref<1x32xf32, #tpu.memory_space<vmem>>, %arg9: memref<3x512x512xbf16, #tpu.memory_space<any>>, %arg10: memref<64x96xbf16, #tpu.memory_space<vmem>>, %arg11: memref<512x16xf32, #tpu.memory_space<vmem>>, %arg12: memref<16x512xf32, #tpu.memory_space<vmem>>, %arg13: memref<1x16xf32, #tpu.memory_space<vmem>>, %arg14: memref<1x16xf32, #tpu.memory_space<vmem>>, %arg15: memref<4x512x128xbf16, #tpu.memory_space<any>>, %arg16: memref<56x256xbf16, #tpu.memory_space<vmem>>, %arg17: memref<1x128xf32, #tpu.memory_space<vmem>>, %arg18: memref<56x128xf32, #tpu.memory_space<vmem>>, %arg19: memref<16x512xbf16, #tpu.memory_space<vmem>>, %arg20: memref<48x512xbf16, #tpu.memory_space<vmem>>, %arg21: memref<96x512xbf16, #tpu.memory_space<vmem>>, %arg22: memref<256x128xbf16, #tpu.memory_space<vmem>>, %arg23: memref<3x512x512xbf16, #tpu.memory_space<vmem>>, %arg24: memref<3x512x512xbf16, #tpu.memory_space<vmem>>, %arg25: memref<4x512x128xbf16, #tpu.memory_space<vmem>>, %arg26: memref<3x!tpu.dma_semaphore, #tpu.memory_space<semaphore_mem>>) attributes {dimension_semantics = [], scalar_prefetch = 0 : i64, scratch_operands = 8 : i64, tpu.core_type = #tpu.core_type<tc>} {
    %c0_i32 = arith.constant 0 : i32
    %0 = tpu.memref_slice %arg26[%c0_i32] : memref<3x!tpu.dma_semaphore, #tpu.memory_space<semaphore_mem>> -> memref<1x!tpu.dma_semaphore, #tpu.memory_space<semaphore_mem>>
    %1 = tpu.memref_squeeze %0 : memref<1x!tpu.dma_semaphore, #tpu.memory_space<semaphore_mem>> -> memref<!tpu.dma_semaphore, #tpu.memory_space<semaphore_mem>>
    tpu.enqueue_dma source(%arg3 : memref<3x512x512xbf16, #tpu.memory_space<any>>) target(%arg23 : memref<3x512x512xbf16, #tpu.memory_space<vmem>>) target_semaphore(%1 : memref<!tpu.dma_semaphore, #tpu.memory_space<semaphore_mem>>)
    %c1_i32 = arith.constant 1 : i32
    %2 = tpu.memref_slice %arg26[%c1_i32] : memref<3x!tpu.dma_semaphore, #tpu.memory_space<semaphore_mem>> -> memref<1x!tpu.dma_semaphore, #tpu.memory_space<semaphore_mem>>
    %3 = tpu.memref_squeeze %2 : memref<1x!tpu.dma_semaphore, #tpu.memory_space<semaphore_mem>> -> memref<!tpu.dma_semaphore, #tpu.memory_space<semaphore_mem>>
    tpu.enqueue_dma source(%arg9 : memref<3x512x512xbf16, #tpu.memory_space<any>>) target(%arg24 : memref<3x512x512xbf16, #tpu.memory_space<vmem>>) target_semaphore(%3 : memref<!tpu.dma_semaphore, #tpu.memory_space<semaphore_mem>>)
    %c2_i32 = arith.constant 2 : i32
    %4 = tpu.memref_slice %arg26[%c2_i32] : memref<3x!tpu.dma_semaphore, #tpu.memory_space<semaphore_mem>> -> memref<1x!tpu.dma_semaphore, #tpu.memory_space<semaphore_mem>>
    %5 = tpu.memref_squeeze %4 : memref<1x!tpu.dma_semaphore, #tpu.memory_space<semaphore_mem>> -> memref<!tpu.dma_semaphore, #tpu.memory_space<semaphore_mem>>
    tpu.enqueue_dma source(%arg15 : memref<4x512x128xbf16, #tpu.memory_space<any>>) target(%arg25 : memref<4x512x128xbf16, #tpu.memory_space<vmem>>) target_semaphore(%5 : memref<!tpu.dma_semaphore, #tpu.memory_space<semaphore_mem>>)
    %c0 = arith.constant 0 : index
    %c0_0 = arith.constant 0 : index
    %6 = vector.load %arg0[%c0, %c0_0] : memref<2x32xf32, #tpu.memory_space<vmem>>, vector<2x32xf32>
    %7 = arith.truncf %6 : vector<2x32xf32> to vector<2x32xbf16>
    %c0_1 = arith.constant 0 : index
    %c0_2 = arith.constant 0 : index
    %8 = vector.load %arg1[%c0_1, %c0_2] : memref<32x3584xbf16, #tpu.memory_space<vmem>>, vector<32x3584xbf16>
    %cst = arith.constant dense<0.000000e+00> : vector<2x3584xf32>
    %9 = tpu.matmul %7, %8, %cst {dimension_numbers = #tpu.dot_dimension_numbers<[1], [0], [0], [1], [0, 0, 1, 1], [], []>} : vector<2x32xbf16>, vector<32x3584xbf16>, vector<2x3584xf32> -> vector<2x3584xf32>
    %c0_3 = arith.constant 0 : index
    %c0_4 = arith.constant 0 : index
    %10 = vector.load %arg2[%c0_3, %c0_4] : memref<1x3584xf32, #tpu.memory_space<vmem>>, vector<1x3584xf32>
    %11 = vector.broadcast %10 : vector<1x3584xf32> to vector<2x3584xf32>
    %12 = arith.addf %9, %11 : vector<2x3584xf32>
    %cst_5 = arith.constant 0.000000e+00 : f32
    %13 = vector.broadcast %cst_5 : f32 to vector<2x3584xf32>
    %14 = arith.cmpf oge, %12, %13 : vector<2x3584xf32>
    %cst_6 = arith.constant 1.000000e-01 : f32
    %15 = vector.broadcast %cst_6 : f32 to vector<2x3584xf32>
    %16 = arith.mulf %15, %12 : vector<2x3584xf32>
    %17 = arith.select %14, %12, %16 : vector<2x3584xi1>, vector<2x3584xf32>
    %18 = arith.truncf %17 : vector<2x3584xf32> to vector<2x3584xbf16>
    %19 = vector.extract_strided_slice %18 {offsets = [0, 0], sizes = [2, 512], strides = [1, 1]} : vector<2x3584xbf16> to vector<2x512xbf16>
    %c0_7 = arith.constant 0 : index
    %c0_8 = arith.constant 0 : index
    %20 = vector.load %arg19[%c0_7, %c0_8] : memref<16x512xbf16, #tpu.memory_space<vmem>>, vector<2x512xbf16>
    tpu.vector_store %arg19[%c0_7, %c0_8], %19 {strides = array<i32>} : memref<16x512xbf16, #tpu.memory_space<vmem>>, vector<2x512xbf16>,
    %21 = vector.extract_strided_slice %18 {offsets = [0, 512], sizes = [2, 512], strides = [1, 1]} : vector<2x3584xbf16> to vector<2x512xbf16>
    %c2 = arith.constant 2 : index
    %c0_9 = arith.constant 0 : index
    %22 = vector.load %arg19[%c2, %c0_9] : memref<16x512xbf16, #tpu.memory_space<vmem>>, vector<2x512xbf16>
    tpu.vector_store %arg19[%c2, %c0_9], %21 {strides = array<i32>} : memref<16x512xbf16, #tpu.memory_space<vmem>>, vector<2x512xbf16>,
    %23 = vector.extract_strided_slice %18 {offsets = [0, 1024], sizes = [2, 512], strides = [1, 1]} : vector<2x3584xbf16> to vector<2x512xbf16>
    %c4 = arith.constant 4 : index
    %c0_10 = arith.constant 0 : index
    %24 = vector.load %arg19[%c4, %c0_10] : memref<16x512xbf16, #tpu.memory_space<vmem>>, vector<2x512xbf16>
    tpu.vector_store %arg19[%c4, %c0_10], %23 {strides = array<i32>} : memref<16x512xbf16, #tpu.memory_space<vmem>>, vector<2x512xbf16>,
    %25 = vector.extract_strided_slice %18 {offsets = [0, 1536], sizes = [2, 512], strides = [1, 1]} : vector<2x3584xbf16> to vector<2x512xbf16>
    %c6 = arith.constant 6 : index
    %c0_11 = arith.constant 0 : index
    %26 = vector.load %arg19[%c6, %c0_11] : memref<16x512xbf16, #tpu.memory_space<vmem>>, vector<2x512xbf16>
    tpu.vector_store %arg19[%c6, %c0_11], %25 {strides = array<i32>} : memref<16x512xbf16, #tpu.memory_space<vmem>>, vector<2x512xbf16>,
    %27 = vector.extract_strided_slice %18 {offsets = [0, 2048], sizes = [2, 512], strides = [1, 1]} : vector<2x3584xbf16> to vector<2x512xbf16>
    %c8 = arith.constant 8 : index
    %c0_12 = arith.constant 0 : index
    %28 = vector.load %arg19[%c8, %c0_12] : memref<16x512xbf16, #tpu.memory_space<vmem>>, vector<2x512xbf16>
    tpu.vector_store %arg19[%c8, %c0_12], %27 {strides = array<i32>} : memref<16x512xbf16, #tpu.memory_space<vmem>>, vector<2x512xbf16>,
    %29 = vector.extract_strided_slice %18 {offsets = [0, 2560], sizes = [2, 512], strides = [1, 1]} : vector<2x3584xbf16> to vector<2x512xbf16>
    %c10 = arith.constant 10 : index
    %c0_13 = arith.constant 0 : index
    %30 = vector.load %arg19[%c10, %c0_13] : memref<16x512xbf16, #tpu.memory_space<vmem>>, vector<2x512xbf16>
    tpu.vector_store %arg19[%c10, %c0_13], %29 {strides = array<i32>} : memref<16x512xbf16, #tpu.memory_space<vmem>>, vector<2x512xbf16>,
    %31 = vector.extract_strided_slice %18 {offsets = [0, 3072], sizes = [2, 512], strides = [1, 1]} : vector<2x3584xbf16> to vector<2x512xbf16>
    %c12 = arith.constant 12 : index
    %c0_14 = arith.constant 0 : index
    %32 = vector.load %arg19[%c12, %c0_14] : memref<16x512xbf16, #tpu.memory_space<vmem>>, vector<2x512xbf16>
    tpu.vector_store %arg19[%c12, %c0_14], %31 {strides = array<i32>} : memref<16x512xbf16, #tpu.memory_space<vmem>>, vector<2x512xbf16>,
    %cst_15 = arith.constant 0.000000e+00 : bf16
    %33 = vector.broadcast %cst_15 : bf16 to vector<2x512xbf16>
    %c14 = arith.constant 14 : index
    %c0_16 = arith.constant 0 : index
    %34 = vector.load %arg19[%c14, %c0_16] : memref<16x512xbf16, #tpu.memory_space<vmem>>, vector<2x512xbf16>
    tpu.vector_store %arg19[%c14, %c0_16], %33 {strides = array<i32>} : memref<16x512xbf16, #tpu.memory_space<vmem>>, vector<2x512xbf16>,
    %c0_i32_17 = arith.constant 0 : i32
    %35 = tpu.memref_slice %arg26[%c0_i32_17] : memref<3x!tpu.dma_semaphore, #tpu.memory_space<semaphore_mem>> -> memref<1x!tpu.dma_semaphore, #tpu.memory_space<semaphore_mem>>
    %36 = tpu.memref_squeeze %35 : memref<1x!tpu.dma_semaphore, #tpu.memory_space<semaphore_mem>> -> memref<!tpu.dma_semaphore, #tpu.memory_space<semaphore_mem>>
    tpu.wait_dma2 semaphore(%36 : memref<!tpu.dma_semaphore, #tpu.memory_space<semaphore_mem>>) src(%arg3 : memref<3x512x512xbf16, #tpu.memory_space<any>>) dst(%arg23 : memref<3x512x512xbf16, #tpu.memory_space<vmem>>)
    %c0_18 = arith.constant 0 : index
    %c0_19 = arith.constant 0 : index
    %37 = vector.load %arg19[%c0_18, %c0_19] : memref<16x512xbf16, #tpu.memory_space<vmem>>, vector<16x512xbf16>
    %c0_20 = arith.constant 0 : index
    %c0_21 = arith.constant 0 : index
    %c0_22 = arith.constant 0 : index
    %38 = vector.load %arg23[%c0_20, %c0_21, %c0_22] : memref<3x512x512xbf16, #tpu.memory_space<vmem>>, vector<1x512x512xbf16>
    %39 = vector.shape_cast %38 : vector<1x512x512xbf16> to vector<512x512xbf16>
    %cst_23 = arith.constant dense<0.000000e+00> : vector<16x512xf32>
    %40 = tpu.matmul %37, %39, %cst_23 {dimension_numbers = #tpu.dot_dimension_numbers<[1], [0], [0], [1], [0, 0, 1, 1], [], []>} : vector<16x512xbf16>, vector<512x512xbf16>, vector<16x512xf32> -> vector<16x512xf32>
    %41 = arith.truncf %40 : vector<16x512xf32> to vector<16x512xbf16>
    %c0_24 = arith.constant 0 : index
    %c0_25 = arith.constant 0 : index
    %42 = vector.load %arg20[%c0_24, %c0_25] : memref<48x512xbf16, #tpu.memory_space<vmem>>, vector<16x512xbf16>
    tpu.vector_store %arg20[%c0_24, %c0_25], %41 {strides = array<i32>} : memref<48x512xbf16, #tpu.memory_space<vmem>>, vector<16x512xbf16>,
    %c1 = arith.constant 1 : index
    %c0_26 = arith.constant 0 : index
    %c0_27 = arith.constant 0 : index
    %43 = vector.load %arg23[%c1, %c0_26, %c0_27] : memref<3x512x512xbf16, #tpu.memory_space<vmem>>, vector<1x512x512xbf16>
    %44 = vector.shape_cast %43 : vector<1x512x512xbf16> to vector<512x512xbf16>
    %cst_28 = arith.constant dense<0.000000e+00> : vector<16x512xf32>
    %45 = tpu.matmul %37, %44, %cst_28 {dimension_numbers = #tpu.dot_dimension_numbers<[1], [0], [0], [1], [0, 0, 1, 1], [], []>} : vector<16x512xbf16>, vector<512x512xbf16>, vector<16x512xf32> -> vector<16x512xf32>
    %46 = arith.truncf %45 : vector<16x512xf32> to vector<16x512xbf16>
    %c16 = arith.constant 16 : index
    %c0_29 = arith.constant 0 : index
    %47 = vector.load %arg20[%c16, %c0_29] : memref<48x512xbf16, #tpu.memory_space<vmem>>, vector<16x512xbf16>
    tpu.vector_store %arg20[%c16, %c0_29], %46 {strides = array<i32>} : memref<48x512xbf16, #tpu.memory_space<vmem>>, vector<16x512xbf16>,
    %c2_30 = arith.constant 2 : index
    %c0_31 = arith.constant 0 : index
    %c0_32 = arith.constant 0 : index
    %48 = vector.load %arg23[%c2_30, %c0_31, %c0_32] : memref<3x512x512xbf16, #tpu.memory_space<vmem>>, vector<1x512x512xbf16>
    %49 = vector.shape_cast %48 : vector<1x512x512xbf16> to vector<512x512xbf16>
    %cst_33 = arith.constant dense<0.000000e+00> : vector<16x512xf32>
    %50 = tpu.matmul %37, %49, %cst_33 {dimension_numbers = #tpu.dot_dimension_numbers<[1], [0], [0], [1], [0, 0, 1, 1], [], []>} : vector<16x512xbf16>, vector<512x512xbf16>, vector<16x512xf32> -> vector<16x512xf32>
    %51 = arith.truncf %50 : vector<16x512xf32> to vector<16x512xbf16>
    %c32 = arith.constant 32 : index
    %c0_34 = arith.constant 0 : index
    %52 = vector.load %arg20[%c32, %c0_34] : memref<48x512xbf16, #tpu.memory_space<vmem>>, vector<16x512xbf16>
    tpu.vector_store %arg20[%c32, %c0_34], %51 {strides = array<i32>} : memref<48x512xbf16, #tpu.memory_space<vmem>>, vector<16x512xbf16>,
    %c0_35 = arith.constant 0 : index
    %c0_36 = arith.constant 0 : index
    %53 = vector.load %arg4[%c0_35, %c0_36] : memref<32x48xbf16, #tpu.memory_space<vmem>>, vector<32x48xbf16>
    %c0_37 = arith.constant 0 : index
    %c0_38 = arith.constant 0 : index
    %54 = vector.load %arg20[%c0_37, %c0_38] : memref<48x512xbf16, #tpu.memory_space<vmem>>, vector<48x512xbf16>
    %cst_39 = arith.constant dense<0.000000e+00> : vector<32x512xf32>
    %55 = tpu.matmul %53, %54, %cst_39 {dimension_numbers = #tpu.dot_dimension_numbers<[1], [0], [0], [1], [0, 0, 1, 1], [], []>} : vector<32x48xbf16>, vector<48x512xbf16>, vector<32x512xf32> -> vector<32x512xf32>
    %cst_40 = arith.constant dense<0.000000e+00> : vector<512xf32>
    %56 = vector.multi_reduction <add>, %55, %cst_40 [0] : vector<32x512xf32> to vector<512xf32>
    %57 = vector.shape_cast %56 : vector<512xf32> to vector<1x512xf32>
    %58 = arith.mulf %55, %55 : vector<32x512xf32>
    %cst_41 = arith.constant dense<0.000000e+00> : vector<512xf32>
    %59 = vector.multi_reduction <add>, %58, %cst_41 [0] : vector<32x512xf32> to vector<512xf32>
    %60 = vector.shape_cast %59 : vector<512xf32> to vector<1x512xf32>
    %61 = tpu.concatenate %57, %60 in 0 : vector<1x512xf32>, vector<1x512xf32> -> vector<2x512xf32>
    %c0_42 = arith.constant 0 : index
    %c0_43 = arith.constant 0 : index
    %62 = vector.load %arg5[%c0_42, %c0_43] : memref<512x32xf32, #tpu.memory_space<vmem>>, vector<512x32xf32>
    %cst_44 = arith.constant dense<0.000000e+00> : vector<2x32xf32>
    %63 = tpu.matmul %61, %62, %cst_44 {dimension_numbers = #tpu.dot_dimension_numbers<[1], [0], [0], [1], [0, 0, 1, 1], [], []>} : vector<2x512xf32>, vector<512x32xf32>, vector<2x32xf32> -> vector<2x32xf32>
    %64 = vector.extract_strided_slice %63 {offsets = [0, 0], sizes = [1, 32], strides = [1, 1]} : vector<2x32xf32> to vector<1x32xf32>
    %cst_45 = arith.constant 0.00222222228 : f32
    %65 = vector.broadcast %cst_45 : f32 to vector<1x32xf32>
    %66 = arith.mulf %64, %65 : vector<1x32xf32>
    %67 = vector.extract_strided_slice %63 {offsets = [1, 0], sizes = [1, 32], strides = [1, 1]} : vector<2x32xf32> to vector<1x32xf32>
    %cst_46 = arith.constant 0.00222222228 : f32
    %68 = vector.broadcast %cst_46 : f32 to vector<1x32xf32>
    %69 = arith.mulf %67, %68 : vector<1x32xf32>
    %70 = arith.mulf %66, %66 : vector<1x32xf32>
    %71 = arith.subf %69, %70 : vector<1x32xf32>
    %c0_47 = arith.constant 0 : index
    %c0_48 = arith.constant 0 : index
    %72 = vector.load %arg7[%c0_47, %c0_48] : memref<1x32xf32, #tpu.memory_space<vmem>>, vector<1x32xf32>
    %cst_49 = arith.constant 9.99999974E-6 : f32
    %73 = vector.broadcast %cst_49 : f32 to vector<1x32xf32>
    %74 = arith.addf %71, %73 : vector<1x32xf32>
    %75 = math.rsqrt %74 : vector<1x32xf32>
    %76 = arith.mulf %72, %75 : vector<1x32xf32>
    %c0_50 = arith.constant 0 : index
    %c0_51 = arith.constant 0 : index
    %77 = vector.load %arg8[%c0_50, %c0_51] : memref<1x32xf32, #tpu.memory_space<vmem>>, vector<1x32xf32>
    %78 = arith.mulf %66, %76 : vector<1x32xf32>
    %79 = arith.subf %77, %78 : vector<1x32xf32>
    %80 = tpu.concatenate %76, %79 in 0 : vector<1x32xf32>, vector<1x32xf32> -> vector<2x32xf32>
    %c0_52 = arith.constant 0 : index
    %c0_53 = arith.constant 0 : index
    %81 = vector.load %arg6[%c0_52, %c0_53] : memref<32x512xf32, #tpu.memory_space<vmem>>, vector<32x512xf32>
    %cst_54 = arith.constant dense<0.000000e+00> : vector<2x512xf32>
    %82 = tpu.matmul %80, %81, %cst_54 {dimension_numbers = #tpu.dot_dimension_numbers<[1], [0], [0], [1], [0, 0, 1, 1], [], []>} : vector<2x32xf32>, vector<32x512xf32>, vector<2x512xf32> -> vector<2x512xf32>
    %83 = vector.extract_strided_slice %82 {offsets = [0, 0], sizes = [1, 512], strides = [1, 1]} : vector<2x512xf32> to vector<1x512xf32>
    %84 = vector.broadcast %83 : vector<1x512xf32> to vector<32x512xf32>
    %85 = arith.mulf %55, %84 : vector<32x512xf32>
    %86 = vector.extract_strided_slice %82 {offsets = [1, 0], sizes = [1, 512], strides = [1, 1]} : vector<2x512xf32> to vector<1x512xf32>
    %87 = vector.broadcast %86 : vector<1x512xf32> to vector<32x512xf32>
    %88 = arith.addf %85, %87 : vector<32x512xf32>
    %cst_55 = arith.constant 0.000000e+00 : f32
    %89 = vector.broadcast %cst_55 : f32 to vector<32x512xf32>
    %90 = arith.cmpf oge, %88, %89 : vector<32x512xf32>
    %cst_56 = arith.constant 1.000000e-01 : f32
    %91 = vector.broadcast %cst_56 : f32 to vector<32x512xf32>
    %92 = arith.mulf %91, %88 : vector<32x512xf32>
    %93 = arith.select %90, %88, %92 : vector<32x512xi1>, vector<32x512xf32>
    %c1_i32_57 = arith.constant 1 : i32
    %94 = tpu.memref_slice %arg26[%c1_i32_57] : memref<3x!tpu.dma_semaphore, #tpu.memory_space<semaphore_mem>> -> memref<1x!tpu.dma_semaphore, #tpu.memory_space<semaphore_mem>>
    %95 = tpu.memref_squeeze %94 : memref<1x!tpu.dma_semaphore, #tpu.memory_space<semaphore_mem>> -> memref<!tpu.dma_semaphore, #tpu.memory_space<semaphore_mem>>
    tpu.wait_dma2 semaphore(%95 : memref<!tpu.dma_semaphore, #tpu.memory_space<semaphore_mem>>) src(%arg9 : memref<3x512x512xbf16, #tpu.memory_space<any>>) dst(%arg24 : memref<3x512x512xbf16, #tpu.memory_space<vmem>>)
    %96 = arith.truncf %93 : vector<32x512xf32> to vector<32x512xbf16>
    %c0_58 = arith.constant 0 : index
    %c0_59 = arith.constant 0 : index
    %c0_60 = arith.constant 0 : index
    %97 = vector.load %arg24[%c0_58, %c0_59, %c0_60] : memref<3x512x512xbf16, #tpu.memory_space<vmem>>, vector<1x512x512xbf16>
    %98 = vector.shape_cast %97 : vector<1x512x512xbf16> to vector<512x512xbf16>
    %cst_61 = arith.constant dense<0.000000e+00> : vector<32x512xf32>
    %99 = tpu.matmul %96, %98, %cst_61 {dimension_numbers = #tpu.dot_dimension_numbers<[1], [0], [0], [1], [0, 0, 1, 1], [], []>} : vector<32x512xbf16>, vector<512x512xbf16>, vector<32x512xf32> -> vector<32x512xf32>
    %100 = arith.truncf %99 : vector<32x512xf32> to vector<32x512xbf16>
    %c0_62 = arith.constant 0 : index
    %c0_63 = arith.constant 0 : index
    %101 = vector.load %arg21[%c0_62, %c0_63] : memref<96x512xbf16, #tpu.memory_space<vmem>>, vector<32x512xbf16>
    tpu.vector_store %arg21[%c0_62, %c0_63], %100 {strides = array<i32>} : memref<96x512xbf16, #tpu.memory_space<vmem>>, vector<32x512xbf16>,
    %c1_64 = arith.constant 1 : index
    %c0_65 = arith.constant 0 : index
    %c0_66 = arith.constant 0 : index
    %102 = vector.load %arg24[%c1_64, %c0_65, %c0_66] : memref<3x512x512xbf16, #tpu.memory_space<vmem>>, vector<1x512x512xbf16>
    %103 = vector.shape_cast %102 : vector<1x512x512xbf16> to vector<512x512xbf16>
    %cst_67 = arith.constant dense<0.000000e+00> : vector<32x512xf32>
    %104 = tpu.matmul %96, %103, %cst_67 {dimension_numbers = #tpu.dot_dimension_numbers<[1], [0], [0], [1], [0, 0, 1, 1], [], []>} : vector<32x512xbf16>, vector<512x512xbf16>, vector<32x512xf32> -> vector<32x512xf32>
    %105 = arith.truncf %104 : vector<32x512xf32> to vector<32x512xbf16>
    %c32_68 = arith.constant 32 : index
    %c0_69 = arith.constant 0 : index
    %106 = vector.load %arg21[%c32_68, %c0_69] : memref<96x512xbf16, #tpu.memory_space<vmem>>, vector<32x512xbf16>
    tpu.vector_store %arg21[%c32_68, %c0_69], %105 {strides = array<i32>} : memref<96x512xbf16, #tpu.memory_space<vmem>>, vector<32x512xbf16>,
    %c2_70 = arith.constant 2 : index
    %c0_71 = arith.constant 0 : index
    %c0_72 = arith.constant 0 : index
    %107 = vector.load %arg24[%c2_70, %c0_71, %c0_72] : memref<3x512x512xbf16, #tpu.memory_space<vmem>>, vector<1x512x512xbf16>
    %108 = vector.shape_cast %107 : vector<1x512x512xbf16> to vector<512x512xbf16>
    %cst_73 = arith.constant dense<0.000000e+00> : vector<32x512xf32>
    %109 = tpu.matmul %96, %108, %cst_73 {dimension_numbers = #tpu.dot_dimension_numbers<[1], [0], [0], [1], [0, 0, 1, 1], [], []>} : vector<32x512xbf16>, vector<512x512xbf16>, vector<32x512xf32> -> vector<32x512xf32>
    %110 = arith.truncf %109 : vector<32x512xf32> to vector<32x512xbf16>
    %c64 = arith.constant 64 : index
    %c0_74 = arith.constant 0 : index
    %111 = vector.load %arg21[%c64, %c0_74] : memref<96x512xbf16, #tpu.memory_space<vmem>>, vector<32x512xbf16>
    tpu.vector_store %arg21[%c64, %c0_74], %110 {strides = array<i32>} : memref<96x512xbf16, #tpu.memory_space<vmem>>, vector<32x512xbf16>,
    %c0_75 = arith.constant 0 : index
    %c0_76 = arith.constant 0 : index
    %112 = vector.load %arg10[%c0_75, %c0_76] : memref<64x96xbf16, #tpu.memory_space<vmem>>, vector<64x96xbf16>
    %c0_77 = arith.constant 0 : index
    %c0_78 = arith.constant 0 : index
    %113 = vector.load %arg21[%c0_77, %c0_78] : memref<96x512xbf16, #tpu.memory_space<vmem>>, vector<96x512xbf16>
    %cst_79 = arith.constant dense<0.000000e+00> : vector<64x512xf32>
    %114 = tpu.matmul %112, %113, %cst_79 {dimension_numbers = #tpu.dot_dimension_numbers<[1], [0], [0], [1], [0, 0, 1, 1], [], []>} : vector<64x96xbf16>, vector<96x512xbf16>, vector<64x512xf32> -> vector<64x512xf32>
    %cst_80 = arith.constant dense<0.000000e+00> : vector<512xf32>
    %115 = vector.multi_reduction <add>, %114, %cst_80 [0] : vector<64x512xf32> to vector<512xf32>
    %116 = vector.shape_cast %115 : vector<512xf32> to vector<1x512xf32>
    %117 = arith.mulf %114, %114 : vector<64x512xf32>
    %cst_81 = arith.constant dense<0.000000e+00> : vector<512xf32>
    %118 = vector.multi_reduction <add>, %117, %cst_81 [0] : vector<64x512xf32> to vector<512xf32>
    %119 = vector.shape_cast %118 : vector<512xf32> to vector<1x512xf32>
    %120 = tpu.concatenate %116, %119 in 0 : vector<1x512xf32>, vector<1x512xf32> -> vector<2x512xf32>
    %c0_82 = arith.constant 0 : index
    %c0_83 = arith.constant 0 : index
    %121 = vector.load %arg11[%c0_82, %c0_83] : memref<512x16xf32, #tpu.memory_space<vmem>>, vector<512x16xf32>
    %cst_84 = arith.constant dense<0.000000e+00> : vector<2x16xf32>
    %122 = tpu.matmul %120, %121, %cst_84 {dimension_numbers = #tpu.dot_dimension_numbers<[1], [0], [0], [1], [0, 0, 1, 1], [], []>} : vector<2x512xf32>, vector<512x16xf32>, vector<2x16xf32> -> vector<2x16xf32>
    %123 = vector.extract_strided_slice %122 {offsets = [0, 0], sizes = [1, 16], strides = [1, 1]} : vector<2x16xf32> to vector<1x16xf32>
    %cst_85 = arith.constant 5.20291389E-4 : f32
    %124 = vector.broadcast %cst_85 : f32 to vector<1x16xf32>
    %125 = arith.mulf %123, %124 : vector<1x16xf32>
    %126 = vector.extract_strided_slice %122 {offsets = [1, 0], sizes = [1, 16], strides = [1, 1]} : vector<2x16xf32> to vector<1x16xf32>
    %cst_86 = arith.constant 5.20291389E-4 : f32
    %127 = vector.broadcast %cst_86 : f32 to vector<1x16xf32>
    %128 = arith.mulf %126, %127 : vector<1x16xf32>
    %129 = arith.mulf %125, %125 : vector<1x16xf32>
    %130 = arith.subf %128, %129 : vector<1x16xf32>
    %c0_87 = arith.constant 0 : index
    %c0_88 = arith.constant 0 : index
    %131 = vector.load %arg13[%c0_87, %c0_88] : memref<1x16xf32, #tpu.memory_space<vmem>>, vector<1x16xf32>
    %cst_89 = arith.constant 9.99999974E-6 : f32
    %132 = vector.broadcast %cst_89 : f32 to vector<1x16xf32>
    %133 = arith.addf %130, %132 : vector<1x16xf32>
    %134 = math.rsqrt %133 : vector<1x16xf32>
    %135 = arith.mulf %131, %134 : vector<1x16xf32>
    %c0_90 = arith.constant 0 : index
    %c0_91 = arith.constant 0 : index
    %136 = vector.load %arg14[%c0_90, %c0_91] : memref<1x16xf32, #tpu.memory_space<vmem>>, vector<1x16xf32>
    %137 = arith.mulf %125, %135 : vector<1x16xf32>
    %138 = arith.subf %136, %137 : vector<1x16xf32>
    %139 = tpu.concatenate %135, %138 in 0 : vector<1x16xf32>, vector<1x16xf32> -> vector<2x16xf32>
    %c0_92 = arith.constant 0 : index
    %c0_93 = arith.constant 0 : index
    %140 = vector.load %arg12[%c0_92, %c0_93] : memref<16x512xf32, #tpu.memory_space<vmem>>, vector<16x512xf32>
    %cst_94 = arith.constant dense<0.000000e+00> : vector<2x512xf32>
    %141 = tpu.matmul %139, %140, %cst_94 {dimension_numbers = #tpu.dot_dimension_numbers<[1], [0], [0], [1], [0, 0, 1, 1], [], []>} : vector<2x16xf32>, vector<16x512xf32>, vector<2x512xf32> -> vector<2x512xf32>
    %142 = vector.extract_strided_slice %141 {offsets = [0, 0], sizes = [1, 512], strides = [1, 1]} : vector<2x512xf32> to vector<1x512xf32>
    %143 = vector.broadcast %142 : vector<1x512xf32> to vector<64x512xf32>
    %144 = arith.mulf %114, %143 : vector<64x512xf32>
    %145 = vector.extract_strided_slice %141 {offsets = [1, 0], sizes = [1, 512], strides = [1, 1]} : vector<2x512xf32> to vector<1x512xf32>
    %146 = vector.broadcast %145 : vector<1x512xf32> to vector<64x512xf32>
    %147 = arith.addf %144, %146 : vector<64x512xf32>
    %cst_95 = arith.constant 0.000000e+00 : f32
    %148 = vector.broadcast %cst_95 : f32 to vector<64x512xf32>
    %149 = arith.cmpf oge, %147, %148 : vector<64x512xf32>
    %cst_96 = arith.constant 1.000000e-01 : f32
    %150 = vector.broadcast %cst_96 : f32 to vector<64x512xf32>
    %151 = arith.mulf %150, %147 : vector<64x512xf32>
    %152 = arith.select %149, %147, %151 : vector<64x512xi1>, vector<64x512xf32>
    %c2_i32_97 = arith.constant 2 : i32
    %153 = tpu.memref_slice %arg26[%c2_i32_97] : memref<3x!tpu.dma_semaphore, #tpu.memory_space<semaphore_mem>> -> memref<1x!tpu.dma_semaphore, #tpu.memory_space<semaphore_mem>>
    %154 = tpu.memref_squeeze %153 : memref<1x!tpu.dma_semaphore, #tpu.memory_space<semaphore_mem>> -> memref<!tpu.dma_semaphore, #tpu.memory_space<semaphore_mem>>
    tpu.wait_dma2 semaphore(%154 : memref<!tpu.dma_semaphore, #tpu.memory_space<semaphore_mem>>) src(%arg15 : memref<4x512x128xbf16, #tpu.memory_space<any>>) dst(%arg25 : memref<4x512x128xbf16, #tpu.memory_space<vmem>>)
    %155 = arith.truncf %152 : vector<64x512xf32> to vector<64x512xbf16>
    %c0_98 = arith.constant 0 : index
    %c0_99 = arith.constant 0 : index
    %c0_100 = arith.constant 0 : index
    %156 = vector.load %arg25[%c0_98, %c0_99, %c0_100] : memref<4x512x128xbf16, #tpu.memory_space<vmem>>, vector<1x512x128xbf16>
    %157 = vector.shape_cast %156 : vector<1x512x128xbf16> to vector<512x128xbf16>
    %cst_101 = arith.constant dense<0.000000e+00> : vector<64x128xf32>
    %158 = tpu.matmul %155, %157, %cst_101 {dimension_numbers = #tpu.dot_dimension_numbers<[1], [0], [0], [1], [0, 0, 1, 1], [], []>} : vector<64x512xbf16>, vector<512x128xbf16>, vector<64x128xf32> -> vector<64x128xf32>
    %159 = arith.truncf %158 : vector<64x128xf32> to vector<64x128xbf16>
    %c0_102 = arith.constant 0 : index
    %c0_103 = arith.constant 0 : index
    %160 = vector.load %arg22[%c0_102, %c0_103] : memref<256x128xbf16, #tpu.memory_space<vmem>>, vector<64x128xbf16>
    tpu.vector_store %arg22[%c0_102, %c0_103], %159 {strides = array<i32>} : memref<256x128xbf16, #tpu.memory_space<vmem>>, vector<64x128xbf16>,
    %c1_104 = arith.constant 1 : index
    %c0_105 = arith.constant 0 : index
    %c0_106 = arith.constant 0 : index
    %161 = vector.load %arg25[%c1_104, %c0_105, %c0_106] : memref<4x512x128xbf16, #tpu.memory_space<vmem>>, vector<1x512x128xbf16>
    %162 = vector.shape_cast %161 : vector<1x512x128xbf16> to vector<512x128xbf16>
    %cst_107 = arith.constant dense<0.000000e+00> : vector<64x128xf32>
    %163 = tpu.matmul %155, %162, %cst_107 {dimension_numbers = #tpu.dot_dimension_numbers<[1], [0], [0], [1], [0, 0, 1, 1], [], []>} : vector<64x512xbf16>, vector<512x128xbf16>, vector<64x128xf32> -> vector<64x128xf32>
    %164 = arith.truncf %163 : vector<64x128xf32> to vector<64x128xbf16>
    %c64_108 = arith.constant 64 : index
    %c0_109 = arith.constant 0 : index
    %165 = vector.load %arg22[%c64_108, %c0_109] : memref<256x128xbf16, #tpu.memory_space<vmem>>, vector<64x128xbf16>
    tpu.vector_store %arg22[%c64_108, %c0_109], %164 {strides = array<i32>} : memref<256x128xbf16, #tpu.memory_space<vmem>>, vector<64x128xbf16>,
    %c2_110 = arith.constant 2 : index
    %c0_111 = arith.constant 0 : index
    %c0_112 = arith.constant 0 : index
    %166 = vector.load %arg25[%c2_110, %c0_111, %c0_112] : memref<4x512x128xbf16, #tpu.memory_space<vmem>>, vector<1x512x128xbf16>
    %167 = vector.shape_cast %166 : vector<1x512x128xbf16> to vector<512x128xbf16>
    %cst_113 = arith.constant dense<0.000000e+00> : vector<64x128xf32>
    %168 = tpu.matmul %155, %167, %cst_113 {dimension_numbers = #tpu.dot_dimension_numbers<[1], [0], [0], [1], [0, 0, 1, 1], [], []>} : vector<64x512xbf16>, vector<512x128xbf16>, vector<64x128xf32> -> vector<64x128xf32>
    %169 = arith.truncf %168 : vector<64x128xf32> to vector<64x128xbf16>
    %c128 = arith.constant 128 : index
    %c0_114 = arith.constant 0 : index
    %170 = vector.load %arg22[%c128, %c0_114] : memref<256x128xbf16, #tpu.memory_space<vmem>>, vector<64x128xbf16>
    tpu.vector_store %arg22[%c128, %c0_114], %169 {strides = array<i32>} : memref<256x128xbf16, #tpu.memory_space<vmem>>, vector<64x128xbf16>,
    %c3 = arith.constant 3 : index
    %c0_115 = arith.constant 0 : index
    %c0_116 = arith.constant 0 : index
    %171 = vector.load %arg25[%c3, %c0_115, %c0_116] : memref<4x512x128xbf16, #tpu.memory_space<vmem>>, vector<1x512x128xbf16>
    %172 = vector.shape_cast %171 : vector<1x512x128xbf16> to vector<512x128xbf16>
    %cst_117 = arith.constant dense<0.000000e+00> : vector<64x128xf32>
    %173 = tpu.matmul %155, %172, %cst_117 {dimension_numbers = #tpu.dot_dimension_numbers<[1], [0], [0], [1], [0, 0, 1, 1], [], []>} : vector<64x512xbf16>, vector<512x128xbf16>, vector<64x128xf32> -> vector<64x128xf32>
    %174 = arith.truncf %173 : vector<64x128xf32> to vector<64x128xbf16>
    %c192 = arith.constant 192 : index
    %c0_118 = arith.constant 0 : index
    %175 = vector.load %arg22[%c192, %c0_118] : memref<256x128xbf16, #tpu.memory_space<vmem>>, vector<64x128xbf16>
    tpu.vector_store %arg22[%c192, %c0_118], %174 {strides = array<i32>} : memref<256x128xbf16, #tpu.memory_space<vmem>>, vector<64x128xbf16>,
    %c0_119 = arith.constant 0 : index
    %c0_120 = arith.constant 0 : index
    %176 = vector.load %arg16[%c0_119, %c0_120] : memref<56x256xbf16, #tpu.memory_space<vmem>>, vector<56x256xbf16>
    %c0_121 = arith.constant 0 : index
    %c0_122 = arith.constant 0 : index
    %177 = vector.load %arg22[%c0_121, %c0_122] : memref<256x128xbf16, #tpu.memory_space<vmem>>, vector<256x128xbf16>
    %cst_123 = arith.constant dense<0.000000e+00> : vector<56x128xf32>
    %178 = tpu.matmul %176, %177, %cst_123 {dimension_numbers = #tpu.dot_dimension_numbers<[1], [0], [0], [1], [0, 0, 1, 1], [], []>} : vector<56x256xbf16>, vector<256x128xbf16>, vector<56x128xf32> -> vector<56x128xf32>
    %c0_124 = arith.constant 0 : index
    %c0_125 = arith.constant 0 : index
    %179 = vector.load %arg17[%c0_124, %c0_125] : memref<1x128xf32, #tpu.memory_space<vmem>>, vector<1x128xf32>
    %180 = vector.broadcast %179 : vector<1x128xf32> to vector<56x128xf32>
    %181 = arith.addf %178, %180 : vector<56x128xf32>
    %c0_126 = arith.constant 0 : index
    %c0_127 = arith.constant 0 : index
    %182 = vector.load %arg18[%c0_126, %c0_127] : memref<56x128xf32, #tpu.memory_space<vmem>>, vector<56x128xf32>
    tpu.vector_store %arg18[%c0_126, %c0_127], %181 {strides = array<i32>} : memref<56x128xf32, #tpu.memory_space<vmem>>, vector<56x128xf32>,
    return
  }
}

</mosaic_0001>

<bundles_post_ra>
// kernel: generator_forward.1
= control target key start
LH: loop header
LB: loop body
LE: loop exit
PB: predicated region body
PF: predicated region fallthrough
CT: control target
= control target key end

     0   :  { %s16730_s0 = inlined_call_operand.hbm [shape: f32[2,32], index: 0, kind: input, shape index: {}]   ;;  %s16731_s1 = inlined_call_operand.hbm [shape: bf16[32,3584], index: 1, kind: input, shape index: {}]   ;;  %s16732_s2 = inlined_call_operand.hbm [shape: f32[1,3584], index: 2, kind: input, shape index: {}]   ;;  %s16733_s3 = inlined_call_operand.hbm [shape: bf16[3,512,512], index: 3, kind: input, shape index: {}]   ;;  %s16734_s4 = inlined_call_operand.hbm [shape: bf16[32,48], index: 4, kind: input, shape index: {}]   ;;  %s16735_s5 = inlined_call_operand.vmem [shape: f32[512,32], index: 5, kind: input, shape index: {}]   ;;  %s16736_s6 = inlined_call_operand.hbm [shape: f32[32,512], index: 6, kind: input, shape index: {}]   ;;  %s16737_s7 = inlined_call_operand.hbm [shape: f32[1,32], index: 7, kind: input, shape index: {}]   ;;  %s16738_s8 = inlined_call_operand.hbm [shape: f32[1,32], index: 8, kind: input, shape index: {}]   ;;  %s16739_s9 = inlined_call_operand.hbm [shape: bf16[3,512,512], index: 9, kind: input, shape index: {}]   ;;  %s16740_s10 = inlined_call_operand.hbm [shape: bf16[64,96], index: 10, kind: input, shape index: {}]   ;;  %s16741_s11 = inlined_call_operand.vmem [shape: f32[512,16], index: 11, kind: input, shape index: {}]   ;;  %s16742_s12 = inlined_call_operand.hbm [shape: f32[16,512], index: 12, kind: input, shape index: {}]   ;;  %s16743_s13 = inlined_call_operand.hbm [shape: f32[1,16], index: 13, kind: input, shape index: {}]   ;;  %s16744_s14 = inlined_call_operand.hbm [shape: f32[1,16], index: 14, kind: input, shape index: {}]   ;;  %s16745_s15 = inlined_call_operand.hbm [shape: bf16[4,512,128], index: 15, kind: input, shape index: {}]   ;;  %s16746_s16 = inlined_call_operand.hbm [shape: bf16[56,256], index: 16, kind: input, shape index: {}]   ;;  %s16747_s17 = inlined_call_operand.hbm [shape: f32[1,128], index: 17, kind: input, shape index: {}]   ;;  %s16748_s18 = inlined_call_operand.hbm [shape: f32[56,128], index: 18, kind: output, shape index: {}]  }
   0x1   :  { %16764 = sst [smem:[#allocation59_spill]] %s16730_s0 }
   0x2   :  { %16765 = sst [smem:[#allocation60_spill]] %s16731_s1 }
   0x3   :  { %16766 = sst [smem:[#allocation61_spill]] %s16732_s2 }
   0x4   :  { %23 = vsyncpa [#allocation11], 0 }
   0x5   :  { %24 = vsyncpa [#allocation14], 0 }
   0x6   :  { %25 = vsyncpa [#allocation17], 0 }
   0x7   :  { %26 = vsyncpa [#allocation20], 0 }
   0x8   :  { %27 = vsyncpa [#allocation23], 0 }
   0x9   :  { %28 = vsyncpa [#allocation26], 0 }
   0xa   :  { %29 = vsyncpa [#allocation29], 0 }
   0xb   :  { %30 = vsyncpa [#allocation12], 0  ;;  %s15146_s27 = smov [#allocation13]  }
   0xc   :  { %s46_s28 = sshll.u32 %s15146_s27, 4  ;;  %s47_s28 = int_to_ptr.vmem [resolvable:$true] %s46_s28 }
   0xd   :  { %s14792_s29 = scalar_lea.vmem %s47_s28, 7168  ;;  %p14797_p1 = scmp.lt.s32.totalorder %s47_s28, %s47_s28 }
   0xe   :  { %p14793_p0 = scmp.ne.s32.totalorder %s47_s28, %s14792_s29  ;;  %p14798_p2 = scmp.lt.s32.totalorder %s14792_s29, %s14792_s29 }
  0x10   :  { %p14799_p3 = por %p14798_p2, %p14797_p1 }
  0x12   :  { %p14800_p4 = pnand %p14799_p3, %p14793_p0 }
  0x14   :  { %14803 = shalt.err (!%p14800_p4)
}
  0x15   :  { %s15147_s30 = smov 1792   ;;  %s15148_s0 = smov 112  }
  0x16   :  { %s16767_s20 = sld [smem:[#allocation60_spill]]  ;;  %s15149_s21 = smov [#allocation16]  }
  0x17   :  { %s68_s22 = sshll.u32 %s15149_s21, 4  ;;  %s69_s22 = int_to_ptr.vmem [resolvable:$true] %s68_s22 }
  0x18   :  { %s14812_s2 = scalar_lea.vmem %s69_s22, 256  ;;  %p14817_p6 = scmp.lt.s32.totalorder %s69_s22, %s69_s22 }
  0x19   :  { %p14813_p5 = scmp.ne.s32.totalorder %s69_s22, %s14812_s2  ;;  %p14818_p7 = scmp.lt.s32.totalorder %s14812_s2, %s14812_s2 }
  0x1b   :  { %p14819_p8 = por %p14818_p7, %p14817_p6 }
  0x1c   :  { %52 = dma.hbm_to_vmem [thread:$0]  %s16767_s20, 7168, %s47_s28, [#allocation14], %s15147_s30, %s15147_s30, %s15148_s0  }
  0x1d   :  { %p14820_p9 = pnand %p14819_p8, %p14813_p5 }
  0x1f   :  { %14823 = shalt.err (!%p14820_p9)
}
  0x20   :  { %s15150_s23 = smov 64   ;;  %s15151_s24 = smov 4  }
  0x21   :  { %74 = dma.hbm_to_vmem [thread:$0]  %s16734_s4, 256, %s69_s22, [#allocation17], %s15150_s23, %s15150_s23, %s15151_s24  }
  0x22   :  { %s15152_s27 = smov [#allocation19]   ;;  %s15153_s19 = smov [#allocation22]  }
  0x23   :  { %s95_s29 = sshll.u32 %s15152_s27, 4  ;;  %s114_s28 = sshll.u32 %s15153_s19, 4  ;;  %s96_s29 = int_to_ptr.vmem [resolvable:$true] %s95_s29  ;;  %s115_s28 = int_to_ptr.vmem [resolvable:$true] %s114_s28 }
  0x24   :  { %s14832_s30 = scalar_lea.vmem %s96_s29, 16  ;;  %s14836_s0 = scalar_lea.vmem %s96_s29, 32 }
  0x25   :  { %p14833_p10 = scmp.ne.s32.totalorder %s96_s29, %s14832_s30  ;;  %p14837_p11 = scmp.lt.s32.totalorder %s96_s29, %s96_s29 }
  0x26   :  { %p14838_p12 = scmp.lt.s32.totalorder %s14836_s0, %s14832_s30 }
  0x28   :  { %p14839_p13 = por %p14838_p12, %p14837_p11 }
  0x2a   :  { %p14840_p0 = pnand %p14839_p13, %p14833_p10 }
  0x2c   :  { %14843 = shalt.err (!%p14840_p0)
}
  0x2d   :  { %98 = dma.hbm_to_vmem [thread:$0]  %s16737_s7, 16, %s96_s29, [#allocation20]  }
  0x2e   :  { %s14852_s21 = scalar_lea.vmem %s115_s28, 512  ;;  %p14857_p2 = scmp.lt.s32.totalorder %s115_s28, %s115_s28 }
  0x2f   :  { %p14853_p1 = scmp.ne.s32.totalorder %s115_s28, %s14852_s21  ;;  %p14858_p3 = scmp.lt.s32.totalorder %s14852_s21, %s14852_s21 }
  0x31   :  { %p14859_p4 = por %p14858_p3, %p14857_p2 }
  0x33   :  { %p14860_p5 = pnand %p14859_p4, %p14853_p1 }
  0x35   :  { %14863 = shalt.err (!%p14860_p5)
}
  0x36   :  { %120 = dma.hbm_to_vmem [thread:$0]  %s16740_s10, 512, %s115_s28, [#allocation23], %s15150_s23, %s15150_s23, %s15151_s24  }
  0x37   :  { %s15154_s2 = smov [#allocation25]   ;;  %s15155_s26 = smov [#allocation28]  }
  0x38   :  { %s141_s25 = sshll.u32 %s15154_s2, 4  ;;  %s160_s27 = sshll.u32 %s15155_s26, 4  ;;  %s142_s25 = int_to_ptr.vmem [resolvable:$true] %s141_s25  ;;  %s161_s27 = int_to_ptr.vmem [resolvable:$true] %s160_s27 }
  0x39   :  { %s14872_s19 = scalar_lea.vmem %s142_s25, 16  ;;  %s14876_s7 = scalar_lea.vmem %s142_s25, 32 }
  0x3a   :  { %p14873_p6 = scmp.ne.s32.totalorder %s142_s25, %s14872_s19  ;;  %p14877_p7 = scmp.lt.s32.totalorder %s142_s25, %s142_s25 }
  0x3b   :  { %p14878_p8 = scmp.lt.s32.totalorder %s14876_s7, %s14872_s19 }
  0x3d   :  { %p14879_p9 = por %p14878_p8, %p14877_p7 }
  0x3f   :  { %p14880_p10 = pnand %p14879_p9, %p14873_p6 }
  0x41   :  { %14883 = shalt.err (!%p14880_p10)
}
  0x42   :  { %144 = dma.hbm_to_vmem [thread:$0]  %s16743_s13, 16, %s142_s25, [#allocation26]  }
  0x43   :  { %s14892_s0 = scalar_lea.vmem %s161_s27, 896  ;;  %p14897_p12 = scmp.lt.s32.totalorder %s161_s27, %s161_s27 }
  0x44   :  { %p14893_p11 = scmp.ne.s32.totalorder %s161_s27, %s14892_s0  ;;  %p14898_p13 = scmp.lt.s32.totalorder %s14892_s0, %s14892_s0 }
  0x46   :  { %p14899_p0 = por %p14898_p13, %p14897_p12 }
  0x48   :  { %p14900_p1 = pnand %p14899_p0, %p14893_p11 }
  0x4a   :  { %14903 = shalt.err (!%p14900_p1)
}
  0x4b   :  { %s15156_s10 = smov 128   ;;  %s15157_s23 = smov 8  }
  0x4c   :  { %166 = dma.hbm_to_vmem [thread:$0]  %s16746_s16, 896, %s161_s27, [#allocation29], %s15156_s10, %s15156_s10, %s15157_s23  }
  0x4d   :  { %s15158_s1 = smov [#allocation10]   ;;  %s15159_s21 = smov [#allocation15]  }
  0x4e   :  { %s37_s20 = sshll.u32 %s15158_s1, 4  ;;  %s59_s13 = sshll.u32 %s15159_s21, 4  ;;  %s38_s20 = int_to_ptr.vmem [resolvable:$true] %s37_s20  ;;  %s60_s13 = int_to_ptr.vmem [resolvable:$true] %s59_s13 }
  0x4f   :  { %s14912_s4 = scalar_lea.vmem %s38_s20, 32  ;;  %p14917_p3 = scmp.lt.s32.totalorder %s38_s20, %s38_s20 }
  0x50   :  { %p14913_p2 = scmp.ne.s32.totalorder %s38_s20, %s14912_s4  ;;  %p14918_p4 = scmp.lt.s32.totalorder %s14912_s4, %s14912_s4 }
  0x52   :  { %p14919_p5 = por %p14918_p4, %p14917_p3 }
  0x54   :  { %p14920_p6 = pnand %p14919_p5, %p14913_p2 }
  0x56   :  { %14923 = shalt.err (!%p14920_p6)
}
  0x57   :  { %s16768_s25 = sld [smem:[#allocation59_spill]]  ;;  %s14932_s26 = scalar_lea.vmem %s60_s13, 448 }
  0x58   :  { %p14933_p7 = scmp.ne.s32.totalorder %s60_s13, %s14932_s26  ;;  %p14937_p8 = scmp.lt.s32.totalorder %s60_s13, %s60_s13 }
  0x59   :  { %p14938_p9 = scmp.lt.s32.totalorder %s14932_s26, %s14932_s26 }
  0x5b   :  { %p14939_p10 = por %p14938_p9, %p14937_p8 }
  0x5d   :  { %40 = dma.hbm_to_vmem [thread:$0]  %s16768_s25, 32, %s38_s20, [#allocation11]  }
  0x5e   :  { %p14940_p11 = pnand %p14939_p10, %p14933_p7 }
  0x60   :  { %14943 = shalt.err (!%p14940_p11)
}
  0x61   :  { %s16769_s19 = sld [smem:[#allocation61_spill]]  ;;  %s15160_s7 = smov [#allocation18]  }
  0x62   :  { %s82_s29 = sshll.u32 %s15160_s7, 4  ;;  %s83_s29 = int_to_ptr.vmem [resolvable:$true] %s82_s29 }
  0x63   :  { %s14952_s30 = scalar_lea.vmem %s83_s29, 2048  ;;  %p14957_p13 = scmp.lt.s32.totalorder %s83_s29, %s83_s29 }
  0x64   :  { %p14953_p12 = scmp.ne.s32.totalorder %s83_s29, %s14952_s30  ;;  %p14958_p0 = scmp.lt.s32.totalorder %s14952_s30, %s14952_s30 }
  0x66   :  { %p14959_p1 = por %p14958_p0, %p14957_p13 }
  0x67   :  { %62 = dma.hbm_to_vmem [thread:$0]  %s16769_s19, 448, %s60_s13, [#allocation14]  }
  0x68   :  { %p14960_p2 = pnand %p14959_p1, %p14953_p12 }
  0x6a   :  { %14963 = shalt.err (!%p14960_p2)
}
  0x6b   :  { %s15161_s0 = smov 512   ;;  %s15162_s24 = smov 32  }
  0x6c   :  { %88 = dma.hbm_to_vmem [thread:$0]  %s16736_s6, 2048, %s83_s29, [#allocation17], %s15161_s0, %s15161_s0, %s15162_s24  }
  0x6d   :  { %s15163_s20 = smov [#allocation21]   ;;  %s15164_s13 = smov [#allocation24]  }
  0x6e   :  { %s105_s21 = sshll.u32 %s15163_s20, 4  ;;  %s128_s4 = sshll.u32 %s15164_s13, 4  ;;  %s106_s21 = int_to_ptr.vmem [resolvable:$true] %s105_s21  ;;  %s129_s4 = int_to_ptr.vmem [resolvable:$true] %s128_s4 }
  0x6f   :  { %s14972_s22 = scalar_lea.vmem %s106_s21, 16  ;;  %s14976_s2 = scalar_lea.vmem %s106_s21, 32 }
  0x70   :  { %p14973_p3 = scmp.ne.s32.totalorder %s106_s21, %s14972_s22  ;;  %p14977_p4 = scmp.lt.s32.totalorder %s106_s21, %s106_s21 }
  0x71   :  { %p14978_p5 = scmp.lt.s32.totalorder %s14976_s2, %s14972_s22 }
  0x73   :  { %p14979_p6 = por %p14978_p5, %p14977_p4 }
  0x75   :  { %p14980_p7 = pnand %p14979_p6, %p14973_p3 }
  0x77   :  { %14983 = shalt.err (!%p14980_p7)
}
  0x78   :  { %108 = dma.hbm_to_vmem [thread:$0]  %s16738_s8, 16, %s106_s21, [#allocation20]  }
  0x79   :  { %s14992_s16 = scalar_lea.vmem %s129_s4, 1024  ;;  %p14997_p9 = scmp.lt.s32.totalorder %s129_s4, %s129_s4 }
  0x7a   :  { %p14993_p8 = scmp.ne.s32.totalorder %s129_s4, %s14992_s16  ;;  %p14998_p10 = scmp.lt.s32.totalorder %s14992_s16, %s14992_s16 }
  0x7c   :  { %p14999_p11 = por %p14998_p10, %p14997_p9 }
  0x7e   :  { %p15000_p12 = pnand %p14999_p11, %p14993_p8 }
  0x80   :  { %15003 = shalt.err (!%p15000_p12)
}
  0x81   :  { %134 = dma.hbm_to_vmem [thread:$0]  %s16742_s12, 1024, %s129_s4, [#allocation23], %s15161_s0, %s15161_s0, %s15162_s24  }
  0x82   :  { %s15165_s19 = smov [#allocation27]   ;;  %s15166_s29 = smov [#allocation30]  }
  0x83   :  { %s151_s7 = sshll.u32 %s15165_s19, 4  ;;  %s173_s30 = sshll.u32 %s15166_s29, 4  ;;  %s152_s7 = int_to_ptr.vmem [resolvable:$true] %s151_s7  ;;  %s174_s30 = int_to_ptr.vmem [resolvable:$true] %s173_s30 }
  0x84   :  { %s15012_s28 = scalar_lea.vmem %s152_s7, 16  ;;  %s15016_s8 = scalar_lea.vmem %s152_s7, 32 }
  0x85   :  { %p15013_p13 = scmp.ne.s32.totalorder %s152_s7, %s15012_s28  ;;  %p15017_p0 = scmp.lt.s32.totalorder %s152_s7, %s152_s7 }
  0x86   :  { %p15018_p1 = scmp.lt.s32.totalorder %s15016_s8, %s15012_s28 }
  0x88   :  { %p15019_p2 = por %p15018_p1, %p15017_p0 }
  0x8a   :  { %p15020_p3 = pnand %p15019_p2, %p15013_p13 }
  0x8c   :  { %15023 = shalt.err (!%p15020_p3)
}
  0x8d   :  { %154 = dma.hbm_to_vmem [thread:$0]  %s16744_s14, 16, %s152_s7, [#allocation26]  }
  0x8e   :  { %s15032_s21 = scalar_lea.vmem %s174_s30, 16  ;;  %s15036_s12 = scalar_lea.vmem %s174_s30, 32 }
  0x8f   :  { %p15033_p4 = scmp.ne.s32.totalorder %s174_s30, %s15032_s21  ;;  %p15037_p5 = scmp.lt.s32.totalorder %s174_s30, %s174_s30 }
  0x90   :  { %p15038_p6 = scmp.lt.s32.totalorder %s15036_s12, %s15032_s21 }
  0x92   :  { %p15039_p7 = por %p15038_p6, %p15037_p5 }
  0x94   :  { %p15040_p8 = pnand %p15039_p7, %p15033_p4 }
  0x96   :  { %15043 = shalt.err (!%p15040_p8)
}
  0x97   :  { %176 = dma.hbm_to_vmem [thread:$0]  %s16747_s17, 16, %s174_s30, [#allocation29]  }
  0x98   :  { %15124 = dma.done.wait [#allocation11], 32  }
  0x99   :  { %15125 = vsyncadd [#allocation11], 4294967264 }
  0x9a   :  { %15126 = dma.done.wait [#allocation14], 7616  }
  0x9b   :  { %15127 = vsyncadd [#allocation14], 4294959680 }
  0x9c   :  { %15128 = dma.done.wait [#allocation17], 2304  }
  0x9d   :  { %15129 = vsyncadd [#allocation17], 4294964992 }
  0x9e   :  { %15130 = dma.done.wait [#allocation20], 32  }
  0x9f   :  { %15131 = vsyncadd [#allocation20], 4294967264 }
  0xa0   :  { %15132 = dma.done.wait [#allocation23], 1536  }
  0xa1   :  { %15133 = vsyncadd [#allocation23], 4294965760 }
  0xa2   :  { %15134 = dma.done.wait [#allocation26], 32  }
  0xa3   :  { %15135 = vsyncadd [#allocation26], 4294967264 }
  0xa4   :  { %15136 = dma.done.wait [#allocation29], 912  }
  0xa5   :  { %15137 = vsyncadd [#allocation29], 4294966384  ;;  %v16751_v0 = vmov 0   ;;  %v13373_v1 = vld [vmem:[#allocation13 + $0xe4] ss:$112 sps:$4 sm:$0xff]   ;;  %vm738_vm0 = vcmask 261120  }
  0xa6   :  { %774 = vmatprep.mubr.bf16.mxu0 %v16751_v0  ;;  %1536 = vst [vmem:[#allocation2 + $0x18] sm:$0x88] %v16751_v0  ;;  %1537 = vst [vmem:[#allocation2 + $0x8] sm:$0x88] %v16751_v0  ;;  %815 = vmatprep.mubr.bf16.mxu1 %v16751_v0  ;;  %v13375_v2 = vld [vmem:[#allocation13 + $0xec] ss:$112 sps:$4 sm:$0xff]  }
  0xa7   :  { %754 = vmatprep.subr.bf16.mxu0 %v13373_v1  ;;  %v13377_v3 = vld [vmem:[#allocation13 + $0xe0] ss:$112 sps:$4 sm:$0xff]   ;;  %v13378_v4 = vld [vmem:[#allocation13 + $0xe8] ss:$112 sps:$4 sm:$0xff]   ;;  %795 = vmatprep.subr.bf16.mxu1 %v13375_v2  ;;  %v13379_v5 = vld [vmem:[#allocation13 + $0x4] ss:$112 sps:$4 sm:$0xff]  }
  0xa8   :  { %755 = vmatpush1.bf16.msra.mxu0 %v13377_v3  ;;  %796 = vmatpush1.bf16.msra.mxu1 %v13378_v4  ;;  %v13381_v6 = vld [vmem:[#allocation13 + $0xc] ss:$112 sps:$4 sm:$0xff]   ;;  %v13383_v7 = vld [vmem:[#allocation13] ss:$112 sps:$4 sm:$0xff]   ;;  %v13384_v8 = vld [vmem:[#allocation13 + $0x8] ss:$112 sps:$4 sm:$0xff]  }
  0xa9   :  { %756 = vmatprep.subr.bf16.mxu0 %v13379_v5  ;;  %v252_v9 = vld [vmem:[#allocation10] sm:$0x3]  ;;  %797 = vmatprep.subr.bf16.mxu1 %v13381_v6  ;;  %v13385_v10 = vld [vmem:[#allocation13 + $0xf0] ss:$112 sps:$4 sm:$0xff]   ;;  %v13387_v11 = vld [vmem:[#allocation13 + $0xf4] ss:$112 sps:$4 sm:$0xff]  }
  0xaa   :  { %v15315_v12 = vpack.c.bf16 %v252_v9, %v252_v9  ;;  %v13388_v13 = vld [vmem:[#allocation13 + $0xf8] ss:$112 sps:$4 sm:$0xff]   ;;  %v13390_v14 = vld [vmem:[#allocation13 + $0xfc] ss:$112 sps:$4 sm:$0xff]   ;;  %v13393_v15 = vld [vmem:[#allocation13 + $0x14] ss:$112 sps:$4 sm:$0xff]  }
  0xab   :  { %v13396_v16 = vld [vmem:[#allocation13 + $0x1c] ss:$112 sps:$4 sm:$0xff]   ;;  %v13391_v17 = vld [vmem:[#allocation13 + $0x10] ss:$112 sps:$4 sm:$0xff]   ;;  %v13394_v18 = vld [vmem:[#allocation13 + $0x18] ss:$112 sps:$4 sm:$0xff]  }
  0xac   :  { %757 = vmatpush1.bf16.msra.mxu0 %v13383_v7  ;;  %798 = vmatpush1.bf16.msra.mxu1 %v13384_v8  ;;  %v13399_v19 = vld [vmem:[#allocation13 + $0x104] ss:$112 sps:$4 sm:$0xff]   ;;  %v13402_v20 = vld [vmem:[#allocation13 + $0x10c] ss:$112 sps:$4 sm:$0xff]   ;;  %v13397_v21 = vld [vmem:[#allocation13 + $0x100] ss:$112 sps:$4 sm:$0xff]  }
  0xad   :  { %836 = vmatprep.subr.bf16.mxu0 %v13387_v11  ;;  %877 = vmatprep.subr.bf16.mxu1 %v13390_v14  ;;  %v13400_v22 = vld [vmem:[#allocation13 + $0x108] ss:$112 sps:$4 sm:$0xff]   ;;  %v13405_v23 = vld [vmem:[#allocation13 + $0x24] ss:$112 sps:$4 sm:$0xff]   ;;  %v13408_v24 = vld [vmem:[#allocation13 + $0x2c] ss:$112 sps:$4 sm:$0xff]  }
  0xae   :  { %v13403_v25 = vld [vmem:[#allocation13 + $0x20] ss:$112 sps:$4 sm:$0xff]   ;;  %v13406_v26 = vld [vmem:[#allocation13 + $0x28] ss:$112 sps:$4 sm:$0xff]   ;;  %v13411_v27 = vld [vmem:[#allocation13 + $0x114] ss:$112 sps:$4 sm:$0xff]  }
  0xaf   :  { %11534 = vmatmul.mubr.msk.bf16.vlgmr.msra.gmra.mxu0 %vm738_vm0, %v15315_v12  ;;  %11535 = vmatmul.mubr.msk.bf16.vlgmr.msra.gmra.mxu1 %vm738_vm0, %v15315_v12  ;;  %v13414_v28 = vld [vmem:[#allocation13 + $0x11c] ss:$112 sps:$4 sm:$0xff]   ;;  %v13409_v29 = vld [vmem:[#allocation13 + $0x110] ss:$112 sps:$4 sm:$0xff]   ;;  %v13412_v30 = vld [vmem:[#allocation13 + $0x118] ss:$112 sps:$4 sm:$0xff]  }
  0xb0   :  { %837 = vmatpush1.bf16.msra.mxu0 %v13385_v10  ;;  %878 = vmatpush1.bf16.msra.mxu1 %v13388_v13  ;;  %v13417_v31 = vld [vmem:[#allocation13 + $0x34] ss:$112 sps:$4 sm:$0xff]   ;;  %v13420_v32 = vld [vmem:[#allocation13 + $0x3c] ss:$112 sps:$4 sm:$0xff]   ;;  %v13415_v33 = vld [vmem:[#allocation13 + $0x30] ss:$112 sps:$4 sm:$0xff]  }
  0xb1   :  { %838 = vmatprep.subr.bf16.mxu0 %v13393_v15  ;;  %879 = vmatprep.subr.bf16.mxu1 %v13396_v16  ;;  %v13418_v34 = vld [vmem:[#allocation13 + $0x38] ss:$112 sps:$4 sm:$0xff]   ;;  %v13423_v35 = vld [vmem:[#allocation13 + $0x124] ss:$112 sps:$4 sm:$0xff]   ;;  %v13426_v36 = vld [vmem:[#allocation13 + $0x12c] ss:$112 sps:$4 sm:$0xff]  }
  0xb2   :  { %856 = vmatprep.mubr.bf16.mxu0 %v16751_v0  ;;  %897 = vmatprep.mubr.bf16.mxu1 %v16751_v0  ;;  %v13421_v37 = vld [vmem:[#allocation13 + $0x120] ss:$112 sps:$4 sm:$0xff]   ;;  %v13424_v38 = vld [vmem:[#allocation13 + $0x128] ss:$112 sps:$4 sm:$0xff]   ;;  %v13429_v39 = vld [vmem:[#allocation13 + $0x44] ss:$112 sps:$4 sm:$0xff]  }
  0xb3   :  { %v13432_v40 = vld [vmem:[#allocation13 + $0x4c] ss:$112 sps:$4 sm:$0xff]   ;;  %v13427_v41 = vld [vmem:[#allocation13 + $0x40] ss:$112 sps:$4 sm:$0xff]   ;;  %v13430_v42 = vld [vmem:[#allocation13 + $0x48] ss:$112 sps:$4 sm:$0xff]  }
  0xb4   :  { %839 = vmatpush1.bf16.msra.mxu0 %v13391_v17  ;;  %880 = vmatpush1.bf16.msra.mxu1 %v13394_v18  ;;  %v13435_v43 = vld [vmem:[#allocation13 + $0x134] ss:$112 sps:$4 sm:$0xff]   ;;  %v13438_v44 = vld [vmem:[#allocation13 + $0x13c] ss:$112 sps:$4 sm:$0xff]   ;;  %v13433_v45 = vld [vmem:[#allocation13 + $0x130] ss:$112 sps:$4 sm:$0xff]  }
  0xb5   :  { %918 = vmatprep.subr.bf16.mxu0 %v13399_v19  ;;  %959 = vmatprep.subr.bf16.mxu1 %v13402_v20  ;;  %v13436_v46 = vld [vmem:[#allocation13 + $0x138] ss:$112 sps:$4 sm:$0xff]   ;;  %v13441_v47 = vld [vmem:[#allocation13 + $0x54] ss:$112 sps:$4 sm:$0xff]   ;;  %v13444_v48 = vld [vmem:[#allocation13 + $0x5c] ss:$112 sps:$4 sm:$0xff]  }
  0xb6   :  { %v13439_v49 = vld [vmem:[#allocation13 + $0x50] ss:$112 sps:$4 sm:$0xff]   ;;  %v13442_v50 = vld [vmem:[#allocation13 + $0x58] ss:$112 sps:$4 sm:$0xff]   ;;  %v13447_v51 = vld [vmem:[#allocation13 + $0x144] ss:$112 sps:$4 sm:$0xff]  }
  0xb7   :  { %11536 = vmatmul.mubr.msk.bf16.vlgmr.msra.gmra.mxu0 %vm738_vm0, %v15315_v12  ;;  %11537 = vmatmul.mubr.msk.bf16.vlgmr.msra.gmra.mxu1 %vm738_vm0, %v15315_v12  ;;  %v13450_v52 = vld [vmem:[#allocation13 + $0x14c] ss:$112 sps:$4 sm:$0xff]   ;;  %v13445_v53 = vld [vmem:[#allocation13 + $0x140] ss:$112 sps:$4 sm:$0xff]   ;;  %v13448_v54 = vld [vmem:[#allocation13 + $0x148] ss:$112 sps:$4 sm:$0xff]  }
  0xb8   :  { %919 = vmatpush1.bf16.msra.mxu0 %v13397_v21  ;;  %960 = vmatpush1.bf16.msra.mxu1 %v13400_v22  ;;  %v13453_v55 = vld [vmem:[#allocation13 + $0x64] ss:$112 sps:$4 sm:$0xff]   ;;  %v13456_v56 = vld [vmem:[#allocation13 + $0x6c] ss:$112 sps:$4 sm:$0xff]   ;;  %v13451_v57 = vld [vmem:[#allocation13 + $0x60] ss:$112 sps:$4 sm:$0xff]  }
  0xb9   :  { %920 = vmatprep.subr.bf16.mxu0 %v13405_v23  ;;  %961 = vmatprep.subr.bf16.mxu1 %v13408_v24  ;;  %v13454_v58 = vld [vmem:[#allocation13 + $0x68] ss:$112 sps:$4 sm:$0xff]   ;;  %s15168_s14 = smov [#allocation6]   ;;  %s15169_s13 = smov [#allocation7]  }
  0xba   :  { %938 = vmatprep.mubr.bf16.mxu0 %v16751_v0  ;;  %979 = vmatprep.mubr.bf16.mxu1 %v16751_v0  ;;  %s224_s17 = sshll.u32 %s15168_s14, 4  ;;  %s236_s4 = sshll.u32 %s15169_s13, 4  ;;  %s225_s17 = int_to_ptr.vmem [resolvable:$true] %s224_s17  ;;  %s237_s4 = int_to_ptr.vmem [resolvable:$true] %s236_s4 }
  0xbb   :  { %s15052_s22 = scalar_lea.vmem %s225_s17, 49152  ;;  %p15057_p10 = scmp.lt.s32.totalorder %s225_s17, %s225_s17 }
  0xbc   :  { %921 = vmatpush1.bf16.msra.mxu0 %v13403_v25  ;;  %962 = vmatpush1.bf16.msra.mxu1 %v13406_v26  ;;  %p15053_p9 = scmp.ne.s32.totalorder %s225_s17, %s15052_s22  ;;  %p15058_p11 = scmp.lt.s32.totalorder %s15052_s22, %s15052_s22 }
  0xbd   :  { %1000 = vmatprep.subr.bf16.mxu0 %v13411_v27  ;;  %1041 = vmatprep.subr.bf16.mxu1 %v13414_v28 }
  0xbe   :  { %p15059_p12 = por %p15058_p11, %p15057_p10 }
  0xbf   :  { %11538 = vmatmul.mubr.msk.bf16.vlgmr.msra.gmra.mxu0 %vm738_vm0, %v15315_v12  ;;  %11539 = vmatmul.mubr.msk.bf16.vlgmr.msra.gmra.mxu1 %vm738_vm0, %v15315_v12 }
  0xc0   :  { %1001 = vmatpush1.bf16.msra.mxu0 %v13409_v29  ;;  %1042 = vmatpush1.bf16.msra.mxu1 %v13412_v30  ;;  %p15060_p13 = pnand %p15059_p12, %p15053_p9 }
  0xc1   :  { %1002 = vmatprep.subr.bf16.mxu0 %v13417_v31  ;;  %1043 = vmatprep.subr.bf16.mxu1 %v13420_v32 }
  0xc2   :  { %1020 = vmatprep.mubr.bf16.mxu0 %v16751_v0  ;;  %1061 = vmatprep.mubr.bf16.mxu1 %v16751_v0 }
  0xc4   :  { %1003 = vmatpush1.bf16.msra.mxu0 %v13415_v33  ;;  %1044 = vmatpush1.bf16.msra.mxu1 %v13418_v34 }
  0xc5   :  { %1082 = vmatprep.subr.bf16.mxu0 %v13423_v35  ;;  %1123 = vmatprep.subr.bf16.mxu1 %v13426_v36 }
  0xc7   :  { %11540 = vmatmul.mubr.msk.bf16.vlgmr.msra.gmra.mxu0 %vm738_vm0, %v15315_v12  ;;  %11541 = vmatmul.mubr.msk.bf16.vlgmr.msra.gmra.mxu1 %vm738_vm0, %v15315_v12 }
  0xc8   :  { %1083 = vmatpush1.bf16.msra.mxu0 %v13421_v37  ;;  %1124 = vmatpush1.bf16.msra.mxu1 %v13424_v38 }
  0xc9   :  { %1084 = vmatprep.subr.bf16.mxu0 %v13429_v39  ;;  %1125 = vmatprep.subr.bf16.mxu1 %v13432_v40 }
  0xca   :  { %1102 = vmatprep.mubr.bf16.mxu0 %v16751_v0  ;;  %1143 = vmatprep.mubr.bf16.mxu1 %v16751_v0 }
  0xcc   :  { %1085 = vmatpush1.bf16.msra.mxu0 %v13427_v41  ;;  %1126 = vmatpush1.bf16.msra.mxu1 %v13430_v42 }
  0xcd   :  { %1164 = vmatprep.subr.bf16.mxu0 %v13435_v43  ;;  %1205 = vmatprep.subr.bf16.mxu1 %v13438_v44 }
  0xcf   :  { %11542 = vmatmul.mubr.msk.bf16.vlgmr.msra.gmra.mxu0 %vm738_vm0, %v15315_v12  ;;  %11543 = vmatmul.mubr.msk.bf16.vlgmr.msra.gmra.mxu1 %vm738_vm0, %v15315_v12 }
  0xd0   :  { %1165 = vmatpush1.bf16.msra.mxu0 %v13433_v45  ;;  %1206 = vmatpush1.bf16.msra.mxu1 %v13436_v46 }
  0xd1   :  { %1166 = vmatprep.subr.bf16.mxu0 %v13441_v47  ;;  %1207 = vmatprep.subr.bf16.mxu1 %v13444_v48 }
  0xd2   :  { %1184 = vmatprep.mubr.bf16.mxu0 %v16751_v0  ;;  %1225 = vmatprep.mubr.bf16.mxu1 %v16751_v0 }
  0xd4   :  { %1167 = vmatpush1.bf16.msra.mxu0 %v13439_v49  ;;  %1208 = vmatpush1.bf16.msra.mxu1 %v13442_v50 }
  0xd5   :  { %1246 = vmatprep.subr.bf16.mxu0 %v13447_v51  ;;  %1287 = vmatprep.subr.bf16.mxu1 %v13450_v52 }
  0xd7   :  { %11544 = vmatmul.mubr.msk.bf16.vlgmr.msra.gmra.mxu0 %vm738_vm0, %v15315_v12  ;;  %11545 = vmatmul.mubr.msk.bf16.vlgmr.msra.gmra.mxu1 %vm738_vm0, %v15315_v12 }
  0xd8   :  { %1247 = vmatpush1.bf16.msra.mxu0 %v13445_v53  ;;  %1288 = vmatpush1.bf16.msra.mxu1 %v13448_v54 }
  0xd9   :  { %1248 = vmatprep.subr.bf16.mxu0 %v13453_v55  ;;  %1289 = vmatprep.subr.bf16.mxu1 %v13456_v56 }
  0xda   :  { %1266 = vmatprep.mubr.bf16.mxu0 %v16751_v0  ;;  %1307 = vmatprep.mubr.bf16.mxu1 %v16751_v0 }
  0xdc   :  { %1249 = vmatpush1.bf16.msra.mxu0 %v13451_v57  ;;  %1290 = vmatpush1.bf16.msra.mxu1 %v13454_v58 }
  0xdf   :  { %11546 = vmatmul.mubr.msk.bf16.vlgmr.msra.gmra.mxu0 %vm738_vm0, %v15315_v12  ;;  %11547 = vmatmul.mubr.msk.bf16.vlgmr.msra.gmra.mxu1 %vm738_vm0, %v15315_v12 }
  0xe0   :  { %15063 = shalt.err (!%p15060_p13)  }
  0xe1   :  { %227 = dma.hbm_to_vmem [thread:$0]  %s16733_s3, 49152, %s225_s17, [#allocation9] }
  0xe2   :  { %s15072_s26 = scalar_lea.vmem %s237_s4, 49152  ;;  %p15077_p1 = scmp.lt.s32.totalorder %s237_s4, %s237_s4 }
  0xe3   :  { %p15073_p0 = scmp.ne.s32.totalorder %s237_s4, %s15072_s26  ;;  %p15078_p2 = scmp.lt.s32.totalorder %s15072_s26, %s15072_s26 }
  0xe5   :  { %p15079_p3 = por %p15078_p2, %p15077_p1 }
  0xe7   :  { %p15080_p4 = pnand %p15079_p3, %p15073_p0 }
  0xe9   :  { %15083 = shalt.err (!%p15080_p4)  }
  0xea   :  { %239 = dma.hbm_to_vmem [thread:$0]  %s16739_s9, 49152, %s237_s4, [#allocation9 + $0x1] }
  0xeb   :  { %s15170_s27 = smov [#allocation8]  }
  0xec   :  { %s248_s19 = sshll.u32 %s15170_s27, 4  ;;  %s249_s19 = int_to_ptr.vmem [resolvable:$true] %s248_s19 }
  0xed   :  { %s15092_s7 = scalar_lea.vmem %s249_s19, 16384  ;;  %p15097_p6 = scmp.lt.s32.totalorder %s249_s19, %s249_s19 }
  0xee   :  { %p15093_p5 = scmp.ne.s32.totalorder %s249_s19, %s15092_s7  ;;  %p15098_p7 = scmp.lt.s32.totalorder %s15092_s7, %s15092_s7 }
  0xf0   :  { %p15099_p8 = por %p15098_p7, %p15097_p6 }
  0xf2   :  { %p15100_p9 = pnand %p15099_p8, %p15093_p5 }
  0xf4   :  { %15103 = shalt.err (!%p15100_p9)  }
  0xf5   :  { %251 = dma.hbm_to_vmem [thread:$0]  %s16745_s15, 16384, %s249_s19, [#allocation9 + $0x2]  ;;  %v318_v59 = vlaneseq  ;;  %v310_v63 = vld [vmem:[#allocation15] sm:$0xff]  ;;  %v15400_v43 = vld [vmem:[#allocation15 + $0x8] sm:$0xff] }
  0xf7   :  { %v15366_v60 = vshrl.u32 %v318_v59, 7 }
  0xf9   :  { %v15369_v61 = vsub.s32 0, %v15366_v60  ;;  %v15372_v62 = vsub.s32 2, %v15366_v60  ;;  %v15375_v1 = vsub.s32 1, %v15366_v60  ;;  %v15378_v2 = vsub.s32 3, %v15366_v60 }
  0xfa   :  { %v15385_v11 = vsub.s32 4, %v15366_v60  ;;  %v15388_v12 = vsub.s32 6, %v15366_v60  ;;  %v15391_v15 = vsub.s32 5, %v15366_v60  ;;  %v15394_v16 = vsub.s32 7, %v15366_v60 }
  0xfb   :  { %16770 = vst [vmem:[#allocation51_spill] sm:$0xff] %v15369_v61  ;;  %16771 = vst [vmem:[#allocation52_spill] sm:$0xff] %v15375_v1  ;;  %v321_v3 = vrot.slane %v310_v63, %v15369_v61  ;;  %v329_v4 = vrot.slane %v310_v63, %v15372_v62  ;;  %v325_v7 = vrot.slane %v310_v63, %v15375_v1 }
  0xfc   :  { %v333_v8 = vrot.slane %v310_v63, %v15378_v2  ;;  %v337_v23 = vrot.slane %v310_v63, %v15385_v11  ;;  %v345_v24 = vrot.slane %v310_v63, %v15388_v12  ;;  %v341_v29 = vrot.slane %v310_v63, %v15391_v15 }
  0xfd   :  { %v349_v30 = vrot.slane %v310_v63, %v15394_v16  ;;  %v353_v50 = vrot.slane %v15400_v43, %v15369_v61  ;;  %v361_v51 = vrot.slane %v15400_v43, %v15372_v62  ;;  %v357_v56 = vrot.slane %v15400_v43, %v15375_v1 }
  0xfe   :  { %v365_v57 = vrot.slane %v15400_v43, %v15378_v2 }
 0x16f   :  { %v776_v5 = vpop.f32.mrf.mxu0  ;;  %v817_v6 = vpop.f32.mrf.mxu1 }
 0x170   :  { %v777_v9 = vadd.f32 %v776_v5, %v321_v3  ;;  %v818_v10 = vadd.f32 %v817_v6, %v329_v4 }
 0x171   :  { %v778_v13 = vpop.f32.mrf.mxu0  ;;  %v819_v14 = vpop.f32.mrf.mxu1 }
 0x172   :  { %v1344_v17 = vmul.f32 0.1, %v777_v9  ;;  %v1346_v18 = vmul.f32 0.1, %v818_v10  ;;  %v779_v19 = vadd.f32 %v778_v13, %v325_v7  ;;  %v820_v20 = vadd.f32 %v819_v14, %v333_v8 }
 0x173   :  { %v780_v21 = vpop.f32.mrf.mxu0  ;;  %v821_v22 = vpop.f32.mrf.mxu1  ;;  %vm1316_vm1 = vcmp.ge.f32.partialorder %v777_v9, 0.0  ;;  %vm1318_vm2 = vcmp.ge.f32.partialorder %v818_v10, 0.0 }
 0x174   :  { %vm1317_vm3 = vcmp.ge.f32.partialorder %v779_v19, 0.0  ;;  %v1345_v25 = vmul.f32 0.1, %v779_v19  ;;  %vm1319_vm4 = vcmp.ge.f32.partialorder %v820_v20, 0.0  ;;  %v1347_v26 = vmul.f32 0.1, %v820_v20 }
 0x175   :  { %v781_v27 = vpop.f32.mrf.mxu0  ;;  %v822_v28 = vpop.f32.mrf.mxu1  ;;  %v1372_v31 = vsel %vm1316_vm1, %v777_v9, %v1344_v17  ;;  %v1374_v32 = vsel %vm1318_vm2, %v818_v10, %v1346_v18 }
 0x176   :  { %v1373_v33 = vsel %vm1317_vm3, %v779_v19, %v1345_v25  ;;  %v1375_v34 = vsel %vm1319_vm4, %v820_v20, %v1347_v26  ;;  %v377_v25 = vrot.slane %v15400_v43, %v15388_v12 }
 0x177   :  { %v858_v35 = vpop.f32.mrf.mxu0  ;;  %v899_v36 = vpop.f32.mrf.mxu1  ;;  %v12616_v37 = vpack.c.bf16 %v1373_v33, %v1372_v31  ;;  %v12617_v38 = vpack.c.bf16 %v1375_v34, %v1374_v32 }
 0x178   :  { %v859_v39 = vadd.f32 %v858_v35, %v337_v23  ;;  %v900_v40 = vadd.f32 %v899_v36, %v345_v24  ;;  %v369_v24 = vrot.slane %v15400_v43, %v15385_v11  ;;  %v381_v36 = vrot.slane %v15400_v43, %v15394_v16 }
 0x179   :  { %v860_v41 = vpop.f32.mrf.mxu0  ;;  %v901_v42 = vpop.f32.mrf.mxu1  ;;  %1440 = vst [vmem:[#allocation2 + $0x10] sm:$0x11] %v12616_v37  ;;  %1441 = vst [vmem:[#allocation2] sm:$0x11] %v12617_v38 }
 0x17a   :  { %v1348_v44 = vmul.f32 0.1, %v859_v39  ;;  %v1350_v45 = vmul.f32 0.1, %v900_v40  ;;  %v861_v46 = vadd.f32 %v860_v41, %v341_v29  ;;  %v902_v47 = vadd.f32 %v901_v42, %v349_v30 }
 0x17b   :  { %v862_v48 = vpop.f32.mrf.mxu0  ;;  %v903_v49 = vpop.f32.mrf.mxu1  ;;  %vm1320_vm5 = vcmp.ge.f32.partialorder %v859_v39, 0.0  ;;  %vm1322_vm6 = vcmp.ge.f32.partialorder %v900_v40, 0.0  ;;  %v373_v30 = vrot.slane %v15400_v43, %v15391_v15 }
 0x17c   :  { %vm1321_vm7 = vcmp.ge.f32.partialorder %v861_v46, 0.0  ;;  %v1349_v52 = vmul.f32 0.1, %v861_v46  ;;  %vm1323_vm8 = vcmp.ge.f32.partialorder %v902_v47, 0.0  ;;  %v1351_v53 = vmul.f32 0.1, %v902_v47 }
 0x17d   :  { %v863_v54 = vpop.f32.mrf.mxu0  ;;  %v904_v55 = vpop.f32.mrf.mxu1  ;;  %v1376_v58 = vsel %vm1320_vm5, %v859_v39, %v1348_v44  ;;  %v1378_v59 = vsel %vm1322_vm6, %v900_v40, %v1350_v45  ;;  %v15418_v45 = vld [vmem:[#allocation15 + $0x10] sm:$0xff] }
 0x17e   :  { %v1377_v63 = vsel %vm1321_vm7, %v861_v46, %v1349_v52  ;;  %v1379_v3 = vsel %vm1323_vm8, %v902_v47, %v1351_v53  ;;  %v385_v43 = vrot.slane %v15418_v45, %v15369_v61  ;;  %v393_v54 = vrot.slane %v15418_v45, %v15372_v62 }
 0x17f   :  { %v940_v4 = vpop.f32.mrf.mxu0  ;;  %v981_v5 = vpop.f32.mrf.mxu1  ;;  %v12618_v6 = vpack.c.bf16 %v1377_v63, %v1376_v58  ;;  %v12619_v7 = vpack.c.bf16 %v1379_v3, %v1378_v59  ;;  %v389_v59 = vrot.slane %v15418_v45, %v15375_v1 }
 0x180   :  { %v941_v8 = vadd.f32 %v940_v4, %v353_v50  ;;  %v982_v9 = vadd.f32 %v981_v5, %v361_v51 }
 0x181   :  { %v942_v10 = vpop.f32.mrf.mxu0  ;;  %v983_v13 = vpop.f32.mrf.mxu1  ;;  %v1452_v14 = vrot.slane %v12618_v6, 7  ;;  %v1453_v17 = vrot.slane %v12619_v7, 7  ;;  %v397_v7 = vrot.slane %v15418_v45, %v15378_v2 }
 0x182   :  { %v1352_v18 = vmul.f32 0.1, %v941_v8  ;;  %v1354_v19 = vmul.f32 0.1, %v982_v9  ;;  %v943_v20 = vadd.f32 %v942_v10, %v357_v56  ;;  %v984_v21 = vadd.f32 %v983_v13, %v365_v57 }
 0x183   :  { %v944_v22 = vpop.f32.mrf.mxu0  ;;  %v985_v23 = vpop.f32.mrf.mxu1  ;;  %1456 = vst [vmem:[#allocation2 + $0x10] sm:$0x22] %v1452_v14  ;;  %1457 = vst [vmem:[#allocation2] sm:$0x22] %v1453_v17  ;;  %vm1324_vm9 = vcmp.ge.f32.partialorder %v941_v8, 0.0  ;;  %vm1326_vm10 = vcmp.ge.f32.partialorder %v982_v9, 0.0 }
 0x184   :  { %vm1325_vm11 = vcmp.ge.f32.partialorder %v943_v20, 0.0  ;;  %v1353_v26 = vmul.f32 0.1, %v943_v20  ;;  %vm1327_vm12 = vcmp.ge.f32.partialorder %v984_v21, 0.0  ;;  %v1355_v29 = vmul.f32 0.1, %v984_v21 }
 0x185   :  { %v945_v27 = vpop.f32.mrf.mxu0  ;;  %v986_v28 = vpop.f32.mrf.mxu1  ;;  %v1380_v31 = vsel %vm1324_vm9, %v941_v8, %v1352_v18  ;;  %v1382_v32 = vsel %vm1326_vm10, %v982_v9, %v1354_v19 }
 0x186   :  { %v1381_v33 = vsel %vm1325_vm11, %v943_v20, %v1353_v26  ;;  %v1383_v38 = vsel %vm1327_vm12, %v984_v21, %v1355_v29  ;;  %v401_v27 = vrot.slane %v15418_v45, %v15385_v11  ;;  %v409_v28 = vrot.slane %v15418_v45, %v15388_v12 }
 0x187   :  { %v1022_v34 = vpop.f32.mrf.mxu0  ;;  %v1063_v35 = vpop.f32.mrf.mxu1  ;;  %v12620_v37 = vpack.c.bf16 %v1381_v33, %v1380_v31  ;;  %v12621_v41 = vpack.c.bf16 %v1383_v38, %v1382_v32  ;;  %v405_v33 = vrot.slane %v15418_v45, %v15391_v15  ;;  %v413_v11 = vrot.slane %v15418_v45, %v15394_v16 }
 0x188   :  { %v1023_v39 = vadd.f32 %v1022_v34, %v369_v24  ;;  %v1064_v40 = vadd.f32 %v1063_v35, %v377_v25 }
 0x189   :  { %v1024_v42 = vpop.f32.mrf.mxu0  ;;  %v1065_v44 = vpop.f32.mrf.mxu1  ;;  %v1468_v46 = vrot.slane %v12620_v37, 6  ;;  %v1469_v48 = vrot.slane %v12621_v41, 6 }
 0x18a   :  { %v1356_v47 = vmul.f32 0.1, %v1023_v39  ;;  %v1358_v49 = vmul.f32 0.1, %v1064_v40  ;;  %v1025_v50 = vadd.f32 %v1024_v42, %v373_v30  ;;  %v1066_v51 = vadd.f32 %v1065_v44, %v381_v36 }
 0x18b   :  { %v1026_v52 = vpop.f32.mrf.mxu0  ;;  %v1067_v53 = vpop.f32.mrf.mxu1  ;;  %1472 = vst [vmem:[#allocation2 + $0x10] sm:$0x44] %v1468_v46  ;;  %vm1328_vm13 = vcmp.ge.f32.partialorder %v1023_v39, 0.0  ;;  %vm1330_vm14 = vcmp.ge.f32.partialorder %v1064_v40, 0.0  ;;  %1473 = vst [vmem:[#allocation2] sm:$0x44] %v1469_v48 }
 0x18c   :  { %vm1329_vm15 = vcmp.ge.f32.partialorder %v1025_v50, 0.0  ;;  %v1357_v55 = vmul.f32 0.1, %v1025_v50  ;;  %vm1331_vm1 = vcmp.ge.f32.partialorder %v1066_v51, 0.0  ;;  %v1359_v58 = vmul.f32 0.1, %v1066_v51 }
 0x18d   :  { %v1027_v56 = vpop.f32.mrf.mxu0  ;;  %v1068_v57 = vpop.f32.mrf.mxu1  ;;  %v1384_v63 = vsel %vm1328_vm13, %v1023_v39, %v1356_v47  ;;  %v1386_v3 = vsel %vm1330_vm14, %v1064_v40, %v1358_v49  ;;  %v313_v47 = vld [vmem:[#allocation15 + $0x18] sm:$0xf] }
 0x18e   :  { %v1385_v4 = vsel %vm1329_vm15, %v1025_v50, %v1357_v55  ;;  %v1387_v9 = vsel %vm1331_vm1, %v1066_v51, %v1359_v58  ;;  %v417_v16 = vrot.slane %v313_v47, %v15369_v61  ;;  %v425_v45 = vrot.slane %v313_v47, %v15372_v62 }
 0x18f   :  { %v1104_v5 = vpop.f32.mrf.mxu0  ;;  %v1145_v6 = vpop.f32.mrf.mxu1  ;;  %v12622_v8 = vpack.c.bf16 %v1385_v4, %v1384_v63  ;;  %v12623_v14 = vpack.c.bf16 %v1387_v9, %v1386_v3  ;;  %v421_v56 = vrot.slane %v313_v47, %v15375_v1  ;;  %v429_v57 = vrot.slane %v313_v47, %v15378_v2 }
 0x190   :  { %v1105_v10 = vadd.f32 %v1104_v5, %v385_v43  ;;  %v1146_v13 = vadd.f32 %v1145_v6, %v393_v54 }
 0x191   :  { %v1106_v17 = vpop.f32.mrf.mxu0  ;;  %v1147_v18 = vpop.f32.mrf.mxu1  ;;  %v1484_v19 = vrot.slane %v12622_v8, 5  ;;  %v1485_v21 = vrot.slane %v12623_v14, 5 }
 0x192   :  { %v1360_v20 = vmul.f32 0.1, %v1105_v10  ;;  %v1362_v22 = vmul.f32 0.1, %v1146_v13  ;;  %v1107_v23 = vadd.f32 %v1106_v17, %v389_v59  ;;  %v1148_v24 = vadd.f32 %v1147_v18, %v397_v7 }
 0x193   :  { %v1108_v25 = vpop.f32.mrf.mxu0  ;;  %v1149_v26 = vpop.f32.mrf.mxu1  ;;  %1488 = vst [vmem:[#allocation2 + $0x10] sm:$0x88] %v1484_v19  ;;  %vm1332_vm2 = vcmp.ge.f32.partialorder %v1105_v10, 0.0  ;;  %vm1334_vm3 = vcmp.ge.f32.partialorder %v1146_v13, 0.0  ;;  %1489 = vst [vmem:[#allocation2] sm:$0x88] %v1485_v21 }
 0x194   :  { %vm1333_vm4 = vcmp.ge.f32.partialorder %v1107_v23, 0.0  ;;  %v1361_v29 = vmul.f32 0.1, %v1107_v23  ;;  %vm1335_vm5 = vcmp.ge.f32.partialorder %v1148_v24, 0.0  ;;  %v1363_v32 = vmul.f32 0.1, %v1148_v24 }
 0x195   :  { %v1109_v30 = vpop.f32.mrf.mxu0  ;;  %v1150_v31 = vpop.f32.mrf.mxu1  ;;  %v1388_v34 = vsel %vm1332_vm2, %v1105_v10, %v1360_v20  ;;  %v1390_v35 = vsel %vm1334_vm3, %v1146_v13, %v1362_v22 }
 0x196   :  { %v1389_v36 = vsel %vm1333_vm4, %v1107_v23, %v1361_v29  ;;  %v1391_v12 = vsel %vm1335_vm5, %v1148_v24, %v1363_v32 }
 0x197   :  { %v1186_v37 = vpop.f32.mrf.mxu0  ;;  %v1227_v38 = vpop.f32.mrf.mxu1  ;;  %v12624_v39 = vpack.c.bf16 %v1389_v36, %v1388_v34  ;;  %v12625_v42 = vpack.c.bf16 %v1391_v12, %v1390_v35 }
 0x198   :  { %v1187_v40 = vadd.f32 %v1186_v37, %v401_v27  ;;  %v1228_v41 = vadd.f32 %v1227_v38, %v409_v28 }
 0x199   :  { %v1188_v44 = vpop.f32.mrf.mxu0  ;;  %v1229_v46 = vpop.f32.mrf.mxu1  ;;  %1502 = vst [vmem:[#allocation2 + $0x18] sm:$0x11] %v12624_v39  ;;  %1503 = vst [vmem:[#allocation2 + $0x8] sm:$0x11] %v12625_v42 }
 0x19a   :  { %v1364_v48 = vmul.f32 0.1, %v1187_v40  ;;  %v1366_v15 = vmul.f32 0.1, %v1228_v41  ;;  %v1189_v49 = vadd.f32 %v1188_v44, %v405_v33  ;;  %v1230_v50 = vadd.f32 %v1229_v46, %v413_v11 }
 0x19b   :  { %v1190_v51 = vpop.f32.mrf.mxu0  ;;  %v1231_v52 = vpop.f32.mrf.mxu1  ;;  %vm1336_vm6 = vcmp.ge.f32.partialorder %v1187_v40, 0.0  ;;  %vm1338_vm7 = vcmp.ge.f32.partialorder %v1228_v41, 0.0 }
 0x19c   :  { %vm1337_vm8 = vcmp.ge.f32.partialorder %v1189_v49, 0.0  ;;  %v1365_v53 = vmul.f32 0.1, %v1189_v49  ;;  %vm1339_vm9 = vcmp.ge.f32.partialorder %v1230_v50, 0.0  ;;  %v1367_v43 = vmul.f32 0.1, %v1230_v50 }
 0x19d   :  { %v1191_v54 = vpop.f32.mrf.mxu0  ;;  %v1232_v55 = vpop.f32.mrf.mxu1  ;;  %v1392_v58 = vsel %vm1336_vm6, %v1187_v40, %v1364_v48  ;;  %v1394_v59 = vsel %vm1338_vm7, %v1228_v41, %v1366_v15 }
 0x19e   :  { %v1393_v63 = vsel %vm1337_vm8, %v1189_v49, %v1365_v53  ;;  %v1395_v3 = vsel %vm1339_vm9, %v1230_v50, %v1367_v43 }
 0x19f   :  { %v1268_v4 = vpop.f32.mrf.mxu0  ;;  %v1309_v5 = vpop.f32.mrf.mxu1  ;;  %v12626_v6 = vpack.c.bf16 %v1393_v63, %v1392_v58  ;;  %v12627_v7 = vpack.c.bf16 %v1395_v3, %v1394_v59 }
 0x1a0   :  { %v1269_v8 = vadd.f32 %v1268_v4, %v417_v16  ;;  %v1310_v62 = vadd.f32 %v1309_v5, %v425_v45 }
 0x1a1   :  { %v1270_v9 = vpop.f32.mrf.mxu0  ;;  %v1311_v10 = vpop.f32.mrf.mxu1  ;;  %v1514_v13 = vrot.slane %v12626_v6, 7  ;;  %v1515_v14 = vrot.slane %v12627_v7, 7 }
 0x1a2   :  { %v1368_v17 = vmul.f32 0.1, %v1269_v8  ;;  %v1271_v18 = vadd.f32 %v1270_v9, %v421_v56  ;;  %v1312_v19 = vadd.f32 %v1311_v10, %v429_v57  ;;  %vm1340_vm10 = vcmp.ge.f32.partialorder %v1269_v8, 0.0 }
 0x1a3   :  { %v1272_v20 = vpop.f32.mrf.mxu0  ;;  %v1313_v21 = vpop.f32.mrf.mxu1  ;;  %1518 = vst [vmem:[#allocation2 + $0x18] sm:$0x22] %v1514_v13  ;;  %1519 = vst [vmem:[#allocation2 + $0x8] sm:$0x22] %v1515_v14  ;;  %v1370_v2 = vmul.f32 0.1, %v1310_v62 }
 0x1a4   :  { %vm1342_vm11 = vcmp.ge.f32.partialorder %v1310_v62, 0.0  ;;  %vm1341_vm12 = vcmp.ge.f32.partialorder %v1271_v18, 0.0  ;;  %v1369_v22 = vmul.f32 0.1, %v1271_v18  ;;  %vm1343_vm13 = vcmp.ge.f32.partialorder %v1312_v19, 0.0 }
 0x1a5   :  { %v1273_v23 = vpop.f32.mrf.mxu0  ;;  %v1314_v24 = vpop.f32.mrf.mxu1  ;;  %v1371_v25 = vmul.f32 0.1, %v1312_v19  ;;  %v1396_v26 = vsel %vm1340_vm10, %v1269_v8, %v1368_v17  ;;  %v1398_v28 = vsel %vm1342_vm11, %v1310_v62, %v1370_v2 }
 0x1a6   :  { %v1397_v27 = vsel %vm1341_vm12, %v1271_v18, %v1369_v22 }
 0x1a7   :  { %v12628_v29 = vpack.c.bf16 %v1397_v27, %v1396_v26  ;;  %v1399_v30 = vsel %vm1343_vm13, %v1312_v19, %v1371_v25 }
 0x1a8   :  { %v12629_v31 = vpack.c.bf16 %v1399_v30, %v1398_v28 }
 0x1a9   :  { %v1530_v32 = vrot.slane %v12628_v29, 6 }
 0x1aa   :  { %v1531_v33 = vrot.slane %v12629_v31, 6 }
 0x1ab   :  { %1534 = vst [vmem:[#allocation2 + $0x18] sm:$0x44] %v1530_v32 }
 0x1ac   :  { %1535 = vst [vmem:[#allocation2 + $0x8] sm:$0x44] %v1531_v33 }
 0x1ad   :  { %15138 = dma.done.wait [#allocation9], 49152 }
 0x1ae   :  { %15139 = vsyncadd [#allocation9], 4294918144  ;;  %v13457_v34 = vld [vmem:[#allocation6 + $0xe4] ss:$16 sps:$4 sm:$0xff]   ;;  %v13461_v36 = vld [vmem:[#allocation6 + $0xe0] ss:$16 sps:$4 sm:$0xff]  }
 0x1af   :  { %v13459_v35 = vld [vmem:[#allocation6 + $0x2e4] ss:$16 sps:$4 sm:$0xff]   ;;  %2335 = vmatprep.subr.bf16.mxu0 %v13457_v34  ;;  %v13462_v37 = vld [vmem:[#allocation6 + $0x2e0] ss:$16 sps:$4 sm:$0xff]   ;;  %vm4559_vm14 = vcmask 392192   ;;  %vm4760_vm15 = vcmask 1040384  }
 0x1b0   :  { %2378 = vmatprep.subr.bf16.mxu1 %v13459_v35  ;;  %v13463_v38 = vld [vmem:[#allocation6 + $0xc4] ss:$16 sps:$4 sm:$0xff]   ;;  %2336 = vmatpush1.bf16.msra.mxu0 %v13461_v36  ;;  %v13467_v39 = vld [vmem:[#allocation6 + $0xc0] ss:$16 sps:$4 sm:$0xff]  }
 0x1b1   :  { %2379 = vmatpush1.bf16.msra.mxu1 %v13462_v37  ;;  %v13465_v11 = vld [vmem:[#allocation6 + $0x2c4] ss:$16 sps:$4 sm:$0xff]   ;;  %2337 = vmatprep.subr.bf16.mxu0 %v13463_v38  ;;  %v13468_v12 = vld [vmem:[#allocation6 + $0x2c0] ss:$16 sps:$4 sm:$0xff]  }
 0x1b2   :  { %2380 = vmatprep.subr.bf16.mxu1 %v13465_v11  ;;  %v13469_v40 = vld [vmem:[#allocation6 + $0xa4] ss:$16 sps:$4 sm:$0xff]   ;;  %v13473_v42 = vld [vmem:[#allocation6 + $0xa0] ss:$16 sps:$4 sm:$0xff]  }
 0x1b3   :  { %v13471_v41 = vld [vmem:[#allocation6 + $0x2a4] ss:$16 sps:$4 sm:$0xff]   ;;  %v13474_v44 = vld [vmem:[#allocation6 + $0x2a0] ss:$16 sps:$4 sm:$0xff]  }
 0x1b4   :  { %2338 = vmatpush1.bf16.msra.mxu0 %v13467_v39  ;;  %v13475_v46 = vld [vmem:[#allocation6 + $0x84] ss:$16 sps:$4 sm:$0xff]   ;;  %v13479_v48 = vld [vmem:[#allocation6 + $0x80] ss:$16 sps:$4 sm:$0xff]   ;;  %v13561_v39 = vld [vmem:[#allocation6 + $0xec] ss:$16 sps:$4 sm:$0xff]  }
 0x1b5   :  { %2381 = vmatpush1.bf16.msra.mxu1 %v13468_v12  ;;  %2339 = vmatprep.subr.bf16.mxu0 %v13469_v40  ;;  %v13477_v47 = vld [vmem:[#allocation6 + $0x284] ss:$16 sps:$4 sm:$0xff]   ;;  %v13480_v15 = vld [vmem:[#allocation6 + $0x280] ss:$16 sps:$4 sm:$0xff]   ;;  %v13564_v12 = vld [vmem:[#allocation6 + $0x2ec] ss:$16 sps:$4 sm:$0xff]  }
 0x1b6   :  { %2382 = vmatprep.subr.bf16.mxu1 %v13471_v41  ;;  %v13481_v49 = vld [vmem:[#allocation6 + $0x64] ss:$16 sps:$4 sm:$0xff]   ;;  %v13485_v51 = vld [vmem:[#allocation6 + $0x60] ss:$16 sps:$4 sm:$0xff]  }
 0x1b7   :  { %v13483_v50 = vld [vmem:[#allocation6 + $0x264] ss:$16 sps:$4 sm:$0xff]   ;;  %v13486_v52 = vld [vmem:[#allocation6 + $0x260] ss:$16 sps:$4 sm:$0xff]  }
 0x1b8   :  { %2340 = vmatpush1.bf16.msra.mxu0 %v13473_v42  ;;  %v13487_v16 = vld [vmem:[#allocation6 + $0x44] ss:$16 sps:$4 sm:$0xff]   ;;  %v13491_v53 = vld [vmem:[#allocation6 + $0x40] ss:$16 sps:$4 sm:$0xff]   ;;  %v13559_v42 = vld [vmem:[#allocation6 + $0xe8] ss:$16 sps:$4 sm:$0xff]  }
 0x1b9   :  { %2383 = vmatpush1.bf16.msra.mxu1 %v13474_v44  ;;  %2341 = vmatprep.subr.bf16.mxu0 %v13475_v46  ;;  %v13489_v45 = vld [vmem:[#allocation6 + $0x244] ss:$16 sps:$4 sm:$0xff]   ;;  %v13492_v43 = vld [vmem:[#allocation6 + $0x240] ss:$16 sps:$4 sm:$0xff]   ;;  %v13562_v44 = vld [vmem:[#allocation6 + $0x2e8] ss:$16 sps:$4 sm:$0xff]  }
 0x1ba   :  { %2384 = vmatprep.subr.bf16.mxu1 %v13477_v47  ;;  %v13493_v54 = vld [vmem:[#allocation6 + $0x24] ss:$16 sps:$4 sm:$0xff]   ;;  %v13497_v56 = vld [vmem:[#allocation6 + $0x20] ss:$16 sps:$4 sm:$0xff]   ;;  %v13567_v46 = vld [vmem:[#allocation6 + $0xcc] ss:$16 sps:$4 sm:$0xff]  }
 0x1bb   :  { %v13495_v55 = vld [vmem:[#allocation6 + $0x224] ss:$16 sps:$4 sm:$0xff]   ;;  %v13498_v57 = vld [vmem:[#allocation6 + $0x220] ss:$16 sps:$4 sm:$0xff]   ;;  %v13570_v47 = vld [vmem:[#allocation6 + $0x2cc] ss:$16 sps:$4 sm:$0xff]  }
 0x1bc   :  { %2342 = vmatpush1.bf16.msra.mxu0 %v13479_v48  ;;  %v13499_v58 = vld [vmem:[#allocation6 + $0x4] ss:$16 sps:$4 sm:$0xff]   ;;  %v13503_v63 = vld [vmem:[#allocation6] ss:$16 sps:$4 sm:$0xff]   ;;  %v13565_v48 = vld [vmem:[#allocation6 + $0xc8] ss:$16 sps:$4 sm:$0xff]  }
 0x1bd   :  { %2385 = vmatpush1.bf16.msra.mxu1 %v13480_v15  ;;  %2343 = vmatprep.subr.bf16.mxu0 %v13481_v49  ;;  %v13501_v59 = vld [vmem:[#allocation6 + $0x204] ss:$16 sps:$4 sm:$0xff]   ;;  %v13504_v3 = vld [vmem:[#allocation6 + $0x200] ss:$16 sps:$4 sm:$0xff]   ;;  %v13568_v15 = vld [vmem:[#allocation6 + $0x2c8] ss:$16 sps:$4 sm:$0xff]  }
 0x1be   :  { %2386 = vmatprep.subr.bf16.mxu1 %v13483_v50  ;;  %v13505_v4 = vld [vmem:[#allocation6 + $0x1e4] ss:$16 sps:$4 sm:$0xff]   ;;  %v13509_v6 = vld [vmem:[#allocation6 + $0x1e0] ss:$16 sps:$4 sm:$0xff]   ;;  %v13573_v49 = vld [vmem:[#allocation6 + $0xac] ss:$16 sps:$4 sm:$0xff]  }
 0x1bf   :  { %v13507_v5 = vld [vmem:[#allocation6 + $0x3e4] ss:$16 sps:$4 sm:$0xff]   ;;  %v13510_v7 = vld [vmem:[#allocation6 + $0x3e0] ss:$16 sps:$4 sm:$0xff]   ;;  %v13576_v50 = vld [vmem:[#allocation6 + $0x2ac] ss:$16 sps:$4 sm:$0xff]  }
 0x1c0   :  { %2344 = vmatpush1.bf16.msra.mxu0 %v13485_v51  ;;  %v13511_v8 = vld [vmem:[#allocation6 + $0x1c4] ss:$16 sps:$4 sm:$0xff]   ;;  %v13515_v9 = vld [vmem:[#allocation6 + $0x1c0] ss:$16 sps:$4 sm:$0xff]   ;;  %v13571_v51 = vld [vmem:[#allocation6 + $0xa8] ss:$16 sps:$4 sm:$0xff]  }
 0x1c1   :  { %2387 = vmatpush1.bf16.msra.mxu1 %v13486_v52  ;;  %2345 = vmatprep.subr.bf16.mxu0 %v13487_v16  ;;  %v13513_v62 = vld [vmem:[#allocation6 + $0x3c4] ss:$16 sps:$4 sm:$0xff]   ;;  %v13516_v10 = vld [vmem:[#allocation6 + $0x3c0] ss:$16 sps:$4 sm:$0xff]   ;;  %v13574_v52 = vld [vmem:[#allocation6 + $0x2a8] ss:$16 sps:$4 sm:$0xff]  }
 0x1c2   :  { %2388 = vmatprep.subr.bf16.mxu1 %v13489_v45  ;;  %v13517_v13 = vld [vmem:[#allocation6 + $0x1a4] ss:$16 sps:$4 sm:$0xff]   ;;  %v13521_v17 = vld [vmem:[#allocation6 + $0x1a0] ss:$16 sps:$4 sm:$0xff]   ;;  %v13579_v16 = vld [vmem:[#allocation6 + $0x8c] ss:$16 sps:$4 sm:$0xff]  }
 0x1c3   :  { %v13519_v14 = vld [vmem:[#allocation6 + $0x3a4] ss:$16 sps:$4 sm:$0xff]   ;;  %v13522_v18 = vld [vmem:[#allocation6 + $0x3a0] ss:$16 sps:$4 sm:$0xff]   ;;  %v13582_v45 = vld [vmem:[#allocation6 + $0x28c] ss:$16 sps:$4 sm:$0xff]  }
 0x1c4   :  { %2346 = vmatpush1.bf16.msra.mxu0 %v13491_v53  ;;  %v13523_v19 = vld [vmem:[#allocation6 + $0x184] ss:$16 sps:$4 sm:$0xff]   ;;  %v13527_v21 = vld [vmem:[#allocation6 + $0x180] ss:$16 sps:$4 sm:$0xff]   ;;  %v13577_v53 = vld [vmem:[#allocation6 + $0x88] ss:$16 sps:$4 sm:$0xff]  }
 0x1c5   :  { %2389 = vmatpush1.bf16.msra.mxu1 %v13492_v43  ;;  %2347 = vmatprep.subr.bf16.mxu0 %v13493_v54  ;;  %v13525_v20 = vld [vmem:[#allocation6 + $0x384] ss:$16 sps:$4 sm:$0xff]   ;;  %v13528_v2 = vld [vmem:[#allocation6 + $0x380] ss:$16 sps:$4 sm:$0xff]   ;;  %v13580_v43 = vld [vmem:[#allocation6 + $0x288] ss:$16 sps:$4 sm:$0xff]  }
 0x1c6   :  { %2390 = vmatprep.subr.bf16.mxu1 %v13495_v55  ;;  %v15440_v22 = vld [vmem:[#allocation2 + $0x14] ss:$8 sps:$4 sm:$0xff]   ;;  %v15442_v24 = vld [vmem:[#allocation2 + $0x4] ss:$8 sps:$4 sm:$0xff]   ;;  %v13533_v26 = vld [vmem:[#allocation6 + $0x160] ss:$16 sps:$4 sm:$0xff]  }
 0x1c7   :  { %v13529_v23 = vld [vmem:[#allocation6 + $0x164] ss:$16 sps:$4 sm:$0xff]   ;;  %2367 = vmatprep.mubr.bf16.mxu0 %v15440_v22  ;;  %2410 = vmatprep.mubr.bf16.mxu1 %v15442_v24  ;;  %v13534_v27 = vld [vmem:[#allocation6 + $0x360] ss:$16 sps:$4 sm:$0xff]   ;;  %v13585_v54 = vld [vmem:[#allocation6 + $0x6c] ss:$16 sps:$4 sm:$0xff]  }
 0x1c8   :  { %2348 = vmatpush1.bf16.msra.mxu0 %v13497_v56  ;;  %v13531_v25 = vld [vmem:[#allocation6 + $0x364] ss:$16 sps:$4 sm:$0xff]   ;;  %v13539_v30 = vld [vmem:[#allocation6 + $0x140] ss:$16 sps:$4 sm:$0xff]   ;;  %v13588_v55 = vld [vmem:[#allocation6 + $0x26c] ss:$16 sps:$4 sm:$0xff]  }
 0x1c9   :  { %2391 = vmatpush1.bf16.msra.mxu1 %v13498_v57  ;;  %2349 = vmatprep.subr.bf16.mxu0 %v13499_v58  ;;  %v13535_v28 = vld [vmem:[#allocation6 + $0x144] ss:$16 sps:$4 sm:$0xff]   ;;  %v13540_v31 = vld [vmem:[#allocation6 + $0x340] ss:$16 sps:$4 sm:$0xff]   ;;  %v13583_v56 = vld [vmem:[#allocation6 + $0x68] ss:$16 sps:$4 sm:$0xff]  }
 0x1ca   :  { %2392 = vmatprep.subr.bf16.mxu1 %v13501_v59  ;;  %v13537_v29 = vld [vmem:[#allocation6 + $0x344] ss:$16 sps:$4 sm:$0xff]   ;;  %v13545_v34 = vld [vmem:[#allocation6 + $0x120] ss:$16 sps:$4 sm:$0xff]   ;;  %v13586_v57 = vld [vmem:[#allocation6 + $0x268] ss:$16 sps:$4 sm:$0xff]  }
 0x1cb   :  { %v13541_v32 = vld [vmem:[#allocation6 + $0x124] ss:$16 sps:$4 sm:$0xff]   ;;  %v13546_v35 = vld [vmem:[#allocation6 + $0x320] ss:$16 sps:$4 sm:$0xff]   ;;  %v13591_v58 = vld [vmem:[#allocation6 + $0x4c] ss:$16 sps:$4 sm:$0xff]  }
 0x1cc   :  { %2350 = vmatpush1.bf16.msra.mxu0 %v13503_v63  ;;  %v13543_v33 = vld [vmem:[#allocation6 + $0x324] ss:$16 sps:$4 sm:$0xff]   ;;  %v13551_v38 = vld [vmem:[#allocation6 + $0x100] ss:$16 sps:$4 sm:$0xff]   ;;  %v13594_v59 = vld [vmem:[#allocation6 + $0x24c] ss:$16 sps:$4 sm:$0xff]  }
 0x1cd   :  { %2393 = vmatpush1.bf16.msra.mxu1 %v13504_v3  ;;  %2351 = vmatprep.subr.bf16.mxu0 %v13505_v4  ;;  %v13547_v36 = vld [vmem:[#allocation6 + $0x104] ss:$16 sps:$4 sm:$0xff]   ;;  %v13552_v11 = vld [vmem:[#allocation6 + $0x300] ss:$16 sps:$4 sm:$0xff]   ;;  %v13589_v63 = vld [vmem:[#allocation6 + $0x48] ss:$16 sps:$4 sm:$0xff]  }
 0x1ce   :  { %2394 = vmatprep.subr.bf16.mxu1 %v13507_v5  ;;  %v13549_v37 = vld [vmem:[#allocation6 + $0x304] ss:$16 sps:$4 sm:$0xff]   ;;  %v15446_v40 = vld [vmem:[#allocation2 + $0x10] ss:$8 sps:$4 sm:$0xff]   ;;  %v15448_v41 = vld [vmem:[#allocation2] ss:$8 sps:$4 sm:$0xff]  }
 0x1cf   :  { %v13592_v3 = vld [vmem:[#allocation6 + $0x248] ss:$16 sps:$4 sm:$0xff]   ;;  %v13597_v4 = vld [vmem:[#allocation6 + $0x2c] ss:$16 sps:$4 sm:$0xff]  }
 0x1d0   :  { %2352 = vmatpush2.bf16.msra.mxu0 %v13509_v6  ;;  %v13600_v5 = vld [vmem:[#allocation6 + $0x22c] ss:$16 sps:$4 sm:$0xff]   ;;  %v13595_v6 = vld [vmem:[#allocation6 + $0x28] ss:$16 sps:$4 sm:$0xff]  }
 0x1d1   :  { %2395 = vmatpush2.bf16.msra.mxu1 %v13510_v7  ;;  %2353 = vmatprep.subr.bf16.mxu0 %v13511_v8  ;;  %v13598_v7 = vld [vmem:[#allocation6 + $0x228] ss:$16 sps:$4 sm:$0xff]   ;;  %v13603_v8 = vld [vmem:[#allocation6 + $0xc] ss:$16 sps:$4 sm:$0xff]  }
 0x1d2   :  { %2396 = vmatprep.subr.bf16.mxu1 %v13513_v62  ;;  %v13606_v62 = vld [vmem:[#allocation6 + $0x20c] ss:$16 sps:$4 sm:$0xff]  }
 0x1d4   :  { %2354 = vmatpush2.bf16.msra.mxu0 %v13515_v9  ;;  %v13601_v9 = vld [vmem:[#allocation6 + $0x8] ss:$16 sps:$4 sm:$0xff]  }
 0x1d5   :  { %2397 = vmatpush2.bf16.msra.mxu1 %v13516_v10  ;;  %2355 = vmatprep.subr.bf16.mxu0 %v13517_v13  ;;  %v13604_v10 = vld [vmem:[#allocation6 + $0x208] ss:$16 sps:$4 sm:$0xff]   ;;  %v13609_v13 = vld [vmem:[#allocation6 + $0x1ec] ss:$16 sps:$4 sm:$0xff]  }
 0x1d6   :  { %2398 = vmatprep.subr.bf16.mxu1 %v13519_v14  ;;  %v13612_v14 = vld [vmem:[#allocation6 + $0x3ec] ss:$16 sps:$4 sm:$0xff]  }
 0x1d8   :  { %2356 = vmatpush2.bf16.msra.mxu0 %v13521_v17  ;;  %v13607_v17 = vld [vmem:[#allocation6 + $0x1e8] ss:$16 sps:$4 sm:$0xff]  }
 0x1d9   :  { %2399 = vmatpush2.bf16.msra.mxu1 %v13522_v18  ;;  %2357 = vmatprep.subr.bf16.mxu0 %v13523_v19  ;;  %v13610_v18 = vld [vmem:[#allocation6 + $0x3e8] ss:$16 sps:$4 sm:$0xff]   ;;  %v13615_v19 = vld [vmem:[#allocation6 + $0x1cc] ss:$16 sps:$4 sm:$0xff]  }
 0x1da   :  { %2400 = vmatprep.subr.bf16.mxu1 %v13525_v20  ;;  %v13618_v20 = vld [vmem:[#allocation6 + $0x3cc] ss:$16 sps:$4 sm:$0xff]  }
 0x1dc   :  { %2358 = vmatpush2.bf16.msra.mxu0 %v13527_v21  ;;  %v13613_v21 = vld [vmem:[#allocation6 + $0x1c8] ss:$16 sps:$4 sm:$0xff]  }
 0x1dd   :  { %2401 = vmatpush2.bf16.msra.mxu1 %v13528_v2  ;;  %2359 = vmatprep.subr.bf16.mxu0 %v13529_v23  ;;  %v13616_v2 = vld [vmem:[#allocation6 + $0x3c8] ss:$16 sps:$4 sm:$0xff]   ;;  %v13621_v23 = vld [vmem:[#allocation6 + $0x1ac] ss:$16 sps:$4 sm:$0xff]  }
 0x1de   :  { %2402 = vmatprep.subr.bf16.mxu1 %v13531_v25  ;;  %v13624_v25 = vld [vmem:[#allocation6 + $0x3ac] ss:$16 sps:$4 sm:$0xff]  }
 0x1e0   :  { %2360 = vmatpush2.bf16.msra.mxu0 %v13533_v26  ;;  %v13619_v26 = vld [vmem:[#allocation6 + $0x1a8] ss:$16 sps:$4 sm:$0xff]  }
 0x1e1   :  { %2403 = vmatpush2.bf16.msra.mxu1 %v13534_v27  ;;  %2361 = vmatprep.subr.bf16.mxu0 %v13535_v28  ;;  %v13622_v27 = vld [vmem:[#allocation6 + $0x3a8] ss:$16 sps:$4 sm:$0xff]   ;;  %v13627_v28 = vld [vmem:[#allocation6 + $0x18c] ss:$16 sps:$4 sm:$0xff]  }
 0x1e2   :  { %2404 = vmatprep.subr.bf16.mxu1 %v13537_v29  ;;  %v13630_v29 = vld [vmem:[#allocation6 + $0x38c] ss:$16 sps:$4 sm:$0xff]  }
 0x1e4   :  { %2362 = vmatpush2.bf16.msra.mxu0 %v13539_v30  ;;  %v13625_v30 = vld [vmem:[#allocation6 + $0x188] ss:$16 sps:$4 sm:$0xff]  }
 0x1e5   :  { %2405 = vmatpush2.bf16.msra.mxu1 %v13540_v31  ;;  %2363 = vmatprep.subr.bf16.mxu0 %v13541_v32  ;;  %v13628_v31 = vld [vmem:[#allocation6 + $0x388] ss:$16 sps:$4 sm:$0xff]   ;;  %v13633_v32 = vld [vmem:[#allocation6 + $0x16c] ss:$16 sps:$4 sm:$0xff]  }
 0x1e6   :  { %2406 = vmatprep.subr.bf16.mxu1 %v13543_v33  ;;  %v13636_v33 = vld [vmem:[#allocation6 + $0x36c] ss:$16 sps:$4 sm:$0xff]  }
 0x1e8   :  { %2364 = vmatpush2.bf16.msra.mxu0 %v13545_v34  ;;  %v13631_v34 = vld [vmem:[#allocation6 + $0x168] ss:$16 sps:$4 sm:$0xff]  }
 0x1e9   :  { %2407 = vmatpush2.bf16.msra.mxu1 %v13546_v35  ;;  %2365 = vmatprep.subr.bf16.mxu0 %v13547_v36  ;;  %v13634_v35 = vld [vmem:[#allocation6 + $0x368] ss:$16 sps:$4 sm:$0xff]   ;;  %v13639_v36 = vld [vmem:[#allocation6 + $0x14c] ss:$16 sps:$4 sm:$0xff]  }
 0x1ea   :  { %2408 = vmatprep.subr.bf16.mxu1 %v13549_v37  ;;  %v13642_v37 = vld [vmem:[#allocation6 + $0x34c] ss:$16 sps:$4 sm:$0xff]  }
 0x1ec   :  { %2366 = vmatpush2.bf16.msra.mxu0 %v13551_v38  ;;  %v13637_v38 = vld [vmem:[#allocation6 + $0x148] ss:$16 sps:$4 sm:$0xff]  }
 0x1ed   :  { %2409 = vmatpush2.bf16.msra.mxu1 %v13552_v11  ;;  %2421 = vmatprep.subr.bf16.mxu0 %v13561_v39  ;;  %v13640_v11 = vld [vmem:[#allocation6 + $0x348] ss:$16 sps:$4 sm:$0xff]   ;;  %v13645_v39 = vld [vmem:[#allocation6 + $0x12c] ss:$16 sps:$4 sm:$0xff]  }
 0x1ee   :  { %2464 = vmatprep.subr.bf16.mxu1 %v13564_v12  ;;  %v13648_v12 = vld [vmem:[#allocation6 + $0x32c] ss:$16 sps:$4 sm:$0xff]  }
 0x1ef   :  { %2368 = vmatmul.mubr.bf16.vlgmr.msra.gmra.mxu0 %v15446_v40 }
 0x1f0   :  { %2411 = vmatmul.mubr.bf16.vlgmr.msra.gmra.mxu1 %v15448_v41  ;;  %2422 = vmatpush1.bf16.msra.mxu0 %v13559_v42  ;;  %v13643_v42 = vld [vmem:[#allocation6 + $0x128] ss:$16 sps:$4 sm:$0xff]  }
 0x1f1   :  { %2465 = vmatpush1.bf16.msra.mxu1 %v13562_v44  ;;  %2423 = vmatprep.subr.bf16.mxu0 %v13567_v46  ;;  %v13646_v44 = vld [vmem:[#allocation6 + $0x328] ss:$16 sps:$4 sm:$0xff]   ;;  %v13651_v46 = vld [vmem:[#allocation6 + $0x10c] ss:$16 sps:$4 sm:$0xff]  }
 0x1f2   :  { %2466 = vmatprep.subr.bf16.mxu1 %v13570_v47  ;;  %2453 = vmatprep.mubr.bf16.mxu0 %v15440_v22  ;;  %v13654_v47 = vld [vmem:[#allocation6 + $0x30c] ss:$16 sps:$4 sm:$0xff]  }
 0x1f3   :  { %2496 = vmatprep.mubr.bf16.mxu1 %v15442_v24 }
 0x1f4   :  { %2424 = vmatpush1.bf16.msra.mxu0 %v13565_v48  ;;  %v13649_v48 = vld [vmem:[#allocation6 + $0x108] ss:$16 sps:$4 sm:$0xff]  }
 0x1f5   :  { %2467 = vmatpush1.bf16.msra.mxu1 %v13568_v15  ;;  %2425 = vmatprep.subr.bf16.mxu0 %v13573_v49  ;;  %v13652_v15 = vld [vmem:[#allocation6 + $0x308] ss:$16 sps:$4 sm:$0xff]   ;;  %v13657_v49 = vld [vmem:[#allocation6 + $0x4e4] ss:$16 sps:$4 sm:$0xff]  }
 0x1f6   :  { %2468 = vmatprep.subr.bf16.mxu1 %v13576_v50  ;;  %v13660_v50 = vld [vmem:[#allocation6 + $0x6e4] ss:$16 sps:$4 sm:$0xff]  }
 0x1f8   :  { %2426 = vmatpush1.bf16.msra.mxu0 %v13571_v51  ;;  %v13655_v51 = vld [vmem:[#allocation6 + $0x4e0] ss:$16 sps:$4 sm:$0xff]  }
 0x1f9   :  { %2469 = vmatpush1.bf16.msra.mxu1 %v13574_v52  ;;  %2427 = vmatprep.subr.bf16.mxu0 %v13579_v16  ;;  %v13658_v52 = vld [vmem:[#allocation6 + $0x6e0] ss:$16 sps:$4 sm:$0xff]   ;;  %v13663_v16 = vld [vmem:[#allocation6 + $0x4c4] ss:$16 sps:$4 sm:$0xff]  }
 0x1fa   :  { %2470 = vmatprep.subr.bf16.mxu1 %v13582_v45  ;;  %v13666_v45 = vld [vmem:[#allocation6 + $0x6c4] ss:$16 sps:$4 sm:$0xff]  }
 0x1fc   :  { %2428 = vmatpush1.bf16.msra.mxu0 %v13577_v53  ;;  %v13661_v53 = vld [vmem:[#allocation6 + $0x4c0] ss:$16 sps:$4 sm:$0xff]  }
 0x1fd   :  { %2471 = vmatpush1.bf16.msra.mxu1 %v13580_v43  ;;  %2429 = vmatprep.subr.bf16.mxu0 %v13585_v54  ;;  %v13664_v43 = vld [vmem:[#allocation6 + $0x6c0] ss:$16 sps:$4 sm:$0xff]   ;;  %v13669_v54 = vld [vmem:[#allocation6 + $0x4a4] ss:$16 sps:$4 sm:$0xff]  }
 0x1fe   :  { %2472 = vmatprep.subr.bf16.mxu1 %v13588_v55  ;;  %v13672_v55 = vld [vmem:[#allocation6 + $0x6a4] ss:$16 sps:$4 sm:$0xff]  }
 0x200   :  { %2430 = vmatpush1.bf16.msra.mxu0 %v13583_v56  ;;  %v13667_v56 = vld [vmem:[#allocation6 + $0x4a0] ss:$16 sps:$4 sm:$0xff]  }
 0x201   :  { %2473 = vmatpush1.bf16.msra.mxu1 %v13586_v57  ;;  %2431 = vmatprep.subr.bf16.mxu0 %v13591_v58  ;;  %v13670_v57 = vld [vmem:[#allocation6 + $0x6a0] ss:$16 sps:$4 sm:$0xff]   ;;  %v13675_v58 = vld [vmem:[#allocation6 + $0x484] ss:$16 sps:$4 sm:$0xff]  }
 0x202   :  { %2474 = vmatprep.subr.bf16.mxu1 %v13594_v59  ;;  %v13678_v59 = vld [vmem:[#allocation6 + $0x684] ss:$16 sps:$4 sm:$0xff]  }
 0x204   :  { %2432 = vmatpush1.bf16.msra.mxu0 %v13589_v63  ;;  %v13673_v63 = vld [vmem:[#allocation6 + $0x480] ss:$16 sps:$4 sm:$0xff]  }
 0x205   :  { %2475 = vmatpush1.bf16.msra.mxu1 %v13592_v3  ;;  %2433 = vmatprep.subr.bf16.mxu0 %v13597_v4  ;;  %v13676_v3 = vld [vmem:[#allocation6 + $0x680] ss:$16 sps:$4 sm:$0xff]   ;;  %v13681_v4 = vld [vmem:[#allocation6 + $0x464] ss:$16 sps:$4 sm:$0xff]  }
 0x206   :  { %2476 = vmatprep.subr.bf16.mxu1 %v13600_v5  ;;  %v13684_v5 = vld [vmem:[#allocation6 + $0x664] ss:$16 sps:$4 sm:$0xff]  }
 0x208   :  { %2434 = vmatpush1.bf16.msra.mxu0 %v13595_v6  ;;  %v13679_v6 = vld [vmem:[#allocation6 + $0x460] ss:$16 sps:$4 sm:$0xff]  }
 0x209   :  { %2477 = vmatpush1.bf16.msra.mxu1 %v13598_v7  ;;  %2435 = vmatprep.subr.bf16.mxu0 %v13603_v8  ;;  %v13690_v7 = vld [vmem:[#allocation6 + $0x644] ss:$16 sps:$4 sm:$0xff]   ;;  %v13685_v8 = vld [vmem:[#allocation6 + $0x440] ss:$16 sps:$4 sm:$0xff]  }
 0x20a   :  { %2478 = vmatprep.subr.bf16.mxu1 %v13606_v62  ;;  %v13688_v62 = vld [vmem:[#allocation6 + $0x640] ss:$16 sps:$4 sm:$0xff]  }
 0x20c   :  { %2436 = vmatpush1.bf16.msra.mxu0 %v13601_v9  ;;  %v13693_v9 = vld [vmem:[#allocation6 + $0x424] ss:$16 sps:$4 sm:$0xff]  }
 0x20d   :  { %2479 = vmatpush1.bf16.msra.mxu1 %v13604_v10  ;;  %2437 = vmatprep.subr.bf16.mxu0 %v13609_v13  ;;  %v13696_v10 = vld [vmem:[#allocation6 + $0x624] ss:$16 sps:$4 sm:$0xff]   ;;  %v13691_v13 = vld [vmem:[#allocation6 + $0x420] ss:$16 sps:$4 sm:$0xff]  }
 0x20e   :  { %2480 = vmatprep.subr.bf16.mxu1 %v13612_v14  ;;  %v13694_v14 = vld [vmem:[#allocation6 + $0x620] ss:$16 sps:$4 sm:$0xff]  }
 0x210   :  { %2438 = vmatpush2.bf16.msra.mxu0 %v13607_v17  ;;  %v13699_v17 = vld [vmem:[#allocation6 + $0x404] ss:$16 sps:$4 sm:$0xff]  }
 0x211   :  { %2481 = vmatpush2.bf16.msra.mxu1 %v13610_v18  ;;  %2439 = vmatprep.subr.bf16.mxu0 %v13615_v19  ;;  %v13702_v18 = vld [vmem:[#allocation6 + $0x604] ss:$16 sps:$4 sm:$0xff]   ;;  %v13697_v19 = vld [vmem:[#allocation6 + $0x400] ss:$16 sps:$4 sm:$0xff]  }
 0x212   :  { %2482 = vmatprep.subr.bf16.mxu1 %v13618_v20  ;;  %v13700_v20 = vld [vmem:[#allocation6 + $0x600] ss:$16 sps:$4 sm:$0xff]  }
 0x214   :  { %2440 = vmatpush2.bf16.msra.mxu0 %v13613_v21  ;;  %v13705_v21 = vld [vmem:[#allocation6 + $0x5e4] ss:$16 sps:$4 sm:$0xff]  }
 0x215   :  { %2483 = vmatpush2.bf16.msra.mxu1 %v13616_v2  ;;  %2441 = vmatprep.subr.bf16.mxu0 %v13621_v23  ;;  %v13708_v2 = vld [vmem:[#allocation6 + $0x7e4] ss:$16 sps:$4 sm:$0xff]   ;;  %v13703_v23 = vld [vmem:[#allocation6 + $0x5e0] ss:$16 sps:$4 sm:$0xff]  }
 0x216   :  { %2484 = vmatprep.subr.bf16.mxu1 %v13624_v25  ;;  %v13706_v25 = vld [vmem:[#allocation6 + $0x7e0] ss:$16 sps:$4 sm:$0xff]  }
 0x218   :  { %2442 = vmatpush2.bf16.msra.mxu0 %v13619_v26  ;;  %v13711_v26 = vld [vmem:[#allocation6 + $0x5c4] ss:$16 sps:$4 sm:$0xff]  }
 0x219   :  { %2485 = vmatpush2.bf16.msra.mxu1 %v13622_v27  ;;  %2443 = vmatprep.subr.bf16.mxu0 %v13627_v28  ;;  %v13714_v27 = vld [vmem:[#allocation6 + $0x7c4] ss:$16 sps:$4 sm:$0xff]   ;;  %v13709_v28 = vld [vmem:[#allocation6 + $0x5c0] ss:$16 sps:$4 sm:$0xff]  }
 0x21a   :  { %2486 = vmatprep.subr.bf16.mxu1 %v13630_v29  ;;  %v13712_v29 = vld [vmem:[#allocation6 + $0x7c0] ss:$16 sps:$4 sm:$0xff]  }
 0x21c   :  { %2444 = vmatpush2.bf16.msra.mxu0 %v13625_v30  ;;  %v13717_v30 = vld [vmem:[#allocation6 + $0x5a4] ss:$16 sps:$4 sm:$0xff]  }
 0x21d   :  { %2487 = vmatpush2.bf16.msra.mxu1 %v13628_v31  ;;  %2445 = vmatprep.subr.bf16.mxu0 %v13633_v32  ;;  %v13720_v31 = vld [vmem:[#allocation6 + $0x7a4] ss:$16 sps:$4 sm:$0xff]   ;;  %v13715_v32 = vld [vmem:[#allocation6 + $0x5a0] ss:$16 sps:$4 sm:$0xff]  }
 0x21e   :  { %2488 = vmatprep.subr.bf16.mxu1 %v13636_v33  ;;  %v13718_v33 = vld [vmem:[#allocation6 + $0x7a0] ss:$16 sps:$4 sm:$0xff]  }
 0x220   :  { %2446 = vmatpush2.bf16.msra.mxu0 %v13631_v34  ;;  %v13723_v34 = vld [vmem:[#allocation6 + $0x584] ss:$16 sps:$4 sm:$0xff]  }
 0x221   :  { %2489 = vmatpush2.bf16.msra.mxu1 %v13634_v35  ;;  %2447 = vmatprep.subr.bf16.mxu0 %v13639_v36  ;;  %v13726_v35 = vld [vmem:[#allocation6 + $0x784] ss:$16 sps:$4 sm:$0xff]   ;;  %v13721_v36 = vld [vmem:[#allocation6 + $0x580] ss:$16 sps:$4 sm:$0xff]  }
 0x222   :  { %2490 = vmatprep.subr.bf16.mxu1 %v13642_v37  ;;  %v13724_v37 = vld [vmem:[#allocation6 + $0x780] ss:$16 sps:$4 sm:$0xff]  }
 0x224   :  { %2448 = vmatpush2.bf16.msra.mxu0 %v13637_v38  ;;  %v13729_v38 = vld [vmem:[#allocation6 + $0x564] ss:$16 sps:$4 sm:$0xff]  }
 0x225   :  { %2491 = vmatpush2.bf16.msra.mxu1 %v13640_v11  ;;  %2449 = vmatprep.subr.bf16.mxu0 %v13645_v39  ;;  %v13732_v11 = vld [vmem:[#allocation6 + $0x764] ss:$16 sps:$4 sm:$0xff]   ;;  %v13727_v39 = vld [vmem:[#allocation6 + $0x560] ss:$16 sps:$4 sm:$0xff]  }
 0x226   :  { %2492 = vmatprep.subr.bf16.mxu1 %v13648_v12  ;;  %v13730_v12 = vld [vmem:[#allocation6 + $0x760] ss:$16 sps:$4 sm:$0xff]  }
 0x228   :  { %2450 = vmatpush2.bf16.msra.mxu0 %v13643_v42  ;;  %v13735_v42 = vld [vmem:[#allocation6 + $0x544] ss:$16 sps:$4 sm:$0xff]  }
 0x229   :  { %2493 = vmatpush2.bf16.msra.mxu1 %v13646_v44  ;;  %2451 = vmatprep.subr.bf16.mxu0 %v13651_v46  ;;  %v13738_v44 = vld [vmem:[#allocation6 + $0x744] ss:$16 sps:$4 sm:$0xff]   ;;  %v13733_v46 = vld [vmem:[#allocation6 + $0x540] ss:$16 sps:$4 sm:$0xff]  }
 0x22a   :  { %2494 = vmatprep.subr.bf16.mxu1 %v13654_v47  ;;  %v13736_v47 = vld [vmem:[#allocation6 + $0x740] ss:$16 sps:$4 sm:$0xff]  }
 0x22c   :  { %2452 = vmatpush2.bf16.msra.mxu0 %v13649_v48  ;;  %v13741_v48 = vld [vmem:[#allocation6 + $0x524] ss:$16 sps:$4 sm:$0xff]  }
 0x22d   :  { %2495 = vmatpush2.bf16.msra.mxu1 %v13652_v15  ;;  %3304 = vmatprep.subr.bf16.mxu0 %v13657_v49  ;;  %v13744_v15 = vld [vmem:[#allocation6 + $0x724] ss:$16 sps:$4 sm:$0xff]   ;;  %v13739_v49 = vld [vmem:[#allocation6 + $0x520] ss:$16 sps:$4 sm:$0xff]  }
 0x22e   :  { %3347 = vmatprep.subr.bf16.mxu1 %v13660_v50  ;;  %v13742_v50 = vld [vmem:[#allocation6 + $0x720] ss:$16 sps:$4 sm:$0xff]  }
 0x22f   :  { %2454 = vmatmul.mubr.bf16.vlgmr.msra.gmra.mxu0 %v15446_v40 }
 0x230   :  { %2497 = vmatmul.mubr.bf16.vlgmr.msra.gmra.mxu1 %v15448_v41  ;;  %3305 = vmatpush1.bf16.msra.mxu0 %v13655_v51  ;;  %v13747_v51 = vld [vmem:[#allocation6 + $0x504] ss:$16 sps:$4 sm:$0xff]  }
 0x231   :  { %3348 = vmatpush1.bf16.msra.mxu1 %v13658_v52  ;;  %3306 = vmatprep.subr.bf16.mxu0 %v13663_v16  ;;  %v13750_v52 = vld [vmem:[#allocation6 + $0x704] ss:$16 sps:$4 sm:$0xff]   ;;  %v13745_v16 = vld [vmem:[#allocation6 + $0x500] ss:$16 sps:$4 sm:$0xff]  }
 0x232   :  { %3349 = vmatprep.subr.bf16.mxu1 %v13666_v45  ;;  %3336 = vmatprep.mubr.bf16.mxu0 %v15440_v22  ;;  %v13682_v22 = vld [vmem:[#allocation6 + $0x660] ss:$16 sps:$4 sm:$0xff]  }
 0x233   :  { %3379 = vmatprep.mubr.bf16.mxu1 %v15442_v24  ;;  %v13687_v24 = vld [vmem:[#allocation6 + $0x444] ss:$16 sps:$4 sm:$0xff]   ;;  %v13748_v45 = vld [vmem:[#allocation6 + $0x700] ss:$16 sps:$4 sm:$0xff]  }
 0x234   :  { %3307 = vmatpush1.bf16.msra.mxu0 %v13661_v53  ;;  %v13753_v53 = vld [vmem:[#allocation6 + $0x4ec] ss:$16 sps:$4 sm:$0xff]  }
 0x235   :  { %3350 = vmatpush1.bf16.msra.mxu1 %v13664_v43  ;;  %3308 = vmatprep.subr.bf16.mxu0 %v13669_v54  ;;  %v13756_v43 = vld [vmem:[#allocation6 + $0x6ec] ss:$16 sps:$4 sm:$0xff]   ;;  %v13751_v54 = vld [vmem:[#allocation6 + $0x4e8] ss:$16 sps:$4 sm:$0xff]  }
 0x236   :  { %3351 = vmatprep.subr.bf16.mxu1 %v13672_v55  ;;  %v13754_v55 = vld [vmem:[#allocation6 + $0x6e8] ss:$16 sps:$4 sm:$0xff]  }
 0x238   :  { %3309 = vmatpush1.bf16.msra.mxu0 %v13667_v56  ;;  %v13759_v56 = vld [vmem:[#allocation6 + $0x4cc] ss:$16 sps:$4 sm:$0xff]  }
 0x239   :  { %3352 = vmatpush1.bf16.msra.mxu1 %v13670_v57  ;;  %3310 = vmatprep.subr.bf16.mxu0 %v13675_v58  ;;  %v13762_v57 = vld [vmem:[#allocation6 + $0x6cc] ss:$16 sps:$4 sm:$0xff]   ;;  %v13757_v58 = vld [vmem:[#allocation6 + $0x4c8] ss:$16 sps:$4 sm:$0xff]  }
 0x23a   :  { %3353 = vmatprep.subr.bf16.mxu1 %v13678_v59  ;;  %v13760_v59 = vld [vmem:[#allocation6 + $0x6c8] ss:$16 sps:$4 sm:$0xff]  }
 0x23c   :  { %3311 = vmatpush1.bf16.msra.mxu0 %v13673_v63  ;;  %v13765_v63 = vld [vmem:[#allocation6 + $0x4ac] ss:$16 sps:$4 sm:$0xff]  }
 0x23d   :  { %3354 = vmatpush1.bf16.msra.mxu1 %v13676_v3  ;;  %3312 = vmatprep.subr.bf16.mxu0 %v13681_v4  ;;  %v13768_v3 = vld [vmem:[#allocation6 + $0x6ac] ss:$16 sps:$4 sm:$0xff]  }
 0x23e   :  { %3355 = vmatprep.subr.bf16.mxu1 %v13684_v5  ;;  %v15460_v4 = vld [vmem:[#allocation2 + $0x14] ss:$8 sps:$4 sm:$0xff]   ;;  %v15463_v5 = vld [vmem:[#allocation2 + $0x4] ss:$8 sps:$4 sm:$0xff]  }
 0x240   :  { %3313 = vmatpush1.bf16.msra.mxu0 %v13679_v6  ;;  %v13763_v6 = vld [vmem:[#allocation6 + $0x4a8] ss:$16 sps:$4 sm:$0xff]  }
 0x241   :  { %3356 = vmatpush1.bf16.msra.mxu1 %v13682_v22  ;;  %3314 = vmatprep.subr.bf16.mxu0 %v13687_v24  ;;  %v13774_v22 = vld [vmem:[#allocation6 + $0x68c] ss:$16 sps:$4 sm:$0xff]   ;;  %v13769_v24 = vld [vmem:[#allocation6 + $0x488] ss:$16 sps:$4 sm:$0xff]  }
 0x242   :  { %3357 = vmatprep.subr.bf16.mxu1 %v13690_v7  ;;  %v13772_v7 = vld [vmem:[#allocation6 + $0x688] ss:$16 sps:$4 sm:$0xff]  }
 0x244   :  { %3315 = vmatpush1.bf16.msra.mxu0 %v13685_v8  ;;  %v13777_v8 = vld [vmem:[#allocation6 + $0x46c] ss:$16 sps:$4 sm:$0xff]  }
 0x245   :  { %3358 = vmatpush1.bf16.msra.mxu1 %v13688_v62  ;;  %3316 = vmatprep.subr.bf16.mxu0 %v13693_v9  ;;  %v13780_v62 = vld [vmem:[#allocation6 + $0x66c] ss:$16 sps:$4 sm:$0xff]   ;;  %v13775_v9 = vld [vmem:[#allocation6 + $0x468] ss:$16 sps:$4 sm:$0xff]  }
 0x246   :  { %3359 = vmatprep.subr.bf16.mxu1 %v13696_v10  ;;  %v13778_v10 = vld [vmem:[#allocation6 + $0x668] ss:$16 sps:$4 sm:$0xff]  }
 0x248   :  { %3317 = vmatpush1.bf16.msra.mxu0 %v13691_v13  ;;  %v13783_v13 = vld [vmem:[#allocation6 + $0x44c] ss:$16 sps:$4 sm:$0xff]  }
 0x249   :  { %3360 = vmatpush1.bf16.msra.mxu1 %v13694_v14  ;;  %3318 = vmatprep.subr.bf16.mxu0 %v13699_v17  ;;  %v13786_v14 = vld [vmem:[#allocation6 + $0x64c] ss:$16 sps:$4 sm:$0xff]   ;;  %v13781_v17 = vld [vmem:[#allocation6 + $0x448] ss:$16 sps:$4 sm:$0xff]  }
 0x24a   :  { %3361 = vmatprep.subr.bf16.mxu1 %v13702_v18  ;;  %v13784_v18 = vld [vmem:[#allocation6 + $0x648] ss:$16 sps:$4 sm:$0xff]  }
 0x24c   :  { %3319 = vmatpush1.bf16.msra.mxu0 %v13697_v19  ;;  %v13789_v19 = vld [vmem:[#allocation6 + $0x42c] ss:$16 sps:$4 sm:$0xff]  }
 0x24d   :  { %3362 = vmatpush1.bf16.msra.mxu1 %v13700_v20  ;;  %3320 = vmatprep.subr.bf16.mxu0 %v13705_v21  ;;  %v13792_v20 = vld [vmem:[#allocation6 + $0x62c] ss:$16 sps:$4 sm:$0xff]   ;;  %v13787_v21 = vld [vmem:[#allocation6 + $0x428] ss:$16 sps:$4 sm:$0xff]  }
 0x24e   :  { %3363 = vmatprep.subr.bf16.mxu1 %v13708_v2  ;;  %v13790_v2 = vld [vmem:[#allocation6 + $0x628] ss:$16 sps:$4 sm:$0xff]  }
 0x250   :  { %3321 = vmatpush2.bf16.msra.mxu0 %v13703_v23  ;;  %v13795_v23 = vld [vmem:[#allocation6 + $0x40c] ss:$16 sps:$4 sm:$0xff]  }
 0x251   :  { %3364 = vmatpush2.bf16.msra.mxu1 %v13706_v25  ;;  %3322 = vmatprep.subr.bf16.mxu0 %v13711_v26  ;;  %v13798_v25 = vld [vmem:[#allocation6 + $0x60c] ss:$16 sps:$4 sm:$0xff]   ;;  %v13793_v26 = vld [vmem:[#allocation6 + $0x408] ss:$16 sps:$4 sm:$0xff]  }
 0x252   :  { %3365 = vmatprep.subr.bf16.mxu1 %v13714_v27  ;;  %v13796_v27 = vld [vmem:[#allocation6 + $0x608] ss:$16 sps:$4 sm:$0xff]  }
 0x254   :  { %3323 = vmatpush2.bf16.msra.mxu0 %v13709_v28  ;;  %v13801_v28 = vld [vmem:[#allocation6 + $0x5ec] ss:$16 sps:$4 sm:$0xff]  }
 0x255   :  { %3366 = vmatpush2.bf16.msra.mxu1 %v13712_v29  ;;  %3324 = vmatprep.subr.bf16.mxu0 %v13717_v30  ;;  %v13804_v29 = vld [vmem:[#allocation6 + $0x7ec] ss:$16 sps:$4 sm:$0xff]   ;;  %v13799_v30 = vld [vmem:[#allocation6 + $0x5e8] ss:$16 sps:$4 sm:$0xff]  }
 0x256   :  { %3367 = vmatprep.subr.bf16.mxu1 %v13720_v31  ;;  %v13802_v31 = vld [vmem:[#allocation6 + $0x7e8] ss:$16 sps:$4 sm:$0xff]  }
 0x258   :  { %3325 = vmatpush2.bf16.msra.mxu0 %v13715_v32  ;;  %v13807_v32 = vld [vmem:[#allocation6 + $0x5cc] ss:$16 sps:$4 sm:$0xff]  }
 0x259   :  { %3368 = vmatpush2.bf16.msra.mxu1 %v13718_v33  ;;  %3326 = vmatprep.subr.bf16.mxu0 %v13723_v34  ;;  %v13810_v33 = vld [vmem:[#allocation6 + $0x7cc] ss:$16 sps:$4 sm:$0xff]   ;;  %v13805_v34 = vld [vmem:[#allocation6 + $0x5c8] ss:$16 sps:$4 sm:$0xff]  }
 0x25a   :  { %3369 = vmatprep.subr.bf16.mxu1 %v13726_v35  ;;  %v13808_v35 = vld [vmem:[#allocation6 + $0x7c8] ss:$16 sps:$4 sm:$0xff]  }
 0x25c   :  { %3327 = vmatpush2.bf16.msra.mxu0 %v13721_v36  ;;  %v13813_v36 = vld [vmem:[#allocation6 + $0x5ac] ss:$16 sps:$4 sm:$0xff]  }
 0x25d   :  { %3370 = vmatpush2.bf16.msra.mxu1 %v13724_v37  ;;  %3328 = vmatprep.subr.bf16.mxu0 %v13729_v38  ;;  %v13816_v37 = vld [vmem:[#allocation6 + $0x7ac] ss:$16 sps:$4 sm:$0xff]   ;;  %v13811_v38 = vld [vmem:[#allocation6 + $0x5a8] ss:$16 sps:$4 sm:$0xff]  }
 0x25e   :  { %3371 = vmatprep.subr.bf16.mxu1 %v13732_v11  ;;  %v13814_v11 = vld [vmem:[#allocation6 + $0x7a8] ss:$16 sps:$4 sm:$0xff]  }
 0x260   :  { %3329 = vmatpush2.bf16.msra.mxu0 %v13727_v39  ;;  %v13819_v39 = vld [vmem:[#allocation6 + $0x58c] ss:$16 sps:$4 sm:$0xff]  }
 0x261   :  { %3372 = vmatpush2.bf16.msra.mxu1 %v13730_v12  ;;  %3330 = vmatprep.subr.bf16.mxu0 %v13735_v42  ;;  %v13822_v12 = vld [vmem:[#allocation6 + $0x78c] ss:$16 sps:$4 sm:$0xff]   ;;  %v13817_v42 = vld [vmem:[#allocation6 + $0x588] ss:$16 sps:$4 sm:$0xff]  }
 0x262   :  { %3373 = vmatprep.subr.bf16.mxu1 %v13738_v44  ;;  %v13820_v44 = vld [vmem:[#allocation6 + $0x788] ss:$16 sps:$4 sm:$0xff]  }
 0x264   :  { %3331 = vmatpush2.bf16.msra.mxu0 %v13733_v46  ;;  %v13825_v46 = vld [vmem:[#allocation6 + $0x56c] ss:$16 sps:$4 sm:$0xff]  }
 0x265   :  { %3374 = vmatpush2.bf16.msra.mxu1 %v13736_v47  ;;  %3332 = vmatprep.subr.bf16.mxu0 %v13741_v48  ;;  %v13828_v47 = vld [vmem:[#allocation6 + $0x76c] ss:$16 sps:$4 sm:$0xff]   ;;  %v13823_v48 = vld [vmem:[#allocation6 + $0x568] ss:$16 sps:$4 sm:$0xff]  }
 0x266   :  { %3375 = vmatprep.subr.bf16.mxu1 %v13744_v15  ;;  %v13826_v15 = vld [vmem:[#allocation6 + $0x768] ss:$16 sps:$4 sm:$0xff]  }
 0x268   :  { %3333 = vmatpush2.bf16.msra.mxu0 %v13739_v49  ;;  %v13831_v49 = vld [vmem:[#allocation6 + $0x54c] ss:$16 sps:$4 sm:$0xff]  }
 0x269   :  { %3376 = vmatpush2.bf16.msra.mxu1 %v13742_v50  ;;  %3334 = vmatprep.subr.bf16.mxu0 %v13747_v51  ;;  %v13834_v50 = vld [vmem:[#allocation6 + $0x74c] ss:$16 sps:$4 sm:$0xff]   ;;  %v13829_v51 = vld [vmem:[#allocation6 + $0x548] ss:$16 sps:$4 sm:$0xff]  }
 0x26a   :  { %3377 = vmatprep.subr.bf16.mxu1 %v13750_v52  ;;  %v13832_v52 = vld [vmem:[#allocation6 + $0x748] ss:$16 sps:$4 sm:$0xff]  }
 0x26c   :  { %3335 = vmatpush2.bf16.msra.mxu0 %v13745_v16  ;;  %v13837_v16 = vld [vmem:[#allocation6 + $0x52c] ss:$16 sps:$4 sm:$0xff]  }
 0x26d   :  { %3378 = vmatpush2.bf16.msra.mxu1 %v13748_v45  ;;  %3390 = vmatprep.subr.bf16.mxu0 %v13753_v53  ;;  %v13840_v45 = vld [vmem:[#allocation6 + $0x72c] ss:$16 sps:$4 sm:$0xff]   ;;  %v13835_v53 = vld [vmem:[#allocation6 + $0x528] ss:$16 sps:$4 sm:$0xff]  }
 0x26e   :  { %3433 = vmatprep.subr.bf16.mxu1 %v13756_v43  ;;  %v13838_v43 = vld [vmem:[#allocation6 + $0x728] ss:$16 sps:$4 sm:$0xff]  }
 0x26f   :  { %3337 = vmatmul.mubr.bf16.vlgmr.msra.gmra.mxu0 %v15446_v40  ;;  %v13766_v40 = vld [vmem:[#allocation6 + $0x6a8] ss:$16 sps:$4 sm:$0xff]  }
 0x270   :  { %3380 = vmatmul.mubr.bf16.vlgmr.msra.gmra.mxu1 %v15448_v41  ;;  %3391 = vmatpush1.bf16.msra.mxu0 %v13751_v54  ;;  %v13771_v41 = vld [vmem:[#allocation6 + $0x48c] ss:$16 sps:$4 sm:$0xff]  }
 0x271   :  { %3434 = vmatpush1.bf16.msra.mxu1 %v13754_v55  ;;  %3392 = vmatprep.subr.bf16.mxu0 %v13759_v56  ;;  %v13843_v54 = vld [vmem:[#allocation6 + $0x50c] ss:$16 sps:$4 sm:$0xff]   ;;  %v13841_v56 = vld [vmem:[#allocation6 + $0x508] ss:$16 sps:$4 sm:$0xff]  }
 0x272   :  { %3435 = vmatprep.subr.bf16.mxu1 %v13762_v57  ;;  %3422 = vmatprep.mubr.bf16.mxu0 %v15460_v4  ;;  %v13846_v55 = vld [vmem:[#allocation6 + $0x70c] ss:$16 sps:$4 sm:$0xff]   ;;  %v13844_v57 = vld [vmem:[#allocation6 + $0x708] ss:$16 sps:$4 sm:$0xff]  }
 0x273   :  { %3465 = vmatprep.mubr.bf16.mxu1 %v15463_v5 }
 0x274   :  { %3393 = vmatpush1.bf16.msra.mxu0 %v13757_v58  ;;  %v13849_v58 = vld [vmem:[#allocation6 + $0x8e4] ss:$16 sps:$4 sm:$0xff]  }
 0x275   :  { %3436 = vmatpush1.bf16.msra.mxu1 %v13760_v59  ;;  %3394 = vmatprep.subr.bf16.mxu0 %v13765_v63  ;;  %v13852_v59 = vld [vmem:[#allocation6 + $0xae4] ss:$16 sps:$4 sm:$0xff]   ;;  %v13847_v63 = vld [vmem:[#allocation6 + $0x8e0] ss:$16 sps:$4 sm:$0xff]  }
 0x276   :  { %3437 = vmatprep.subr.bf16.mxu1 %v13768_v3  ;;  %v13850_v3 = vld [vmem:[#allocation6 + $0xae0] ss:$16 sps:$4 sm:$0xff]  }
 0x278   :  { %3395 = vmatpush1.bf16.msra.mxu0 %v13763_v6  ;;  %v13855_v6 = vld [vmem:[#allocation6 + $0x8c4] ss:$16 sps:$4 sm:$0xff]  }
 0x279   :  { %3438 = vmatpush1.bf16.msra.mxu1 %v13766_v40  ;;  %3396 = vmatprep.subr.bf16.mxu0 %v13771_v41  ;;  %v13858_v40 = vld [vmem:[#allocation6 + $0xac4] ss:$16 sps:$4 sm:$0xff]   ;;  %v15466_v41 = vld [vmem:[#allocation2 + $0x10] ss:$8 sps:$4 sm:$0xff]  }
 0x27a   :  { %3439 = vmatprep.subr.bf16.mxu1 %v13774_v22  ;;  %v15469_v22 = vld [vmem:[#allocation2] ss:$8 sps:$4 sm:$0xff]  }
 0x27c   :  { %3397 = vmatpush1.bf16.msra.mxu0 %v13769_v24  ;;  %v13853_v24 = vld [vmem:[#allocation6 + $0x8c0] ss:$16 sps:$4 sm:$0xff]  }
 0x27d   :  { %3440 = vmatpush1.bf16.msra.mxu1 %v13772_v7  ;;  %3398 = vmatprep.subr.bf16.mxu0 %v13777_v8  ;;  %v13856_v7 = vld [vmem:[#allocation6 + $0xac0] ss:$16 sps:$4 sm:$0xff]   ;;  %v13861_v8 = vld [vmem:[#allocation6 + $0x8a4] ss:$16 sps:$4 sm:$0xff]  }
 0x27e   :  { %3441 = vmatprep.subr.bf16.mxu1 %v13780_v62  ;;  %v13864_v62 = vld [vmem:[#allocation6 + $0xaa4] ss:$16 sps:$4 sm:$0xff]  }
 0x280   :  { %3399 = vmatpush1.bf16.msra.mxu0 %v13775_v9  ;;  %v13859_v9 = vld [vmem:[#allocation6 + $0x8a0] ss:$16 sps:$4 sm:$0xff]  }
 0x281   :  { %3442 = vmatpush1.bf16.msra.mxu1 %v13778_v10  ;;  %3400 = vmatprep.subr.bf16.mxu0 %v13783_v13  ;;  %v13862_v10 = vld [vmem:[#allocation6 + $0xaa0] ss:$16 sps:$4 sm:$0xff]   ;;  %v13867_v13 = vld [vmem:[#allocation6 + $0x884] ss:$16 sps:$4 sm:$0xff]  }
 0x282   :  { %3443 = vmatprep.subr.bf16.mxu1 %v13786_v14  ;;  %v13870_v14 = vld [vmem:[#allocation6 + $0xa84] ss:$16 sps:$4 sm:$0xff]  }
 0x284   :  { %3401 = vmatpush1.bf16.msra.mxu0 %v13781_v17  ;;  %v13865_v17 = vld [vmem:[#allocation6 + $0x880] ss:$16 sps:$4 sm:$0xff]  }
 0x285   :  { %3444 = vmatpush1.bf16.msra.mxu1 %v13784_v18  ;;  %3402 = vmatprep.subr.bf16.mxu0 %v13789_v19  ;;  %v13868_v18 = vld [vmem:[#allocation6 + $0xa80] ss:$16 sps:$4 sm:$0xff]   ;;  %v13873_v19 = vld [vmem:[#allocation6 + $0x864] ss:$16 sps:$4 sm:$0xff]  }
 0x286   :  { %3445 = vmatprep.subr.bf16.mxu1 %v13792_v20  ;;  %v13876_v20 = vld [vmem:[#allocation6 + $0xa64] ss:$16 sps:$4 sm:$0xff]  }
 0x288   :  { %3403 = vmatpush1.bf16.msra.mxu0 %v13787_v21  ;;  %v13871_v21 = vld [vmem:[#allocation6 + $0x860] ss:$16 sps:$4 sm:$0xff]  }
 0x289   :  { %3446 = vmatpush1.bf16.msra.mxu1 %v13790_v2  ;;  %3404 = vmatprep.subr.bf16.mxu0 %v13795_v23  ;;  %v13874_v2 = vld [vmem:[#allocation6 + $0xa60] ss:$16 sps:$4 sm:$0xff]   ;;  %v13879_v23 = vld [vmem:[#allocation6 + $0x844] ss:$16 sps:$4 sm:$0xff]  }
 0x28a   :  { %3447 = vmatprep.subr.bf16.mxu1 %v13798_v25  ;;  %v13882_v25 = vld [vmem:[#allocation6 + $0xa44] ss:$16 sps:$4 sm:$0xff]  }
 0x28c   :  { %3405 = vmatpush1.bf16.msra.mxu0 %v13793_v26  ;;  %v13877_v26 = vld [vmem:[#allocation6 + $0x840] ss:$16 sps:$4 sm:$0xff]  }
 0x28d   :  { %3448 = vmatpush1.bf16.msra.mxu1 %v13796_v27  ;;  %3406 = vmatprep.subr.bf16.mxu0 %v13801_v28  ;;  %v13880_v27 = vld [vmem:[#allocation6 + $0xa40] ss:$16 sps:$4 sm:$0xff]   ;;  %v13885_v28 = vld [vmem:[#allocation6 + $0x824] ss:$16 sps:$4 sm:$0xff]  }
 0x28e   :  { %3449 = vmatprep.subr.bf16.mxu1 %v13804_v29  ;;  %v13888_v29 = vld [vmem:[#allocation6 + $0xa24] ss:$16 sps:$4 sm:$0xff]  }
 0x290   :  { %3407 = vmatpush2.bf16.msra.mxu0 %v13799_v30  ;;  %v13883_v30 = vld [vmem:[#allocation6 + $0x820] ss:$16 sps:$4 sm:$0xff]  }
 0x291   :  { %3450 = vmatpush2.bf16.msra.mxu1 %v13802_v31  ;;  %3408 = vmatprep.subr.bf16.mxu0 %v13807_v32  ;;  %v13886_v31 = vld [vmem:[#allocation6 + $0xa20] ss:$16 sps:$4 sm:$0xff]   ;;  %v13891_v32 = vld [vmem:[#allocation6 + $0x804] ss:$16 sps:$4 sm:$0xff]  }
 0x292   :  { %3451 = vmatprep.subr.bf16.mxu1 %v13810_v33  ;;  %v13894_v33 = vld [vmem:[#allocation6 + $0xa04] ss:$16 sps:$4 sm:$0xff]  }
 0x294   :  { %3409 = vmatpush2.bf16.msra.mxu0 %v13805_v34  ;;  %v13889_v34 = vld [vmem:[#allocation6 + $0x800] ss:$16 sps:$4 sm:$0xff]  }
 0x295   :  { %3452 = vmatpush2.bf16.msra.mxu1 %v13808_v35  ;;  %3410 = vmatprep.subr.bf16.mxu0 %v13813_v36  ;;  %v13892_v35 = vld [vmem:[#allocation6 + $0xa00] ss:$16 sps:$4 sm:$0xff]   ;;  %v13897_v36 = vld [vmem:[#allocation6 + $0x9e4] ss:$16 sps:$4 sm:$0xff]  }
 0x296   :  { %3453 = vmatprep.subr.bf16.mxu1 %v13816_v37  ;;  %v13900_v37 = vld [vmem:[#allocation6 + $0xbe4] ss:$16 sps:$4 sm:$0xff]  }
 0x298   :  { %3411 = vmatpush2.bf16.msra.mxu0 %v13811_v38  ;;  %v13895_v38 = vld [vmem:[#allocation6 + $0x9e0] ss:$16 sps:$4 sm:$0xff]  }
 0x299   :  { %3454 = vmatpush2.bf16.msra.mxu1 %v13814_v11  ;;  %3412 = vmatprep.subr.bf16.mxu0 %v13819_v39  ;;  %v13898_v11 = vld [vmem:[#allocation6 + $0xbe0] ss:$16 sps:$4 sm:$0xff]   ;;  %v13903_v39 = vld [vmem:[#allocation6 + $0x9c4] ss:$16 sps:$4 sm:$0xff]  }
 0x29a   :  { %3455 = vmatprep.subr.bf16.mxu1 %v13822_v12  ;;  %v13906_v12 = vld [vmem:[#allocation6 + $0xbc4] ss:$16 sps:$4 sm:$0xff]  }
 0x29c   :  { %3413 = vmatpush2.bf16.msra.mxu0 %v13817_v42  ;;  %v13901_v42 = vld [vmem:[#allocation6 + $0x9c0] ss:$16 sps:$4 sm:$0xff]  }
 0x29d   :  { %3456 = vmatpush2.bf16.msra.mxu1 %v13820_v44  ;;  %3414 = vmatprep.subr.bf16.mxu0 %v13825_v46  ;;  %v13904_v44 = vld [vmem:[#allocation6 + $0xbc0] ss:$16 sps:$4 sm:$0xff]   ;;  %v13909_v46 = vld [vmem:[#allocation6 + $0x9a4] ss:$16 sps:$4 sm:$0xff]  }
 0x29e   :  { %3457 = vmatprep.subr.bf16.mxu1 %v13828_v47  ;;  %v13912_v47 = vld [vmem:[#allocation6 + $0xba4] ss:$16 sps:$4 sm:$0xff]  }
 0x2a0   :  { %3415 = vmatpush2.bf16.msra.mxu0 %v13823_v48  ;;  %v13907_v48 = vld [vmem:[#allocation6 + $0x9a0] ss:$16 sps:$4 sm:$0xff]  }
 0x2a1   :  { %3458 = vmatpush2.bf16.msra.mxu1 %v13826_v15  ;;  %3416 = vmatprep.subr.bf16.mxu0 %v13831_v49  ;;  %v13910_v15 = vld [vmem:[#allocation6 + $0xba0] ss:$16 sps:$4 sm:$0xff]   ;;  %v13915_v49 = vld [vmem:[#allocation6 + $0x984] ss:$16 sps:$4 sm:$0xff]  }
 0x2a2   :  { %3459 = vmatprep.subr.bf16.mxu1 %v13834_v50  ;;  %v13918_v50 = vld [vmem:[#allocation6 + $0xb84] ss:$16 sps:$4 sm:$0xff]  }
 0x2a4   :  { %3417 = vmatpush2.bf16.msra.mxu0 %v13829_v51  ;;  %v13913_v51 = vld [vmem:[#allocation6 + $0x980] ss:$16 sps:$4 sm:$0xff]  }
 0x2a5   :  { %3460 = vmatpush2.bf16.msra.mxu1 %v13832_v52  ;;  %3418 = vmatprep.subr.bf16.mxu0 %v13837_v16  ;;  %v13916_v52 = vld [vmem:[#allocation6 + $0xb80] ss:$16 sps:$4 sm:$0xff]   ;;  %v13921_v16 = vld [vmem:[#allocation6 + $0x964] ss:$16 sps:$4 sm:$0xff]  }
 0x2a6   :  { %3461 = vmatprep.subr.bf16.mxu1 %v13840_v45  ;;  %v13924_v45 = vld [vmem:[#allocation6 + $0xb64] ss:$16 sps:$4 sm:$0xff]  }
 0x2a8   :  { %3419 = vmatpush2.bf16.msra.mxu0 %v13835_v53  ;;  %v13919_v53 = vld [vmem:[#allocation6 + $0x960] ss:$16 sps:$4 sm:$0xff]  }
 0x2a9   :  { %3462 = vmatpush2.bf16.msra.mxu1 %v13838_v43  ;;  %3420 = vmatprep.subr.bf16.mxu0 %v13843_v54  ;;  %v13922_v43 = vld [vmem:[#allocation6 + $0xb60] ss:$16 sps:$4 sm:$0xff]   ;;  %v13927_v54 = vld [vmem:[#allocation6 + $0x944] ss:$16 sps:$4 sm:$0xff]  }
 0x2aa   :  { %3463 = vmatprep.subr.bf16.mxu1 %v13846_v55  ;;  %v13930_v55 = vld [vmem:[#allocation6 + $0xb44] ss:$16 sps:$4 sm:$0xff]  }
 0x2ac   :  { %3421 = vmatpush2.bf16.msra.mxu0 %v13841_v56  ;;  %v13925_v56 = vld [vmem:[#allocation6 + $0x940] ss:$16 sps:$4 sm:$0xff]  }
 0x2ad   :  { %3464 = vmatpush2.bf16.msra.mxu1 %v13844_v57  ;;  %4273 = vmatprep.subr.bf16.mxu0 %v13849_v58  ;;  %v13928_v57 = vld [vmem:[#allocation6 + $0xb40] ss:$16 sps:$4 sm:$0xff]  }
 0x2ae   :  { %4316 = vmatprep.subr.bf16.mxu1 %v13852_v59 }
 0x2af   :  { %3423 = vmatmul.mubr.bf16.vlgmr.msra.gmra.mxu0 %v15466_v41  ;;  %v15474_v58 = vpop.f32.mrf.mxu0 }
 0x2b0   :  { %3466 = vmatmul.mubr.bf16.vlgmr.msra.gmra.mxu1 %v15469_v22  ;;  %4274 = vmatpush1.bf16.msra.mxu0 %v13847_v63  ;;  %v15476_v59 = vpop.f32.mrf.mxu1  ;;  %v13933_v63 = vld [vmem:[#allocation6 + $0x924] ss:$16 sps:$4 sm:$0xff]  }
 0x2b1   :  { %4317 = vmatpush1.bf16.msra.mxu1 %v13850_v3  ;;  %4275 = vmatprep.subr.bf16.mxu0 %v13855_v6  ;;  %v13936_v3 = vld [vmem:[#allocation6 + $0xb24] ss:$16 sps:$4 sm:$0xff]   ;;  %v13931_v6 = vld [vmem:[#allocation6 + $0x920] ss:$16 sps:$4 sm:$0xff]  }
 0x2b2   :  { %4318 = vmatprep.subr.bf16.mxu1 %v13858_v40  ;;  %4305 = vmatprep.mubr.bf16.mxu0 %v15460_v4  ;;  %v13934_v40 = vld [vmem:[#allocation6 + $0xb20] ss:$16 sps:$4 sm:$0xff]  }
 0x2b3   :  { %4348 = vmatprep.mubr.bf16.mxu1 %v15463_v5 }
 0x2b4   :  { %4276 = vmatpush1.bf16.msra.mxu0 %v13853_v24  ;;  %v15478_v24 = vpop.f32.mrf.mxu0 }
 0x2b5   :  { %4319 = vmatpush1.bf16.msra.mxu1 %v13856_v7  ;;  %4277 = vmatprep.subr.bf16.mxu0 %v13861_v8  ;;  %v15480_v7 = vpop.f32.mrf.mxu1  ;;  %v13939_v8 = vld [vmem:[#allocation6 + $0x904] ss:$16 sps:$4 sm:$0xff]  }
 0x2b6   :  { %4320 = vmatprep.subr.bf16.mxu1 %v13864_v62  ;;  %v13942_v62 = vld [vmem:[#allocation6 + $0xb04] ss:$16 sps:$4 sm:$0xff]  }
 0x2b8   :  { %4278 = vmatpush1.bf16.msra.mxu0 %v13859_v9  ;;  %v13937_v9 = vld [vmem:[#allocation6 + $0x900] ss:$16 sps:$4 sm:$0xff]  }
 0x2b9   :  { %4321 = vmatpush1.bf16.msra.mxu1 %v13862_v10  ;;  %4279 = vmatprep.subr.bf16.mxu0 %v13867_v13  ;;  %v13940_v10 = vld [vmem:[#allocation6 + $0xb00] ss:$16 sps:$4 sm:$0xff]   ;;  %v15482_v13 = vpop.f32.mrf.mxu0 }
 0x2ba   :  { %4322 = vmatprep.subr.bf16.mxu1 %v13870_v14  ;;  %v15484_v14 = vpop.f32.mrf.mxu1 }
 0x2bc   :  { %4280 = vmatpush1.bf16.msra.mxu0 %v13865_v17  ;;  %v13945_v17 = vld [vmem:[#allocation6 + $0x8ec] ss:$16 sps:$4 sm:$0xff]  }
 0x2bd   :  { %4323 = vmatpush1.bf16.msra.mxu1 %v13868_v18  ;;  %4281 = vmatprep.subr.bf16.mxu0 %v13873_v19  ;;  %v13948_v18 = vld [vmem:[#allocation6 + $0xaec] ss:$16 sps:$4 sm:$0xff]   ;;  %v13943_v19 = vld [vmem:[#allocation6 + $0x8e8] ss:$16 sps:$4 sm:$0xff]  }
 0x2be   :  { %4324 = vmatprep.subr.bf16.mxu1 %v13876_v20  ;;  %v13946_v20 = vld [vmem:[#allocation6 + $0xae8] ss:$16 sps:$4 sm:$0xff]  }
 0x2c0   :  { %4282 = vmatpush1.bf16.msra.mxu0 %v13871_v21  ;;  %v15486_v21 = vpop.f32.mrf.mxu0 }
 0x2c1   :  { %4325 = vmatpush1.bf16.msra.mxu1 %v13874_v2  ;;  %4283 = vmatprep.subr.bf16.mxu0 %v13879_v23  ;;  %v15488_v2 = vpop.f32.mrf.mxu1  ;;  %v13951_v23 = vld [vmem:[#allocation6 + $0x8cc] ss:$16 sps:$4 sm:$0xff]  }
 0x2c2   :  { %4326 = vmatprep.subr.bf16.mxu1 %v13882_v25  ;;  %v13954_v25 = vld [vmem:[#allocation6 + $0xacc] ss:$16 sps:$4 sm:$0xff]  }
 0x2c4   :  { %4284 = vmatpush1.bf16.msra.mxu0 %v13877_v26 }
 0x2c5   :  { %4327 = vmatpush1.bf16.msra.mxu1 %v13880_v27  ;;  %4285 = vmatprep.subr.bf16.mxu0 %v13885_v28 }
 0x2c6   :  { %4328 = vmatprep.subr.bf16.mxu1 %v13888_v29  ;;  %v13949_v29 = vld [vmem:[#allocation6 + $0x8c8] ss:$16 sps:$4 sm:$0xff]  }
 0x2c8   :  { %4286 = vmatpush1.bf16.msra.mxu0 %v13883_v30  ;;  %v13952_v30 = vld [vmem:[#allocation6 + $0xac8] ss:$16 sps:$4 sm:$0xff]  }
 0x2c9   :  { %4329 = vmatpush1.bf16.msra.mxu1 %v13886_v31  ;;  %4287 = vmatprep.subr.bf16.mxu0 %v13891_v32 }
 0x2ca   :  { %4330 = vmatprep.subr.bf16.mxu1 %v13894_v33  ;;  %v13957_v33 = vld [vmem:[#allocation6 + $0x8ac] ss:$16 sps:$4 sm:$0xff]  }
 0x2cc   :  { %4288 = vmatpush1.bf16.msra.mxu0 %v13889_v34  ;;  %v13960_v34 = vld [vmem:[#allocation6 + $0xaac] ss:$16 sps:$4 sm:$0xff]  }
 0x2cd   :  { %4331 = vmatpush1.bf16.msra.mxu1 %v13892_v35  ;;  %4289 = vmatprep.subr.bf16.mxu0 %v13897_v36 }
 0x2ce   :  { %4332 = vmatprep.subr.bf16.mxu1 %v13900_v37 }
 0x2d0   :  { %4290 = vmatpush2.bf16.msra.mxu0 %v13895_v38 }
 0x2d1   :  { %4333 = vmatpush2.bf16.msra.mxu1 %v13898_v11  ;;  %4291 = vmatprep.subr.bf16.mxu0 %v13903_v39  ;;  %v13955_v11 = vld [vmem:[#allocation6 + $0x8a8] ss:$16 sps:$4 sm:$0xff]  }
 0x2d2   :  { %4334 = vmatprep.subr.bf16.mxu1 %v13906_v12  ;;  %v13958_v39 = vld [vmem:[#allocation6 + $0xaa8] ss:$16 sps:$4 sm:$0xff]  }
 0x2d4   :  { %4292 = vmatpush2.bf16.msra.mxu0 %v13901_v42 }
 0x2d5   :  { %4335 = vmatpush2.bf16.msra.mxu1 %v13904_v44  ;;  %4293 = vmatprep.subr.bf16.mxu0 %v13909_v46  ;;  %v13963_v44 = vld [vmem:[#allocation6 + $0x88c] ss:$16 sps:$4 sm:$0xff]  }
 0x2d6   :  { %4336 = vmatprep.subr.bf16.mxu1 %v13912_v47  ;;  %v13966_v46 = vld [vmem:[#allocation6 + $0xa8c] ss:$16 sps:$4 sm:$0xff]  }
 0x2d8   :  { %4294 = vmatpush2.bf16.msra.mxu0 %v13907_v48  ;;  %v13961_v48 = vld [vmem:[#allocation6 + $0x888] ss:$16 sps:$4 sm:$0xff]  }
 0x2d9   :  { %4337 = vmatpush2.bf16.msra.mxu1 %v13910_v15  ;;  %4295 = vmatprep.subr.bf16.mxu0 %v13915_v49  ;;  %v13964_v15 = vld [vmem:[#allocation6 + $0xa88] ss:$16 sps:$4 sm:$0xff]   ;;  %v13969_v49 = vld [vmem:[#allocation6 + $0x86c] ss:$16 sps:$4 sm:$0xff]  }
 0x2da   :  { %4338 = vmatprep.subr.bf16.mxu1 %v13918_v50  ;;  %v13972_v50 = vld [vmem:[#allocation6 + $0xa6c] ss:$16 sps:$4 sm:$0xff]  }
 0x2dc   :  { %4296 = vmatpush2.bf16.msra.mxu0 %v13913_v51  ;;  %v13967_v51 = vld [vmem:[#allocation6 + $0x868] ss:$16 sps:$4 sm:$0xff]  }
 0x2dd   :  { %4339 = vmatpush2.bf16.msra.mxu1 %v13916_v52  ;;  %4297 = vmatprep.subr.bf16.mxu0 %v13921_v16  ;;  %v13970_v52 = vld [vmem:[#allocation6 + $0xa68] ss:$16 sps:$4 sm:$0xff]   ;;  %v13975_v16 = vld [vmem:[#allocation6 + $0x84c] ss:$16 sps:$4 sm:$0xff]  }
 0x2de   :  { %4340 = vmatprep.subr.bf16.mxu1 %v13924_v45  ;;  %v13978_v45 = vld [vmem:[#allocation6 + $0xa4c] ss:$16 sps:$4 sm:$0xff]  }
 0x2e0   :  { %4298 = vmatpush2.bf16.msra.mxu0 %v13919_v53  ;;  %v13973_v53 = vld [vmem:[#allocation6 + $0x848] ss:$16 sps:$4 sm:$0xff]  }
 0x2e1   :  { %4341 = vmatpush2.bf16.msra.mxu1 %v13922_v43  ;;  %4299 = vmatprep.subr.bf16.mxu0 %v13927_v54  ;;  %v13976_v43 = vld [vmem:[#allocation6 + $0xa48] ss:$16 sps:$4 sm:$0xff]   ;;  %v13981_v54 = vld [vmem:[#allocation6 + $0x82c] ss:$16 sps:$4 sm:$0xff]  }
 0x2e2   :  { %4342 = vmatprep.subr.bf16.mxu1 %v13930_v55  ;;  %v13984_v55 = vld [vmem:[#allocation6 + $0xa2c] ss:$16 sps:$4 sm:$0xff]  }
 0x2e4   :  { %4300 = vmatpush2.bf16.msra.mxu0 %v13925_v56  ;;  %v13979_v56 = vld [vmem:[#allocation6 + $0x828] ss:$16 sps:$4 sm:$0xff]  }
 0x2e5   :  { %4343 = vmatpush2.bf16.msra.mxu1 %v13928_v57  ;;  %4301 = vmatprep.subr.bf16.mxu0 %v13933_v63  ;;  %v13982_v57 = vld [vmem:[#allocation6 + $0xa28] ss:$16 sps:$4 sm:$0xff]   ;;  %v13987_v63 = vld [vmem:[#allocation6 + $0x80c] ss:$16 sps:$4 sm:$0xff]  }
 0x2e6   :  { %4344 = vmatprep.subr.bf16.mxu1 %v13936_v3  ;;  %v13990_v3 = vld [vmem:[#allocation6 + $0xa0c] ss:$16 sps:$4 sm:$0xff]  }
 0x2e8   :  { %4302 = vmatpush2.bf16.msra.mxu0 %v13931_v6  ;;  %v13985_v6 = vld [vmem:[#allocation6 + $0x808] ss:$16 sps:$4 sm:$0xff]  }
 0x2e9   :  { %4345 = vmatpush2.bf16.msra.mxu1 %v13934_v40  ;;  %4303 = vmatprep.subr.bf16.mxu0 %v13939_v8  ;;  %v13988_v40 = vld [vmem:[#allocation6 + $0xa08] ss:$16 sps:$4 sm:$0xff]   ;;  %v13993_v8 = vld [vmem:[#allocation6 + $0x9ec] ss:$16 sps:$4 sm:$0xff]  }
 0x2ea   :  { %4346 = vmatprep.subr.bf16.mxu1 %v13942_v62  ;;  %v13996_v62 = vld [vmem:[#allocation6 + $0xbec] ss:$16 sps:$4 sm:$0xff]  }
 0x2ec   :  { %4304 = vmatpush2.bf16.msra.mxu0 %v13937_v9  ;;  %v13991_v9 = vld [vmem:[#allocation6 + $0x9e8] ss:$16 sps:$4 sm:$0xff]  }
 0x2ed   :  { %4347 = vmatpush2.bf16.msra.mxu1 %v13940_v10  ;;  %4359 = vmatprep.subr.bf16.mxu0 %v13945_v17  ;;  %v13994_v10 = vld [vmem:[#allocation6 + $0xbe8] ss:$16 sps:$4 sm:$0xff]   ;;  %v13999_v17 = vld [vmem:[#allocation6 + $0x9cc] ss:$16 sps:$4 sm:$0xff]  }
 0x2ee   :  { %4402 = vmatprep.subr.bf16.mxu1 %v13948_v18  ;;  %v14002_v18 = vld [vmem:[#allocation6 + $0xbcc] ss:$16 sps:$4 sm:$0xff]  }
 0x2ef   :  { %v2455_v26 = vpop.f32.mrf.mxu0  ;;  %4306 = vmatmul.mubr.bf16.vlgmr.msra.gmra.mxu0 %v15466_v41 }
 0x2f0   :  { %v2498_v27 = vpop.f32.mrf.mxu1  ;;  %4349 = vmatmul.mubr.bf16.vlgmr.msra.gmra.mxu1 %v15469_v22  ;;  %4360 = vmatpush1.bf16.msra.mxu0 %v13943_v19  ;;  %v13997_v19 = vld [vmem:[#allocation6 + $0x9c8] ss:$16 sps:$4 sm:$0xff]  }
 0x2f1   :  { %v15492_v28 = vadd.f32 %v2498_v27, %v2455_v26  ;;  %4403 = vmatpush1.bf16.msra.mxu1 %v13946_v20  ;;  %v2457_v31 = vpop.f32.mrf.mxu0  ;;  %4361 = vmatprep.subr.bf16.mxu0 %v13951_v23  ;;  %v14000_v20 = vld [vmem:[#allocation6 + $0xbc8] ss:$16 sps:$4 sm:$0xff]   ;;  %v14005_v23 = vld [vmem:[#allocation6 + $0x9ac] ss:$16 sps:$4 sm:$0xff]  }
 0x2f2   :  { %v2500_v32 = vpop.f32.mrf.mxu1  ;;  %4404 = vmatprep.subr.bf16.mxu1 %v13954_v25  ;;  %4391 = vmatprep.mubr.bf16.mxu0 %v15460_v4  ;;  %v14008_v25 = vld [vmem:[#allocation6 + $0xbac] ss:$16 sps:$4 sm:$0xff]   ;;  %v14003_v26 = vld [vmem:[#allocation6 + $0x9a8] ss:$16 sps:$4 sm:$0xff]  }
 0x2f3   :  { %v15494_v35 = vadd.f32 %v2500_v32, %v2457_v31  ;;  %4434 = vmatprep.mubr.bf16.mxu1 %v15463_v5  ;;  %v2459_v36 = vpop.f32.mrf.mxu0  ;;  %v14006_v27 = vld [vmem:[#allocation6 + $0xba8] ss:$16 sps:$4 sm:$0xff]  }
 0x2f4   :  { %v2502_v37 = vpop.f32.mrf.mxu1  ;;  %4362 = vmatpush1.bf16.msra.mxu0 %v13949_v29  ;;  %v14011_v29 = vld [vmem:[#allocation6 + $0x98c] ss:$16 sps:$4 sm:$0xff]   ;;  %v14009_v31 = vld [vmem:[#allocation6 + $0x988] ss:$16 sps:$4 sm:$0xff]  }
 0x2f5   :  { %v15498_v38 = vadd.f32 %v2502_v37, %v2459_v36  ;;  %4405 = vmatpush1.bf16.msra.mxu1 %v13952_v30  ;;  %v2461_v12 = vpop.f32.mrf.mxu0  ;;  %4363 = vmatprep.subr.bf16.mxu0 %v13957_v33  ;;  %v14014_v30 = vld [vmem:[#allocation6 + $0xb8c] ss:$16 sps:$4 sm:$0xff]   ;;  %v14012_v32 = vld [vmem:[#allocation6 + $0xb88] ss:$16 sps:$4 sm:$0xff]  }
 0x2f6   :  { %v2504_v42 = vpop.f32.mrf.mxu1  ;;  %4406 = vmatprep.subr.bf16.mxu1 %v13960_v34  ;;  %v14017_v33 = vld [vmem:[#allocation6 + $0x96c] ss:$16 sps:$4 sm:$0xff]   ;;  %v14015_v36 = vld [vmem:[#allocation6 + $0x968] ss:$16 sps:$4 sm:$0xff]  }
 0x2f7   :  { %v12795_v47 = vpack.c.bf16 %v15498_v38, %v15492_v28  ;;  %v15502_v4 = vadd.f32 %v2504_v42, %v2461_v12  ;;  %v14020_v34 = vld [vmem:[#allocation6 + $0xb6c] ss:$16 sps:$4 sm:$0xff]   ;;  %v14018_v37 = vld [vmem:[#allocation6 + $0xb68] ss:$16 sps:$4 sm:$0xff]   ;;  %v4779_v28 = vld [vmem:[%s16735_s5 + $0x70] sm:$0xff] }
 0x2f8   :  { %4364 = vmatpush1.bf16.msra.mxu0 %v13955_v11  ;;  %v14023_v11 = vld [vmem:[#allocation6 + $0x94c] ss:$16 sps:$4 sm:$0xff]   ;;  %v14021_v12 = vld [vmem:[#allocation6 + $0x948] ss:$16 sps:$4 sm:$0xff]  }
 0x2f9   :  { %v12796_v5 = vpack.c.bf16 %v15502_v4, %v15494_v35  ;;  %4407 = vmatpush1.bf16.msra.mxu1 %v13958_v39  ;;  %4365 = vmatprep.subr.bf16.mxu0 %v13963_v44  ;;  %v14026_v39 = vld [vmem:[#allocation6 + $0xb4c] ss:$16 sps:$4 sm:$0xff]   ;;  %v14024_v42 = vld [vmem:[#allocation6 + $0xb48] ss:$16 sps:$4 sm:$0xff]   ;;  %v4795_v35 = vld [vmem:[%s16735_s5 + $0xf0] sm:$0xff] }
 0x2fa   :  { %4408 = vmatprep.subr.bf16.mxu1 %v13966_v46  ;;  %v14029_v44 = vld [vmem:[#allocation6 + $0x92c] ss:$16 sps:$4 sm:$0xff]   ;;  %v4793_v4 = vld [vmem:[%s16735_s5 + $0xe0] sm:$0xff] }
 0x2fb   :  { %v14032_v46 = vld [vmem:[#allocation6 + $0xb2c] ss:$16 sps:$4 sm:$0xff]  }
 0x2fc   :  { %4366 = vmatpush1.bf16.msra.mxu0 %v13961_v48  ;;  %v14027_v48 = vld [vmem:[#allocation6 + $0x928] ss:$16 sps:$4 sm:$0xff]  }
 0x2fd   :  { %4409 = vmatpush1.bf16.msra.mxu1 %v13964_v15  ;;  %4367 = vmatprep.subr.bf16.mxu0 %v13969_v49  ;;  %v14030_v15 = vld [vmem:[#allocation6 + $0xb28] ss:$16 sps:$4 sm:$0xff]   ;;  %v14035_v49 = vld [vmem:[#allocation6 + $0x90c] ss:$16 sps:$4 sm:$0xff]  }
 0x2fe   :  { %4410 = vmatprep.subr.bf16.mxu1 %v13972_v50  ;;  %v14038_v50 = vld [vmem:[#allocation6 + $0xb0c] ss:$16 sps:$4 sm:$0xff]  }
 0x2ff   :  { %v4794_v38 = vld [vmem:[%s16735_s5 + $0xe8] sm:$0xff] }
 0x300   :  { %4368 = vmatpush1.bf16.msra.mxu0 %v13967_v51  ;;  %v14033_v51 = vld [vmem:[#allocation6 + $0x908] ss:$16 sps:$4 sm:$0xff]  }
 0x301   :  { %4411 = vmatpush1.bf16.msra.mxu1 %v13970_v52  ;;  %4369 = vmatprep.subr.bf16.mxu0 %v13975_v16  ;;  %v14036_v52 = vld [vmem:[#allocation6 + $0xb08] ss:$16 sps:$4 sm:$0xff]  }
 0x302   :  { %4412 = vmatprep.subr.bf16.mxu1 %v13978_v45 }
 0x304   :  { %4370 = vmatpush1.bf16.msra.mxu0 %v13973_v53 }
 0x305   :  { %4413 = vmatpush1.bf16.msra.mxu1 %v13976_v43  ;;  %4371 = vmatprep.subr.bf16.mxu0 %v13981_v54 }
 0x306   :  { %4414 = vmatprep.subr.bf16.mxu1 %v13984_v55 }
 0x308   :  { %4372 = vmatpush1.bf16.msra.mxu0 %v13979_v56 }
 0x309   :  { %4415 = vmatpush1.bf16.msra.mxu1 %v13982_v57  ;;  %4373 = vmatprep.subr.bf16.mxu0 %v13987_v63 }
 0x30a   :  { %4416 = vmatprep.subr.bf16.mxu1 %v13990_v3 }
 0x30c   :  { %4374 = vmatpush1.bf16.msra.mxu0 %v13985_v6 }
 0x30d   :  { %4417 = vmatpush1.bf16.msra.mxu1 %v13988_v40  ;;  %4375 = vmatprep.subr.bf16.mxu0 %v13993_v8 }
 0x30e   :  { %4418 = vmatprep.subr.bf16.mxu1 %v13996_v62 }
 0x310   :  { %4376 = vmatpush2.bf16.msra.mxu0 %v13991_v9 }
 0x311   :  { %4419 = vmatpush2.bf16.msra.mxu1 %v13994_v10  ;;  %4377 = vmatprep.subr.bf16.mxu0 %v13999_v17 }
 0x312   :  { %4420 = vmatprep.subr.bf16.mxu1 %v14002_v18 }
 0x314   :  { %4378 = vmatpush2.bf16.msra.mxu0 %v13997_v19 }
 0x315   :  { %4421 = vmatpush2.bf16.msra.mxu1 %v14000_v20  ;;  %4379 = vmatprep.subr.bf16.mxu0 %v14005_v23 }
 0x316   :  { %4422 = vmatprep.subr.bf16.mxu1 %v14008_v25 }
 0x318   :  { %4380 = vmatpush2.bf16.msra.mxu0 %v14003_v26 }
 0x319   :  { %4423 = vmatpush2.bf16.msra.mxu1 %v14006_v27  ;;  %4381 = vmatprep.subr.bf16.mxu0 %v14011_v29 }
 0x31a   :  { %4424 = vmatprep.subr.bf16.mxu1 %v14014_v30 }
 0x31c   :  { %4382 = vmatpush2.bf16.msra.mxu0 %v14009_v31 }
 0x31d   :  { %4425 = vmatpush2.bf16.msra.mxu1 %v14012_v32  ;;  %4383 = vmatprep.subr.bf16.mxu0 %v14017_v33 }
 0x31e   :  { %4426 = vmatprep.subr.bf16.mxu1 %v14020_v34 }
 0x320   :  { %4384 = vmatpush2.bf16.msra.mxu0 %v14015_v36 }
 0x321   :  { %4427 = vmatpush2.bf16.msra.mxu1 %v14018_v37  ;;  %4385 = vmatprep.subr.bf16.mxu0 %v14023_v11 }
 0x322   :  { %4428 = vmatprep.subr.bf16.mxu1 %v14026_v39 }
 0x324   :  { %4386 = vmatpush2.bf16.msra.mxu0 %v14021_v12 }
 0x325   :  { %4429 = vmatpush2.bf16.msra.mxu1 %v14024_v42  ;;  %4387 = vmatprep.subr.bf16.mxu0 %v14029_v44 }
 0x326   :  { %4430 = vmatprep.subr.bf16.mxu1 %v14032_v46  ;;  %v2419_v46 = vadd.f32 %v15488_v2, %v15486_v21  ;;  %v14039_v21 = vld [vmem:[#allocation16] sm:$0xff]  }
 0x328   :  { %4388 = vmatpush2.bf16.msra.mxu0 %v14027_v48 }
 0x329   :  { %4431 = vmatpush2.bf16.msra.mxu1 %v14030_v15  ;;  %4389 = vmatprep.subr.bf16.mxu0 %v14035_v49  ;;  %v2415_v49 = vadd.f32 %v15480_v7, %v15478_v24  ;;  %v14040_v24 = vld [vmem:[#allocation16 + $0x8] sm:$0xff]  }
 0x32a   :  { %4432 = vmatprep.subr.bf16.mxu1 %v14038_v50  ;;  %v2417_v50 = vadd.f32 %v15484_v14, %v15482_v13 }
 0x32c   :  { %4390 = vmatpush2.bf16.msra.mxu0 %v14033_v51 }
 0x32d   :  { %4433 = vmatpush2.bf16.msra.mxu1 %v14036_v52  ;;  %v12794_v52 = vpack.c.bf16 %v2419_v46, %v2415_v49  ;;  %v4782_v46 = vld [vmem:[%s16735_s5 + $0x88] sm:$0xff]  ;;  %v4824_v49 = vld [vmem:[%s16735_s5 + $0x1d8] sm:$0xff] }
 0x32f   :  { %4392 = vmatmul.mubr.bf16.vlgmr.msra.gmra.mxu0 %v15466_v41  ;;  %v3338_v16 = vpop.f32.mrf.mxu0 }
 0x330   :  { %4435 = vmatmul.mubr.bf16.vlgmr.msra.gmra.mxu1 %v15469_v22  ;;  %4598 = vmatprep.mubr.bf16.mxu0 %v16751_v0  ;;  %v3381_v45 = vpop.f32.mrf.mxu1 }
 0x331   :  { %4651 = vmatprep.mubr.bf16.mxu1 %v16751_v0  ;;  %v3340_v53 = vpop.f32.mrf.mxu0  ;;  %v3382_v15 = vadd.f32 %v3381_v45, %v3338_v16 }
 0x332   :  { %v3383_v43 = vpop.f32.mrf.mxu1 }
 0x333   :  { %v3342_v54 = vpop.f32.mrf.mxu0  ;;  %v3384_v39 = vadd.f32 %v3383_v43, %v3340_v53  ;;  %v2413_v53 = vadd.f32 %v15476_v59, %v15474_v58 }
 0x334   :  { %v3385_v55 = vpop.f32.mrf.mxu1 }
 0x335   :  { %v3344_v56 = vpop.f32.mrf.mxu0  ;;  %v3386_v42 = vadd.f32 %v3385_v55, %v3342_v54  ;;  %v12793_v43 = vpack.c.bf16 %v2417_v50, %v2413_v53  ;;  %v4781_v50 = vld [vmem:[%s16735_s5 + $0x80] sm:$0xff]  ;;  %v4823_v53 = vld [vmem:[%s16735_s5 + $0x1d0] sm:$0xff] }
 0x336   :  { %v3387_v57 = vpop.f32.mrf.mxu1 }
 0x337   :  { %v3388_v34 = vadd.f32 %v3387_v57, %v3344_v56  ;;  %v12797_v51 = vpack.c.bf16 %v3386_v42, %v3382_v15  ;;  %v4767_v42 = vld [vmem:[%s16735_s5 + $0x10] sm:$0xff]  ;;  %v4766_v15 = vld [vmem:[%s16735_s5 + $0x8] sm:$0xff] }
 0x339   :  { %v12798_v48 = vpack.c.bf16 %v3388_v34, %v3384_v39  ;;  %v4784_v34 = vld [vmem:[%s16735_s5 + $0x98] sm:$0xff]  ;;  %v4783_v39 = vld [vmem:[%s16735_s5 + $0x90] sm:$0xff] }
 0x36f   :  { %v3424_v63 = vpop.f32.mrf.mxu0 }
 0x370   :  { %v3467_v3 = vpop.f32.mrf.mxu1 }
 0x371   :  { %v15510_v6 = vadd.f32 %v3467_v3, %v3424_v63  ;;  %v3426_v40 = vpop.f32.mrf.mxu0 }
 0x372   :  { %v3469_v41 = vpop.f32.mrf.mxu1 }
 0x373   :  { %v15512_v8 = vadd.f32 %v3469_v41, %v3426_v40  ;;  %v3428_v22 = vpop.f32.mrf.mxu0  ;;  %v4780_v40 = vld [vmem:[%s16735_s5 + $0x78] sm:$0xff] }
 0x374   :  { %v3471_v62 = vpop.f32.mrf.mxu1  ;;  %v4792_v41 = vld [vmem:[%s16735_s5 + $0xd8] sm:$0xff] }
 0x375   :  { %v3472_v9 = vadd.f32 %v3471_v62, %v3428_v22  ;;  %v3430_v10 = vpop.f32.mrf.mxu0  ;;  %v4791_v22 = vld [vmem:[%s16735_s5 + $0xd0] sm:$0xff] }
 0x376   :  { %v3473_v17 = vpop.f32.mrf.mxu1  ;;  %v4775_v62 = vld [vmem:[%s16735_s5 + $0x50] sm:$0xff] }
 0x377   :  { %v12799_v18 = vpack.c.bf16 %v3472_v9, %v15510_v6  ;;  %v3474_v19 = vadd.f32 %v3473_v17, %v3430_v10  ;;  %v4796_v6 = vld [vmem:[%s16735_s5 + $0xf8] sm:$0xff]  ;;  %v4790_v9 = vld [vmem:[%s16735_s5 + $0xc8] sm:$0xff]  ;;  %v4789_v17 = vld [vmem:[%s16735_s5 + $0xc0] sm:$0xff] }
 0x378   :  { %v4774_v10 = vld [vmem:[%s16735_s5 + $0x48] sm:$0xff] }
 0x379   :  { %v12800_v20 = vpack.c.bf16 %v3474_v19, %v15512_v8  ;;  %v4776_v8 = vld [vmem:[%s16735_s5 + $0x58] sm:$0xff] }
 0x37a   :  { %v4788_v19 = vld [vmem:[%s16735_s5 + $0xb8] sm:$0xff] }
 0x3af   :  { %v4307_v23 = vpop.f32.mrf.mxu0 }
 0x3b0   :  { %v4350_v25 = vpop.f32.mrf.mxu1 }
 0x3b1   :  { %v4309_v26 = vpop.f32.mrf.mxu0  ;;  %v4351_v11 = vadd.f32 %v4350_v25, %v4307_v23  ;;  %v4787_v23 = vld [vmem:[%s16735_s5 + $0xb0] sm:$0xff] }
 0x3b2   :  { %v4352_v27 = vpop.f32.mrf.mxu1  ;;  %v4771_v25 = vld [vmem:[%s16735_s5 + $0x30] sm:$0xff] }
 0x3b3   :  { %v4311_v29 = vpop.f32.mrf.mxu0  ;;  %v4353_v36 = vadd.f32 %v4352_v27, %v4309_v26  ;;  %v4786_v26 = vld [vmem:[%s16735_s5 + $0xa8] sm:$0xff] }
 0x3b4   :  { %v4354_v30 = vpop.f32.mrf.mxu1  ;;  %v4770_v27 = vld [vmem:[%s16735_s5 + $0x28] sm:$0xff] }
 0x3b5   :  { %v4355_v31 = vadd.f32 %v4354_v30, %v4311_v29  ;;  %v4313_v32 = vpop.f32.mrf.mxu0  ;;  %v4828_v29 = vld [vmem:[%s16735_s5 + $0x1f8] sm:$0xff]  ;;  %v4785_v30 = vld [vmem:[%s16735_s5 + $0xa0] sm:$0xff] }
 0x3b6   :  { %v4356_v33 = vpop.f32.mrf.mxu1 }
 0x3b7   :  { %v4357_v37 = vadd.f32 %v4356_v33, %v4313_v32  ;;  %v12801_v44 = vpack.c.bf16 %v4355_v31, %v4351_v11  ;;  %v4812_v31 = vld [vmem:[%s16735_s5 + $0x178] sm:$0xff]  ;;  %v4769_v32 = vld [vmem:[%s16735_s5 + $0x20] sm:$0xff]  ;;  %v4827_v33 = vld [vmem:[%s16735_s5 + $0x1f0] sm:$0xff] }
 0x3b8   :  { %v4826_v11 = vld [vmem:[%s16735_s5 + $0x1e8] sm:$0xff] }
 0x3b9   :  { %v12802_v12 = vpack.c.bf16 %v4357_v37, %v4353_v36  ;;  %v4811_v36 = vld [vmem:[%s16735_s5 + $0x170] sm:$0xff]  ;;  %v4768_v37 = vld [vmem:[%s16735_s5 + $0x18] sm:$0xff] }
 0x3bb   :  { %4576 = vmatprep.subr.bf16.mxu0 %v12802_v12  ;;  %v4810_v12 = vld [vmem:[%s16735_s5 + $0x168] sm:$0xff] }
 0x3bc   :  { %4577 = vmatpush1.bf16.msra.mxu0 %v12801_v44  ;;  %v4825_v44 = vld [vmem:[%s16735_s5 + $0x1e0] sm:$0xff] }
 0x3bd   :  { %4578 = vmatprep.subr.bf16.mxu0 %v12798_v48  ;;  %v4809_v48 = vld [vmem:[%s16735_s5 + $0x160] sm:$0xff] }
 0x3c0   :  { %4579 = vmatpush1.bf16.msra.mxu0 %v12797_v51  ;;  %v4808_v51 = vld [vmem:[%s16735_s5 + $0x158] sm:$0xff] }
 0x3c1   :  { %4580 = vmatprep.subr.bf16.mxu0 %v12794_v52  ;;  %v4765_v52 = vld [vmem:[%s16735_s5] sm:$0xff] }
 0x3c4   :  { %4581 = vmatpush1.bf16.msra.mxu0 %v12793_v43  ;;  %v4807_v43 = vld [vmem:[%s16735_s5 + $0x150] sm:$0xff] }
 0x3c5   :  { %12829 = vmatprep.subr.mxu0 %v4796_v6  ;;  %v4814_v6 = vld [vmem:[%s16735_s5 + $0x188] sm:$0xff] }
 0x3c7   :  { %11976 = vmatmul.mubr.msk.bf16.vlgmr.msra.gmra.mxu0 %vm4559_vm14, %v14039_v21 }
 0x3c8   :  { %4608 = vmatprep.mubr.bf16.mxu0 %v16751_v0  ;;  %12830 = vmatpush3.msra.mxu0 %v4780_v40  ;;  %v4798_v40 = vld [vmem:[%s16735_s5 + $0x108] sm:$0xff] }
 0x3c9   :  { %12831 = vmatprep.subr.mxu0 %v4795_v35  ;;  %v4813_v35 = vld [vmem:[%s16735_s5 + $0x180] sm:$0xff] }
 0x3ca   :  { %12832 = vmatpush3.msra.mxu0 %v4779_v28  ;;  %v4797_v28 = vld [vmem:[%s16735_s5 + $0x100] sm:$0xff] }
 0x3cb   :  { %12833 = vmatprep.subr.mxu0 %v4794_v38 }
 0x3cf   :  { %11977 = vmatmul.mubr.msk.bf16.gmra.mxu0 %vm4559_vm14, %v14040_v24 }
 0x3ef   :  { %v4393_v7 = vpop.f32.mrf.mxu0 }
 0x3f0   :  { %v4436_v13 = vpop.f32.mrf.mxu1 }
 0x3f1   :  { %v4395_v14 = vpop.f32.mrf.mxu0  ;;  %v4437_v57 = vadd.f32 %v4436_v13, %v4393_v7  ;;  %v4821_v7 = vld [vmem:[%s16735_s5 + $0x1c0] sm:$0xff] }
 0x3f2   :  { %v4438_v2 = vpop.f32.mrf.mxu1  ;;  %v4805_v13 = vld [vmem:[%s16735_s5 + $0x140] sm:$0xff] }
 0x3f3   :  { %v4397_v16 = vpop.f32.mrf.mxu0  ;;  %v4439_v55 = vadd.f32 %v4438_v2, %v4395_v14  ;;  %v4820_v14 = vld [vmem:[%s16735_s5 + $0x1b8] sm:$0xff] }
 0x3f4   :  { %v4440_v45 = vpop.f32.mrf.mxu1  ;;  %v4804_v2 = vld [vmem:[%s16735_s5 + $0x138] sm:$0xff] }
 0x3f5   :  { %v4441_v58 = vadd.f32 %v4440_v45, %v4397_v16  ;;  %v4399_v59 = vpop.f32.mrf.mxu0  ;;  %v4819_v16 = vld [vmem:[%s16735_s5 + $0x1b0] sm:$0xff] }
 0x3f6   :  { %v4442_v54 = vpop.f32.mrf.mxu1  ;;  %v4803_v45 = vld [vmem:[%s16735_s5 + $0x130] sm:$0xff] }
 0x3f7   :  { %v4443_v56 = vadd.f32 %v4442_v54, %v4399_v59  ;;  %v12803_v3 = vpack.c.bf16 %v4441_v58, %v4437_v57  ;;  %v4818_v58 = vld [vmem:[%s16735_s5 + $0x1a8] sm:$0xff]  ;;  %v4817_v54 = vld [vmem:[%s16735_s5 + $0x1a0] sm:$0xff]  ;;  %v4800_v57 = vld [vmem:[%s16735_s5 + $0x118] sm:$0xff] }
 0x3f8   :  { %v4802_v59 = vld [vmem:[%s16735_s5 + $0x128] sm:$0xff] }
 0x3f9   :  { %v12804_v63 = vpack.c.bf16 %v4443_v56, %v4439_v55  ;;  %v4801_v55 = vld [vmem:[%s16735_s5 + $0x120] sm:$0xff]  ;;  %v4816_v56 = vld [vmem:[%s16735_s5 + $0x198] sm:$0xff] }
 0x3fb   :  { %4629 = vmatprep.subr.bf16.mxu1 %v12804_v63  ;;  %v4815_v63 = vld [vmem:[%s16735_s5 + $0x190] sm:$0xff] }
 0x3fc   :  { %4630 = vmatpush1.bf16.msra.mxu1 %v12803_v3  ;;  %v4799_v3 = vld [vmem:[%s16735_s5 + $0x110] sm:$0xff] }
 0x3fd   :  { %4631 = vmatprep.subr.bf16.mxu1 %v12800_v20  ;;  %v4772_v20 = vld [vmem:[%s16735_s5 + $0x38] sm:$0xff] }
 0x400   :  { %4632 = vmatpush1.bf16.msra.mxu1 %v12799_v18  ;;  %v4773_v18 = vld [vmem:[%s16735_s5 + $0x40] sm:$0xff] }
 0x401   :  { %4633 = vmatprep.subr.bf16.mxu1 %v12796_v5  ;;  %v4777_v5 = vld [vmem:[%s16735_s5 + $0x60] sm:$0xff] }
 0x404   :  { %4634 = vmatpush1.bf16.msra.mxu1 %v12795_v47  ;;  %v4778_v47 = vld [vmem:[%s16735_s5 + $0x68] sm:$0xff] }
 0x405   :  { %12834 = vmatpush3.msra.mxu0 %v4778_v47  ;;  %12864 = vmatprep.subr.mxu1 %v4828_v29 }
 0x406   :  { %12835 = vmatprep.subr.mxu0 %v4793_v4 }
 0x407   :  { %11978 = vmatmul.mubr.msk.bf16.vlgmr.msra.gmra.mxu1 %vm4559_vm14, %v14039_v21  ;;  %12836 = vmatpush3.msra.mxu0 %v4777_v5  ;;  %v4822_v21 = vld [vmem:[%s16735_s5 + $0x1c8] sm:$0xff] }
 0x408   :  { %4661 = vmatprep.mubr.bf16.mxu1 %v16751_v0  ;;  %12837 = vmatprep.subr.mxu0 %v4792_v41 }
 0x409   :  { %12838 = vmatpush3.msra.mxu0 %v4776_v8  ;;  %12865 = vmatpush3.msra.mxu1 %v4812_v31 }
 0x40a   :  { %12839 = vmatprep.subr.mxu0 %v4791_v22  ;;  %12866 = vmatprep.subr.mxu1 %v4827_v33 }
 0x40b   :  { %12840 = vmatpush3.msra.mxu0 %v4775_v62  ;;  %12867 = vmatpush3.msra.mxu1 %v4811_v36 }
 0x40c   :  { %12841 = vmatprep.subr.mxu0 %v4790_v9  ;;  %12868 = vmatprep.subr.mxu1 %v4826_v11 }
 0x40d   :  { %12842 = vmatpush3.msra.mxu0 %v4774_v10  ;;  %12869 = vmatpush3.msra.mxu1 %v4810_v12 }
 0x40e   :  { %12843 = vmatprep.subr.mxu0 %v4789_v17  ;;  %12870 = vmatprep.subr.mxu1 %v4825_v44 }
 0x40f   :  { %11979 = vmatmul.mubr.msk.bf16.gmra.mxu1 %vm4559_vm14, %v14040_v24  ;;  %12844 = vmatpush3.msra.mxu0 %v4773_v18  ;;  %v4806_v24 = vld [vmem:[%s16735_s5 + $0x148] sm:$0xff] }
 0x410   :  { %12845 = vmatprep.subr.mxu0 %v4788_v19  ;;  %12871 = vmatpush3.msra.mxu1 %v4809_v48 }
 0x411   :  { %12846 = vmatpush3.msra.mxu0 %v4772_v20  ;;  %12872 = vmatprep.subr.mxu1 %v4824_v49 }
 0x412   :  { %12847 = vmatprep.subr.mxu0 %v4787_v23  ;;  %12873 = vmatpush3.msra.mxu1 %v4808_v51 }
 0x413   :  { %12848 = vmatpush3.msra.mxu0 %v4771_v25  ;;  %12874 = vmatprep.subr.mxu1 %v4823_v53 }
 0x414   :  { %12849 = vmatprep.subr.mxu0 %v4786_v26  ;;  %12875 = vmatpush3.msra.mxu1 %v4807_v43 }
 0x415   :  { %12850 = vmatpush3.msra.mxu0 %v4770_v27  ;;  %12876 = vmatprep.subr.mxu1 %v4822_v21 }
 0x416   :  { %12851 = vmatprep.subr.mxu0 %v4785_v30  ;;  %12877 = vmatpush3.msra.mxu1 %v4806_v24 }
 0x417   :  { %12852 = vmatpush3.msra.mxu0 %v4769_v32  ;;  %12878 = vmatprep.subr.mxu1 %v4821_v7 }
 0x418   :  { %12853 = vmatprep.subr.mxu0 %v4784_v34  ;;  %12879 = vmatpush3.msra.mxu1 %v4805_v13 }
 0x419   :  { %12854 = vmatpush3.msra.mxu0 %v4768_v37  ;;  %12880 = vmatprep.subr.mxu1 %v4820_v14 }
 0x41a   :  { %12855 = vmatprep.subr.mxu0 %v4783_v39  ;;  %12881 = vmatpush3.msra.mxu1 %v4804_v2 }
 0x41b   :  { %12856 = vmatpush3.msra.mxu0 %v4767_v42  ;;  %12882 = vmatprep.subr.mxu1 %v4819_v16 }
 0x41c   :  { %12857 = vmatprep.subr.mxu0 %v4782_v46  ;;  %12883 = vmatpush3.msra.mxu1 %v4803_v45 }
 0x41d   :  { %12858 = vmatpush3.msra.mxu0 %v4766_v15  ;;  %12884 = vmatprep.subr.mxu1 %v4818_v58 }
 0x41e   :  { %12859 = vmatprep.subr.mxu0 %v4781_v50  ;;  %12885 = vmatpush3.msra.mxu1 %v4802_v59 }
 0x41f   :  { %12860 = vmatpush3.msra.mxu0 %v4765_v52  ;;  %12886 = vmatprep.subr.mxu1 %v4817_v54 }
 0x420   :  { %12887 = vmatpush3.msra.mxu1 %v4801_v55 }
 0x421   :  { %12888 = vmatprep.subr.mxu1 %v4816_v56 }
 0x422   :  { %12889 = vmatpush3.msra.mxu1 %v4800_v57 }
 0x423   :  { %12890 = vmatprep.subr.mxu1 %v4815_v63 }
 0x424   :  { %12891 = vmatpush3.msra.mxu1 %v4799_v3 }
 0x425   :  { %12892 = vmatprep.subr.mxu1 %v4814_v6 }
 0x426   :  { %12893 = vmatpush3.msra.mxu1 %v4798_v40 }
 0x427   :  { %12894 = vmatprep.subr.mxu1 %v4813_v35 }
 0x428   :  { %12895 = vmatpush3.msra.mxu1 %v4797_v28 }
 0x487   :  { %v15728_v38 = vpop.f32.mrf.mxu0 }
 0x488   :  { %v4708_v4 = vmul.f32 %v15728_v38, %v15728_v38 }
 0x489   :  { %v15730_v47 = vpop.f32.mrf.mxu0 }
 0x48a   :  { %v4709_v41 = vmul.f32 %v15730_v47, %v15730_v47 }
 0x48b   :  { %v15734_v5 = vpop.f32.mrf.mxu0 }
 0x48c   :  { %v4672_v8 = vadd.f32 %v15734_v5, %v15728_v38  ;;  %v4712_v22 = vmul.f32 %v15734_v5, %v15734_v5 }
 0x48d   :  { %v15742_v62 = vpop.f32.mrf.mxu0 }
 0x48e   :  { %v4724_v9 = vadd.f32 %v4712_v22, %v4708_v4  ;;  %v4681_v10 = vadd.f32 %v15742_v62, %v15730_v47  ;;  %v4713_v17 = vmul.f32 %v15742_v62, %v15742_v62 }
 0x48f   :  { %v15748_v18 = vpop.f32.mrf.mxu0 }
 0x490   :  { %v4733_v19 = vadd.f32 %v4713_v17, %v4709_v41  ;;  %v4673_v20 = vadd.f32 %v4672_v8, %v15748_v18  ;;  %v4716_v23 = vmul.f32 %v15748_v18, %v15748_v18 }
 0x491   :  { %v15753_v25 = vpop.f32.mrf.mxu0 }
 0x492   :  { %v4725_v26 = vadd.f32 %v4724_v9, %v4716_v23  ;;  %v4682_v27 = vadd.f32 %v4681_v10, %v15753_v25  ;;  %v4717_v29 = vmul.f32 %v15753_v25, %v15753_v25 }
 0x493   :  { %v15758_v30 = vpop.f32.mrf.mxu0 }
 0x494   :  { %v4734_v31 = vadd.f32 %v4733_v19, %v4717_v29  ;;  %v4674_v32 = vadd.f32 %v4673_v20, %v15758_v30  ;;  %v4720_v33 = vmul.f32 %v15758_v30, %v15758_v30 }
 0x495   :  { %v15763_v34 = vpop.f32.mrf.mxu0 }
 0x496   :  { %v4675_v36 = vrot.slane %v4674_v32, 4  ;;  %v4726_v37 = vadd.f32 %v4725_v26, %v4720_v33  ;;  %v4683_v11 = vadd.f32 %v4682_v27, %v15763_v34  ;;  %v4721_v39 = vmul.f32 %v15763_v34, %v15763_v34 }
 0x498   :  { %v4676_v12 = vadd.f32 %v4675_v36, %v4674_v32  ;;  %v4727_v42 = vrot.slane %v4726_v37, 4  ;;  %v4684_v44 = vrot.slane %v4683_v11, 4  ;;  %v4735_v46 = vadd.f32 %v4734_v31, %v4721_v39 }
 0x49a   :  { %v4677_v48 = vrot.slane %v4676_v12, 2  ;;  %v4728_v15 = vadd.f32 %v4727_v42, %v4726_v37  ;;  %v4685_v49 = vadd.f32 %v4684_v44, %v4683_v11  ;;  %v4736_v50 = vrot.slane %v4735_v46, 4 }
 0x49c   :  { %v4678_v51 = vadd.f32 %v4677_v48, %v4676_v12  ;;  %v4729_v52 = vrot.slane %v4728_v15, 2  ;;  %v4686_v53 = vrot.slane %v4685_v49, 2  ;;  %v4737_v43 = vadd.f32 %v4736_v50, %v4735_v46 }
 0x49e   :  { %v4679_v21 = vrot.slane %v4678_v51, 1  ;;  %v4730_v24 = vadd.f32 %v4729_v52, %v4728_v15  ;;  %v4687_v7 = vadd.f32 %v4686_v53, %v4685_v49  ;;  %v4738_v13 = vrot.slane %v4737_v43, 2 }
 0x4a0   :  { %v4731_v14 = vrot.slane %v4730_v24, 1  ;;  %v4688_v2 = vrot.slane %v4687_v7, 1  ;;  %v4739_v16 = vadd.f32 %v4738_v13, %v4737_v43  ;;  %v4680_v45 = vadd.f32 %v4679_v21, %v4678_v51 }
 0x4a2   :  { %v4689_v58 = vadd.f32 %v4688_v2, %v4687_v7  ;;  %v4740_v59 = vrot.slane %v4739_v16, 1  ;;  %v4732_v54 = vadd.f32 %v4731_v14, %v4730_v24 }
 0x4a4   :  { %v4741_v55 = vadd.f32 %v4740_v59, %v4739_v16  ;;  %v4761_v56 = vsel %vm4760_vm15, %v4680_v45, %v4732_v54 }
 0x4a6   :  { %v4762_v57 = vsel %vm4760_vm15, %v4689_v58, %v4741_v55 }
 0x4a7   :  { %4893 = vmatprep.mubr.f32.mxu0 %v4762_v57 }
 0x4a8   :  { %4894 = vmatmul.mubr.f32.vlgmr.msra.gmra.mxu0 %v4761_v56 }
 0x4c7   :  { %v15770_v63 = vpop.f32.mrf.mxu1 }
 0x4c8   :  { %v4710_v41 = vmul.f32 %v15770_v63, %v15770_v63 }
 0x4c9   :  { %v15772_v3 = vpop.f32.mrf.mxu1 }
 0x4ca   :  { %v4711_v9 = vmul.f32 %v15772_v3, %v15772_v3 }
 0x4cb   :  { %v15774_v6 = vpop.f32.mrf.mxu1 }
 0x4cc   :  { %v4714_v35 = vmul.f32 %v15774_v6, %v15774_v6  ;;  %v4690_v8 = vadd.f32 %v15774_v6, %v15770_v63 }
 0x4cd   :  { %v15776_v40 = vpop.f32.mrf.mxu1 }
 0x4ce   :  { %v4715_v28 = vmul.f32 %v15776_v40, %v15776_v40  ;;  %v4742_v17 = vadd.f32 %v4714_v35, %v4710_v41  ;;  %v4699_v19 = vadd.f32 %v15776_v40, %v15772_v3  ;;  %v5019_v41 = vld [vmem:[#allocation18 + $0x68] sm:$0xff] }
 0x4cf   :  { %v15782_v4 = vpop.f32.mrf.mxu1  ;;  %5049 = vmatprep.subr.mxu0 %v5019_v41 }
 0x4d0   :  { %v4718_v22 = vmul.f32 %v15782_v4, %v15782_v4  ;;  %v4691_v20 = vadd.f32 %v4690_v8, %v15782_v4  ;;  %v4751_v26 = vadd.f32 %v4715_v28, %v4711_v9  ;;  %v5021_v8 = vld [vmem:[#allocation18 + $0x78] sm:$0xff]  ;;  %v5020_v9 = vld [vmem:[#allocation18 + $0x70] sm:$0xff] }
 0x4d1   :  { %v15792_v10 = vpop.f32.mrf.mxu1  ;;  %5120 = vmatprep.subr.mxu1 %v5021_v8 }
 0x4d2   :  { %v4719_v23 = vmul.f32 %v15792_v10, %v15792_v10  ;;  %v4743_v29 = vadd.f32 %v4742_v17, %v4718_v22  ;;  %v4700_v31 = vadd.f32 %v4699_v19, %v15792_v10  ;;  %v5018_v22 = vld [vmem:[#allocation18 + $0x60] sm:$0xff]  ;;  %v5015_v17 = vld [vmem:[#allocation18 + $0x48] sm:$0xff]  ;;  %v5017_v19 = vld [vmem:[#allocation18 + $0x58] sm:$0xff] }
 0x4d3   :  { %v15799_v27 = vpop.f32.mrf.mxu1  ;;  %5050 = vmatpush1.msra.mxu0 %v5018_v22 }
 0x4d4   :  { %v4692_v32 = vadd.f32 %v4691_v20, %v15799_v27  ;;  %v4722_v33 = vmul.f32 %v15799_v27, %v15799_v27  ;;  %v4752_v36 = vadd.f32 %v4751_v26, %v4719_v23  ;;  %v5014_v20 = vld [vmem:[#allocation18 + $0x40] sm:$0xff]  ;;  %5051 = vmatprep.subr.mxu0 %v5015_v17  ;;  %v5016_v23 = vld [vmem:[#allocation18 + $0x50] sm:$0xff]  ;;  %v5011_v26 = vld [vmem:[#allocation18 + $0x28] sm:$0xff] }
 0x4d5   :  { %v15805_v37 = vpop.f32.mrf.mxu1  ;;  %5052 = vmatpush1.msra.mxu0 %v5014_v20 }
 0x4d6   :  { %v4693_v11 = vrot.slane %v4692_v32, 4  ;;  %v4744_v39 = vadd.f32 %v4743_v29, %v4722_v33  ;;  %v4701_v12 = vadd.f32 %v4700_v31, %v15805_v37  ;;  %v4723_v42 = vmul.f32 %v15805_v37, %v15805_v37  ;;  %v5013_v29 = vld [vmem:[#allocation18 + $0x38] sm:$0xff]  ;;  %v5010_v31 = vld [vmem:[#allocation18 + $0x20] sm:$0xff]  ;;  %v5007_v33 = vld [vmem:[#allocation18 + $0x8] sm:$0xff]  ;;  %5053 = vmatprep.subr.mxu0 %v5011_v26 }
 0x4d7   :  { %5054 = vmatpush1.msra.mxu0 %v5010_v31 }
 0x4d8   :  { %v4694_v44 = vadd.f32 %v4693_v11, %v4692_v32  ;;  %v4745_v46 = vrot.slane %v4744_v39, 4  ;;  %v4702_v48 = vrot.slane %v4701_v12, 4  ;;  %v4753_v15 = vadd.f32 %v4752_v36, %v4723_v42  ;;  %v5012_v32 = vld [vmem:[#allocation18 + $0x30] sm:$0xff]  ;;  %v5009_v36 = vld [vmem:[#allocation18 + $0x18] sm:$0xff]  ;;  %v5006_v11 = vld [vmem:[#allocation18] sm:$0xff]  ;;  %5055 = vmatprep.subr.mxu0 %v5007_v33 }
 0x4d9   :  { %5056 = vmatpush1.msra.mxu0 %v5006_v11 }
 0x4da   :  { %v4695_v49 = vrot.slane %v4694_v44, 2  ;;  %v4746_v50 = vadd.f32 %v4745_v46, %v4744_v39  ;;  %v4703_v51 = vadd.f32 %v4702_v48, %v4701_v12  ;;  %v4754_v52 = vrot.slane %v4753_v15, 4  ;;  %v5008_v39 = vld [vmem:[#allocation18 + $0x10] sm:$0xff] }
 0x4db   :  { %v16749_v12 = vmov 0.0  }
 0x4dc   :  { %v4747_v53 = vrot.slane %v4746_v50, 2  ;;  %v4704_v43 = vrot.slane %v4703_v51, 2  ;;  %v4755_v21 = vadd.f32 %v4754_v52, %v4753_v15  ;;  %v4696_v24 = vadd.f32 %v4695_v49, %v4694_v44  ;;  %5089 = vmatprep.mubr.f32.mxu0 %v16749_v12 }
 0x4de   :  { %v4748_v7 = vadd.f32 %v4747_v53, %v4746_v50  ;;  %v4705_v13 = vadd.f32 %v4704_v43, %v4703_v51  ;;  %v4756_v14 = vrot.slane %v4755_v21, 2  ;;  %v4697_v58 = vrot.slane %v4696_v24, 1 }
 0x4e0   :  { %v4749_v2 = vrot.slane %v4748_v7, 1  ;;  %v4706_v16 = vrot.slane %v4705_v13, 1  ;;  %v4757_v45 = vadd.f32 %v4756_v14, %v4755_v21  ;;  %v4698_v57 = vadd.f32 %v4697_v58, %v4696_v24  ;;  %v4975_v58 = vld [vmem:[#allocation19] sm:$0x1] }
 0x4e1   :  { %v15172_v24 = vmov 1966171168  }
 0x4e2   :  { %v4758_v59 = vrot.slane %v4757_v45, 1  ;;  %v4750_v54 = vadd.f32 %v4749_v2, %v4748_v7  ;;  %v4707_v55 = vadd.f32 %v4706_v16, %v4705_v13  ;;  %v4980_v7 = vunpack.c.l.s4 %v15172_v24 }
 0x4e4   :  { %v4759_v56 = vadd.f32 %v4758_v59, %v4757_v45  ;;  %v4763_v28 = vsel %vm4760_vm15, %v4698_v57, %v4750_v54  ;;  %v4981_v13 = vunpack.c.0.s8 %v4980_v7 }
 0x4e6   :  { %v4764_v35 = vsel %vm4760_vm15, %v4707_v55, %v4759_v56  ;;  %v15815_v14 = vsub.s32 %v4981_v13, %v15366_v60  ;;  %v4996_v55 = vld [vmem:[#allocation21] sm:$0x1] }
 0x4e7   :  { %4963 = vmatprep.mubr.f32.mxu1 %v4764_v35 }
 0x4e8   :  { %4964 = vmatmul.mubr.f32.vlgmr.msra.gmra.mxu1 %v4763_v28  ;;  %16772 = vst [vmem:[#allocation53_spill] sm:$0xff] %v15815_v14 }
 0x4e9   :  { %5121 = vmatpush1.msra.mxu1 %v5020_v9  ;;  %5160 = vmatprep.mubr.f32.mxu1 %v16749_v12 }
 0x4ea   :  { %5122 = vmatprep.subr.mxu1 %v5017_v19 }
 0x4eb   :  { %5123 = vmatpush1.msra.mxu1 %v5016_v23 }
 0x4ec   :  { %5124 = vmatprep.subr.mxu1 %v5013_v29 }
 0x4ed   :  { %5125 = vmatpush1.msra.mxu1 %v5012_v32 }
 0x4ee   :  { %5126 = vmatprep.subr.mxu1 %v5009_v36 }
 0x4ef   :  { %5127 = vmatpush1.msra.mxu1 %v5008_v39 }
 0x568   :  { %v12861_v42 = vpop.f32.mrf.mxu0 }
 0x56a   :  { %v12862_v44 = vpop.f32.mrf.mxu0 }
 0x56b   :  { %v12863_v15 = vadd.f32 %v12862_v44, %v12861_v42 }
 0x5a8   :  { %v12896_v46 = vpop.f32.mrf.mxu1 }
 0x5aa   :  { %v12897_v48 = vpop.f32.mrf.mxu1 }
 0x5ab   :  { %v12898_v49 = vadd.f32 %v12897_v48, %v12896_v46 }
 0x5ad   :  { %v4966_v50 = vadd.f32 %v12898_v49, %v12863_v15 }
 0x5af   :  { %v4969_v51 = vmul.f32 0.0022222223, %v4966_v50 }
 0x5b1   :  { %v4970_v52 = vmul.f32 %v4969_v51, %v4969_v51 }
 0x5b3   :  { %v4972_v53 = vrot.slane %v4970_v52, 7 }
 0x5b5   :  { %v4974_v43 = vsub.f32 %v4969_v51, %v4972_v53 }
 0x5b7   :  { %v4976_v21 = vadd.f32 1e-05, %v4974_v43 }
 0x5b9   :  { %14041 = vrsqrt.f32 %v4976_v21 }
 0x5c6   :  { %v14042_v2 = vpop.eup %14041 }
 0x5c7   :  { %v4985_v16 = vrot.slane %v14042_v2, %v15815_v14 }
 0x5c9   :  { %v4986_v45 = vcombine.high %v4985_v16, %v4985_v16 }
 0x5cb   :  { %v4993_v59 = vrot.slane %v4986_v45, %v15815_v14 }
 0x5cd   :  { %v4995_v54 = vmul.f32 %v4993_v59, %v4975_v58 }
 0x5cf   :  { %v4997_v56 = vmul.f32 %v4995_v54, %v4969_v51 }
 0x5d1   :  { %v4998_v57 = vsub.f32 %v4996_v55, %v4997_v56 }
 0x5d3   :  { %v5003_v35 = vrot.slane %v4998_v57, %v15369_v61 }
 0x5d5   :  { %v5005_v28 = vsel %vm4760_vm15, %v4995_v54, %v5003_v35 }
 0x5d6   :  { %11980 = vmatmul.mubr.msk.f32.vlgmr.msra.gmra.mxu0 %vm738_vm0, %v5005_v28  ;;  %11981 = vmatmul.mubr.msk.f32.vlgmr.msra.gmra.mxu1 %vm738_vm0, %v5005_v28 }
 0x696   :  { %v5091_v60 = vpop.f32.mrf.mxu0  ;;  %v5162_v41 = vpop.f32.mrf.mxu1 }
 0x697   :  { %v5170_v8 = vrot.slane %v5091_v60, %v15369_v61  ;;  %v5178_v22 = vrot.slane %v5162_v41, %v15369_v61  ;;  %v5202_v9 = vrot.slane %v5091_v60, %v15375_v1  ;;  %v5210_v17 = vrot.slane %v5162_v41, %v15375_v1 }
 0x698   :  { %v5093_v44 = vpop.f32.mrf.mxu0  ;;  %v5164_v43 = vpop.f32.mrf.mxu1 }
 0x699   :  { %v5183_v19 = vmul.f32 %v5170_v8, %v15728_v38  ;;  %v5187_v20 = vmul.f32 %v5170_v8, %v15734_v5  ;;  %v5191_v23 = vmul.f32 %v5170_v8, %v15748_v18  ;;  %v5195_v26 = vmul.f32 %v5170_v8, %v15758_v30 }
 0x69a   :  { %v5185_v29 = vmul.f32 %v5178_v22, %v15770_v63  ;;  %v5189_v31 = vmul.f32 %v5178_v22, %v15774_v6  ;;  %v5193_v32 = vmul.f32 %v5178_v22, %v15782_v4  ;;  %v5197_v33 = vmul.f32 %v5178_v22, %v15799_v27 }
 0x69b   :  { %v5215_v36 = vadd.f32 %v5202_v9, %v5183_v19  ;;  %v5219_v11 = vadd.f32 %v5202_v9, %v5187_v20  ;;  %v5223_v39 = vadd.f32 %v5202_v9, %v5191_v23  ;;  %v5227_v42 = vadd.f32 %v5202_v9, %v5195_v26 }
 0x69c   :  { %v5217_v38 = vadd.f32 %v5210_v17, %v5185_v29  ;;  %v5221_v46 = vadd.f32 %v5210_v17, %v5189_v31  ;;  %v5225_v5 = vadd.f32 %v5210_v17, %v5193_v32  ;;  %v5229_v48 = vadd.f32 %v5210_v17, %v5197_v33 }
 0x69d   :  { %vm5231_vm0 = vcmp.ge.f32.partialorder %v5215_v36, 0.0  ;;  %vm5235_vm1 = vcmp.ge.f32.partialorder %v5219_v11, 0.0  ;;  %vm5239_vm2 = vcmp.ge.f32.partialorder %v5223_v39, 0.0  ;;  %vm5243_vm3 = vcmp.ge.f32.partialorder %v5227_v42, 0.0 }
 0x69e   :  { %v5247_v18 = vmul.f32 0.1, %v5215_v36  ;;  %v5251_v30 = vmul.f32 0.1, %v5219_v11  ;;  %v5255_v63 = vmul.f32 0.1, %v5223_v39  ;;  %v5174_v6 = vrot.slane %v5093_v44, %v15369_v61 }
 0x69f   :  { %v5259_v4 = vmul.f32 0.1, %v5227_v42  ;;  %vm5233_vm4 = vcmp.ge.f32.partialorder %v5217_v38, 0.0  ;;  %vm5237_vm5 = vcmp.ge.f32.partialorder %v5221_v46, 0.0  ;;  %vm5241_vm6 = vcmp.ge.f32.partialorder %v5225_v5, 0.0 }
 0x6a0   :  { %v15836_v27 = vsel %vm5231_vm0, %v5215_v36, %v5247_v18  ;;  %v15838_v15 = vsel %vm5235_vm1, %v5219_v11, %v5251_v30  ;;  %v15840_v49 = vsel %vm5239_vm2, %v5223_v39, %v5255_v63  ;;  %vm5245_vm7 = vcmp.ge.f32.partialorder %v5229_v48, 0.0 }
 0x6a1   :  { %v15842_v50 = vsel %vm5243_vm3, %v5227_v42, %v5259_v4  ;;  %v5249_v51 = vmul.f32 0.1, %v5217_v38  ;;  %v5253_v52 = vmul.f32 0.1, %v5221_v46  ;;  %v5257_v53 = vmul.f32 0.1, %v5225_v5 }
 0x6a2   :  { %v5261_v21 = vmul.f32 0.1, %v5229_v48  ;;  %v5184_v24 = vmul.f32 %v5174_v6, %v15730_v47  ;;  %v5188_v7 = vmul.f32 %v5174_v6, %v15742_v62  ;;  %v5192_v13 = vmul.f32 %v5174_v6, %v15753_v25 }
 0x6a3   :  { %v15848_v2 = vsel %vm5233_vm4, %v5217_v38, %v5249_v51  ;;  %v15851_v16 = vsel %vm5237_vm5, %v5221_v46, %v5253_v52  ;;  %v15854_v45 = vsel %vm5241_vm6, %v5225_v5, %v5257_v53  ;;  %v5196_v58 = vmul.f32 %v5174_v6, %v15763_v34 }
 0x6a4   :  { %v15857_v59 = vsel %vm5245_vm7, %v5229_v48, %v5261_v21  ;;  %v5206_v54 = vrot.slane %v5093_v44, %v15375_v1  ;;  %v5182_v47 = vrot.slane %v5164_v43, %v15369_v61  ;;  %v5214_v62 = vrot.slane %v5164_v43, %v15375_v1 }
 0x6a6   :  { %v5216_v25 = vadd.f32 %v5206_v54, %v5184_v24  ;;  %v5220_v55 = vadd.f32 %v5206_v54, %v5188_v7  ;;  %v5224_v56 = vadd.f32 %v5206_v54, %v5192_v13  ;;  %v5228_v57 = vadd.f32 %v5206_v54, %v5196_v58 }
 0x6a7   :  { %v5186_v35 = vmul.f32 %v5182_v47, %v15772_v3  ;;  %v5190_v28 = vmul.f32 %v5182_v47, %v15776_v40  ;;  %v5194_v60 = vmul.f32 %v5182_v47, %v15792_v10  ;;  %v5198_v34 = vmul.f32 %v5182_v47, %v15805_v37 }
 0x6a8   :  { %vm5232_vm8 = vcmp.ge.f32.partialorder %v5216_v25, 0.0  ;;  %vm5236_vm9 = vcmp.ge.f32.partialorder %v5220_v55, 0.0  ;;  %vm5240_vm10 = vcmp.ge.f32.partialorder %v5224_v56, 0.0  ;;  %vm5244_vm11 = vcmp.ge.f32.partialorder %v5228_v57, 0.0 }
 0x6a9   :  { %v5248_v41 = vmul.f32 0.1, %v5216_v25  ;;  %v5252_v8 = vmul.f32 0.1, %v5220_v55  ;;  %v5256_v22 = vmul.f32 0.1, %v5224_v56  ;;  %v5218_v9 = vadd.f32 %v5214_v62, %v5186_v35 }
 0x6aa   :  { %v5260_v17 = vmul.f32 0.1, %v5228_v57  ;;  %v5222_v19 = vadd.f32 %v5214_v62, %v5190_v28  ;;  %v5226_v20 = vadd.f32 %v5214_v62, %v5194_v60  ;;  %v5230_v23 = vadd.f32 %v5214_v62, %v5198_v34 }
 0x6ab   :  { %v5264_v26 = vsel %vm5232_vm8, %v5216_v25, %v5248_v41  ;;  %v5268_v3 = vsel %vm5236_vm9, %v5220_v55, %v5252_v8  ;;  %v15866_v29 = vsel %vm5240_vm10, %v5224_v56, %v5256_v22  ;;  %vm5234_vm12 = vcmp.ge.f32.partialorder %v5218_v9, 0.0 }
 0x6ac   :  { %v15868_v40 = vsel %vm5244_vm11, %v5228_v57, %v5260_v17  ;;  %vm5238_vm13 = vcmp.ge.f32.partialorder %v5222_v19, 0.0  ;;  %vm5242_vm14 = vcmp.ge.f32.partialorder %v5226_v20, 0.0  ;;  %vm5246_vm0 = vcmp.ge.f32.partialorder %v5230_v23, 0.0 }
 0x6ad   :  { %v5250_v10 = vmul.f32 0.1, %v5218_v9  ;;  %v5254_v37 = vmul.f32 0.1, %v5222_v19  ;;  %v5258_v31 = vmul.f32 0.1, %v5226_v20 }
 0x6ae   :  { %v5262_v32 = vmul.f32 0.1, %v5230_v23 }
 0x6af   :  { %v5266_v33 = vsel %vm5234_vm12, %v5218_v9, %v5250_v10  ;;  %v5270_v36 = vsel %vm5238_vm13, %v5222_v19, %v5254_v37  ;;  %v15870_v11 = vsel %vm5242_vm14, %v5226_v20, %v5258_v31 }
 0x6b0   :  { %v15872_v39 = vsel %vm5246_vm0, %v5230_v23, %v5262_v32 }
 0x6b1   :  { %15140 = dma.done.wait [#allocation9 + $0x1], 49152 }
 0x6b2   :  { %15141 = vsyncadd [#allocation9 + $0x1], 4294918144  ;;  %v15874_v42 = vpack.c.bf16 %v5268_v3, %v5264_v26  ;;  %v15876_v44 = vpack.c.bf16 %v5270_v36, %v5266_v33  ;;  %v14047_v38 = vld [vmem:[#allocation7 + $0xe4] ss:$16 sps:$4 sm:$0xff]   ;;  %v14051_v5 = vld [vmem:[#allocation7 + $0xe0] ss:$16 sps:$4 sm:$0xff]  }
 0x6b3   :  { %v14049_v46 = vld [vmem:[#allocation7 + $0x2e4] ss:$16 sps:$4 sm:$0xff]   ;;  %6057 = vmatprep.subr.bf16.mxu0 %v14047_v38  ;;  %v14052_v48 = vld [vmem:[#allocation7 + $0x2e0] ss:$16 sps:$4 sm:$0xff]   ;;  %vm8571_vm1 = vcmask 785408   ;;  %vm9119_vm2 = vcmask 130048  }
 0x6b4   :  { %6089 = vmatprep.mubr.bf16.mxu0 %v15874_v42  ;;  %6142 = vmatprep.mubr.bf16.mxu1 %v15876_v44  ;;  %v14053_v18 = vld [vmem:[#allocation7 + $0xc4] ss:$16 sps:$4 sm:$0xff]   ;;  %v14057_v63 = vld [vmem:[#allocation7 + $0xc0] ss:$16 sps:$4 sm:$0xff]  }
 0x6b5   :  { %6110 = vmatprep.subr.bf16.mxu1 %v14049_v46  ;;  %6058 = vmatpush1.bf16.msra.mxu0 %v14051_v5  ;;  %v14055_v30 = vld [vmem:[#allocation7 + $0x2c4] ss:$16 sps:$4 sm:$0xff]   ;;  %v14058_v6 = vld [vmem:[#allocation7 + $0x2c0] ss:$16 sps:$4 sm:$0xff]  }
 0x6b6   :  { %6111 = vmatpush1.bf16.msra.mxu1 %v14052_v48  ;;  %6059 = vmatprep.subr.bf16.mxu0 %v14053_v18  ;;  %v14059_v4 = vld [vmem:[#allocation7 + $0xa4] ss:$16 sps:$4 sm:$0xff]   ;;  %v14063_v52 = vld [vmem:[#allocation7 + $0xa0] ss:$16 sps:$4 sm:$0xff]  }
 0x6b7   :  { %6112 = vmatprep.subr.bf16.mxu1 %v14055_v30  ;;  %v14061_v51 = vld [vmem:[#allocation7 + $0x2a4] ss:$16 sps:$4 sm:$0xff]   ;;  %v14064_v53 = vld [vmem:[#allocation7 + $0x2a0] ss:$16 sps:$4 sm:$0xff]  }
 0x6b8   :  { %v14065_v43 = vld [vmem:[#allocation7 + $0x84] ss:$16 sps:$4 sm:$0xff]   ;;  %v14069_v24 = vld [vmem:[#allocation7 + $0x80] ss:$16 sps:$4 sm:$0xff]  }
 0x6b9   :  { %6060 = vmatpush1.bf16.msra.mxu0 %v14057_v63  ;;  %v14067_v21 = vld [vmem:[#allocation7 + $0x284] ss:$16 sps:$4 sm:$0xff]   ;;  %v14070_v7 = vld [vmem:[#allocation7 + $0x280] ss:$16 sps:$4 sm:$0xff]  }
 0x6ba   :  { %6113 = vmatpush1.bf16.msra.mxu1 %v14058_v6  ;;  %6061 = vmatprep.subr.bf16.mxu0 %v14059_v4  ;;  %v14071_v13 = vld [vmem:[#allocation7 + $0x64] ss:$16 sps:$4 sm:$0xff]   ;;  %v14075_v54 = vld [vmem:[#allocation7 + $0x60] ss:$16 sps:$4 sm:$0xff]  }
 0x6bb   :  { %6114 = vmatprep.subr.bf16.mxu1 %v14061_v51  ;;  %v14073_v58 = vld [vmem:[#allocation7 + $0x264] ss:$16 sps:$4 sm:$0xff]   ;;  %v14076_v47 = vld [vmem:[#allocation7 + $0x260] ss:$16 sps:$4 sm:$0xff]  }
 0x6bc   :  { %v14077_v62 = vld [vmem:[#allocation7 + $0x44] ss:$16 sps:$4 sm:$0xff]   ;;  %v14081_v55 = vld [vmem:[#allocation7 + $0x40] ss:$16 sps:$4 sm:$0xff]  }
 0x6bd   :  { %6062 = vmatpush1.bf16.msra.mxu0 %v14063_v52  ;;  %v14079_v25 = vld [vmem:[#allocation7 + $0x244] ss:$16 sps:$4 sm:$0xff]   ;;  %v14082_v56 = vld [vmem:[#allocation7 + $0x240] ss:$16 sps:$4 sm:$0xff]  }
 0x6be   :  { %6115 = vmatpush1.bf16.msra.mxu1 %v14064_v53  ;;  %6063 = vmatprep.subr.bf16.mxu0 %v14065_v43  ;;  %v14083_v57 = vld [vmem:[#allocation7 + $0x24] ss:$16 sps:$4 sm:$0xff]   ;;  %v14087_v28 = vld [vmem:[#allocation7 + $0x20] ss:$16 sps:$4 sm:$0xff]  }
 0x6bf   :  { %6116 = vmatprep.subr.bf16.mxu1 %v14067_v21  ;;  %v14085_v35 = vld [vmem:[#allocation7 + $0x224] ss:$16 sps:$4 sm:$0xff]   ;;  %v14088_v60 = vld [vmem:[#allocation7 + $0x220] ss:$16 sps:$4 sm:$0xff]  }
 0x6c0   :  { %v14089_v34 = vld [vmem:[#allocation7 + $0x4] ss:$16 sps:$4 sm:$0xff]   ;;  %v14093_v8 = vld [vmem:[#allocation7] ss:$16 sps:$4 sm:$0xff]  }
 0x6c1   :  { %6064 = vmatpush1.bf16.msra.mxu0 %v14069_v24  ;;  %v14091_v41 = vld [vmem:[#allocation7 + $0x204] ss:$16 sps:$4 sm:$0xff]   ;;  %v14094_v22 = vld [vmem:[#allocation7 + $0x200] ss:$16 sps:$4 sm:$0xff]  }
 0x6c2   :  { %6117 = vmatpush1.bf16.msra.mxu1 %v14070_v7  ;;  %6065 = vmatprep.subr.bf16.mxu0 %v14071_v13  ;;  %v14095_v9 = vld [vmem:[#allocation7 + $0x1e4] ss:$16 sps:$4 sm:$0xff]   ;;  %v14099_v19 = vld [vmem:[#allocation7 + $0x1e0] ss:$16 sps:$4 sm:$0xff]  }
 0x6c3   :  { %6118 = vmatprep.subr.bf16.mxu1 %v14073_v58  ;;  %v14097_v17 = vld [vmem:[#allocation7 + $0x3e4] ss:$16 sps:$4 sm:$0xff]   ;;  %v14100_v20 = vld [vmem:[#allocation7 + $0x3e0] ss:$16 sps:$4 sm:$0xff]  }
 0x6c4   :  { %v14101_v23 = vld [vmem:[#allocation7 + $0x1c4] ss:$16 sps:$4 sm:$0xff]   ;;  %v14105_v3 = vld [vmem:[#allocation7 + $0x1c0] ss:$16 sps:$4 sm:$0xff]  }
 0x6c5   :  { %6066 = vmatpush1.bf16.msra.mxu0 %v14075_v54  ;;  %v14103_v26 = vld [vmem:[#allocation7 + $0x3c4] ss:$16 sps:$4 sm:$0xff]   ;;  %v14106_v10 = vld [vmem:[#allocation7 + $0x3c0] ss:$16 sps:$4 sm:$0xff]  }
 0x6c6   :  { %6119 = vmatpush1.bf16.msra.mxu1 %v14076_v47  ;;  %6067 = vmatprep.subr.bf16.mxu0 %v14077_v62  ;;  %v14107_v37 = vld [vmem:[#allocation7 + $0x1a4] ss:$16 sps:$4 sm:$0xff]   ;;  %v14111_v32 = vld [vmem:[#allocation7 + $0x1a0] ss:$16 sps:$4 sm:$0xff]   ;;  %v14145_v47 = vld [vmem:[#allocation7 + $0xec] ss:$16 sps:$4 sm:$0xff]  }
 0x6c7   :  { %6120 = vmatprep.subr.bf16.mxu1 %v14079_v25  ;;  %v14109_v31 = vld [vmem:[#allocation7 + $0x3a4] ss:$16 sps:$4 sm:$0xff]   ;;  %v14112_v33 = vld [vmem:[#allocation7 + $0x3a0] ss:$16 sps:$4 sm:$0xff]   ;;  %v14148_v62 = vld [vmem:[#allocation7 + $0x2ec] ss:$16 sps:$4 sm:$0xff]   ;;  %v15882_v25 = vpack.c.bf16 %v15838_v15, %v15836_v27  ;;  %v15894_v27 = vpack.c.bf16 %v15872_v39, %v15870_v11  ;;  %v15902_v11 = vpack.c.bf16 %v15842_v50, %v15840_v49  ;;  %v15906_v39 = vpack.c.bf16 %v15857_v59, %v15854_v45 }
 0x6c8   :  { %v14113_v36 = vld [vmem:[#allocation7 + $0x184] ss:$16 sps:$4 sm:$0xff]   ;;  %v14117_v46 = vld [vmem:[#allocation7 + $0x180] ss:$16 sps:$4 sm:$0xff]   ;;  %v14149_v15 = vld [vmem:[#allocation7 + $0xc8] ss:$16 sps:$4 sm:$0xff]  }
 0x6c9   :  { %6068 = vmatpush1.bf16.msra.mxu0 %v14081_v55  ;;  %v14115_v38 = vld [vmem:[#allocation7 + $0x384] ss:$16 sps:$4 sm:$0xff]   ;;  %v14118_v5 = vld [vmem:[#allocation7 + $0x380] ss:$16 sps:$4 sm:$0xff]   ;;  %v15886_v55 = vpack.c.bf16 %v15851_v16, %v15848_v2  ;;  %v14152_v2 = vld [vmem:[#allocation7 + $0x2c8] ss:$16 sps:$4 sm:$0xff]  }
 0x6ca   :  { %6121 = vmatpush1.bf16.msra.mxu1 %v14082_v56  ;;  %6069 = vmatprep.subr.bf16.mxu0 %v14083_v57  ;;  %v14119_v48 = vld [vmem:[#allocation7 + $0x164] ss:$16 sps:$4 sm:$0xff]   ;;  %v14123_v30 = vld [vmem:[#allocation7 + $0x160] ss:$16 sps:$4 sm:$0xff]   ;;  %v14143_v56 = vld [vmem:[#allocation7 + $0xe8] ss:$16 sps:$4 sm:$0xff]  }
 0x6cb   :  { %6122 = vmatprep.subr.bf16.mxu1 %v14085_v35  ;;  %v14121_v18 = vld [vmem:[#allocation7 + $0x364] ss:$16 sps:$4 sm:$0xff]   ;;  %v14124_v63 = vld [vmem:[#allocation7 + $0x360] ss:$16 sps:$4 sm:$0xff]   ;;  %v14146_v57 = vld [vmem:[#allocation7 + $0x2e8] ss:$16 sps:$4 sm:$0xff]  }
 0x6cc   :  { %v14125_v6 = vld [vmem:[#allocation7 + $0x144] ss:$16 sps:$4 sm:$0xff]   ;;  %v14129_v51 = vld [vmem:[#allocation7 + $0x140] ss:$16 sps:$4 sm:$0xff]   ;;  %v14151_v35 = vld [vmem:[#allocation7 + $0xcc] ss:$16 sps:$4 sm:$0xff]  }
 0x6cd   :  { %6070 = vmatpush1.bf16.msra.mxu0 %v14087_v28  ;;  %v14127_v4 = vld [vmem:[#allocation7 + $0x344] ss:$16 sps:$4 sm:$0xff]   ;;  %v14130_v52 = vld [vmem:[#allocation7 + $0x340] ss:$16 sps:$4 sm:$0xff]   ;;  %v14154_v28 = vld [vmem:[#allocation7 + $0x2cc] ss:$16 sps:$4 sm:$0xff]  }
 0x6ce   :  { %6123 = vmatpush1.bf16.msra.mxu1 %v14088_v60  ;;  %6071 = vmatprep.subr.bf16.mxu0 %v14089_v34  ;;  %v14131_v53 = vld [vmem:[#allocation7 + $0x124] ss:$16 sps:$4 sm:$0xff]   ;;  %v14135_v21 = vld [vmem:[#allocation7 + $0x120] ss:$16 sps:$4 sm:$0xff]   ;;  %v15890_v60 = vpack.c.bf16 %v15868_v40, %v15866_v29  ;;  %v14157_v16 = vld [vmem:[#allocation7 + $0xac] ss:$16 sps:$4 sm:$0xff]  }
 0x6cf   :  { %6124 = vmatprep.subr.bf16.mxu1 %v14091_v41  ;;  %v14133_v43 = vld [vmem:[#allocation7 + $0x324] ss:$16 sps:$4 sm:$0xff]   ;;  %v14136_v24 = vld [vmem:[#allocation7 + $0x320] ss:$16 sps:$4 sm:$0xff]   ;;  %v14160_v34 = vld [vmem:[#allocation7 + $0x2ac] ss:$16 sps:$4 sm:$0xff]  }
 0x6d0   :  { %v14137_v7 = vld [vmem:[#allocation7 + $0x104] ss:$16 sps:$4 sm:$0xff]   ;;  %v14141_v58 = vld [vmem:[#allocation7 + $0x100] ss:$16 sps:$4 sm:$0xff]   ;;  %v14155_v29 = vld [vmem:[#allocation7 + $0xa8] ss:$16 sps:$4 sm:$0xff]  }
 0x6d1   :  { %6072 = vmatpush1.bf16.msra.mxu0 %v14093_v8  ;;  %v14139_v13 = vld [vmem:[#allocation7 + $0x304] ss:$16 sps:$4 sm:$0xff]   ;;  %v14142_v54 = vld [vmem:[#allocation7 + $0x300] ss:$16 sps:$4 sm:$0xff]   ;;  %v14158_v40 = vld [vmem:[#allocation7 + $0x2a8] ss:$16 sps:$4 sm:$0xff]  }
 0x6d2   :  { %6125 = vmatpush1.bf16.msra.mxu1 %v14094_v22  ;;  %6073 = vmatprep.subr.bf16.mxu0 %v14095_v9  ;;  %v14163_v41 = vld [vmem:[#allocation7 + $0x8c] ss:$16 sps:$4 sm:$0xff]   ;;  %v14161_v22 = vld [vmem:[#allocation7 + $0x88] ss:$16 sps:$4 sm:$0xff]  }
 0x6d3   :  { %6126 = vmatprep.subr.bf16.mxu1 %v14097_v17  ;;  %v14166_v8 = vld [vmem:[#allocation7 + $0x28c] ss:$16 sps:$4 sm:$0xff]   ;;  %v14164_v9 = vld [vmem:[#allocation7 + $0x288] ss:$16 sps:$4 sm:$0xff]  }
 0x6d4   :  { %v14169_v49 = vld [vmem:[#allocation7 + $0x6c] ss:$16 sps:$4 sm:$0xff]   ;;  %v14167_v45 = vld [vmem:[#allocation7 + $0x68] ss:$16 sps:$4 sm:$0xff]  }
 0x6d5   :  { %6074 = vmatpush2.bf16.msra.mxu0 %v14099_v19  ;;  %v14172_v50 = vld [vmem:[#allocation7 + $0x26c] ss:$16 sps:$4 sm:$0xff]   ;;  %v14170_v59 = vld [vmem:[#allocation7 + $0x268] ss:$16 sps:$4 sm:$0xff]  }
 0x6d6   :  { %6127 = vmatpush2.bf16.msra.mxu1 %v14100_v20  ;;  %6075 = vmatprep.subr.bf16.mxu0 %v14101_v23  ;;  %v14175_v17 = vld [vmem:[#allocation7 + $0x4c] ss:$16 sps:$4 sm:$0xff]   ;;  %v14173_v20 = vld [vmem:[#allocation7 + $0x48] ss:$16 sps:$4 sm:$0xff]  }
 0x6d7   :  { %6128 = vmatprep.subr.bf16.mxu1 %v14103_v26  ;;  %v14178_v19 = vld [vmem:[#allocation7 + $0x24c] ss:$16 sps:$4 sm:$0xff]   ;;  %v14176_v23 = vld [vmem:[#allocation7 + $0x248] ss:$16 sps:$4 sm:$0xff]  }
 0x6d8   :  { %v14181_v26 = vld [vmem:[#allocation7 + $0x2c] ss:$16 sps:$4 sm:$0xff]  }
 0x6d9   :  { %6076 = vmatpush2.bf16.msra.mxu0 %v14105_v3  ;;  %v14184_v3 = vld [vmem:[#allocation7 + $0x22c] ss:$16 sps:$4 sm:$0xff]  }
 0x6da   :  { %6129 = vmatpush2.bf16.msra.mxu1 %v14106_v10  ;;  %6077 = vmatprep.subr.bf16.mxu0 %v14107_v37  ;;  %v14179_v10 = vld [vmem:[#allocation7 + $0x28] ss:$16 sps:$4 sm:$0xff]  }
 0x6db   :  { %6130 = vmatprep.subr.bf16.mxu1 %v14109_v31  ;;  %v14182_v37 = vld [vmem:[#allocation7 + $0x228] ss:$16 sps:$4 sm:$0xff]   ;;  %v14187_v31 = vld [vmem:[#allocation7 + $0xc] ss:$16 sps:$4 sm:$0xff]  }
 0x6dd   :  { %6078 = vmatpush2.bf16.msra.mxu0 %v14111_v32  ;;  %v14190_v32 = vld [vmem:[#allocation7 + $0x20c] ss:$16 sps:$4 sm:$0xff]  }
 0x6de   :  { %6131 = vmatpush2.bf16.msra.mxu1 %v14112_v33  ;;  %6079 = vmatprep.subr.bf16.mxu0 %v14113_v36  ;;  %v14185_v33 = vld [vmem:[#allocation7 + $0x8] ss:$16 sps:$4 sm:$0xff]  }
 0x6df   :  { %6132 = vmatprep.subr.bf16.mxu1 %v14115_v38  ;;  %v14188_v36 = vld [vmem:[#allocation7 + $0x208] ss:$16 sps:$4 sm:$0xff]   ;;  %v14193_v38 = vld [vmem:[#allocation7 + $0x1ec] ss:$16 sps:$4 sm:$0xff]  }
 0x6e1   :  { %6080 = vmatpush2.bf16.msra.mxu0 %v14117_v46  ;;  %v14196_v46 = vld [vmem:[#allocation7 + $0x3ec] ss:$16 sps:$4 sm:$0xff]  }
 0x6e2   :  { %6133 = vmatpush2.bf16.msra.mxu1 %v14118_v5  ;;  %6081 = vmatprep.subr.bf16.mxu0 %v14119_v48  ;;  %v14191_v5 = vld [vmem:[#allocation7 + $0x1e8] ss:$16 sps:$4 sm:$0xff]  }
 0x6e3   :  { %6134 = vmatprep.subr.bf16.mxu1 %v14121_v18  ;;  %v14194_v48 = vld [vmem:[#allocation7 + $0x3e8] ss:$16 sps:$4 sm:$0xff]   ;;  %v14199_v18 = vld [vmem:[#allocation7 + $0x1cc] ss:$16 sps:$4 sm:$0xff]  }
 0x6e5   :  { %6082 = vmatpush2.bf16.msra.mxu0 %v14123_v30  ;;  %v14202_v30 = vld [vmem:[#allocation7 + $0x3cc] ss:$16 sps:$4 sm:$0xff]  }
 0x6e6   :  { %6135 = vmatpush2.bf16.msra.mxu1 %v14124_v63  ;;  %6083 = vmatprep.subr.bf16.mxu0 %v14125_v6  ;;  %v14197_v63 = vld [vmem:[#allocation7 + $0x1c8] ss:$16 sps:$4 sm:$0xff]  }
 0x6e7   :  { %6136 = vmatprep.subr.bf16.mxu1 %v14127_v4  ;;  %v14200_v6 = vld [vmem:[#allocation7 + $0x3c8] ss:$16 sps:$4 sm:$0xff]   ;;  %v14205_v4 = vld [vmem:[#allocation7 + $0x1ac] ss:$16 sps:$4 sm:$0xff]  }
 0x6e9   :  { %6084 = vmatpush2.bf16.msra.mxu0 %v14129_v51  ;;  %v14208_v51 = vld [vmem:[#allocation7 + $0x3ac] ss:$16 sps:$4 sm:$0xff]  }
 0x6ea   :  { %6137 = vmatpush2.bf16.msra.mxu1 %v14130_v52  ;;  %6085 = vmatprep.subr.bf16.mxu0 %v14131_v53  ;;  %v14203_v52 = vld [vmem:[#allocation7 + $0x1a8] ss:$16 sps:$4 sm:$0xff]  }
 0x6eb   :  { %6138 = vmatprep.subr.bf16.mxu1 %v14133_v43  ;;  %v14206_v53 = vld [vmem:[#allocation7 + $0x3a8] ss:$16 sps:$4 sm:$0xff]   ;;  %v14211_v43 = vld [vmem:[#allocation7 + $0x18c] ss:$16 sps:$4 sm:$0xff]  }
 0x6ed   :  { %6086 = vmatpush2.bf16.msra.mxu0 %v14135_v21  ;;  %v14214_v21 = vld [vmem:[#allocation7 + $0x38c] ss:$16 sps:$4 sm:$0xff]  }
 0x6ee   :  { %6139 = vmatpush2.bf16.msra.mxu1 %v14136_v24  ;;  %6087 = vmatprep.subr.bf16.mxu0 %v14137_v7  ;;  %v14209_v24 = vld [vmem:[#allocation7 + $0x188] ss:$16 sps:$4 sm:$0xff]  }
 0x6ef   :  { %6140 = vmatprep.subr.bf16.mxu1 %v14139_v13  ;;  %v14212_v7 = vld [vmem:[#allocation7 + $0x388] ss:$16 sps:$4 sm:$0xff]   ;;  %v14217_v13 = vld [vmem:[#allocation7 + $0x16c] ss:$16 sps:$4 sm:$0xff]  }
 0x6f1   :  { %6088 = vmatpush2.bf16.msra.mxu0 %v14141_v58  ;;  %v14220_v58 = vld [vmem:[#allocation7 + $0x36c] ss:$16 sps:$4 sm:$0xff]  }
 0x6f2   :  { %6141 = vmatpush2.bf16.msra.mxu1 %v14142_v54  ;;  %6163 = vmatprep.subr.bf16.mxu0 %v14145_v47  ;;  %v14215_v54 = vld [vmem:[#allocation7 + $0x168] ss:$16 sps:$4 sm:$0xff]  }
 0x6f3   :  { %6216 = vmatprep.subr.bf16.mxu1 %v14148_v62  ;;  %v14218_v47 = vld [vmem:[#allocation7 + $0x368] ss:$16 sps:$4 sm:$0xff]   ;;  %v14223_v62 = vld [vmem:[#allocation7 + $0x14c] ss:$16 sps:$4 sm:$0xff]  }
 0x6f4   :  { %6090 = vmatmul.mubr.bf16.vlgmr.msra.gmra.mxu0 %v15882_v25 }
 0x6f5   :  { %6143 = vmatmul.mubr.bf16.vlgmr.msra.gmra.mxu1 %v15886_v55  ;;  %6164 = vmatpush1.bf16.msra.mxu0 %v14143_v56  ;;  %v14226_v56 = vld [vmem:[#allocation7 + $0x34c] ss:$16 sps:$4 sm:$0xff]  }
 0x6f6   :  { %6217 = vmatpush1.bf16.msra.mxu1 %v14146_v57  ;;  %6165 = vmatprep.subr.bf16.mxu0 %v14151_v35  ;;  %v14221_v57 = vld [vmem:[#allocation7 + $0x148] ss:$16 sps:$4 sm:$0xff]  }
 0x6f7   :  { %6218 = vmatprep.subr.bf16.mxu1 %v14154_v28  ;;  %6099 = vmatprep.mubr.bf16.mxu0 %v15890_v60  ;;  %v14224_v35 = vld [vmem:[#allocation7 + $0x348] ss:$16 sps:$4 sm:$0xff]   ;;  %v14229_v28 = vld [vmem:[#allocation7 + $0x12c] ss:$16 sps:$4 sm:$0xff]  }
 0x6f8   :  { %6152 = vmatprep.mubr.bf16.mxu1 %v15894_v27 }
 0x6f9   :  { %6166 = vmatpush1.bf16.msra.mxu0 %v14149_v15  ;;  %v14232_v15 = vld [vmem:[#allocation7 + $0x32c] ss:$16 sps:$4 sm:$0xff]  }
 0x6fa   :  { %6219 = vmatpush1.bf16.msra.mxu1 %v14152_v2  ;;  %6167 = vmatprep.subr.bf16.mxu0 %v14157_v16  ;;  %v14227_v2 = vld [vmem:[#allocation7 + $0x128] ss:$16 sps:$4 sm:$0xff]  }
 0x6fb   :  { %6220 = vmatprep.subr.bf16.mxu1 %v14160_v34  ;;  %v14230_v16 = vld [vmem:[#allocation7 + $0x328] ss:$16 sps:$4 sm:$0xff]   ;;  %v14235_v34 = vld [vmem:[#allocation7 + $0x10c] ss:$16 sps:$4 sm:$0xff]  }
 0x6fc   :  { %6100 = vmatmul.mubr.bf16.gmra.mxu0 %v15902_v11 }
 0x6fd   :  { %6153 = vmatmul.mubr.bf16.gmra.mxu1 %v15906_v39  ;;  %6168 = vmatpush1.bf16.msra.mxu0 %v14155_v29  ;;  %v14238_v29 = vld [vmem:[#allocation7 + $0x30c] ss:$16 sps:$4 sm:$0xff]  }
 0x6fe   :  { %6221 = vmatpush1.bf16.msra.mxu1 %v14158_v40  ;;  %6169 = vmatprep.subr.bf16.mxu0 %v14163_v41  ;;  %v14233_v40 = vld [vmem:[#allocation7 + $0x108] ss:$16 sps:$4 sm:$0xff]  }
 0x6ff   :  { %6222 = vmatprep.subr.bf16.mxu1 %v14166_v8  ;;  %6195 = vmatprep.mubr.bf16.mxu0 %v15874_v42  ;;  %v14236_v41 = vld [vmem:[#allocation7 + $0x308] ss:$16 sps:$4 sm:$0xff]   ;;  %v14241_v8 = vld [vmem:[#allocation7 + $0x4e4] ss:$16 sps:$4 sm:$0xff]  }
 0x700   :  { %6248 = vmatprep.mubr.bf16.mxu1 %v15876_v44 }
 0x701   :  { %6170 = vmatpush1.bf16.msra.mxu0 %v14161_v22  ;;  %v14244_v22 = vld [vmem:[#allocation7 + $0x6e4] ss:$16 sps:$4 sm:$0xff]  }
 0x702   :  { %6223 = vmatpush1.bf16.msra.mxu1 %v14164_v9  ;;  %6171 = vmatprep.subr.bf16.mxu0 %v14169_v49  ;;  %v14239_v9 = vld [vmem:[#allocation7 + $0x4e0] ss:$16 sps:$4 sm:$0xff]  }
 0x703   :  { %6224 = vmatprep.subr.bf16.mxu1 %v14172_v50  ;;  %v14242_v49 = vld [vmem:[#allocation7 + $0x6e0] ss:$16 sps:$4 sm:$0xff]   ;;  %v14247_v50 = vld [vmem:[#allocation7 + $0x4c4] ss:$16 sps:$4 sm:$0xff]  }
 0x705   :  { %6172 = vmatpush1.bf16.msra.mxu0 %v14167_v45  ;;  %v14250_v45 = vld [vmem:[#allocation7 + $0x6c4] ss:$16 sps:$4 sm:$0xff]  }
 0x706   :  { %6225 = vmatpush1.bf16.msra.mxu1 %v14170_v59  ;;  %6173 = vmatprep.subr.bf16.mxu0 %v14175_v17  ;;  %v14245_v59 = vld [vmem:[#allocation7 + $0x4c0] ss:$16 sps:$4 sm:$0xff]  }
 0x707   :  { %6226 = vmatprep.subr.bf16.mxu1 %v14178_v19  ;;  %v14248_v17 = vld [vmem:[#allocation7 + $0x6c0] ss:$16 sps:$4 sm:$0xff]   ;;  %v14253_v19 = vld [vmem:[#allocation7 + $0x4a4] ss:$16 sps:$4 sm:$0xff]  }
 0x709   :  { %6174 = vmatpush1.bf16.msra.mxu0 %v14173_v20  ;;  %v14256_v20 = vld [vmem:[#allocation7 + $0x6a4] ss:$16 sps:$4 sm:$0xff]  }
 0x70a   :  { %6227 = vmatpush1.bf16.msra.mxu1 %v14176_v23  ;;  %6175 = vmatprep.subr.bf16.mxu0 %v14181_v26  ;;  %v14251_v23 = vld [vmem:[#allocation7 + $0x4a0] ss:$16 sps:$4 sm:$0xff]  }
 0x70b   :  { %6228 = vmatprep.subr.bf16.mxu1 %v14184_v3  ;;  %v14254_v26 = vld [vmem:[#allocation7 + $0x6a0] ss:$16 sps:$4 sm:$0xff]   ;;  %v14259_v3 = vld [vmem:[#allocation7 + $0x484] ss:$16 sps:$4 sm:$0xff]  }
 0x70d   :  { %6176 = vmatpush1.bf16.msra.mxu0 %v14179_v10  ;;  %v14262_v10 = vld [vmem:[#allocation7 + $0x684] ss:$16 sps:$4 sm:$0xff]  }
 0x70e   :  { %6229 = vmatpush1.bf16.msra.mxu1 %v14182_v37  ;;  %6177 = vmatprep.subr.bf16.mxu0 %v14187_v31  ;;  %v14257_v37 = vld [vmem:[#allocation7 + $0x480] ss:$16 sps:$4 sm:$0xff]  }
 0x70f   :  { %6230 = vmatprep.subr.bf16.mxu1 %v14190_v32  ;;  %v14260_v31 = vld [vmem:[#allocation7 + $0x680] ss:$16 sps:$4 sm:$0xff]   ;;  %v14265_v32 = vld [vmem:[#allocation7 + $0x464] ss:$16 sps:$4 sm:$0xff]  }
 0x711   :  { %6178 = vmatpush1.bf16.msra.mxu0 %v14185_v33  ;;  %v14268_v33 = vld [vmem:[#allocation7 + $0x664] ss:$16 sps:$4 sm:$0xff]  }
 0x712   :  { %6231 = vmatpush1.bf16.msra.mxu1 %v14188_v36  ;;  %6179 = vmatprep.subr.bf16.mxu0 %v14193_v38  ;;  %v14263_v36 = vld [vmem:[#allocation7 + $0x460] ss:$16 sps:$4 sm:$0xff]  }
 0x713   :  { %6232 = vmatprep.subr.bf16.mxu1 %v14196_v46  ;;  %v14266_v38 = vld [vmem:[#allocation7 + $0x660] ss:$16 sps:$4 sm:$0xff]   ;;  %v14271_v46 = vld [vmem:[#allocation7 + $0x444] ss:$16 sps:$4 sm:$0xff]  }
 0x715   :  { %6180 = vmatpush2.bf16.msra.mxu0 %v14191_v5  ;;  %v14274_v5 = vld [vmem:[#allocation7 + $0x644] ss:$16 sps:$4 sm:$0xff]  }
 0x716   :  { %6233 = vmatpush2.bf16.msra.mxu1 %v14194_v48  ;;  %6181 = vmatprep.subr.bf16.mxu0 %v14199_v18  ;;  %v14269_v48 = vld [vmem:[#allocation7 + $0x440] ss:$16 sps:$4 sm:$0xff]  }
 0x717   :  { %6234 = vmatprep.subr.bf16.mxu1 %v14202_v30  ;;  %v14272_v18 = vld [vmem:[#allocation7 + $0x640] ss:$16 sps:$4 sm:$0xff]   ;;  %v14277_v30 = vld [vmem:[#allocation7 + $0x424] ss:$16 sps:$4 sm:$0xff]  }
 0x719   :  { %6182 = vmatpush2.bf16.msra.mxu0 %v14197_v63  ;;  %v14280_v63 = vld [vmem:[#allocation7 + $0x624] ss:$16 sps:$4 sm:$0xff]  }
 0x71a   :  { %6235 = vmatpush2.bf16.msra.mxu1 %v14200_v6  ;;  %6183 = vmatprep.subr.bf16.mxu0 %v14205_v4  ;;  %v14275_v6 = vld [vmem:[#allocation7 + $0x420] ss:$16 sps:$4 sm:$0xff]  }
 0x71b   :  { %6236 = vmatprep.subr.bf16.mxu1 %v14208_v51  ;;  %v14278_v4 = vld [vmem:[#allocation7 + $0x620] ss:$16 sps:$4 sm:$0xff]   ;;  %v14283_v51 = vld [vmem:[#allocation7 + $0x404] ss:$16 sps:$4 sm:$0xff]  }
 0x71d   :  { %6184 = vmatpush2.bf16.msra.mxu0 %v14203_v52  ;;  %v14286_v52 = vld [vmem:[#allocation7 + $0x604] ss:$16 sps:$4 sm:$0xff]  }
 0x71e   :  { %6237 = vmatpush2.bf16.msra.mxu1 %v14206_v53  ;;  %6185 = vmatprep.subr.bf16.mxu0 %v14211_v43  ;;  %v14281_v53 = vld [vmem:[#allocation7 + $0x400] ss:$16 sps:$4 sm:$0xff]  }
 0x71f   :  { %6238 = vmatprep.subr.bf16.mxu1 %v14214_v21  ;;  %v14284_v43 = vld [vmem:[#allocation7 + $0x600] ss:$16 sps:$4 sm:$0xff]   ;;  %v14289_v21 = vld [vmem:[#allocation7 + $0x5e4] ss:$16 sps:$4 sm:$0xff]  }
 0x721   :  { %6186 = vmatpush2.bf16.msra.mxu0 %v14209_v24  ;;  %v14292_v24 = vld [vmem:[#allocation7 + $0x7e4] ss:$16 sps:$4 sm:$0xff]  }
 0x722   :  { %6239 = vmatpush2.bf16.msra.mxu1 %v14212_v7  ;;  %6187 = vmatprep.subr.bf16.mxu0 %v14217_v13  ;;  %v14287_v7 = vld [vmem:[#allocation7 + $0x5e0] ss:$16 sps:$4 sm:$0xff]  }
 0x723   :  { %6240 = vmatprep.subr.bf16.mxu1 %v14220_v58  ;;  %v14290_v13 = vld [vmem:[#allocation7 + $0x7e0] ss:$16 sps:$4 sm:$0xff]   ;;  %v14295_v58 = vld [vmem:[#allocation7 + $0x5c4] ss:$16 sps:$4 sm:$0xff]  }
 0x725   :  { %6188 = vmatpush2.bf16.msra.mxu0 %v14215_v54  ;;  %v14298_v54 = vld [vmem:[#allocation7 + $0x7c4] ss:$16 sps:$4 sm:$0xff]  }
 0x726   :  { %6241 = vmatpush2.bf16.msra.mxu1 %v14218_v47  ;;  %6189 = vmatprep.subr.bf16.mxu0 %v14223_v62  ;;  %v14293_v47 = vld [vmem:[#allocation7 + $0x5c0] ss:$16 sps:$4 sm:$0xff]  }
 0x727   :  { %6242 = vmatprep.subr.bf16.mxu1 %v14226_v56  ;;  %v14296_v62 = vld [vmem:[#allocation7 + $0x7c0] ss:$16 sps:$4 sm:$0xff]   ;;  %v14301_v56 = vld [vmem:[#allocation7 + $0x5a4] ss:$16 sps:$4 sm:$0xff]  }
 0x729   :  { %6190 = vmatpush2.bf16.msra.mxu0 %v14221_v57  ;;  %v14304_v57 = vld [vmem:[#allocation7 + $0x7a4] ss:$16 sps:$4 sm:$0xff]  }
 0x72a   :  { %6243 = vmatpush2.bf16.msra.mxu1 %v14224_v35  ;;  %6191 = vmatprep.subr.bf16.mxu0 %v14229_v28  ;;  %v14299_v35 = vld [vmem:[#allocation7 + $0x5a0] ss:$16 sps:$4 sm:$0xff]  }
 0x72b   :  { %6244 = vmatprep.subr.bf16.mxu1 %v14232_v15  ;;  %v14302_v28 = vld [vmem:[#allocation7 + $0x7a0] ss:$16 sps:$4 sm:$0xff]   ;;  %v14307_v15 = vld [vmem:[#allocation7 + $0x584] ss:$16 sps:$4 sm:$0xff]  }
 0x72d   :  { %6192 = vmatpush2.bf16.msra.mxu0 %v14227_v2  ;;  %v14310_v2 = vld [vmem:[#allocation7 + $0x784] ss:$16 sps:$4 sm:$0xff]  }
 0x72e   :  { %6245 = vmatpush2.bf16.msra.mxu1 %v14230_v16  ;;  %6193 = vmatprep.subr.bf16.mxu0 %v14235_v34  ;;  %v14305_v16 = vld [vmem:[#allocation7 + $0x580] ss:$16 sps:$4 sm:$0xff]  }
 0x72f   :  { %6246 = vmatprep.subr.bf16.mxu1 %v14238_v29  ;;  %v14308_v34 = vld [vmem:[#allocation7 + $0x780] ss:$16 sps:$4 sm:$0xff]   ;;  %v14313_v29 = vld [vmem:[#allocation7 + $0x564] ss:$16 sps:$4 sm:$0xff]  }
 0x731   :  { %6194 = vmatpush2.bf16.msra.mxu0 %v14233_v40  ;;  %v14316_v40 = vld [vmem:[#allocation7 + $0x764] ss:$16 sps:$4 sm:$0xff]  }
 0x732   :  { %6247 = vmatpush2.bf16.msra.mxu1 %v14236_v41  ;;  %7094 = vmatprep.subr.bf16.mxu0 %v14241_v8  ;;  %v14311_v41 = vld [vmem:[#allocation7 + $0x560] ss:$16 sps:$4 sm:$0xff]  }
 0x733   :  { %7147 = vmatprep.subr.bf16.mxu1 %v14244_v22  ;;  %v14314_v8 = vld [vmem:[#allocation7 + $0x760] ss:$16 sps:$4 sm:$0xff]   ;;  %v14319_v22 = vld [vmem:[#allocation7 + $0x544] ss:$16 sps:$4 sm:$0xff]  }
 0x734   :  { %6196 = vmatmul.mubr.bf16.vlgmr.msra.gmra.mxu0 %v15882_v25 }
 0x735   :  { %6249 = vmatmul.mubr.bf16.vlgmr.msra.gmra.mxu1 %v15886_v55  ;;  %7095 = vmatpush1.bf16.msra.mxu0 %v14239_v9  ;;  %v14322_v9 = vld [vmem:[#allocation7 + $0x744] ss:$16 sps:$4 sm:$0xff]  }
 0x736   :  { %7148 = vmatpush1.bf16.msra.mxu1 %v14242_v49  ;;  %7096 = vmatprep.subr.bf16.mxu0 %v14247_v50  ;;  %v14317_v49 = vld [vmem:[#allocation7 + $0x540] ss:$16 sps:$4 sm:$0xff]  }
 0x737   :  { %7149 = vmatprep.subr.bf16.mxu1 %v14250_v45  ;;  %6205 = vmatprep.mubr.bf16.mxu0 %v15890_v60  ;;  %v14320_v50 = vld [vmem:[#allocation7 + $0x740] ss:$16 sps:$4 sm:$0xff]   ;;  %v14325_v45 = vld [vmem:[#allocation7 + $0x524] ss:$16 sps:$4 sm:$0xff]  }
 0x738   :  { %6258 = vmatprep.mubr.bf16.mxu1 %v15894_v27 }
 0x739   :  { %7097 = vmatpush1.bf16.msra.mxu0 %v14245_v59  ;;  %v14328_v59 = vld [vmem:[#allocation7 + $0x724] ss:$16 sps:$4 sm:$0xff]  }
 0x73a   :  { %7150 = vmatpush1.bf16.msra.mxu1 %v14248_v17  ;;  %7098 = vmatprep.subr.bf16.mxu0 %v14253_v19  ;;  %v14323_v17 = vld [vmem:[#allocation7 + $0x520] ss:$16 sps:$4 sm:$0xff]  }
 0x73b   :  { %7151 = vmatprep.subr.bf16.mxu1 %v14256_v20  ;;  %v14326_v19 = vld [vmem:[#allocation7 + $0x720] ss:$16 sps:$4 sm:$0xff]   ;;  %v14331_v20 = vld [vmem:[#allocation7 + $0x504] ss:$16 sps:$4 sm:$0xff]  }
 0x73c   :  { %6206 = vmatmul.mubr.bf16.gmra.mxu0 %v15902_v11 }
 0x73d   :  { %6259 = vmatmul.mubr.bf16.gmra.mxu1 %v15906_v39  ;;  %7099 = vmatpush1.bf16.msra.mxu0 %v14251_v23  ;;  %v14334_v23 = vld [vmem:[#allocation7 + $0x704] ss:$16 sps:$4 sm:$0xff]  }
 0x73e   :  { %7152 = vmatpush1.bf16.msra.mxu1 %v14254_v26  ;;  %7100 = vmatprep.subr.bf16.mxu0 %v14259_v3  ;;  %v14329_v26 = vld [vmem:[#allocation7 + $0x500] ss:$16 sps:$4 sm:$0xff]  }
 0x73f   :  { %7153 = vmatprep.subr.bf16.mxu1 %v14262_v10  ;;  %7126 = vmatprep.mubr.bf16.mxu0 %v15874_v42  ;;  %v14332_v3 = vld [vmem:[#allocation7 + $0x700] ss:$16 sps:$4 sm:$0xff]   ;;  %v14337_v10 = vld [vmem:[#allocation7 + $0x4ec] ss:$16 sps:$4 sm:$0xff]  }
 0x740   :  { %7179 = vmatprep.mubr.bf16.mxu1 %v15876_v44 }
 0x741   :  { %7101 = vmatpush1.bf16.msra.mxu0 %v14257_v37  ;;  %v14340_v37 = vld [vmem:[#allocation7 + $0x6ec] ss:$16 sps:$4 sm:$0xff]  }
 0x742   :  { %7154 = vmatpush1.bf16.msra.mxu1 %v14260_v31  ;;  %7102 = vmatprep.subr.bf16.mxu0 %v14265_v32  ;;  %v14335_v31 = vld [vmem:[#allocation7 + $0x4e8] ss:$16 sps:$4 sm:$0xff]  }
 0x743   :  { %7155 = vmatprep.subr.bf16.mxu1 %v14268_v33  ;;  %v14338_v32 = vld [vmem:[#allocation7 + $0x6e8] ss:$16 sps:$4 sm:$0xff]   ;;  %v14343_v33 = vld [vmem:[#allocation7 + $0x4cc] ss:$16 sps:$4 sm:$0xff]  }
 0x745   :  { %7103 = vmatpush1.bf16.msra.mxu0 %v14263_v36  ;;  %v14346_v36 = vld [vmem:[#allocation7 + $0x6cc] ss:$16 sps:$4 sm:$0xff]  }
 0x746   :  { %7156 = vmatpush1.bf16.msra.mxu1 %v14266_v38  ;;  %7104 = vmatprep.subr.bf16.mxu0 %v14271_v46  ;;  %v14341_v38 = vld [vmem:[#allocation7 + $0x4c8] ss:$16 sps:$4 sm:$0xff]  }
 0x747   :  { %7157 = vmatprep.subr.bf16.mxu1 %v14274_v5  ;;  %v14344_v46 = vld [vmem:[#allocation7 + $0x6c8] ss:$16 sps:$4 sm:$0xff]   ;;  %v14349_v5 = vld [vmem:[#allocation7 + $0x4ac] ss:$16 sps:$4 sm:$0xff]  }
 0x749   :  { %7105 = vmatpush1.bf16.msra.mxu0 %v14269_v48  ;;  %v14352_v48 = vld [vmem:[#allocation7 + $0x6ac] ss:$16 sps:$4 sm:$0xff]  }
 0x74a   :  { %7158 = vmatpush1.bf16.msra.mxu1 %v14272_v18  ;;  %7106 = vmatprep.subr.bf16.mxu0 %v14277_v30  ;;  %v14347_v18 = vld [vmem:[#allocation7 + $0x4a8] ss:$16 sps:$4 sm:$0xff]  }
 0x74b   :  { %7159 = vmatprep.subr.bf16.mxu1 %v14280_v63  ;;  %v14350_v30 = vld [vmem:[#allocation7 + $0x6a8] ss:$16 sps:$4 sm:$0xff]   ;;  %v14355_v63 = vld [vmem:[#allocation7 + $0x48c] ss:$16 sps:$4 sm:$0xff]  }
 0x74d   :  { %7107 = vmatpush1.bf16.msra.mxu0 %v14275_v6  ;;  %v14358_v6 = vld [vmem:[#allocation7 + $0x68c] ss:$16 sps:$4 sm:$0xff]  }
 0x74e   :  { %7160 = vmatpush1.bf16.msra.mxu1 %v14278_v4  ;;  %7108 = vmatprep.subr.bf16.mxu0 %v14283_v51  ;;  %v14353_v4 = vld [vmem:[#allocation7 + $0x488] ss:$16 sps:$4 sm:$0xff]  }
 0x74f   :  { %7161 = vmatprep.subr.bf16.mxu1 %v14286_v52  ;;  %v14356_v51 = vld [vmem:[#allocation7 + $0x688] ss:$16 sps:$4 sm:$0xff]   ;;  %v14361_v52 = vld [vmem:[#allocation7 + $0x46c] ss:$16 sps:$4 sm:$0xff]  }
 0x751   :  { %7109 = vmatpush1.bf16.msra.mxu0 %v14281_v53  ;;  %v14364_v53 = vld [vmem:[#allocation7 + $0x66c] ss:$16 sps:$4 sm:$0xff]  }
 0x752   :  { %7162 = vmatpush1.bf16.msra.mxu1 %v14284_v43  ;;  %7110 = vmatprep.subr.bf16.mxu0 %v14289_v21  ;;  %v14359_v43 = vld [vmem:[#allocation7 + $0x468] ss:$16 sps:$4 sm:$0xff]  }
 0x753   :  { %7163 = vmatprep.subr.bf16.mxu1 %v14292_v24  ;;  %v14362_v21 = vld [vmem:[#allocation7 + $0x668] ss:$16 sps:$4 sm:$0xff]   ;;  %v14367_v24 = vld [vmem:[#allocation7 + $0x44c] ss:$16 sps:$4 sm:$0xff]  }
 0x755   :  { %7111 = vmatpush2.bf16.msra.mxu0 %v14287_v7  ;;  %v14370_v7 = vld [vmem:[#allocation7 + $0x64c] ss:$16 sps:$4 sm:$0xff]  }
 0x756   :  { %7164 = vmatpush2.bf16.msra.mxu1 %v14290_v13  ;;  %7112 = vmatprep.subr.bf16.mxu0 %v14295_v58  ;;  %v14365_v13 = vld [vmem:[#allocation7 + $0x448] ss:$16 sps:$4 sm:$0xff]  }
 0x757   :  { %7165 = vmatprep.subr.bf16.mxu1 %v14298_v54  ;;  %v14368_v58 = vld [vmem:[#allocation7 + $0x648] ss:$16 sps:$4 sm:$0xff]   ;;  %v14373_v54 = vld [vmem:[#allocation7 + $0x42c] ss:$16 sps:$4 sm:$0xff]  }
 0x759   :  { %7113 = vmatpush2.bf16.msra.mxu0 %v14293_v47  ;;  %v14376_v47 = vld [vmem:[#allocation7 + $0x62c] ss:$16 sps:$4 sm:$0xff]  }
 0x75a   :  { %7166 = vmatpush2.bf16.msra.mxu1 %v14296_v62  ;;  %7114 = vmatprep.subr.bf16.mxu0 %v14301_v56  ;;  %v14371_v62 = vld [vmem:[#allocation7 + $0x428] ss:$16 sps:$4 sm:$0xff]  }
 0x75b   :  { %7167 = vmatprep.subr.bf16.mxu1 %v14304_v57  ;;  %v14374_v56 = vld [vmem:[#allocation7 + $0x628] ss:$16 sps:$4 sm:$0xff]   ;;  %v14379_v57 = vld [vmem:[#allocation7 + $0x40c] ss:$16 sps:$4 sm:$0xff]  }
 0x75d   :  { %7115 = vmatpush2.bf16.msra.mxu0 %v14299_v35  ;;  %v14382_v35 = vld [vmem:[#allocation7 + $0x60c] ss:$16 sps:$4 sm:$0xff]  }
 0x75e   :  { %7168 = vmatpush2.bf16.msra.mxu1 %v14302_v28  ;;  %7116 = vmatprep.subr.bf16.mxu0 %v14307_v15  ;;  %v14377_v28 = vld [vmem:[#allocation7 + $0x408] ss:$16 sps:$4 sm:$0xff]  }
 0x75f   :  { %7169 = vmatprep.subr.bf16.mxu1 %v14310_v2  ;;  %v14380_v15 = vld [vmem:[#allocation7 + $0x608] ss:$16 sps:$4 sm:$0xff]   ;;  %v14385_v2 = vld [vmem:[#allocation7 + $0x5ec] ss:$16 sps:$4 sm:$0xff]  }
 0x761   :  { %7117 = vmatpush2.bf16.msra.mxu0 %v14305_v16  ;;  %v14388_v16 = vld [vmem:[#allocation7 + $0x7ec] ss:$16 sps:$4 sm:$0xff]  }
 0x762   :  { %7170 = vmatpush2.bf16.msra.mxu1 %v14308_v34  ;;  %7118 = vmatprep.subr.bf16.mxu0 %v14313_v29  ;;  %v14383_v34 = vld [vmem:[#allocation7 + $0x5e8] ss:$16 sps:$4 sm:$0xff]  }
 0x763   :  { %7171 = vmatprep.subr.bf16.mxu1 %v14316_v40  ;;  %v14386_v29 = vld [vmem:[#allocation7 + $0x7e8] ss:$16 sps:$4 sm:$0xff]   ;;  %v14391_v40 = vld [vmem:[#allocation7 + $0x5cc] ss:$16 sps:$4 sm:$0xff]  }
 0x765   :  { %7119 = vmatpush2.bf16.msra.mxu0 %v14311_v41  ;;  %v14394_v41 = vld [vmem:[#allocation7 + $0x7cc] ss:$16 sps:$4 sm:$0xff]  }
 0x766   :  { %7172 = vmatpush2.bf16.msra.mxu1 %v14314_v8  ;;  %7120 = vmatprep.subr.bf16.mxu0 %v14319_v22  ;;  %v14389_v8 = vld [vmem:[#allocation7 + $0x5c8] ss:$16 sps:$4 sm:$0xff]  }
 0x767   :  { %7173 = vmatprep.subr.bf16.mxu1 %v14322_v9  ;;  %v14392_v22 = vld [vmem:[#allocation7 + $0x7c8] ss:$16 sps:$4 sm:$0xff]   ;;  %v14397_v9 = vld [vmem:[#allocation7 + $0x5ac] ss:$16 sps:$4 sm:$0xff]  }
 0x769   :  { %7121 = vmatpush2.bf16.msra.mxu0 %v14317_v49  ;;  %v14400_v49 = vld [vmem:[#allocation7 + $0x7ac] ss:$16 sps:$4 sm:$0xff]  }
 0x76a   :  { %7174 = vmatpush2.bf16.msra.mxu1 %v14320_v50  ;;  %7122 = vmatprep.subr.bf16.mxu0 %v14325_v45  ;;  %v14395_v50 = vld [vmem:[#allocation7 + $0x5a8] ss:$16 sps:$4 sm:$0xff]  }
 0x76b   :  { %7175 = vmatprep.subr.bf16.mxu1 %v14328_v59  ;;  %v14398_v45 = vld [vmem:[#allocation7 + $0x7a8] ss:$16 sps:$4 sm:$0xff]   ;;  %v14403_v59 = vld [vmem:[#allocation7 + $0x58c] ss:$16 sps:$4 sm:$0xff]  }
 0x76d   :  { %7123 = vmatpush2.bf16.msra.mxu0 %v14323_v17  ;;  %v14406_v17 = vld [vmem:[#allocation7 + $0x78c] ss:$16 sps:$4 sm:$0xff]  }
 0x76e   :  { %7176 = vmatpush2.bf16.msra.mxu1 %v14326_v19  ;;  %7124 = vmatprep.subr.bf16.mxu0 %v14331_v20  ;;  %v14401_v19 = vld [vmem:[#allocation7 + $0x588] ss:$16 sps:$4 sm:$0xff]  }
 0x76f   :  { %7177 = vmatprep.subr.bf16.mxu1 %v14334_v23  ;;  %v14404_v20 = vld [vmem:[#allocation7 + $0x788] ss:$16 sps:$4 sm:$0xff]   ;;  %v14409_v23 = vld [vmem:[#allocation7 + $0x56c] ss:$16 sps:$4 sm:$0xff]  }
 0x771   :  { %7125 = vmatpush2.bf16.msra.mxu0 %v14329_v26  ;;  %v14412_v26 = vld [vmem:[#allocation7 + $0x76c] ss:$16 sps:$4 sm:$0xff]  }
 0x772   :  { %7178 = vmatpush2.bf16.msra.mxu1 %v14332_v3  ;;  %7200 = vmatprep.subr.bf16.mxu0 %v14337_v10  ;;  %v14407_v3 = vld [vmem:[#allocation7 + $0x568] ss:$16 sps:$4 sm:$0xff]  }
 0x773   :  { %7253 = vmatprep.subr.bf16.mxu1 %v14340_v37  ;;  %v14410_v10 = vld [vmem:[#allocation7 + $0x768] ss:$16 sps:$4 sm:$0xff]   ;;  %v14415_v37 = vld [vmem:[#allocation7 + $0x54c] ss:$16 sps:$4 sm:$0xff]  }
 0x774   :  { %7127 = vmatmul.mubr.bf16.vlgmr.msra.gmra.mxu0 %v15882_v25 }
 0x775   :  { %7180 = vmatmul.mubr.bf16.vlgmr.msra.gmra.mxu1 %v15886_v55  ;;  %7201 = vmatpush1.bf16.msra.mxu0 %v14335_v31  ;;  %v14418_v31 = vld [vmem:[#allocation7 + $0x74c] ss:$16 sps:$4 sm:$0xff]  }
 0x776   :  { %7254 = vmatpush1.bf16.msra.mxu1 %v14338_v32  ;;  %7202 = vmatprep.subr.bf16.mxu0 %v14343_v33  ;;  %v14413_v32 = vld [vmem:[#allocation7 + $0x548] ss:$16 sps:$4 sm:$0xff]  }
 0x777   :  { %7255 = vmatprep.subr.bf16.mxu1 %v14346_v36  ;;  %7136 = vmatprep.mubr.bf16.mxu0 %v15890_v60  ;;  %v14416_v33 = vld [vmem:[#allocation7 + $0x748] ss:$16 sps:$4 sm:$0xff]   ;;  %v14421_v36 = vld [vmem:[#allocation7 + $0x52c] ss:$16 sps:$4 sm:$0xff]  }
 0x778   :  { %7189 = vmatprep.mubr.bf16.mxu1 %v15894_v27 }
 0x779   :  { %7203 = vmatpush1.bf16.msra.mxu0 %v14341_v38  ;;  %v14424_v38 = vld [vmem:[#allocation7 + $0x72c] ss:$16 sps:$4 sm:$0xff]  }
 0x77a   :  { %7256 = vmatpush1.bf16.msra.mxu1 %v14344_v46  ;;  %7204 = vmatprep.subr.bf16.mxu0 %v14349_v5  ;;  %v14419_v46 = vld [vmem:[#allocation7 + $0x528] ss:$16 sps:$4 sm:$0xff]  }
 0x77b   :  { %7257 = vmatprep.subr.bf16.mxu1 %v14352_v48  ;;  %v14422_v5 = vld [vmem:[#allocation7 + $0x728] ss:$16 sps:$4 sm:$0xff]   ;;  %v14427_v48 = vld [vmem:[#allocation7 + $0x50c] ss:$16 sps:$4 sm:$0xff]  }
 0x77c   :  { %7137 = vmatmul.mubr.bf16.gmra.mxu0 %v15902_v11 }
 0x77d   :  { %7190 = vmatmul.mubr.bf16.gmra.mxu1 %v15906_v39  ;;  %7205 = vmatpush1.bf16.msra.mxu0 %v14347_v18  ;;  %v14430_v18 = vld [vmem:[#allocation7 + $0x70c] ss:$16 sps:$4 sm:$0xff]  }
 0x77e   :  { %7258 = vmatpush1.bf16.msra.mxu1 %v14350_v30  ;;  %7206 = vmatprep.subr.bf16.mxu0 %v14355_v63  ;;  %v14425_v30 = vld [vmem:[#allocation7 + $0x508] ss:$16 sps:$4 sm:$0xff]  }
 0x77f   :  { %7259 = vmatprep.subr.bf16.mxu1 %v14358_v6  ;;  %7232 = vmatprep.mubr.bf16.mxu0 %v15874_v42  ;;  %v14428_v63 = vld [vmem:[#allocation7 + $0x708] ss:$16 sps:$4 sm:$0xff]   ;;  %v14433_v6 = vld [vmem:[#allocation7 + $0x8e4] ss:$16 sps:$4 sm:$0xff]  }
 0x780   :  { %7285 = vmatprep.mubr.bf16.mxu1 %v15876_v44 }
 0x781   :  { %7207 = vmatpush1.bf16.msra.mxu0 %v14353_v4  ;;  %v14436_v4 = vld [vmem:[#allocation7 + $0xae4] ss:$16 sps:$4 sm:$0xff]  }
 0x782   :  { %7260 = vmatpush1.bf16.msra.mxu1 %v14356_v51  ;;  %7208 = vmatprep.subr.bf16.mxu0 %v14361_v52  ;;  %v14431_v51 = vld [vmem:[#allocation7 + $0x8e0] ss:$16 sps:$4 sm:$0xff]  }
 0x783   :  { %7261 = vmatprep.subr.bf16.mxu1 %v14364_v53  ;;  %v14434_v52 = vld [vmem:[#allocation7 + $0xae0] ss:$16 sps:$4 sm:$0xff]   ;;  %v14439_v53 = vld [vmem:[#allocation7 + $0x8c4] ss:$16 sps:$4 sm:$0xff]  }
 0x785   :  { %7209 = vmatpush1.bf16.msra.mxu0 %v14359_v43  ;;  %v14442_v43 = vld [vmem:[#allocation7 + $0xac4] ss:$16 sps:$4 sm:$0xff]  }
 0x786   :  { %7262 = vmatpush1.bf16.msra.mxu1 %v14362_v21  ;;  %7210 = vmatprep.subr.bf16.mxu0 %v14367_v24 }
 0x787   :  { %7263 = vmatprep.subr.bf16.mxu1 %v14370_v7 }
 0x789   :  { %7211 = vmatpush1.bf16.msra.mxu0 %v14365_v13  ;;  %v14437_v13 = vld [vmem:[#allocation7 + $0x8c0] ss:$16 sps:$4 sm:$0xff]  }
 0x78a   :  { %7264 = vmatpush1.bf16.msra.mxu1 %v14368_v58  ;;  %7212 = vmatprep.subr.bf16.mxu0 %v14373_v54  ;;  %v14440_v58 = vld [vmem:[#allocation7 + $0xac0] ss:$16 sps:$4 sm:$0xff]  }
 0x78b   :  { %7265 = vmatprep.subr.bf16.mxu1 %v14376_v47 }
 0x78d   :  { %7213 = vmatpush1.bf16.msra.mxu0 %v14371_v62  ;;  %v14445_v62 = vld [vmem:[#allocation7 + $0x8a4] ss:$16 sps:$4 sm:$0xff]  }
 0x78e   :  { %7266 = vmatpush1.bf16.msra.mxu1 %v14374_v56  ;;  %7214 = vmatprep.subr.bf16.mxu0 %v14379_v57  ;;  %v14448_v56 = vld [vmem:[#allocation7 + $0xaa4] ss:$16 sps:$4 sm:$0xff]  }
 0x78f   :  { %7267 = vmatprep.subr.bf16.mxu1 %v14382_v35 }
 0x791   :  { %7215 = vmatpush1.bf16.msra.mxu0 %v14377_v28 }
 0x792   :  { %7268 = vmatpush1.bf16.msra.mxu1 %v14380_v15  ;;  %7216 = vmatprep.subr.bf16.mxu0 %v14385_v2  ;;  %v14443_v2 = vld [vmem:[#allocation7 + $0x8a0] ss:$16 sps:$4 sm:$0xff]  }
 0x793   :  { %7269 = vmatprep.subr.bf16.mxu1 %v14388_v16  ;;  %v14446_v16 = vld [vmem:[#allocation7 + $0xaa0] ss:$16 sps:$4 sm:$0xff]  }
 0x795   :  { %7217 = vmatpush2.bf16.msra.mxu0 %v14383_v34 }
 0x796   :  { %7270 = vmatpush2.bf16.msra.mxu1 %v14386_v29  ;;  %7218 = vmatprep.subr.bf16.mxu0 %v14391_v40  ;;  %v14451_v40 = vld [vmem:[#allocation7 + $0x884] ss:$16 sps:$4 sm:$0xff]  }
 0x797   :  { %7271 = vmatprep.subr.bf16.mxu1 %v14394_v41  ;;  %v14454_v41 = vld [vmem:[#allocation7 + $0xa84] ss:$16 sps:$4 sm:$0xff]  }
 0x799   :  { %7219 = vmatpush2.bf16.msra.mxu0 %v14389_v8 }
 0x79a   :  { %7272 = vmatpush2.bf16.msra.mxu1 %v14392_v22  ;;  %7220 = vmatprep.subr.bf16.mxu0 %v14397_v9 }
 0x79b   :  { %7273 = vmatprep.subr.bf16.mxu1 %v14400_v49 }
 0x79d   :  { %7221 = vmatpush2.bf16.msra.mxu0 %v14395_v50 }
 0x79e   :  { %7274 = vmatpush2.bf16.msra.mxu1 %v14398_v45  ;;  %7222 = vmatprep.subr.bf16.mxu0 %v14403_v59  ;;  %v14449_v45 = vld [vmem:[#allocation7 + $0x880] ss:$16 sps:$4 sm:$0xff]  }
 0x79f   :  { %7275 = vmatprep.subr.bf16.mxu1 %v14406_v17  ;;  %v14452_v59 = vld [vmem:[#allocation7 + $0xa80] ss:$16 sps:$4 sm:$0xff]  }
 0x7a1   :  { %7223 = vmatpush2.bf16.msra.mxu0 %v14401_v19  ;;  %v14457_v19 = vld [vmem:[#allocation7 + $0x864] ss:$16 sps:$4 sm:$0xff]  }
 0x7a2   :  { %7276 = vmatpush2.bf16.msra.mxu1 %v14404_v20  ;;  %7224 = vmatprep.subr.bf16.mxu0 %v14409_v23  ;;  %v14460_v20 = vld [vmem:[#allocation7 + $0xa64] ss:$16 sps:$4 sm:$0xff]  }
 0x7a3   :  { %7277 = vmatprep.subr.bf16.mxu1 %v14412_v26 }
 0x7a5   :  { %7225 = vmatpush2.bf16.msra.mxu0 %v14407_v3 }
 0x7a6   :  { %7278 = vmatpush2.bf16.msra.mxu1 %v14410_v10  ;;  %7226 = vmatprep.subr.bf16.mxu0 %v14415_v37 }
 0x7a7   :  { %7279 = vmatprep.subr.bf16.mxu1 %v14418_v31  ;;  %v14455_v31 = vld [vmem:[#allocation7 + $0x860] ss:$16 sps:$4 sm:$0xff]  }
 0x7a9   :  { %7227 = vmatpush2.bf16.msra.mxu0 %v14413_v32  ;;  %v14458_v32 = vld [vmem:[#allocation7 + $0xa60] ss:$16 sps:$4 sm:$0xff]  }
 0x7aa   :  { %7280 = vmatpush2.bf16.msra.mxu1 %v14416_v33  ;;  %7228 = vmatprep.subr.bf16.mxu0 %v14421_v36  ;;  %v14463_v36 = vld [vmem:[#allocation7 + $0x844] ss:$16 sps:$4 sm:$0xff]  }
 0x7ab   :  { %7281 = vmatprep.subr.bf16.mxu1 %v14424_v38  ;;  %v14466_v38 = vld [vmem:[#allocation7 + $0xa44] ss:$16 sps:$4 sm:$0xff]  }
 0x7ad   :  { %7229 = vmatpush2.bf16.msra.mxu0 %v14419_v46 }
 0x7ae   :  { %7282 = vmatpush2.bf16.msra.mxu1 %v14422_v5  ;;  %7230 = vmatprep.subr.bf16.mxu0 %v14427_v48 }
 0x7af   :  { %7283 = vmatprep.subr.bf16.mxu1 %v14430_v18 }
 0x7b1   :  { %7231 = vmatpush2.bf16.msra.mxu0 %v14425_v30  ;;  %v14461_v30 = vld [vmem:[#allocation7 + $0x840] ss:$16 sps:$4 sm:$0xff]  }
 0x7b2   :  { %7284 = vmatpush2.bf16.msra.mxu1 %v14428_v63  ;;  %8131 = vmatprep.subr.bf16.mxu0 %v14433_v6  ;;  %v14464_v63 = vld [vmem:[#allocation7 + $0xa40] ss:$16 sps:$4 sm:$0xff]  }
 0x7b3   :  { %8184 = vmatprep.subr.bf16.mxu1 %v14436_v4  ;;  %v14469_v4 = vld [vmem:[#allocation7 + $0x824] ss:$16 sps:$4 sm:$0xff]  }
 0x7b4   :  { %v6091_v21 = vpop.f32.mrf.mxu0  ;;  %7233 = vmatmul.mubr.bf16.vlgmr.msra.gmra.mxu0 %v15882_v25 }
 0x7b5   :  { %v6144_v24 = vpop.f32.mrf.mxu1  ;;  %7286 = vmatmul.mubr.bf16.vlgmr.msra.gmra.mxu1 %v15886_v55  ;;  %8132 = vmatpush1.bf16.msra.mxu0 %v14431_v51  ;;  %v14472_v51 = vld [vmem:[#allocation7 + $0xa24] ss:$16 sps:$4 sm:$0xff]  }
 0x7b6   :  { %v15930_v7 = vadd.f32 %v6144_v24, %v6091_v21  ;;  %8185 = vmatpush1.bf16.msra.mxu1 %v14434_v52  ;;  %v6093_v54 = vpop.f32.mrf.mxu0  ;;  %8133 = vmatprep.subr.bf16.mxu0 %v14439_v53  ;;  %v14467_v52 = vld [vmem:[#allocation7 + $0x820] ss:$16 sps:$4 sm:$0xff]   ;;  %v14478_v21 = vld [vmem:[#allocation7 + $0xa04] ss:$16 sps:$4 sm:$0xff]  }
 0x7b7   :  { %v6146_v47 = vpop.f32.mrf.mxu1  ;;  %8186 = vmatprep.subr.bf16.mxu1 %v14442_v43  ;;  %7242 = vmatprep.mubr.bf16.mxu0 %v15890_v60  ;;  %v14470_v53 = vld [vmem:[#allocation7 + $0xa20] ss:$16 sps:$4 sm:$0xff]   ;;  %v14475_v43 = vld [vmem:[#allocation7 + $0x804] ss:$16 sps:$4 sm:$0xff]  }
 0x7b8   :  { %v15932_v57 = vadd.f32 %v6146_v47, %v6093_v54  ;;  %7295 = vmatprep.mubr.bf16.mxu1 %v15894_v27  ;;  %v6095_v35 = vpop.f32.mrf.mxu0  ;;  %v14473_v24 = vld [vmem:[#allocation7 + $0x800] ss:$16 sps:$4 sm:$0xff]   ;;  %v14484_v54 = vld [vmem:[#allocation7 + $0xbe4] ss:$16 sps:$4 sm:$0xff]  }
 0x7b9   :  { %v6148_v28 = vpop.f32.mrf.mxu1  ;;  %8134 = vmatpush1.bf16.msra.mxu0 %v14437_v13  ;;  %v14476_v13 = vld [vmem:[#allocation7 + $0xa00] ss:$16 sps:$4 sm:$0xff]  }
 0x7ba   :  { %v15936_v15 = vadd.f32 %v6148_v28, %v6095_v35  ;;  %8187 = vmatpush1.bf16.msra.mxu1 %v14440_v58  ;;  %v6097_v34 = vpop.f32.mrf.mxu0  ;;  %8135 = vmatprep.subr.bf16.mxu0 %v14445_v62  ;;  %v14481_v58 = vld [vmem:[#allocation7 + $0x9e4] ss:$16 sps:$4 sm:$0xff]   ;;  %v14479_v47 = vld [vmem:[#allocation7 + $0x9e0] ss:$16 sps:$4 sm:$0xff]  }
 0x7bb   :  { %v6150_v29 = vpop.f32.mrf.mxu1  ;;  %8188 = vmatprep.subr.bf16.mxu1 %v14448_v56  ;;  %v14482_v62 = vld [vmem:[#allocation7 + $0xbe0] ss:$16 sps:$4 sm:$0xff]   ;;  %v14487_v56 = vld [vmem:[#allocation7 + $0x9c4] ss:$16 sps:$4 sm:$0xff]  }
 0x7bc   :  { %v15940_v22 = vadd.f32 %v6150_v29, %v6097_v34  ;;  %v6101_v9 = vpop.f32.mrf.mxu0  ;;  %7243 = vmatmul.mubr.bf16.gmra.mxu0 %v15902_v11  ;;  %v14490_v35 = vld [vmem:[#allocation7 + $0xbc4] ss:$16 sps:$4 sm:$0xff]   ;;  %v14485_v28 = vld [vmem:[#allocation7 + $0x9c0] ss:$16 sps:$4 sm:$0xff]  }
 0x7bd   :  { %v6154_v49 = vpop.f32.mrf.mxu1  ;;  %7296 = vmatmul.mubr.bf16.gmra.mxu1 %v15906_v39  ;;  %8136 = vmatpush1.bf16.msra.mxu0 %v14443_v2  ;;  %v14488_v2 = vld [vmem:[#allocation7 + $0xbc0] ss:$16 sps:$4 sm:$0xff]   ;;  %v14496_v34 = vld [vmem:[#allocation7 + $0xba4] ss:$16 sps:$4 sm:$0xff]  }
 0x7be   :  { %8189 = vmatpush1.bf16.msra.mxu1 %v14446_v16  ;;  %v15946_v17 = vadd.f32 %v6154_v49, %v6101_v9  ;;  %8137 = vmatprep.subr.bf16.mxu0 %v14451_v40  ;;  %v6103_v23 = vpop.f32.mrf.mxu0  ;;  %v14493_v16 = vld [vmem:[#allocation7 + $0x9a4] ss:$16 sps:$4 sm:$0xff]   ;;  %v14491_v29 = vld [vmem:[#allocation7 + $0x9a0] ss:$16 sps:$4 sm:$0xff]  }
 0x7bf   :  { %8190 = vmatprep.subr.bf16.mxu1 %v14454_v41  ;;  %v6156_v26 = vpop.f32.mrf.mxu1  ;;  %8163 = vmatprep.mubr.bf16.mxu0 %v15874_v42  ;;  %v14494_v40 = vld [vmem:[#allocation7 + $0xba0] ss:$16 sps:$4 sm:$0xff]   ;;  %v14499_v41 = vld [vmem:[#allocation7 + $0x984] ss:$16 sps:$4 sm:$0xff]  }
 0x7c0   :  { %v15948_v3 = vadd.f32 %v6156_v26, %v6103_v23  ;;  %8216 = vmatprep.mubr.bf16.mxu1 %v15876_v44  ;;  %v6105_v10 = vpop.f32.mrf.mxu0  ;;  %v14502_v9 = vld [vmem:[#allocation7 + $0xb84] ss:$16 sps:$4 sm:$0xff]   ;;  %v14497_v49 = vld [vmem:[#allocation7 + $0x980] ss:$16 sps:$4 sm:$0xff]  }
 0x7c1   :  { %v6158_v37 = vpop.f32.mrf.mxu1  ;;  %8138 = vmatpush1.bf16.msra.mxu0 %v14449_v45  ;;  %v14500_v45 = vld [vmem:[#allocation7 + $0xb80] ss:$16 sps:$4 sm:$0xff]   ;;  %v14511_v26 = vld [vmem:[#allocation7 + $0x944] ss:$16 sps:$4 sm:$0xff]  }
 0x7c2   :  { %8191 = vmatpush1.bf16.msra.mxu1 %v14452_v59  ;;  %v15952_v33 = vadd.f32 %v6158_v37, %v6105_v10  ;;  %8139 = vmatprep.subr.bf16.mxu0 %v14457_v19  ;;  %v6107_v46 = vpop.f32.mrf.mxu0  ;;  %v14505_v59 = vld [vmem:[#allocation7 + $0x964] ss:$16 sps:$4 sm:$0xff]   ;;  %v14506_v23 = vld [vmem:[#allocation7 + $0xb60] ss:$16 sps:$4 sm:$0xff]  }
 0x7c3   :  { %8192 = vmatprep.subr.bf16.mxu1 %v14460_v20  ;;  %v6160_v5 = vpop.f32.mrf.mxu1  ;;  %v14508_v19 = vld [vmem:[#allocation7 + $0xb64] ss:$16 sps:$4 sm:$0xff]   ;;  %v14503_v20 = vld [vmem:[#allocation7 + $0x960] ss:$16 sps:$4 sm:$0xff]  }
 0x7c4   :  { %v15956_v18 = vadd.f32 %v6160_v5, %v6107_v46  ;;  %v14514_v10 = vld [vmem:[#allocation7 + $0xb44] ss:$16 sps:$4 sm:$0xff]   ;;  %v14509_v37 = vld [vmem:[#allocation7 + $0x940] ss:$16 sps:$4 sm:$0xff]  }
 0x7c5   :  { %8140 = vmatpush1.bf16.msra.mxu0 %v14455_v31  ;;  %v14512_v31 = vld [vmem:[#allocation7 + $0xb40] ss:$16 sps:$4 sm:$0xff]   ;;  %v14523_v5 = vld [vmem:[#allocation7 + $0x904] ss:$16 sps:$4 sm:$0xff]  }
 0x7c6   :  { %8193 = vmatpush1.bf16.msra.mxu1 %v14458_v32  ;;  %8141 = vmatprep.subr.bf16.mxu0 %v14463_v36  ;;  %v14517_v32 = vld [vmem:[#allocation7 + $0x924] ss:$16 sps:$4 sm:$0xff]   ;;  %v14518_v46 = vld [vmem:[#allocation7 + $0xb20] ss:$16 sps:$4 sm:$0xff]  }
 0x7c7   :  { %8194 = vmatprep.subr.bf16.mxu1 %v14466_v38  ;;  %v14520_v36 = vld [vmem:[#allocation7 + $0xb24] ss:$16 sps:$4 sm:$0xff]   ;;  %v14515_v38 = vld [vmem:[#allocation7 + $0x920] ss:$16 sps:$4 sm:$0xff]  }
 0x7c9   :  { %8142 = vmatpush1.bf16.msra.mxu0 %v14461_v30  ;;  %v14526_v30 = vld [vmem:[#allocation7 + $0xb04] ss:$16 sps:$4 sm:$0xff]  }
 0x7ca   :  { %8195 = vmatpush1.bf16.msra.mxu1 %v14464_v63  ;;  %8143 = vmatprep.subr.bf16.mxu0 %v14469_v4  ;;  %v14521_v63 = vld [vmem:[#allocation7 + $0x900] ss:$16 sps:$4 sm:$0xff]  }
 0x7cb   :  { %8196 = vmatprep.subr.bf16.mxu1 %v14472_v51  ;;  %v14524_v4 = vld [vmem:[#allocation7 + $0xb00] ss:$16 sps:$4 sm:$0xff]   ;;  %v14529_v51 = vld [vmem:[#allocation7 + $0x8ec] ss:$16 sps:$4 sm:$0xff]  }
 0x7cd   :  { %8144 = vmatpush1.bf16.msra.mxu0 %v14467_v52  ;;  %v14532_v52 = vld [vmem:[#allocation7 + $0xaec] ss:$16 sps:$4 sm:$0xff]  }
 0x7ce   :  { %8197 = vmatpush1.bf16.msra.mxu1 %v14470_v53  ;;  %8145 = vmatprep.subr.bf16.mxu0 %v14475_v43  ;;  %v14527_v53 = vld [vmem:[#allocation7 + $0x8e8] ss:$16 sps:$4 sm:$0xff]  }
 0x7cf   :  { %8198 = vmatprep.subr.bf16.mxu1 %v14478_v21  ;;  %v14530_v43 = vld [vmem:[#allocation7 + $0xae8] ss:$16 sps:$4 sm:$0xff]   ;;  %v14535_v21 = vld [vmem:[#allocation7 + $0x8cc] ss:$16 sps:$4 sm:$0xff]  }
 0x7d1   :  { %8146 = vmatpush1.bf16.msra.mxu0 %v14473_v24  ;;  %v14538_v24 = vld [vmem:[#allocation7 + $0xacc] ss:$16 sps:$4 sm:$0xff]  }
 0x7d2   :  { %8199 = vmatpush1.bf16.msra.mxu1 %v14476_v13  ;;  %8147 = vmatprep.subr.bf16.mxu0 %v14481_v58 }
 0x7d3   :  { %8200 = vmatprep.subr.bf16.mxu1 %v14484_v54 }
 0x7d5   :  { %8148 = vmatpush2.bf16.msra.mxu0 %v14479_v47  ;;  %v14533_v47 = vld [vmem:[#allocation7 + $0x8c8] ss:$16 sps:$4 sm:$0xff]  }
 0x7d6   :  { %8201 = vmatpush2.bf16.msra.mxu1 %v14482_v62  ;;  %8149 = vmatprep.subr.bf16.mxu0 %v14487_v56  ;;  %v14536_v62 = vld [vmem:[#allocation7 + $0xac8] ss:$16 sps:$4 sm:$0xff]  }
 0x7d7   :  { %8202 = vmatprep.subr.bf16.mxu1 %v14490_v35 }
 0x7d9   :  { %8150 = vmatpush2.bf16.msra.mxu0 %v14485_v28  ;;  %v14541_v28 = vld [vmem:[#allocation7 + $0x8ac] ss:$16 sps:$4 sm:$0xff]  }
 0x7da   :  { %8203 = vmatpush2.bf16.msra.mxu1 %v14488_v2  ;;  %8151 = vmatprep.subr.bf16.mxu0 %v14493_v16  ;;  %v14544_v2 = vld [vmem:[#allocation7 + $0xaac] ss:$16 sps:$4 sm:$0xff]  }
 0x7db   :  { %8204 = vmatprep.subr.bf16.mxu1 %v14496_v34 }
 0x7dd   :  { %8152 = vmatpush2.bf16.msra.mxu0 %v14491_v29 }
 0x7de   :  { %8205 = vmatpush2.bf16.msra.mxu1 %v14494_v40  ;;  %8153 = vmatprep.subr.bf16.mxu0 %v14499_v41  ;;  %v14539_v41 = vld [vmem:[#allocation7 + $0x8a8] ss:$16 sps:$4 sm:$0xff]  }
 0x7df   :  { %8206 = vmatprep.subr.bf16.mxu1 %v14502_v9  ;;  %v14542_v9 = vld [vmem:[#allocation7 + $0xaa8] ss:$16 sps:$4 sm:$0xff]  }
 0x7e1   :  { %8154 = vmatpush2.bf16.msra.mxu0 %v14497_v49 }
 0x7e2   :  { %8207 = vmatpush2.bf16.msra.mxu1 %v14500_v45  ;;  %8155 = vmatprep.subr.bf16.mxu0 %v14505_v59  ;;  %v14547_v59 = vld [vmem:[#allocation7 + $0x88c] ss:$16 sps:$4 sm:$0xff]  }
 0x7e3   :  { %8208 = vmatprep.subr.bf16.mxu1 %v14508_v19  ;;  %v14550_v19 = vld [vmem:[#allocation7 + $0xa8c] ss:$16 sps:$4 sm:$0xff]  }
 0x7e5   :  { %8156 = vmatpush2.bf16.msra.mxu0 %v14503_v20 }
 0x7e6   :  { %8209 = vmatpush2.bf16.msra.mxu1 %v14506_v23  ;;  %8157 = vmatprep.subr.bf16.mxu0 %v14511_v26 }
 0x7e7   :  { %8210 = vmatprep.subr.bf16.mxu1 %v14514_v10 }
 0x7e9   :  { %8158 = vmatpush2.bf16.msra.mxu0 %v14509_v37 }
 0x7ea   :  { %8211 = vmatpush2.bf16.msra.mxu1 %v14512_v31  ;;  %8159 = vmatprep.subr.bf16.mxu0 %v14517_v32  ;;  %v14545_v31 = vld [vmem:[#allocation7 + $0x888] ss:$16 sps:$4 sm:$0xff]  }
 0x7eb   :  { %8212 = vmatprep.subr.bf16.mxu1 %v14520_v36  ;;  %v14548_v32 = vld [vmem:[#allocation7 + $0xa88] ss:$16 sps:$4 sm:$0xff]  }
 0x7ed   :  { %8160 = vmatpush2.bf16.msra.mxu0 %v14515_v38  ;;  %v14553_v38 = vld [vmem:[#allocation7 + $0x86c] ss:$16 sps:$4 sm:$0xff]  }
 0x7ee   :  { %8213 = vmatpush2.bf16.msra.mxu1 %v14518_v46  ;;  %8161 = vmatprep.subr.bf16.mxu0 %v14523_v5  ;;  %v14556_v46 = vld [vmem:[#allocation7 + $0xa6c] ss:$16 sps:$4 sm:$0xff]  }
 0x7ef   :  { %8214 = vmatprep.subr.bf16.mxu1 %v14526_v30 }
 0x7f1   :  { %8162 = vmatpush2.bf16.msra.mxu0 %v14521_v63 }
 0x7f2   :  { %8215 = vmatpush2.bf16.msra.mxu1 %v14524_v4  ;;  %8237 = vmatprep.subr.bf16.mxu0 %v14529_v51 }
 0x7f3   :  { %8290 = vmatprep.subr.bf16.mxu1 %v14532_v52  ;;  %v14551_v52 = vld [vmem:[#allocation7 + $0x868] ss:$16 sps:$4 sm:$0xff]  }
 0x7f4   :  { %v6197_v13 = vpop.f32.mrf.mxu0  ;;  %8164 = vmatmul.mubr.bf16.vlgmr.msra.gmra.mxu0 %v15882_v25 }
 0x7f5   :  { %v6250_v58 = vpop.f32.mrf.mxu1  ;;  %8217 = vmatmul.mubr.bf16.vlgmr.msra.gmra.mxu1 %v15886_v55  ;;  %8238 = vmatpush1.bf16.msra.mxu0 %v14527_v53  ;;  %v14554_v53 = vld [vmem:[#allocation7 + $0xa68] ss:$16 sps:$4 sm:$0xff]  }
 0x7f6   :  { %v15962_v54 = vadd.f32 %v6250_v58, %v6197_v13  ;;  %8291 = vmatpush1.bf16.msra.mxu1 %v14530_v43  ;;  %v6199_v56 = vpop.f32.mrf.mxu0  ;;  %8239 = vmatprep.subr.bf16.mxu0 %v14535_v21  ;;  %v14559_v21 = vld [vmem:[#allocation7 + $0x84c] ss:$16 sps:$4 sm:$0xff]  }
 0x7f7   :  { %v6252_v35 = vpop.f32.mrf.mxu1  ;;  %8292 = vmatprep.subr.bf16.mxu1 %v14538_v24  ;;  %8173 = vmatprep.mubr.bf16.mxu0 %v15890_v60  ;;  %v14562_v24 = vld [vmem:[#allocation7 + $0xa4c] ss:$16 sps:$4 sm:$0xff]  }
 0x7f8   :  { %16773 = vst [vmem:[#allocation54_spill] sm:$0xff] %v15962_v54  ;;  %v15964_v16 = vadd.f32 %v6252_v35, %v6199_v56  ;;  %8226 = vmatprep.mubr.bf16.mxu1 %v15894_v27  ;;  %v6201_v34 = vpop.f32.mrf.mxu0  ;;  %v14565_v35 = vld [vmem:[#allocation7 + $0x82c] ss:$16 sps:$4 sm:$0xff]  }
 0x7f9   :  { %v6254_v29 = vpop.f32.mrf.mxu1  ;;  %8240 = vmatpush1.bf16.msra.mxu0 %v14533_v47 }
 0x7fa   :  { %16774 = vst [vmem:[#allocation55_spill] sm:$0xff] %v15964_v16  ;;  %v15968_v40 = vadd.f32 %v6254_v29, %v6201_v34  ;;  %8293 = vmatpush1.bf16.msra.mxu1 %v14536_v62  ;;  %v6203_v49 = vpop.f32.mrf.mxu0  ;;  %8241 = vmatprep.subr.bf16.mxu0 %v14541_v28  ;;  %v14560_v62 = vld [vmem:[#allocation7 + $0xa48] ss:$16 sps:$4 sm:$0xff]   ;;  %v14568_v28 = vld [vmem:[#allocation7 + $0xa2c] ss:$16 sps:$4 sm:$0xff]  }
 0x7fb   :  { %v6256_v45 = vpop.f32.mrf.mxu1  ;;  %8294 = vmatprep.subr.bf16.mxu1 %v14544_v2  ;;  %v14563_v2 = vld [vmem:[#allocation7 + $0x828] ss:$16 sps:$4 sm:$0xff]   ;;  %v14571_v29 = vld [vmem:[#allocation7 + $0x80c] ss:$16 sps:$4 sm:$0xff]  }
 0x7fc   :  { %16775 = vst [vmem:[#allocation56_spill] sm:$0xff] %v15968_v40  ;;  %v15972_v23 = vadd.f32 %v6256_v45, %v6203_v49  ;;  %8174 = vmatmul.mubr.bf16.gmra.mxu0 %v15902_v11  ;;  %v6207_v26 = vpop.f32.mrf.mxu0  ;;  %v14566_v34 = vld [vmem:[#allocation7 + $0xa28] ss:$16 sps:$4 sm:$0xff]   ;;  %v14577_v45 = vld [vmem:[#allocation7 + $0x9ec] ss:$16 sps:$4 sm:$0xff]  }
 0x7fd   :  { %8227 = vmatmul.mubr.bf16.gmra.mxu1 %v15906_v39  ;;  %v6260_v10 = vpop.f32.mrf.mxu1  ;;  %8242 = vmatpush1.bf16.msra.mxu0 %v14539_v41  ;;  %v14574_v41 = vld [vmem:[#allocation7 + $0xa0c] ss:$16 sps:$4 sm:$0xff]   ;;  %v14572_v49 = vld [vmem:[#allocation7 + $0xa08] ss:$16 sps:$4 sm:$0xff]  }
 0x7fe   :  { %16776 = vst [vmem:[#allocation57_spill] sm:$0xff] %v15972_v23  ;;  %8295 = vmatpush1.bf16.msra.mxu1 %v14542_v9  ;;  %v15978_v36 = vadd.f32 %v6260_v10, %v6207_v26  ;;  %8243 = vmatprep.subr.bf16.mxu0 %v14547_v59  ;;  %v6209_v5 = vpop.f32.mrf.mxu0  ;;  %v14569_v9 = vld [vmem:[#allocation7 + $0x808] ss:$16 sps:$4 sm:$0xff]   ;;  %v14580_v59 = vld [vmem:[#allocation7 + $0xbec] ss:$16 sps:$4 sm:$0xff]  }
 0x7ff   :  { %8296 = vmatprep.subr.bf16.mxu1 %v14550_v19  ;;  %v6262_v30 = vpop.f32.mrf.mxu1  ;;  %8269 = vmatprep.mubr.bf16.mxu0 %v15874_v42  ;;  %v14575_v19 = vld [vmem:[#allocation7 + $0x9e8] ss:$16 sps:$4 sm:$0xff]   ;;  %v14583_v10 = vld [vmem:[#allocation7 + $0x9cc] ss:$16 sps:$4 sm:$0xff]  }
 0x800   :  { %16777 = vst [vmem:[#allocation58_spill] sm:$0xff] %v15978_v36  ;;  %v15980_v63 = vadd.f32 %v6262_v30, %v6209_v5  ;;  %8322 = vmatprep.mubr.bf16.mxu1 %v15876_v44  ;;  %v6211_v4 = vpop.f32.mrf.mxu0  ;;  %v14557_v44 = vld [vmem:[#allocation7 + $0x848] ss:$16 sps:$4 sm:$0xff]   ;;  %v14592_v5 = vld [vmem:[#allocation7 + $0xbac] ss:$16 sps:$4 sm:$0xff]  }
 0x801   :  { %v6264_v51 = vpop.f32.mrf.mxu1  ;;  %8244 = vmatpush1.bf16.msra.mxu0 %v14545_v31  ;;  %v14578_v26 = vld [vmem:[#allocation7 + $0xbe8] ss:$16 sps:$4 sm:$0xff]   ;;  %v14586_v31 = vld [vmem:[#allocation7 + $0xbcc] ss:$16 sps:$4 sm:$0xff]  }
 0x802   :  { %8297 = vmatpush1.bf16.msra.mxu1 %v14548_v32  ;;  %v15984_v43 = vadd.f32 %v6264_v51, %v6211_v4  ;;  %8245 = vmatprep.subr.bf16.mxu0 %v14553_v38  ;;  %v6213_v13 = vpop.f32.mrf.mxu0  ;;  %v14581_v32 = vld [vmem:[#allocation7 + $0x9c8] ss:$16 sps:$4 sm:$0xff]   ;;  %v14595_v51 = vld [vmem:[#allocation7 + $0x98c] ss:$16 sps:$4 sm:$0xff]  }
 0x803   :  { %8298 = vmatprep.subr.bf16.mxu1 %v14556_v46  ;;  %v6266_v58 = vpop.f32.mrf.mxu1  ;;  %v14584_v38 = vld [vmem:[#allocation7 + $0xbc8] ss:$16 sps:$4 sm:$0xff]   ;;  %v14589_v46 = vld [vmem:[#allocation7 + $0x9ac] ss:$16 sps:$4 sm:$0xff]  }
 0x804   :  { %v15988_v42 = vadd.f32 %v6266_v58, %v6213_v13  ;;  %v14587_v30 = vld [vmem:[#allocation7 + $0x9a8] ss:$16 sps:$4 sm:$0xff]   ;;  %v14604_v13 = vld [vmem:[#allocation7 + $0xb6c] ss:$16 sps:$4 sm:$0xff]  }
 0x805   :  { %8246 = vmatpush1.bf16.msra.mxu0 %v14551_v52  ;;  %v14590_v4 = vld [vmem:[#allocation7 + $0xba8] ss:$16 sps:$4 sm:$0xff]   ;;  %v14598_v52 = vld [vmem:[#allocation7 + $0xb8c] ss:$16 sps:$4 sm:$0xff]  }
 0x806   :  { %8299 = vmatpush1.bf16.msra.mxu1 %v14554_v53  ;;  %8247 = vmatprep.subr.bf16.mxu0 %v14559_v21  ;;  %v14593_v53 = vld [vmem:[#allocation7 + $0x988] ss:$16 sps:$4 sm:$0xff]  }
 0x807   :  { %8300 = vmatprep.subr.bf16.mxu1 %v14562_v24  ;;  %v14596_v21 = vld [vmem:[#allocation7 + $0xb88] ss:$16 sps:$4 sm:$0xff]   ;;  %v14601_v24 = vld [vmem:[#allocation7 + $0x96c] ss:$16 sps:$4 sm:$0xff]  }
 0x808   :  { %v14599_v58 = vld [vmem:[#allocation7 + $0x968] ss:$16 sps:$4 sm:$0xff]  }
 0x809   :  { %8248 = vmatpush1.bf16.msra.mxu0 %v14557_v44  ;;  %v14602_v44 = vld [vmem:[#allocation7 + $0xb68] ss:$16 sps:$4 sm:$0xff]  }
 0x80a   :  { %8301 = vmatpush1.bf16.msra.mxu1 %v14560_v62  ;;  %8249 = vmatprep.subr.bf16.mxu0 %v14565_v35  ;;  %v14607_v62 = vld [vmem:[#allocation7 + $0x94c] ss:$16 sps:$4 sm:$0xff]  }
 0x80b   :  { %8302 = vmatprep.subr.bf16.mxu1 %v14568_v28  ;;  %v14610_v35 = vld [vmem:[#allocation7 + $0xb4c] ss:$16 sps:$4 sm:$0xff]   ;;  %v14605_v28 = vld [vmem:[#allocation7 + $0x948] ss:$16 sps:$4 sm:$0xff]  }
 0x80d   :  { %8250 = vmatpush1.bf16.msra.mxu0 %v14563_v2  ;;  %v14608_v2 = vld [vmem:[#allocation7 + $0xb48] ss:$16 sps:$4 sm:$0xff]  }
 0x80e   :  { %8303 = vmatpush1.bf16.msra.mxu1 %v14566_v34  ;;  %8251 = vmatprep.subr.bf16.mxu0 %v14571_v29  ;;  %v14613_v34 = vld [vmem:[#allocation7 + $0x92c] ss:$16 sps:$4 sm:$0xff]  }
 0x80f   :  { %8304 = vmatprep.subr.bf16.mxu1 %v14574_v41  ;;  %v14616_v29 = vld [vmem:[#allocation7 + $0xb2c] ss:$16 sps:$4 sm:$0xff]   ;;  %v14611_v41 = vld [vmem:[#allocation7 + $0x928] ss:$16 sps:$4 sm:$0xff]  }
 0x811   :  { %8252 = vmatpush1.bf16.msra.mxu0 %v14569_v9  ;;  %v14614_v9 = vld [vmem:[#allocation7 + $0xb28] ss:$16 sps:$4 sm:$0xff]  }
 0x812   :  { %8305 = vmatpush1.bf16.msra.mxu1 %v14572_v49  ;;  %8253 = vmatprep.subr.bf16.mxu0 %v14577_v45  ;;  %v14619_v49 = vld [vmem:[#allocation7 + $0x90c] ss:$16 sps:$4 sm:$0xff]  }
 0x813   :  { %8306 = vmatprep.subr.bf16.mxu1 %v14580_v59  ;;  %v14622_v45 = vld [vmem:[#allocation7 + $0xb0c] ss:$16 sps:$4 sm:$0xff]   ;;  %v14617_v59 = vld [vmem:[#allocation7 + $0x908] ss:$16 sps:$4 sm:$0xff]  }
 0x815   :  { %8254 = vmatpush2.bf16.msra.mxu0 %v14575_v19  ;;  %v14620_v19 = vld [vmem:[#allocation7 + $0xb08] ss:$16 sps:$4 sm:$0xff]  }
 0x816   :  { %8307 = vmatpush2.bf16.msra.mxu1 %v14578_v26  ;;  %8255 = vmatprep.subr.bf16.mxu0 %v14583_v10 }
 0x817   :  { %8308 = vmatprep.subr.bf16.mxu1 %v14586_v31 }
 0x819   :  { %8256 = vmatpush2.bf16.msra.mxu0 %v14581_v32 }
 0x81a   :  { %8309 = vmatpush2.bf16.msra.mxu1 %v14584_v38  ;;  %8257 = vmatprep.subr.bf16.mxu0 %v14589_v46 }
 0x81b   :  { %8310 = vmatprep.subr.bf16.mxu1 %v14592_v5 }
 0x81d   :  { %8258 = vmatpush2.bf16.msra.mxu0 %v14587_v30 }
 0x81e   :  { %8311 = vmatpush2.bf16.msra.mxu1 %v14590_v4  ;;  %8259 = vmatprep.subr.bf16.mxu0 %v14595_v51 }
 0x81f   :  { %8312 = vmatprep.subr.bf16.mxu1 %v14598_v52 }
 0x821   :  { %8260 = vmatpush2.bf16.msra.mxu0 %v14593_v53 }
 0x822   :  { %8313 = vmatpush2.bf16.msra.mxu1 %v14596_v21  ;;  %8261 = vmatprep.subr.bf16.mxu0 %v14601_v24 }
 0x823   :  { %8314 = vmatprep.subr.bf16.mxu1 %v14604_v13 }
 0x825   :  { %8262 = vmatpush2.bf16.msra.mxu0 %v14599_v58 }
 0x826   :  { %8315 = vmatpush2.bf16.msra.mxu1 %v14602_v44  ;;  %8263 = vmatprep.subr.bf16.mxu0 %v14607_v62 }
 0x827   :  { %8316 = vmatprep.subr.bf16.mxu1 %v14610_v35 }
 0x829   :  { %8264 = vmatpush2.bf16.msra.mxu0 %v14605_v28 }
 0x82a   :  { %8317 = vmatpush2.bf16.msra.mxu1 %v14608_v2  ;;  %8265 = vmatprep.subr.bf16.mxu0 %v14613_v34 }
 0x82b   :  { %8318 = vmatprep.subr.bf16.mxu1 %v14616_v29 }
 0x82d   :  { %8266 = vmatpush2.bf16.msra.mxu0 %v14611_v41 }
 0x82e   :  { %8319 = vmatpush2.bf16.msra.mxu1 %v14614_v9  ;;  %8267 = vmatprep.subr.bf16.mxu0 %v14619_v49 }
 0x82f   :  { %8320 = vmatprep.subr.bf16.mxu1 %v14622_v45 }
 0x831   :  { %8268 = vmatpush2.bf16.msra.mxu0 %v14617_v59 }
 0x832   :  { %8321 = vmatpush2.bf16.msra.mxu1 %v14620_v19 }
 0x834   :  { %8270 = vmatmul.mubr.bf16.vlgmr.msra.gmra.mxu0 %v15882_v25  ;;  %v16000_v26 = vpop.f32.mrf.mxu0 }
 0x835   :  { %8323 = vmatmul.mubr.bf16.vlgmr.msra.gmra.mxu1 %v15886_v55  ;;  %8279 = vmatprep.mubr.bf16.mxu0 %v15890_v60  ;;  %v16002_v10 = vpop.f32.mrf.mxu1 }
 0x836   :  { %8332 = vmatprep.mubr.bf16.mxu1 %v15894_v27  ;;  %v16004_v31 = vpop.f32.mrf.mxu0 }
 0x837   :  { %v16006_v25 = vpop.f32.mrf.mxu1 }
 0x838   :  { %v16008_v55 = vpop.f32.mrf.mxu0 }
 0x839   :  { %v16010_v60 = vpop.f32.mrf.mxu1 }
 0x83a   :  { %v16012_v27 = vpop.f32.mrf.mxu0 }
 0x83c   :  { %8280 = vmatmul.mubr.bf16.gmra.mxu0 %v15902_v11  ;;  %v16014_v11 = vpop.f32.mrf.mxu1 }
 0x83d   :  { %8333 = vmatmul.mubr.bf16.gmra.mxu1 %v15906_v39  ;;  %8616 = vmatprep.mubr.bf16.mxu0 %v16751_v0  ;;  %v16016_v39 = vpop.f32.mrf.mxu0 }
 0x83e   :  { %8689 = vmatprep.mubr.bf16.mxu1 %v16751_v0  ;;  %v16018_v32 = vpop.f32.mrf.mxu1 }
 0x83f   :  { %v7140_v38 = vpop.f32.mrf.mxu0 }
 0x840   :  { %v7193_v46 = vpop.f32.mrf.mxu1 }
 0x841   :  { %v16020_v5 = vpop.f32.mrf.mxu0  ;;  %v7194_v40 = vadd.f32 %v7193_v46, %v7140_v38 }
 0x842   :  { %v16022_v30 = vpop.f32.mrf.mxu1 }
 0x843   :  { %v7144_v4 = vpop.f32.mrf.mxu0 }
 0x844   :  { %v7197_v51 = vpop.f32.mrf.mxu1 }
 0x845   :  { %v7198_v16 = vadd.f32 %v7197_v51, %v7144_v4 }
 0x874   :  { %v7234_v52 = vpop.f32.mrf.mxu0 }
 0x875   :  { %v7287_v53 = vpop.f32.mrf.mxu1 }
 0x876   :  { %v16024_v21 = vadd.f32 %v7287_v53, %v7234_v52  ;;  %v7236_v24 = vpop.f32.mrf.mxu0 }
 0x877   :  { %v7289_v13 = vpop.f32.mrf.mxu1 }
 0x878   :  { %v16026_v58 = vadd.f32 %v7289_v13, %v7236_v24  ;;  %v7238_v44 = vpop.f32.mrf.mxu0 }
 0x879   :  { %v7291_v62 = vpop.f32.mrf.mxu1 }
 0x87a   :  { %v16028_v35 = vadd.f32 %v7291_v62, %v7238_v44  ;;  %v7240_v28 = vpop.f32.mrf.mxu0 }
 0x87b   :  { %v7293_v2 = vpop.f32.mrf.mxu1 }
 0x87c   :  { %v16032_v29 = vadd.f32 %v7293_v2, %v7240_v28  ;;  %v7244_v41 = vpop.f32.mrf.mxu0 }
 0x87d   :  { %v7297_v9 = vpop.f32.mrf.mxu1 }
 0x87e   :  { %v16036_v45 = vadd.f32 %v7297_v9, %v7244_v41  ;;  %v7246_v59 = vpop.f32.mrf.mxu0 }
 0x87f   :  { %v7299_v19 = vpop.f32.mrf.mxu1 }
 0x880   :  { %v16038_v52 = vadd.f32 %v7299_v19, %v7246_v59  ;;  %v7248_v53 = vpop.f32.mrf.mxu0 }
 0x881   :  { %v7301_v24 = vpop.f32.mrf.mxu1 }
 0x882   :  { %v16040_v13 = vadd.f32 %v7301_v24, %v7248_v53  ;;  %v7250_v44 = vpop.f32.mrf.mxu0 }
 0x883   :  { %v7303_v62 = vpop.f32.mrf.mxu1 }
 0x884   :  { %v16044_v2 = vadd.f32 %v7303_v62, %v7250_v44 }
 0x8b4   :  { %v8165_v41 = vpop.f32.mrf.mxu0 }
 0x8b5   :  { %v8218_v9 = vpop.f32.mrf.mxu1 }
 0x8b6   :  { %v8167_v20 = vpop.f32.mrf.mxu0  ;;  %v8219_v36 = vadd.f32 %v8218_v9, %v8165_v41 }
 0x8b7   :  { %v8220_v37 = vpop.f32.mrf.mxu1 }
 0x8b8   :  { %v8169_v59 = vpop.f32.mrf.mxu0  ;;  %v8221_v61 = vadd.f32 %v8220_v37, %v8167_v20  ;;  %v14623_v20 = vld [vmem:[#allocation22] sm:$0xff]   ;;  %v16782_v37 = vmov 0  }
 0x8b9   :  { %v8222_v19 = vpop.f32.mrf.mxu1 }
 0x8ba   :  { %v8171_v47 = vpop.f32.mrf.mxu0  ;;  %v8223_v54 = vadd.f32 %v8222_v19, %v8169_v59  ;;  %v16783_v59 = vpack.c.bf16 %v16044_v2, %v16038_v52  ;;  %v16784_v19 = vpack.c.bf16 %v16040_v13, %v16036_v45  ;;  %v16790_v2 = vld [vmem:[#allocation57_spill] sm:$0xff]  ;;  %v16793_v13 = vld [vmem:[#allocation56_spill] sm:$0xff] }
 0x8bb   :  { %v8224_v56 = vpop.f32.mrf.mxu1 }
 0x8bc   :  { %v8175_v53 = vpop.f32.mrf.mxu0  ;;  %v8225_v12 = vadd.f32 %v8224_v56, %v8171_v47 }
 0x8bd   :  { %v8228_v24 = vpop.f32.mrf.mxu1 }
 0x8be   :  { %v8177_v34 = vpop.f32.mrf.mxu0  ;;  %v8229_v0 = vadd.f32 %v8228_v24, %v8175_v53  ;;  %v12822_v23 = vpack.c.bf16 %v8225_v12, %v8221_v61  ;;  %v7192_v53 = vadd.f32 %v16018_v32, %v16016_v39  ;;  %v7186_v61 = vadd.f32 %v16010_v60, %v16008_v55 }
 0x8bf   :  { %v8230_v49 = vpop.f32.mrf.mxu1  ;;  %v16785_v24 = vpack.c.bf16 %v16032_v29, %v16026_v58  ;;  %v8883_v29 = vld [vmem:[%s16741_s11 + $0x68] sm:$0xff] }
 0x8c0   :  { %v8179_v8 = vpop.f32.mrf.mxu0  ;;  %v8231_v44 = vadd.f32 %v8230_v49, %v8177_v34  ;;  %v12821_v34 = vpack.c.bf16 %v8223_v54, %v8219_v36  ;;  %v16778_v54 = vpack.c.bf16 %v15956_v18, %v15948_v3  ;;  %v14624_v3 = vld [vmem:[#allocation22 + $0x8] sm:$0xff]  }
 0x8c1   :  { %v8232_v28 = vpop.f32.mrf.mxu1 }
 0x8c2   :  { %v8233_v62 = vadd.f32 %v8232_v28, %v8179_v8  ;;  %v8181_v50 = vpop.f32.mrf.mxu0  ;;  %v7196_v8 = vadd.f32 %v16022_v30, %v16020_v5 }
 0x8c3   :  { %v8234_v48 = vpop.f32.mrf.mxu1 }
 0x8c4   :  { %v8235_v6 = vadd.f32 %v8234_v48, %v8181_v50  ;;  %v12825_v1 = vpack.c.bf16 %v8233_v62, %v8229_v0  ;;  %v7188_v0 = vadd.f32 %v16014_v11, %v16012_v27  ;;  %v12818_v50 = vpack.c.bf16 %v7198_v16, %v7194_v40 }
 0x8c5   :  { %v7184_v48 = vadd.f32 %v16006_v25, %v16004_v31  ;;  %v16779_v16 = vpack.c.bf16 %v15952_v33, %v15946_v17  ;;  %v16780_v40 = vpack.c.bf16 %v15940_v22, %v15932_v57  ;;  %v14625_v17 = vld [vmem:[#allocation22 + $0x10] sm:$0xff]   ;;  %v14626_v57 = vld [vmem:[#allocation22 + $0x18] sm:$0xff]   ;;  %v16787_v62 = vpack.c.bf16 %v15988_v42, %v15980_v63  ;;  %v8901_v63 = vld [vmem:[%s16741_s11 + $0xf8] sm:$0xff] }
 0x8c6   :  { %v12826_v14 = vpack.c.bf16 %v8235_v6, %v8231_v44  ;;  %v16786_v44 = vpack.c.bf16 %v16028_v35, %v16024_v21  ;;  %v8900_v42 = vld [vmem:[%s16741_s11 + $0xf0] sm:$0xff]  ;;  %v8899_v35 = vld [vmem:[%s16741_s11 + $0xe8] sm:$0xff] }
 0x8c7   :  { %v12814_v12 = vpack.c.bf16 %v7188_v0, %v7184_v48  ;;  %v8884_v21 = vld [vmem:[%s16741_s11 + $0x70] sm:$0xff]  ;;  %v8898_v0 = vld [vmem:[%s16741_s11 + $0xe0] sm:$0xff]  ;;  %v8897_v48 = vld [vmem:[%s16741_s11 + $0xd8] sm:$0xff] }
 0x8c8   :  { %8588 = vmatprep.subr.bf16.mxu0 %v12826_v14  ;;  %v7182_v14 = vadd.f32 %v16002_v10, %v16000_v26 }
 0x8c9   :  { %8589 = vmatpush1.bf16.msra.mxu0 %v12825_v1  ;;  %v12817_v1 = vpack.c.bf16 %v7196_v8, %v7192_v53  ;;  %v16788_v53 = vld [vmem:[#allocation58_spill] sm:$0xff]  ;;  %v16791_v8 = vld [vmem:[#allocation55_spill] sm:$0xff] }
 0x8ca   :  { %8590 = vmatprep.subr.bf16.mxu0 %v12822_v23  ;;  %v12813_v6 = vpack.c.bf16 %v7186_v61, %v7182_v14  ;;  %v16781_v23 = vpack.c.bf16 %v15936_v15, %v15930_v7  ;;  %v16789_v52 = vpack.c.bf16 %v15984_v43, %v16788_v53  ;;  %v16792_v45 = vpack.c.bf16 %v16790_v2, %v16791_v8  ;;  %v8885_v43 = vld [vmem:[%s16741_s11 + $0x78] sm:$0xff]  ;;  %v8895_v14 = vld [vmem:[%s16741_s11 + $0xc8] sm:$0xff]  ;;  %v8920_v2 = vld [vmem:[%s16741_s11 + $0x190] sm:$0xff] }
 0x8cb   :  { %v8881_v61 = vld [vmem:[%s16741_s11 + $0x58] sm:$0xff]  ;;  %v8904_v8 = vld [vmem:[%s16741_s11 + $0x110] sm:$0xff] }
 0x8cc   :  { %v8921_v53 = vld [vmem:[%s16741_s11 + $0x198] sm:$0xff] }
 0x8cd   :  { %8591 = vmatpush1.bf16.msra.mxu0 %v12821_v34  ;;  %v16794_v34 = vld [vmem:[#allocation54_spill] sm:$0xff] }
 0x8ce   :  { %8592 = vmatprep.subr.bf16.mxu0 %v12818_v50  ;;  %v16795_v58 = vpack.c.bf16 %v16793_v13, %v16794_v34  ;;  %v8882_v50 = vld [vmem:[%s16741_s11 + $0x60] sm:$0xff]  ;;  %v8903_v13 = vld [vmem:[%s16741_s11 + $0x108] sm:$0xff] }
 0x8cf   :  { %v8918_v34 = vld [vmem:[%s16741_s11 + $0x180] sm:$0xff] }
 0x8d1   :  { %8593 = vmatpush1.bf16.msra.mxu0 %v12817_v1  ;;  %v8896_v1 = vld [vmem:[%s16741_s11 + $0xd0] sm:$0xff] }
 0x8d2   :  { %8594 = vmatprep.subr.bf16.mxu0 %v12814_v12  ;;  %v8880_v12 = vld [vmem:[%s16741_s11 + $0x50] sm:$0xff] }
 0x8d5   :  { %8595 = vmatpush1.bf16.msra.mxu0 %v12813_v6  ;;  %v8879_v6 = vld [vmem:[%s16741_s11 + $0x48] sm:$0xff] }
 0x8d6   :  { %8596 = vmatprep.subr.bf16.mxu0 %v16778_v54  ;;  %v8894_v54 = vld [vmem:[%s16741_s11 + $0xc0] sm:$0xff] }
 0x8d9   :  { %8597 = vmatpush1.bf16.msra.mxu0 %v16779_v16  ;;  %v8878_v16 = vld [vmem:[%s16741_s11 + $0x40] sm:$0xff] }
 0x8da   :  { %8598 = vmatprep.subr.bf16.mxu0 %v16780_v40  ;;  %v8893_v40 = vld [vmem:[%s16741_s11 + $0xb8] sm:$0xff] }
 0x8dd   :  { %8599 = vmatpush1.bf16.msra.mxu0 %v16781_v23  ;;  %v8892_v23 = vld [vmem:[%s16741_s11 + $0xb0] sm:$0xff] }
 0x8de   :  { %12899 = vmatprep.subr.mxu0 %v8901_v63 }
 0x8e0   :  { %12418 = vmatmul.mubr.msk.bf16.vlgmr.msra.gmra.mxu0 %vm8571_vm1, %v14623_v20 }
 0x8e1   :  { %8626 = vmatprep.mubr.bf16.mxu0 %v16782_v37  ;;  %12900 = vmatpush3.msra.mxu0 %v8885_v43 }
 0x8e2   :  { %12901 = vmatprep.subr.mxu0 %v8900_v42 }
 0x8e3   :  { %12902 = vmatpush3.msra.mxu0 %v8884_v21 }
 0x8e4   :  { %12903 = vmatprep.subr.mxu0 %v8899_v35 }
 0x8e5   :  { %12904 = vmatpush3.msra.mxu0 %v8883_v29 }
 0x8e6   :  { %12905 = vmatprep.subr.mxu0 %v8898_v0 }
 0x8e7   :  { %12906 = vmatpush3.msra.mxu0 %v8882_v50 }
 0x8e8   :  { %12419 = vmatmul.mubr.msk.bf16.gmra.mxu0 %vm8571_vm1, %v14624_v3  ;;  %12907 = vmatprep.subr.mxu0 %v8897_v48 }
 0x8e9   :  { %8636 = vmatprep.mubr.bf16.mxu0 %v16782_v37  ;;  %12908 = vmatpush3.msra.mxu0 %v8881_v61 }
 0x8ea   :  { %12909 = vmatprep.subr.mxu0 %v8896_v1 }
 0x8eb   :  { %12910 = vmatpush3.msra.mxu0 %v8880_v12 }
 0x8ec   :  { %12911 = vmatprep.subr.mxu0 %v8895_v14 }
 0x8ed   :  { %12912 = vmatpush3.msra.mxu0 %v8879_v6 }
 0x8ee   :  { %12913 = vmatprep.subr.mxu0 %v8894_v54 }
 0x8ef   :  { %12914 = vmatpush3.msra.mxu0 %v8878_v16 }
 0x8f0   :  { %12420 = vmatmul.mubr.msk.bf16.gmra.mxu0 %vm8571_vm1, %v14625_v17  ;;  %12915 = vmatprep.subr.mxu0 %v8893_v40 }
 0x8f1   :  { %8646 = vmatprep.mubr.bf16.mxu0 %v16782_v37 }
 0x8f4   :  { %v8271_v22 = vpop.f32.mrf.mxu0 }
 0x8f5   :  { %v8324_v33 = vpop.f32.mrf.mxu1 }
 0x8f6   :  { %v8273_v7 = vpop.f32.mrf.mxu0  ;;  %v8325_v41 = vadd.f32 %v8324_v33, %v8271_v22  ;;  %v8874_v22 = vld [vmem:[%s16741_s11 + $0x20] sm:$0xff]  ;;  %v8889_v33 = vld [vmem:[%s16741_s11 + $0x98] sm:$0xff] }
 0x8f7   :  { %v8326_v15 = vpop.f32.mrf.mxu1 }
 0x8f8   :  { %12421 = vmatmul.mubr.msk.bf16.gmra.mxu0 %vm8571_vm1, %v14626_v57  ;;  %v8275_v18 = vpop.f32.mrf.mxu0  ;;  %v8327_v30 = vadd.f32 %v8326_v15, %v8273_v7  ;;  %v8873_v7 = vld [vmem:[%s16741_s11 + $0x18] sm:$0xff]  ;;  %v8888_v15 = vld [vmem:[%s16741_s11 + $0x90] sm:$0xff] }
 0x8f9   :  { %v8328_v36 = vpop.f32.mrf.mxu1 }
 0x8fa   :  { %v8277_v47 = vpop.f32.mrf.mxu0  ;;  %v8329_v51 = vadd.f32 %v8328_v36, %v8275_v18  ;;  %v8872_v18 = vld [vmem:[%s16741_s11 + $0x10] sm:$0xff]  ;;  %v8887_v36 = vld [vmem:[%s16741_s11 + $0x88] sm:$0xff] }
 0x8fb   :  { %v8330_v56 = vpop.f32.mrf.mxu1 }
 0x8fc   :  { %v8281_v26 = vpop.f32.mrf.mxu0  ;;  %v8331_v32 = vadd.f32 %v8330_v56, %v8277_v47  ;;  %v12823_v9 = vpack.c.bf16 %v8329_v51, %v8325_v41  ;;  %v8933_v47 = vld [vmem:[%s16741_s11 + $0x1f8] sm:$0xff]  ;;  %v8871_v56 = vld [vmem:[%s16741_s11 + $0x8] sm:$0xff]  ;;  %v8926_v51 = vld [vmem:[%s16741_s11 + $0x1c0] sm:$0xff] }
 0x8fd   :  { %v8334_v10 = vpop.f32.mrf.mxu1  ;;  %v8909_v41 = vld [vmem:[%s16741_s11 + $0x138] sm:$0xff] }
 0x8fe   :  { %v8283_v31 = vpop.f32.mrf.mxu0  ;;  %v8335_v5 = vadd.f32 %v8334_v10, %v8281_v26  ;;  %v12824_v28 = vpack.c.bf16 %v8331_v32, %v8327_v30  ;;  %v8917_v26 = vld [vmem:[%s16741_s11 + $0x178] sm:$0xff]  ;;  %v8886_v10 = vld [vmem:[%s16741_s11 + $0x80] sm:$0xff]  ;;  %v8927_v30 = vld [vmem:[%s16741_s11 + $0x1c8] sm:$0xff] }
 0x8ff   :  { %v8336_v25 = vpop.f32.mrf.mxu1  ;;  %v8929_v32 = vld [vmem:[%s16741_s11 + $0x1d8] sm:$0xff] }
 0x900   :  { %v8285_v55 = vpop.f32.mrf.mxu0  ;;  %v8337_v38 = vadd.f32 %v8336_v25, %v8283_v31  ;;  %v8932_v31 = vld [vmem:[%s16741_s11 + $0x1f0] sm:$0xff]  ;;  %v8870_v25 = vld [vmem:[%s16741_s11] sm:$0xff] }
 0x901   :  { %v8338_v60 = vpop.f32.mrf.mxu1 }
 0x902   :  { %v8339_v27 = vadd.f32 %v8338_v60, %v8285_v55  ;;  %v8287_v11 = vpop.f32.mrf.mxu0  ;;  %v8916_v55 = vld [vmem:[%s16741_s11 + $0x170] sm:$0xff]  ;;  %v8931_v60 = vld [vmem:[%s16741_s11 + $0x1e8] sm:$0xff] }
 0x903   :  { %v8340_v39 = vpop.f32.mrf.mxu1 }
 0x904   :  { %v8341_v46 = vadd.f32 %v8340_v39, %v8287_v11  ;;  %v12827_v49 = vpack.c.bf16 %v8339_v27, %v8335_v5  ;;  %v8915_v27 = vld [vmem:[%s16741_s11 + $0x168] sm:$0xff]  ;;  %v8930_v11 = vld [vmem:[%s16741_s11 + $0x1e0] sm:$0xff]  ;;  %v8912_v5 = vld [vmem:[%s16741_s11 + $0x150] sm:$0xff] }
 0x905   :  { %v8914_v39 = vld [vmem:[%s16741_s11 + $0x160] sm:$0xff] }
 0x906   :  { %v12828_v4 = vpack.c.bf16 %v8341_v46, %v8337_v38  ;;  %v8913_v38 = vld [vmem:[%s16741_s11 + $0x158] sm:$0xff]  ;;  %v8928_v46 = vld [vmem:[%s16741_s11 + $0x1d0] sm:$0xff] }
 0x908   :  { %8661 = vmatprep.subr.bf16.mxu1 %v12828_v4  ;;  %v8911_v4 = vld [vmem:[%s16741_s11 + $0x148] sm:$0xff] }
 0x909   :  { %8662 = vmatpush1.bf16.msra.mxu1 %v12827_v49  ;;  %v8910_v49 = vld [vmem:[%s16741_s11 + $0x140] sm:$0xff] }
 0x90a   :  { %8663 = vmatprep.subr.bf16.mxu1 %v12824_v28  ;;  %v8925_v28 = vld [vmem:[%s16741_s11 + $0x1b8] sm:$0xff] }
 0x90d   :  { %8664 = vmatpush1.bf16.msra.mxu1 %v12823_v9  ;;  %v8924_v9 = vld [vmem:[%s16741_s11 + $0x1b0] sm:$0xff] }
 0x90e   :  { %8665 = vmatprep.subr.bf16.mxu1 %v16783_v59  ;;  %v8908_v59 = vld [vmem:[%s16741_s11 + $0x130] sm:$0xff] }
 0x911   :  { %8666 = vmatpush1.bf16.msra.mxu1 %v16784_v19  ;;  %v8923_v19 = vld [vmem:[%s16741_s11 + $0x1a8] sm:$0xff] }
 0x912   :  { %8667 = vmatprep.subr.bf16.mxu1 %v16785_v24  ;;  %v8907_v24 = vld [vmem:[%s16741_s11 + $0x128] sm:$0xff] }
 0x915   :  { %8668 = vmatpush1.bf16.msra.mxu1 %v16786_v44  ;;  %v8922_v44 = vld [vmem:[%s16741_s11 + $0x1a0] sm:$0xff] }
 0x916   :  { %8669 = vmatprep.subr.bf16.mxu1 %v16787_v62  ;;  %v8906_v62 = vld [vmem:[%s16741_s11 + $0x120] sm:$0xff] }
 0x919   :  { %8670 = vmatpush1.bf16.msra.mxu1 %v16789_v52  ;;  %v8905_v52 = vld [vmem:[%s16741_s11 + $0x118] sm:$0xff] }
 0x91a   :  { %8671 = vmatprep.subr.bf16.mxu1 %v16792_v45  ;;  %v8919_v45 = vld [vmem:[%s16741_s11 + $0x188] sm:$0xff] }
 0x91d   :  { %8672 = vmatpush1.bf16.msra.mxu1 %v16795_v58  ;;  %v8902_v58 = vld [vmem:[%s16741_s11 + $0x100] sm:$0xff] }
 0x91e   :  { %12934 = vmatprep.subr.mxu1 %v8933_v47 }
 0x920   :  { %12422 = vmatmul.mubr.msk.bf16.vlgmr.msra.gmra.mxu1 %vm8571_vm1, %v14623_v20  ;;  %v8877_v20 = vld [vmem:[%s16741_s11 + $0x38] sm:$0xff] }
 0x921   :  { %8699 = vmatprep.mubr.bf16.mxu1 %v16782_v37  ;;  %12916 = vmatpush3.msra.mxu0 %v8877_v20 }
 0x922   :  { %12917 = vmatprep.subr.mxu0 %v8892_v23  ;;  %12935 = vmatpush3.msra.mxu1 %v8917_v26 }
 0x923   :  { %12936 = vmatprep.subr.mxu1 %v8932_v31 }
 0x924   :  { %12937 = vmatpush3.msra.mxu1 %v8916_v55 }
 0x925   :  { %12938 = vmatprep.subr.mxu1 %v8931_v60 }
 0x926   :  { %12939 = vmatpush3.msra.mxu1 %v8915_v27 }
 0x927   :  { %12940 = vmatprep.subr.mxu1 %v8930_v11 }
 0x928   :  { %12423 = vmatmul.mubr.msk.bf16.gmra.mxu1 %vm8571_vm1, %v14624_v3  ;;  %v8891_v3 = vld [vmem:[%s16741_s11 + $0xa8] sm:$0xff] }
 0x929   :  { %8709 = vmatprep.mubr.bf16.mxu1 %v16782_v37  ;;  %12941 = vmatpush3.msra.mxu1 %v8914_v39 }
 0x92a   :  { %12942 = vmatprep.subr.mxu1 %v8929_v32 }
 0x92b   :  { %12943 = vmatpush3.msra.mxu1 %v8913_v38 }
 0x92c   :  { %12944 = vmatprep.subr.mxu1 %v8928_v46 }
 0x92d   :  { %12945 = vmatpush3.msra.mxu1 %v8912_v5 }
 0x92e   :  { %12946 = vmatprep.subr.mxu1 %v8927_v30 }
 0x92f   :  { %12947 = vmatpush3.msra.mxu1 %v8911_v4 }
 0x930   :  { %12424 = vmatmul.mubr.msk.bf16.gmra.mxu1 %vm8571_vm1, %v14625_v17  ;;  %v8875_v17 = vld [vmem:[%s16741_s11 + $0x28] sm:$0xff]  ;;  %12948 = vmatprep.subr.mxu1 %v8926_v51 }
 0x931   :  { %8719 = vmatprep.mubr.bf16.mxu1 %v16782_v37  ;;  %v8876_v37 = vld [vmem:[%s16741_s11 + $0x30] sm:$0xff]  ;;  %12949 = vmatpush3.msra.mxu1 %v8910_v49 }
 0x932   :  { %12918 = vmatpush3.msra.mxu0 %v8876_v37  ;;  %12950 = vmatprep.subr.mxu1 %v8925_v28 }
 0x933   :  { %12919 = vmatprep.subr.mxu0 %v8891_v3  ;;  %12951 = vmatpush3.msra.mxu1 %v8909_v41 }
 0x934   :  { %12920 = vmatpush3.msra.mxu0 %v8875_v17  ;;  %12952 = vmatprep.subr.mxu1 %v8924_v9 }
 0x935   :  { %12953 = vmatpush3.msra.mxu1 %v8908_v59 }
 0x936   :  { %12954 = vmatprep.subr.mxu1 %v8923_v19 }
 0x937   :  { %12955 = vmatpush3.msra.mxu1 %v8907_v24 }
 0x938   :  { %12425 = vmatmul.mubr.msk.bf16.gmra.mxu1 %vm8571_vm1, %v14626_v57  ;;  %v8890_v57 = vld [vmem:[%s16741_s11 + $0xa0] sm:$0xff]  ;;  %12956 = vmatprep.subr.mxu1 %v8922_v44 }
 0x939   :  { %12921 = vmatprep.subr.mxu0 %v8890_v57  ;;  %12957 = vmatpush3.msra.mxu1 %v8906_v62 }
 0x93a   :  { %12922 = vmatpush3.msra.mxu0 %v8874_v22  ;;  %12958 = vmatprep.subr.mxu1 %v8921_v53 }
 0x93b   :  { %12923 = vmatprep.subr.mxu0 %v8889_v33  ;;  %12959 = vmatpush3.msra.mxu1 %v8905_v52 }
 0x93c   :  { %12924 = vmatpush3.msra.mxu0 %v8873_v7  ;;  %12960 = vmatprep.subr.mxu1 %v8920_v2 }
 0x93d   :  { %12925 = vmatprep.subr.mxu0 %v8888_v15  ;;  %12961 = vmatpush3.msra.mxu1 %v8904_v8 }
 0x93e   :  { %12926 = vmatpush3.msra.mxu0 %v8872_v18  ;;  %12962 = vmatprep.subr.mxu1 %v8919_v45 }
 0x93f   :  { %12927 = vmatprep.subr.mxu0 %v8887_v36  ;;  %12963 = vmatpush3.msra.mxu1 %v8903_v13 }
 0x940   :  { %12928 = vmatpush3.msra.mxu0 %v8871_v56  ;;  %12964 = vmatprep.subr.mxu1 %v8918_v34 }
 0x941   :  { %12929 = vmatprep.subr.mxu0 %v8886_v10  ;;  %12965 = vmatpush3.msra.mxu1 %v8902_v58 }
 0x942   :  { %12930 = vmatpush3.msra.mxu0 %v8870_v25 }
 0x9a0   :  { %v16302_v63 = vpop.f32.mrf.mxu0 }
 0x9a1   :  { %v8782_v42 = vmul.f32 %v16302_v63, %v16302_v63 }
 0x9a2   :  { %v16304_v43 = vpop.f32.mrf.mxu0 }
 0x9a3   :  { %v8783_v35 = vmul.f32 %v16304_v43, %v16304_v43 }
 0x9a4   :  { %v16308_v21 = vpop.f32.mrf.mxu0 }
 0x9a5   :  { %v8730_v29 = vadd.f32 %v16308_v21, %v16302_v63  ;;  %v8786_v0 = vmul.f32 %v16308_v21, %v16308_v21 }
 0x9a6   :  { %v16316_v50 = vpop.f32.mrf.mxu0 }
 0x9a7   :  { %v8814_v48 = vadd.f32 %v8786_v0, %v8782_v42  ;;  %v8743_v61 = vadd.f32 %v16316_v50, %v16304_v43  ;;  %v8787_v1 = vmul.f32 %v16316_v50, %v16316_v50 }
 0x9a8   :  { %v16322_v12 = vpop.f32.mrf.mxu0 }
 0x9a9   :  { %v8827_v14 = vadd.f32 %v8787_v1, %v8783_v35  ;;  %v8731_v6 = vadd.f32 %v8730_v29, %v16322_v12  ;;  %v8790_v54 = vmul.f32 %v16322_v12, %v16322_v12 }
 0x9aa   :  { %v16327_v16 = vpop.f32.mrf.mxu0 }
 0x9ab   :  { %v8815_v40 = vadd.f32 %v8814_v48, %v8790_v54  ;;  %v8744_v20 = vadd.f32 %v8743_v61, %v16327_v16  ;;  %v8791_v23 = vmul.f32 %v16327_v16, %v16327_v16 }
 0x9ac   :  { %v16332_v37 = vpop.f32.mrf.mxu0 }
 0x9ad   :  { %v8828_v3 = vadd.f32 %v8827_v14, %v8791_v23  ;;  %v8732_v17 = vadd.f32 %v8731_v6, %v16332_v37  ;;  %v8794_v57 = vmul.f32 %v16332_v37, %v16332_v37 }
 0x9ae   :  { %v16337_v22 = vpop.f32.mrf.mxu0 }
 0x9af   :  { %v8816_v33 = vadd.f32 %v8815_v40, %v8794_v57  ;;  %v8745_v7 = vadd.f32 %v8744_v20, %v16337_v22  ;;  %v8795_v15 = vmul.f32 %v16337_v22, %v16337_v22 }
 0x9b0   :  { %v16342_v18 = vpop.f32.mrf.mxu0 }
 0x9b1   :  { %v8829_v36 = vadd.f32 %v8828_v3, %v8795_v15  ;;  %v8733_v47 = vadd.f32 %v8732_v17, %v16342_v18  ;;  %v8798_v56 = vmul.f32 %v16342_v18, %v16342_v18 }
 0x9b2   :  { %v16347_v26 = vpop.f32.mrf.mxu0 }
 0x9b3   :  { %v8817_v10 = vadd.f32 %v8816_v33, %v8798_v56  ;;  %v8746_v31 = vadd.f32 %v8745_v7, %v16347_v26  ;;  %v8799_v25 = vmul.f32 %v16347_v26, %v16347_v26 }
 0x9b4   :  { %v16352_v55 = vpop.f32.mrf.mxu0 }
 0x9b5   :  { %v8830_v60 = vadd.f32 %v8829_v36, %v8799_v25  ;;  %v8734_v27 = vadd.f32 %v8733_v47, %v16352_v55  ;;  %v8802_v11 = vmul.f32 %v16352_v55, %v16352_v55 }
 0x9b6   :  { %v16357_v39 = vpop.f32.mrf.mxu0 }
 0x9b7   :  { %v8818_v32 = vadd.f32 %v8817_v10, %v8802_v11  ;;  %v8747_v38 = vadd.f32 %v8746_v31, %v16357_v39  ;;  %v8803_v46 = vmul.f32 %v16357_v39, %v16357_v39  ;;  %v16796_v10 = vmov 0.0  }
 0x9b8   :  { %v16362_v5 = vpop.f32.mrf.mxu0 }
 0x9b9   :  { %v8831_v30 = vadd.f32 %v8830_v60, %v8803_v46  ;;  %v8735_v4 = vadd.f32 %v8734_v27, %v16362_v5  ;;  %v8806_v51 = vmul.f32 %v16362_v5, %v16362_v5 }
 0x9ba   :  { %v16367_v49 = vpop.f32.mrf.mxu0 }
 0x9bb   :  { %v8819_v28 = vadd.f32 %v8818_v32, %v8806_v51  ;;  %v8748_v41 = vadd.f32 %v8747_v38, %v16367_v49  ;;  %v8807_v9 = vmul.f32 %v16367_v49, %v16367_v49 }
 0x9bc   :  { %v16372_v59 = vpop.f32.mrf.mxu0 }
 0x9bd   :  { %v8832_v19 = vadd.f32 %v8831_v30, %v8807_v9  ;;  %v8736_v24 = vadd.f32 %v8735_v4, %v16372_v59  ;;  %v8810_v44 = vmul.f32 %v16372_v59, %v16372_v59 }
 0x9be   :  { %v16377_v62 = vpop.f32.mrf.mxu0 }
 0x9bf   :  { %v8737_v53 = vrot.slane %v8736_v24, 4  ;;  %v8820_v52 = vadd.f32 %v8819_v28, %v8810_v44  ;;  %v8749_v2 = vadd.f32 %v8748_v41, %v16377_v62  ;;  %v8811_v8 = vmul.f32 %v16377_v62, %v16377_v62 }
 0x9c1   :  { %v8738_v45 = vadd.f32 %v8737_v53, %v8736_v24  ;;  %v8821_v13 = vrot.slane %v8820_v52, 4  ;;  %v8750_v34 = vrot.slane %v8749_v2, 4  ;;  %v8833_v58 = vadd.f32 %v8832_v19, %v8811_v8 }
 0x9c3   :  { %v8739_v42 = vrot.slane %v8738_v45, 2  ;;  %v8822_v35 = vadd.f32 %v8821_v13, %v8820_v52  ;;  %v8751_v29 = vadd.f32 %v8750_v34, %v8749_v2  ;;  %v8834_v0 = vrot.slane %v8833_v58, 4 }
 0x9c5   :  { %v8740_v48 = vadd.f32 %v8739_v42, %v8738_v45  ;;  %v8823_v61 = vrot.slane %v8822_v35, 2  ;;  %v8752_v1 = vrot.slane %v8751_v29, 2  ;;  %v8835_v14 = vadd.f32 %v8834_v0, %v8833_v58 }
 0x9c7   :  { %v8741_v6 = vrot.slane %v8740_v48, 1  ;;  %v8824_v54 = vadd.f32 %v8823_v61, %v8822_v35  ;;  %v8753_v40 = vadd.f32 %v8752_v1, %v8751_v29  ;;  %v8836_v20 = vrot.slane %v8835_v14, 2 }
 0x9c9   :  { %v8754_v23 = vrot.slane %v8753_v40, 1  ;;  %v8837_v3 = vadd.f32 %v8836_v20, %v8835_v14  ;;  %v8825_v17 = vrot.slane %v8824_v54, 1  ;;  %v8742_v57 = vadd.f32 %v8741_v6, %v8740_v48 }
 0x9cb   :  { %v8755_v33 = vadd.f32 %v8754_v23, %v8753_v40  ;;  %v8838_v7 = vrot.slane %v8837_v3, 1  ;;  %v8826_v15 = vadd.f32 %v8825_v17, %v8824_v54 }
 0x9cd   :  { %v8839_v36 = vadd.f32 %v8838_v7, %v8837_v3  ;;  %v8866_v47 = vsel %vm4760_vm15, %v8742_v57, %v8826_v15 }
 0x9cf   :  { %v8867_v56 = vsel %vm4760_vm15, %v8755_v33, %v8839_v36 }
 0x9d0   :  { %8998 = vmatprep.mubr.f32.mxu0 %v8867_v56 }
 0x9d1   :  { %8999 = vmatmul.mubr.f32.vlgmr.msra.gmra.mxu0 %v8866_v47 }
 0x9d2   :  { %9187 = vmatprep.mubr.f32.mxu0 %v16796_v10 }
 0x9e0   :  { %v16385_v31 = vpop.f32.mrf.mxu1 }
 0x9e1   :  { %v8784_v28 = vmul.f32 %v16385_v31, %v16385_v31 }
 0x9e2   :  { %v16387_v25 = vpop.f32.mrf.mxu1 }
 0x9e3   :  { %v8785_v19 = vmul.f32 %v16387_v25, %v16387_v25 }
 0x9e4   :  { %v16389_v60 = vpop.f32.mrf.mxu1 }
 0x9e5   :  { %v8788_v30 = vmul.f32 %v16389_v60, %v16389_v60  ;;  %v8756_v41 = vadd.f32 %v16389_v60, %v16385_v31 }
 0x9e6   :  { %v16391_v27 = vpop.f32.mrf.mxu1 }
 0x9e7   :  { %v8789_v4 = vmul.f32 %v16391_v27, %v16391_v27  ;;  %v8840_v53 = vadd.f32 %v8788_v30, %v8784_v28  ;;  %v8769_v52 = vadd.f32 %v16391_v27, %v16387_v25 }
 0x9e8   :  { %v16393_v11 = vpop.f32.mrf.mxu1 }
 0x9e9   :  { %v8792_v9 = vmul.f32 %v16393_v11, %v16393_v11  ;;  %v8757_v2 = vadd.f32 %v8756_v41, %v16393_v11  ;;  %v8853_v45 = vadd.f32 %v8789_v4, %v8785_v19 }
 0x9ea   :  { %v16395_v32 = vpop.f32.mrf.mxu1 }
 0x9eb   :  { %v8793_v24 = vmul.f32 %v16395_v32, %v16395_v32  ;;  %v8841_v58 = vadd.f32 %v8840_v53, %v8792_v9  ;;  %v8770_v42 = vadd.f32 %v8769_v52, %v16395_v32 }
 0x9ec   :  { %v16397_v38 = vpop.f32.mrf.mxu1 }
 0x9ed   :  { %v8796_v8 = vmul.f32 %v16397_v38, %v16397_v38  ;;  %v8758_v35 = vadd.f32 %v8757_v2, %v16397_v38  ;;  %v8854_v0 = vadd.f32 %v8853_v45, %v8793_v24 }
 0x9ee   :  { %v16399_v46 = vpop.f32.mrf.mxu1 }
 0x9ef   :  { %v8797_v13 = vmul.f32 %v16399_v46, %v16399_v46  ;;  %v8842_v1 = vadd.f32 %v8841_v58, %v8796_v8  ;;  %v8771_v14 = vadd.f32 %v8770_v42, %v16399_v46 }
 0x9f0   :  { %v16405_v51 = vpop.f32.mrf.mxu1 }
 0x9f1   :  { %v8800_v29 = vmul.f32 %v16405_v51, %v16405_v51  ;;  %v8759_v6 = vadd.f32 %v8758_v35, %v16405_v51  ;;  %v8855_v40 = vadd.f32 %v8854_v0, %v8797_v13 }
 0x9f2   :  { %v16417_v44 = vpop.f32.mrf.mxu1 }
 0x9f3   :  { %v8801_v48 = vmul.f32 %v16417_v44, %v16417_v44  ;;  %v8843_v3 = vadd.f32 %v8842_v1, %v8800_v29  ;;  %v8772_v17 = vadd.f32 %v8771_v14, %v16417_v44 }
 0x9f4   :  { %v16426_v34 = vpop.f32.mrf.mxu1 }
 0x9f5   :  { %v8804_v54 = vmul.f32 %v16426_v34, %v16426_v34  ;;  %v8760_v57 = vadd.f32 %v8759_v6, %v16426_v34  ;;  %v8856_v7 = vadd.f32 %v8855_v40, %v8801_v48 }
 0x9f6   :  { %v16434_v61 = vpop.f32.mrf.mxu1 }
 0x9f7   :  { %v8805_v20 = vmul.f32 %v16434_v61, %v16434_v61  ;;  %v8844_v36 = vadd.f32 %v8843_v3, %v8804_v54  ;;  %v8773_v47 = vadd.f32 %v8772_v17, %v16434_v61 }
 0x9f8   :  { %v16442_v23 = vpop.f32.mrf.mxu1 }
 0x9f9   :  { %v8808_v33 = vmul.f32 %v16442_v23, %v16442_v23  ;;  %v8761_v56 = vadd.f32 %v8760_v57, %v16442_v23  ;;  %v8857_v4 = vadd.f32 %v8856_v7, %v8805_v20 }
 0x9fa   :  { %v16448_v15 = vpop.f32.mrf.mxu1 }
 0x9fb   :  { %v8809_v30 = vmul.f32 %v16448_v15, %v16448_v15  ;;  %v8845_v41 = vadd.f32 %v8844_v36, %v8808_v33  ;;  %v8774_v9 = vadd.f32 %v8773_v47, %v16448_v15 }
 0x9fc   :  { %v16454_v28 = vpop.f32.mrf.mxu1 }
 0x9fd   :  { %v8762_v19 = vadd.f32 %v8761_v56, %v16454_v28  ;;  %v8812_v24 = vmul.f32 %v16454_v28, %v16454_v28  ;;  %v8858_v53 = vadd.f32 %v8857_v4, %v8809_v30 }
 0x9fe   :  { %v16460_v52 = vpop.f32.mrf.mxu1 }
 0x9ff   :  { %v8763_v2 = vrot.slane %v8762_v19, 4  ;;  %v8846_v8 = vadd.f32 %v8845_v41, %v8812_v24  ;;  %v8775_v45 = vadd.f32 %v8774_v9, %v16460_v52  ;;  %v8813_v13 = vmul.f32 %v16460_v52, %v16460_v52 }
 0xa01   :  { %v8764_v58 = vadd.f32 %v8763_v2, %v8762_v19  ;;  %v8847_v42 = vrot.slane %v8846_v8, 4  ;;  %v8776_v35 = vrot.slane %v8775_v45, 4  ;;  %v8859_v29 = vadd.f32 %v8858_v53, %v8813_v13  ;;  %v9116_v53 = vld [vmem:[#allocation24 + $0x28] sm:$0xff]  ;;  %v9118_v2 = vld [vmem:[#allocation24 + $0x38] sm:$0xff] }
 0xa02   :  { %9151 = vmatprep.subr.mxu0 %v9116_v53  ;;  %9222 = vmatprep.subr.mxu1 %v9118_v2  ;;  %v9112_v13 = vld [vmem:[#allocation24 + $0x8] sm:$0xff] }
 0xa03   :  { %v8765_v0 = vrot.slane %v8764_v58, 2  ;;  %v8848_v48 = vadd.f32 %v8847_v42, %v8846_v8  ;;  %v8777_v1 = vadd.f32 %v8776_v35, %v8775_v45  ;;  %v8860_v14 = vrot.slane %v8859_v29, 4  ;;  %v9115_v8 = vld [vmem:[#allocation24 + $0x20] sm:$0xff]  ;;  %v9117_v45 = vld [vmem:[#allocation24 + $0x30] sm:$0xff] }
 0xa04   :  { %9152 = vmatpush1.msra.mxu0 %v9115_v8  ;;  %v9111_v42 = vld [vmem:[#allocation24] sm:$0xff]  ;;  %v9113_v35 = vld [vmem:[#allocation24 + $0x10] sm:$0xff] }
 0xa05   :  { %v8849_v6 = vrot.slane %v8848_v48, 2  ;;  %v8778_v54 = vrot.slane %v8777_v1, 2  ;;  %v8861_v40 = vadd.f32 %v8860_v14, %v8859_v29  ;;  %v8766_v20 = vadd.f32 %v8765_v0, %v8764_v58  ;;  %v9114_v58 = vld [vmem:[#allocation24 + $0x18] sm:$0xff]  ;;  %9153 = vmatprep.subr.mxu0 %v9112_v13 }
 0xa06   :  { %9154 = vmatpush1.msra.mxu0 %v9111_v42  ;;  %v16799_v13 = vld [vmem:[#allocation52_spill] sm:$0xff] }
 0xa07   :  { %v8850_v3 = vadd.f32 %v8849_v6, %v8848_v48  ;;  %v8779_v17 = vadd.f32 %v8778_v54, %v8777_v1  ;;  %v8862_v57 = vrot.slane %v8861_v40, 2  ;;  %v8767_v47 = vrot.slane %v8766_v20, 1 }
 0xa09   :  { %v8780_v33 = vrot.slane %v8779_v17, 1  ;;  %v8863_v7 = vadd.f32 %v8862_v57, %v8861_v40  ;;  %v8851_v36 = vrot.slane %v8850_v3, 1  ;;  %v8768_v9 = vadd.f32 %v8767_v47, %v8766_v20  ;;  %v9080_v47 = vld [vmem:[#allocation25] sm:$0x1] }
 0xa0b   :  { %v8864_v56 = vrot.slane %v8863_v7, 1  ;;  %v8852_v30 = vadd.f32 %v8851_v36, %v8850_v3  ;;  %v8781_v4 = vadd.f32 %v8780_v33, %v8779_v17  ;;  %v16797_v33 = vld [vmem:[#allocation53_spill] sm:$0xff] }
 0xa0d   :  { %v8865_v41 = vadd.f32 %v8864_v56, %v8863_v7  ;;  %v8868_v24 = vsel %vm4760_vm15, %v8768_v9, %v8852_v30 }
 0xa0f   :  { %v8869_v19 = vsel %vm4760_vm15, %v8781_v4, %v8865_v41  ;;  %v9101_v4 = vld [vmem:[#allocation27] sm:$0x1] }
 0xa10   :  { %9068 = vmatprep.mubr.f32.mxu1 %v8869_v19  ;;  %v16798_v19 = vld [vmem:[#allocation51_spill] sm:$0xff] }
 0xa11   :  { %9069 = vmatmul.mubr.f32.vlgmr.msra.gmra.mxu1 %v8868_v24 }
 0xa12   :  { %9258 = vmatprep.mubr.f32.mxu1 %v16796_v10  ;;  %9223 = vmatpush1.msra.mxu1 %v9117_v45 }
 0xa13   :  { %9224 = vmatprep.subr.mxu1 %v9114_v58 }
 0xa14   :  { %9225 = vmatpush1.msra.mxu1 %v9113_v35 }
 0xa91   :  { %v12931_v29 = vpop.f32.mrf.mxu0 }
 0xa93   :  { %v12932_v0 = vpop.f32.mrf.mxu0 }
 0xa94   :  { %v12933_v1 = vadd.f32 %v12932_v0, %v12931_v29 }
 0xad1   :  { %v12966_v48 = vpop.f32.mrf.mxu1 }
 0xad3   :  { %v12967_v10 = vpop.f32.mrf.mxu1 }
 0xad4   :  { %v12968_v14 = vadd.f32 %v12967_v10, %v12966_v48 }
 0xad6   :  { %v9071_v6 = vadd.f32 %v12968_v14, %v12933_v1 }
 0xad8   :  { %v9074_v54 = vmul.f32 0.0005202914, %v9071_v6 }
 0xada   :  { %v9075_v40 = vmul.f32 %v9074_v54, %v9074_v54 }
 0xadc   :  { %v9077_v20 = vrot.slane %v9075_v40, 7 }
 0xade   :  { %v9079_v3 = vsub.f32 %v9074_v54, %v9077_v20 }
 0xae0   :  { %v9081_v17 = vadd.f32 1e-05, %v9079_v3 }
 0xae2   :  { %14627 = vrsqrt.f32 %v9081_v17 }
 0xaef   :  { %v14628_v57 = vpop.eup %14627 }
 0xaf0   :  { %v9090_v7 = vrot.slane %v14628_v57, %v16797_v33 }
 0xaf2   :  { %v9091_v36 = vcombine.high %v9090_v7, %v9090_v7 }
 0xaf4   :  { %v9098_v56 = vrot.slane %v9091_v36, %v16797_v33 }
 0xaf6   :  { %v9100_v30 = vmul.f32 %v9098_v56, %v9080_v47 }
 0xaf8   :  { %v9102_v41 = vmul.f32 %v9100_v30, %v9074_v54 }
 0xafa   :  { %v9103_v9 = vsub.f32 %v9101_v4, %v9102_v41 }
 0xafc   :  { %v9108_v24 = vrot.slane %v9103_v9, %v16798_v19 }
 0xafe   :  { %v9110_v53 = vsel %vm4760_vm15, %v9100_v30, %v9108_v24 }
 0xaff   :  { %12426 = vmatmul.mubr.msk.f32.vlgmr.msra.gmra.mxu0 %vm9119_vm2, %v9110_v53  ;;  %12427 = vmatmul.mubr.msk.f32.vlgmr.msra.gmra.mxu1 %vm9119_vm2, %v9110_v53 }
 0xbbf   :  { %v9189_v2 = vpop.f32.mrf.mxu0  ;;  %v9260_v8 = vpop.f32.mrf.mxu1 }
 0xbc0   :  { %v9268_v45 = vrot.slane %v9189_v2, %v16798_v19  ;;  %v9316_v58 = vrot.slane %v9189_v2, %v16799_v13  ;;  %v9276_v42 = vrot.slane %v9260_v8, %v16798_v19  ;;  %v9324_v35 = vrot.slane %v9260_v8, %v16799_v13 }
 0xbc2   :  { %v9281_v29 = vmul.f32 %v9268_v45, %v16302_v63  ;;  %v9285_v0 = vmul.f32 %v9268_v45, %v16308_v21  ;;  %v9289_v48 = vmul.f32 %v9268_v45, %v16322_v12  ;;  %v9293_v10 = vmul.f32 %v9268_v45, %v16332_v37 }
 0xbc3   :  { %v9297_v1 = vmul.f32 %v9268_v45, %v16342_v18  ;;  %v9301_v14 = vmul.f32 %v9268_v45, %v16352_v55  ;;  %v9305_v6 = vmul.f32 %v9268_v45, %v16362_v5  ;;  %v9309_v54 = vmul.f32 %v9268_v45, %v16372_v59 }
 0xbc4   :  { %v9329_v40 = vadd.f32 %v9316_v58, %v9281_v29  ;;  %v9333_v20 = vadd.f32 %v9316_v58, %v9285_v0  ;;  %v9337_v3 = vadd.f32 %v9316_v58, %v9289_v48  ;;  %v9341_v17 = vadd.f32 %v9316_v58, %v9293_v10 }
 0xbc5   :  { %v9345_v57 = vadd.f32 %v9316_v58, %v9297_v1  ;;  %v9349_v63 = vadd.f32 %v9316_v58, %v9301_v14  ;;  %v9353_v33 = vadd.f32 %v9316_v58, %v9305_v6  ;;  %v9357_v21 = vadd.f32 %v9316_v58, %v9309_v54 }
 0xbc6   :  { %vm9361_vm15 = vcmp.ge.f32.partialorder %v9329_v40, 0.0  ;;  %vm9365_vm3 = vcmp.ge.f32.partialorder %v9333_v20, 0.0  ;;  %vm9369_vm4 = vcmp.ge.f32.partialorder %v9337_v3, 0.0  ;;  %vm9373_vm5 = vcmp.ge.f32.partialorder %v9341_v17, 0.0 }
 0xbc7   :  { %vm9377_vm6 = vcmp.ge.f32.partialorder %v9345_v57, 0.0  ;;  %vm9381_vm7 = vcmp.ge.f32.partialorder %v9349_v63, 0.0  ;;  %vm9385_vm8 = vcmp.ge.f32.partialorder %v9353_v33, 0.0  ;;  %vm9389_vm9 = vcmp.ge.f32.partialorder %v9357_v21, 0.0 }
 0xbc8   :  { %v9393_v12 = vmul.f32 0.1, %v9329_v40  ;;  %v9397_v37 = vmul.f32 0.1, %v9333_v20  ;;  %v9401_v18 = vmul.f32 0.1, %v9337_v3  ;;  %v9283_v55 = vmul.f32 %v9276_v42, %v16385_v31 }
 0xbc9   :  { %v9405_v5 = vmul.f32 0.1, %v9341_v17  ;;  %v9409_v59 = vmul.f32 0.1, %v9345_v57  ;;  %v9413_v7 = vmul.f32 0.1, %v9349_v63  ;;  %v9287_v36 = vmul.f32 %v9276_v42, %v16389_v60 }
 0xbca   :  { %v9417_v47 = vmul.f32 0.1, %v9353_v33  ;;  %v9421_v56 = vmul.f32 0.1, %v9357_v21  ;;  %v16487_v30 = vsel %vm9361_vm15, %v9329_v40, %v9393_v12  ;;  %v16490_v4 = vsel %vm9365_vm3, %v9333_v20, %v9397_v37 }
 0xbcb   :  { %v16493_v41 = vsel %vm9369_vm4, %v9337_v3, %v9401_v18  ;;  %v16496_v9 = vsel %vm9373_vm5, %v9341_v17, %v9405_v5  ;;  %v16499_v31 = vsel %vm9377_vm6, %v9345_v57, %v9409_v59  ;;  %v16502_v24 = vsel %vm9381_vm7, %v9349_v63, %v9413_v7  ;;  %v9191_v3 = vpop.f32.mrf.mxu0 }
 0xbcc   :  { %v16505_v60 = vsel %vm9385_vm8, %v9353_v33, %v9417_v47  ;;  %v16508_v53 = vsel %vm9389_vm9, %v9357_v21, %v9421_v56  ;;  %v9291_v2 = vmul.f32 %v9276_v42, %v16393_v11  ;;  %v9295_v8 = vmul.f32 %v9276_v42, %v16397_v38 }
 0xbcd   :  { %v9299_v45 = vmul.f32 %v9276_v42, %v16405_v51  ;;  %v9303_v58 = vmul.f32 %v9276_v42, %v16426_v34  ;;  %v9307_v29 = vmul.f32 %v9276_v42, %v16442_v23  ;;  %v9311_v0 = vmul.f32 %v9276_v42, %v16454_v28 }
 0xbce   :  { %v9331_v48 = vadd.f32 %v9324_v35, %v9283_v55  ;;  %v9335_v10 = vadd.f32 %v9324_v35, %v9287_v36  ;;  %v9339_v1 = vadd.f32 %v9324_v35, %v9291_v2  ;;  %v9343_v14 = vadd.f32 %v9324_v35, %v9295_v8 }
 0xbcf   :  { %v9347_v6 = vadd.f32 %v9324_v35, %v9299_v45  ;;  %v9351_v54 = vadd.f32 %v9324_v35, %v9303_v58  ;;  %v9355_v40 = vadd.f32 %v9324_v35, %v9307_v29  ;;  %v9359_v20 = vadd.f32 %v9324_v35, %v9311_v0 }
 0xbd0   :  { %vm9363_vm10 = vcmp.ge.f32.partialorder %v9331_v48, 0.0  ;;  %vm9367_vm11 = vcmp.ge.f32.partialorder %v9335_v10, 0.0  ;;  %vm9371_vm12 = vcmp.ge.f32.partialorder %v9339_v1, 0.0  ;;  %vm9375_vm13 = vcmp.ge.f32.partialorder %v9343_v14, 0.0 }
 0xbd1   :  { %vm9379_vm14 = vcmp.ge.f32.partialorder %v9347_v6, 0.0  ;;  %vm9383_vm0 = vcmp.ge.f32.partialorder %v9351_v54, 0.0  ;;  %vm9387_vm1 = vcmp.ge.f32.partialorder %v9355_v40, 0.0  ;;  %vm9391_vm2 = vcmp.ge.f32.partialorder %v9359_v20, 0.0 }
 0xbd2   :  { %v9395_v11 = vmul.f32 0.1, %v9331_v48  ;;  %v9399_v38 = vmul.f32 0.1, %v9335_v10  ;;  %v9403_v51 = vmul.f32 0.1, %v9339_v1  ;;  %v9272_v34 = vrot.slane %v9191_v3, %v16798_v19 }
 0xbd3   :  { %v9407_v23 = vmul.f32 0.1, %v9343_v14  ;;  %v9411_v28 = vmul.f32 0.1, %v9347_v6  ;;  %v9415_v42 = vmul.f32 0.1, %v9351_v54  ;;  %v9320_v17 = vrot.slane %v9191_v3, %v16799_v13 }
 0xbd4   :  { %v9419_v35 = vmul.f32 0.1, %v9355_v40  ;;  %v9423_v57 = vmul.f32 0.1, %v9359_v20  ;;  %v16519_v63 = vsel %vm9363_vm10, %v9331_v48, %v9395_v11  ;;  %v16522_v33 = vsel %vm9367_vm11, %v9335_v10, %v9399_v38 }
 0xbd5   :  { %v16525_v21 = vsel %vm9371_vm12, %v9339_v1, %v9403_v51  ;;  %v16528_v12 = vsel %vm9375_vm13, %v9343_v14, %v9407_v23  ;;  %v16531_v37 = vsel %vm9379_vm14, %v9347_v6, %v9411_v28  ;;  %v16534_v18 = vsel %vm9383_vm0, %v9351_v54, %v9415_v42 }
 0xbd6   :  { %v16537_v55 = vsel %vm9387_vm1, %v9355_v40, %v9419_v35  ;;  %v16540_v5 = vsel %vm9391_vm2, %v9359_v20, %v9423_v57  ;;  %v9282_v59 = vmul.f32 %v9272_v34, %v16304_v43  ;;  %v9286_v7 = vmul.f32 %v9272_v34, %v16316_v50 }
 0xbd7   :  { %v9290_v36 = vmul.f32 %v9272_v34, %v16327_v16  ;;  %v9294_v47 = vmul.f32 %v9272_v34, %v16337_v22  ;;  %v9298_v56 = vmul.f32 %v9272_v34, %v16347_v26  ;;  %v9302_v2 = vmul.f32 %v9272_v34, %v16357_v39  ;;  %v9262_v16 = vpop.f32.mrf.mxu1 }
 0xbd8   :  { %v9306_v8 = vmul.f32 %v9272_v34, %v16367_v49  ;;  %v9310_v45 = vmul.f32 %v9272_v34, %v16377_v62  ;;  %v9330_v58 = vadd.f32 %v9320_v17, %v9282_v59  ;;  %v9334_v29 = vadd.f32 %v9320_v17, %v9286_v7 }
 0xbd9   :  { %v9338_v0 = vadd.f32 %v9320_v17, %v9290_v36  ;;  %v9342_v48 = vadd.f32 %v9320_v17, %v9294_v47  ;;  %v9346_v10 = vadd.f32 %v9320_v17, %v9298_v56  ;;  %v9350_v43 = vadd.f32 %v9320_v17, %v9302_v2 }
 0xbda   :  { %v9354_v1 = vadd.f32 %v9320_v17, %v9306_v8  ;;  %v9358_v50 = vadd.f32 %v9320_v17, %v9310_v45  ;;  %vm9362_vm15 = vcmp.ge.f32.partialorder %v9330_v58, 0.0  ;;  %vm9366_vm3 = vcmp.ge.f32.partialorder %v9334_v29, 0.0 }
 0xbdb   :  { %vm9370_vm4 = vcmp.ge.f32.partialorder %v9338_v0, 0.0  ;;  %vm9374_vm5 = vcmp.ge.f32.partialorder %v9342_v48, 0.0  ;;  %vm9378_vm6 = vcmp.ge.f32.partialorder %v9346_v10, 0.0  ;;  %vm9382_vm7 = vcmp.ge.f32.partialorder %v9350_v43, 0.0 }
 0xbdc   :  { %vm9386_vm8 = vcmp.ge.f32.partialorder %v9354_v1, 0.0  ;;  %vm9390_vm9 = vcmp.ge.f32.partialorder %v9358_v50, 0.0  ;;  %v9394_v22 = vmul.f32 0.1, %v9330_v58  ;;  %v9398_v26 = vmul.f32 0.1, %v9334_v29 }
 0xbdd   :  { %v9402_v39 = vmul.f32 0.1, %v9338_v0  ;;  %v9406_v49 = vmul.f32 0.1, %v9342_v48  ;;  %v9410_v62 = vmul.f32 0.1, %v9346_v10  ;;  %v9280_v14 = vrot.slane %v9262_v16, %v16798_v19 }
 0xbde   :  { %v9414_v6 = vmul.f32 0.1, %v9350_v43  ;;  %v9418_v54 = vmul.f32 0.1, %v9354_v1  ;;  %v9422_v40 = vmul.f32 0.1, %v9358_v50  ;;  %v9426_v20 = vsel %vm9362_vm15, %v9330_v58, %v9394_v22 }
 0xbdf   :  { %v9430_v3 = vsel %vm9366_vm3, %v9334_v29, %v9398_v26  ;;  %v16554_v11 = vsel %vm9370_vm4, %v9338_v0, %v9402_v39  ;;  %v16557_v38 = vsel %vm9374_vm5, %v9342_v48, %v9406_v49  ;;  %v16560_v51 = vsel %vm9378_vm6, %v9346_v10, %v9410_v62 }
 0xbe0   :  { %v16563_v34 = vsel %vm9382_vm7, %v9350_v43, %v9414_v6  ;;  %v16566_v19 = vsel %vm9386_vm8, %v9354_v1, %v9418_v54  ;;  %v16569_v23 = vsel %vm9390_vm9, %v9358_v50, %v9422_v40  ;;  %v9284_v28 = vmul.f32 %v9280_v14, %v16387_v25 }
 0xbe1   :  { %v9288_v42 = vmul.f32 %v9280_v14, %v16391_v27  ;;  %v9292_v17 = vmul.f32 %v9280_v14, %v16395_v32  ;;  %v9296_v35 = vmul.f32 %v9280_v14, %v16399_v46  ;;  %v9300_v57 = vmul.f32 %v9280_v14, %v16417_v44 }
 0xbe2   :  { %v9304_v59 = vmul.f32 %v9280_v14, %v16434_v61  ;;  %v9308_v7 = vmul.f32 %v9280_v14, %v16448_v15  ;;  %v9312_v36 = vmul.f32 %v9280_v14, %v16460_v52  ;;  %v9328_v47 = vrot.slane %v9262_v16, %v16799_v13 }
 0xbe4   :  { %v9332_v56 = vadd.f32 %v9328_v47, %v9284_v28  ;;  %v9336_v2 = vadd.f32 %v9328_v47, %v9288_v42  ;;  %v9340_v8 = vadd.f32 %v9328_v47, %v9292_v17  ;;  %v9344_v25 = vadd.f32 %v9328_v47, %v9296_v35 }
 0xbe5   :  { %v9348_v45 = vadd.f32 %v9328_v47, %v9300_v57  ;;  %v9352_v27 = vadd.f32 %v9328_v47, %v9304_v59  ;;  %v9356_v58 = vadd.f32 %v9328_v47, %v9308_v7  ;;  %v9360_v32 = vadd.f32 %v9328_v47, %v9312_v36 }
 0xbe6   :  { %vm9364_vm10 = vcmp.ge.f32.partialorder %v9332_v56, 0.0  ;;  %vm9368_vm11 = vcmp.ge.f32.partialorder %v9336_v2, 0.0  ;;  %vm9372_vm12 = vcmp.ge.f32.partialorder %v9340_v8, 0.0  ;;  %vm9376_vm13 = vcmp.ge.f32.partialorder %v9344_v25, 0.0 }
 0xbe7   :  { %vm9380_vm14 = vcmp.ge.f32.partialorder %v9348_v45, 0.0  ;;  %vm9384_vm0 = vcmp.ge.f32.partialorder %v9352_v27, 0.0  ;;  %vm9388_vm1 = vcmp.ge.f32.partialorder %v9356_v58, 0.0  ;;  %vm9392_vm2 = vcmp.ge.f32.partialorder %v9360_v32, 0.0 }
 0xbe8   :  { %v9396_v46 = vmul.f32 0.1, %v9332_v56  ;;  %v9400_v44 = vmul.f32 0.1, %v9336_v2  ;;  %v9404_v61 = vmul.f32 0.1, %v9340_v8 }
 0xbe9   :  { %v9408_v15 = vmul.f32 0.1, %v9344_v25  ;;  %v9412_v52 = vmul.f32 0.1, %v9348_v45  ;;  %v9416_v13 = vmul.f32 0.1, %v9352_v27 }
 0xbea   :  { %v9420_v29 = vmul.f32 0.1, %v9356_v58  ;;  %v9424_v0 = vmul.f32 0.1, %v9360_v32  ;;  %v9428_v48 = vsel %vm9364_vm10, %v9332_v56, %v9396_v46  ;;  %v9432_v10 = vsel %vm9368_vm11, %v9336_v2, %v9400_v44 }
 0xbeb   :  { %v16583_v43 = vsel %vm9372_vm12, %v9340_v8, %v9404_v61  ;;  %v16586_v1 = vsel %vm9376_vm13, %v9344_v25, %v9408_v15  ;;  %v16589_v50 = vsel %vm9380_vm14, %v9348_v45, %v9412_v52  ;;  %v16592_v16 = vsel %vm9384_vm0, %v9352_v27, %v9416_v13 }
 0xbec   :  { %v16595_v22 = vsel %vm9388_vm1, %v9356_v58, %v9420_v29  ;;  %v16598_v26 = vsel %vm9392_vm2, %v9360_v32, %v9424_v0 }
 0xbed   :  { %15142 = dma.done.wait [#allocation9 + $0x2], 16384 }
 0xbee   :  { %15143 = vsyncadd [#allocation9 + $0x2], 4294950912  ;;  %v16600_v39 = vpack.c.bf16 %v9430_v3, %v9426_v20  ;;  %v16602_v49 = vpack.c.bf16 %v9432_v10, %v9428_v48  ;;  %v14629_v62 = vld [vmem:[#allocation8 + $0x78] sm:$0xff]   ;;  %v14633_v40 = vld [vmem:[#allocation8 + $0x70] sm:$0xff]   ;;  %v16608_v48 = vpack.c.bf16 %v16490_v4, %v16487_v30  ;;  %v16612_v10 = vpack.c.bf16 %v16522_v33, %v16519_v63  ;;  %s15173_s11 = smov [#allocation31]  }
 0xbef   :  { %v14630_v14 = vld [vmem:[#allocation8 + $0xf8] sm:$0xff]   ;;  %12969 = vmatprep.subr.bf16.mxu0 %v14629_v62  ;;  %v14634_v28 = vld [vmem:[#allocation8 + $0xf0] sm:$0xff]   ;;  %v14637_v3 = vld [vmem:[#allocation8 + $0x68] sm:$0xff]   ;;  %s11440_s25 = sshll.u32 %s15173_s11, 4  ;;  %s11441_s25 = int_to_ptr.vmem [resolvable:$true] %s11440_s25 }
 0xbf0   :  { %9766 = vmatprep.mubr.bf16.mxu0 %v16600_v39  ;;  %9831 = vmatprep.mubr.bf16.mxu1 %v16602_v49  ;;  %v14631_v6 = vld [vmem:[#allocation8 + $0x38] sm:$0xff]   ;;  %v14635_v42 = vld [vmem:[#allocation8 + $0x30] sm:$0xff]   ;;  %v14638_v17 = vld [vmem:[#allocation8 + $0xe8] sm:$0xff]   ;;  %s15104_s26 = scalar_lea.vmem %s11441_s25, 896  ;;  %p15109_p11 = scmp.lt.s32.totalorder %s11441_s25, %s11441_s25 }
 0xbf1   :  { %13009 = vmatprep.subr.bf16.mxu1 %v14630_v14  ;;  %v14632_v54 = vld [vmem:[#allocation8 + $0xb8] sm:$0xff]   ;;  %12970 = vmatpush3.bf16.msra.mxu0 %v14631_v6  ;;  %v14636_v20 = vld [vmem:[#allocation8 + $0xb0] sm:$0xff]   ;;  %v14639_v35 = vld [vmem:[#allocation8 + $0x28] sm:$0xff]   ;;  %v16616_v6 = vpack.c.bf16 %v16557_v38, %v16554_v11  ;;  %v16628_v38 = vpack.c.bf16 %v16496_v9, %v16493_v41  ;;  %p15105_p10 = scmp.ne.s32.totalorder %s11441_s25, %s15104_s26  ;;  %p15110_p12 = scmp.lt.s32.totalorder %s15104_s26, %s15104_s26 }
 0xbf2   :  { %13010 = vmatpush3.bf16.msra.mxu1 %v14632_v54  ;;  %12971 = vmatprep.subr.bf16.mxu0 %v14633_v40  ;;  %v14640_v57 = vld [vmem:[#allocation8 + $0xa8] sm:$0xff]   ;;  %v14641_v59 = vld [vmem:[#allocation8 + $0x60] sm:$0xff]   ;;  %v14645_v56 = vld [vmem:[#allocation8 + $0x58] sm:$0xff]   ;;  %v16620_v40 = vpack.c.bf16 %v16586_v1, %v16583_v43  ;;  %v16632_v43 = vpack.c.bf16 %v16528_v12, %v16525_v21 }
 0xbf3   :  { %13011 = vmatprep.subr.bf16.mxu1 %v14634_v28  ;;  %v14642_v7 = vld [vmem:[#allocation8 + $0xe0] sm:$0xff]   ;;  %v14646_v2 = vld [vmem:[#allocation8 + $0xd8] sm:$0xff]   ;;  %v14649_v45 = vld [vmem:[#allocation8 + $0x50] sm:$0xff]   ;;  %p15111_p13 = por %p15110_p12, %p15109_p11 }
 0xbf4   :  { %v14643_v36 = vld [vmem:[#allocation8 + $0x20] sm:$0xff]   ;;  %v14647_v8 = vld [vmem:[#allocation8 + $0x18] sm:$0xff]   ;;  %v14650_v27 = vld [vmem:[#allocation8 + $0xd0] sm:$0xff]  }
 0xbf5   :  { %12972 = vmatpush3.bf16.msra.mxu0 %v14635_v42  ;;  %v14644_v47 = vld [vmem:[#allocation8 + $0xa0] sm:$0xff]   ;;  %v14648_v25 = vld [vmem:[#allocation8 + $0x98] sm:$0xff]   ;;  %v14651_v58 = vld [vmem:[#allocation8 + $0x10] sm:$0xff]   ;;  %v16636_v42 = vpack.c.bf16 %v16563_v34, %v16560_v51  ;;  %v16648_v34 = vpack.c.bf16 %v16502_v24, %v16499_v31  ;;  %p15112_p0 = pnand %p15111_p13, %p15105_p10 }
 0xbf6   :  { %13012 = vmatpush3.bf16.msra.mxu1 %v14636_v20  ;;  %12973 = vmatprep.subr.bf16.mxu0 %v14637_v3  ;;  %v14652_v32 = vld [vmem:[#allocation8 + $0x90] sm:$0xff]   ;;  %v14653_v46 = vld [vmem:[#allocation8 + $0x48] sm:$0xff]   ;;  %v14657_v52 = vld [vmem:[#allocation8 + $0x40] sm:$0xff]   ;;  %v16640_v3 = vpack.c.bf16 %v16592_v16, %v16589_v50  ;;  %v16652_v50 = vpack.c.bf16 %v16534_v18, %v16531_v37 }
 0xbf7   :  { %13013 = vmatprep.subr.bf16.mxu1 %v14638_v17  ;;  %v14654_v44 = vld [vmem:[#allocation8 + $0xc8] sm:$0xff]   ;;  %v14658_v13 = vld [vmem:[#allocation8 + $0xc0] sm:$0xff]   ;;  %v14661_v62 = vld [vmem:[#allocation8 + $0x178] sm:$0xff]  }
 0xbf8   :  { %v14655_v61 = vld [vmem:[#allocation8 + $0x8] sm:$0xff]   ;;  %v14659_v29 = vld [vmem:[#allocation8] sm:$0xff]   ;;  %v14662_v14 = vld [vmem:[#allocation8 + $0x1f8] sm:$0xff]  }
 0xbf9   :  { %12974 = vmatpush3.bf16.msra.mxu0 %v14639_v35  ;;  %v14656_v15 = vld [vmem:[#allocation8 + $0x88] sm:$0xff]   ;;  %v14660_v0 = vld [vmem:[#allocation8 + $0x80] sm:$0xff]   ;;  %v14663_v54 = vld [vmem:[#allocation8 + $0x138] sm:$0xff]   ;;  %v16656_v35 = vpack.c.bf16 %v16569_v23, %v16566_v19  ;;  %v16668_v23 = vpack.c.bf16 %v16508_v53, %v16505_v60 }
 0xbfa   :  { %13014 = vmatpush3.bf16.msra.mxu1 %v14640_v57  ;;  %12975 = vmatprep.subr.bf16.mxu0 %v14641_v59  ;;  %v14664_v30 = vld [vmem:[#allocation8 + $0x1b8] sm:$0xff]   ;;  %v14665_v4 = vld [vmem:[#allocation8 + $0x170] sm:$0xff]   ;;  %v14669_v1 = vld [vmem:[#allocation8 + $0x168] sm:$0xff]   ;;  %v16660_v59 = vpack.c.bf16 %v16598_v26, %v16595_v22  ;;  %v16672_v22 = vpack.c.bf16 %v16540_v5, %v16537_v55 }
 0xbfb   :  { %13015 = vmatprep.subr.bf16.mxu1 %v14642_v7  ;;  %v14666_v63 = vld [vmem:[#allocation8 + $0x1f0] sm:$0xff]   ;;  %v14670_v28 = vld [vmem:[#allocation8 + $0x1e8] sm:$0xff]   ;;  %v14673_v9 = vld [vmem:[#allocation8 + $0x160] sm:$0xff]  }
 0xbfc   :  { %v14667_v33 = vld [vmem:[#allocation8 + $0x130] sm:$0xff]   ;;  %v14671_v20 = vld [vmem:[#allocation8 + $0x128] sm:$0xff]   ;;  %v14674_v21 = vld [vmem:[#allocation8 + $0x1e0] sm:$0xff]  }
 0xbfd   :  { %12976 = vmatpush3.bf16.msra.mxu0 %v14643_v36  ;;  %v14668_v11 = vld [vmem:[#allocation8 + $0x1b0] sm:$0xff]   ;;  %v14672_v41 = vld [vmem:[#allocation8 + $0x1a8] sm:$0xff]   ;;  %v14675_v12 = vld [vmem:[#allocation8 + $0x120] sm:$0xff]  }
 0xbfe   :  { %13016 = vmatpush3.bf16.msra.mxu1 %v14644_v47  ;;  %12977 = vmatprep.subr.bf16.mxu0 %v14645_v56  ;;  %v14676_v51 = vld [vmem:[#allocation8 + $0x1a0] sm:$0xff]   ;;  %v14677_v16 = vld [vmem:[#allocation8 + $0x158] sm:$0xff]   ;;  %v14681_v24 = vld [vmem:[#allocation8 + $0x150] sm:$0xff]  }
 0xbff   :  { %13017 = vmatprep.subr.bf16.mxu1 %v14646_v2  ;;  %v14678_v17 = vld [vmem:[#allocation8 + $0x1d8] sm:$0xff]   ;;  %v14682_v37 = vld [vmem:[#allocation8 + $0x1d0] sm:$0xff]   ;;  %v14685_v26 = vld [vmem:[#allocation8 + $0x148] sm:$0xff]  }
 0xc00   :  { %v14679_v57 = vld [vmem:[#allocation8 + $0x118] sm:$0xff]   ;;  %v14683_v18 = vld [vmem:[#allocation8 + $0x110] sm:$0xff]   ;;  %v14686_v7 = vld [vmem:[#allocation8 + $0x1c8] sm:$0xff]  }
 0xc01   :  { %12978 = vmatpush3.bf16.msra.mxu0 %v14647_v8  ;;  %v14680_v31 = vld [vmem:[#allocation8 + $0x198] sm:$0xff]   ;;  %v14684_v19 = vld [vmem:[#allocation8 + $0x190] sm:$0xff]   ;;  %v14687_v36 = vld [vmem:[#allocation8 + $0x108] sm:$0xff]  }
 0xc02   :  { %13018 = vmatpush3.bf16.msra.mxu1 %v14648_v25  ;;  %12979 = vmatprep.subr.bf16.mxu0 %v14649_v45  ;;  %v14688_v47 = vld [vmem:[#allocation8 + $0x188] sm:$0xff]   ;;  %v14689_v56 = vld [vmem:[#allocation8 + $0x140] sm:$0xff]   ;;  %v14693_v5 = vld [vmem:[#allocation8 + $0x278] sm:$0xff]  }
 0xc03   :  { %13019 = vmatprep.subr.bf16.mxu1 %v14650_v27  ;;  %v14690_v60 = vld [vmem:[#allocation8 + $0x1c0] sm:$0xff]   ;;  %v14694_v2 = vld [vmem:[#allocation8 + $0x2f8] sm:$0xff]   ;;  %v14697_v45 = vld [vmem:[#allocation8 + $0x270] sm:$0xff]  }
 0xc04   :  { %v14691_v53 = vld [vmem:[#allocation8 + $0x100] sm:$0xff]   ;;  %v14695_v8 = vld [vmem:[#allocation8 + $0x238] sm:$0xff]   ;;  %v14698_v27 = vld [vmem:[#allocation8 + $0x2f0] sm:$0xff]  }
 0xc05   :  { %12980 = vmatpush3.bf16.msra.mxu0 %v14651_v58  ;;  %v14692_v55 = vld [vmem:[#allocation8 + $0x180] sm:$0xff]   ;;  %v14696_v25 = vld [vmem:[#allocation8 + $0x2b8] sm:$0xff]   ;;  %v14699_v58 = vld [vmem:[#allocation8 + $0x230] sm:$0xff]  }
 0xc06   :  { %13020 = vmatpush3.bf16.msra.mxu1 %v14652_v32  ;;  %12981 = vmatprep.subr.bf16.mxu0 %v14653_v46  ;;  %v14700_v32 = vld [vmem:[#allocation8 + $0x2b0] sm:$0xff]   ;;  %v14701_v46 = vld [vmem:[#allocation8 + $0x268] sm:$0xff]  }
 0xc07   :  { %13021 = vmatprep.subr.bf16.mxu1 %v14654_v44  ;;  %v14702_v44 = vld [vmem:[#allocation8 + $0x2e8] sm:$0xff]  }
 0xc09   :  { %12982 = vmatpush3.bf16.msra.mxu0 %v14655_v61  ;;  %v14703_v61 = vld [vmem:[#allocation8 + $0x228] sm:$0xff]  }
 0xc0a   :  { %13022 = vmatpush3.bf16.msra.mxu1 %v14656_v15  ;;  %12983 = vmatprep.subr.bf16.mxu0 %v14657_v52  ;;  %v14704_v15 = vld [vmem:[#allocation8 + $0x2a8] sm:$0xff]   ;;  %v14705_v52 = vld [vmem:[#allocation8 + $0x260] sm:$0xff]  }
 0xc0b   :  { %13023 = vmatprep.subr.bf16.mxu1 %v14658_v13  ;;  %v14706_v13 = vld [vmem:[#allocation8 + $0x2e0] sm:$0xff]  }
 0xc0d   :  { %12984 = vmatpush3.bf16.msra.mxu0 %v14659_v29  ;;  %v14707_v29 = vld [vmem:[#allocation8 + $0x220] sm:$0xff]  }
 0xc0e   :  { %13024 = vmatpush3.bf16.msra.mxu1 %v14660_v0  ;;  %13049 = vmatprep.subr.bf16.mxu0 %v14661_v62  ;;  %v14708_v0 = vld [vmem:[#allocation8 + $0x2a0] sm:$0xff]   ;;  %v14709_v62 = vld [vmem:[#allocation8 + $0x258] sm:$0xff]  }
 0xc0f   :  { %13089 = vmatprep.subr.bf16.mxu1 %v14662_v14  ;;  %v14710_v14 = vld [vmem:[#allocation8 + $0x2d8] sm:$0xff]  }
 0xc10   :  { %9767 = vmatmul.mubr.bf16.vlgmr.msra.gmra.mxu0 %v16608_v48 }
 0xc11   :  { %9832 = vmatmul.mubr.bf16.vlgmr.msra.gmra.mxu1 %v16612_v10  ;;  %13050 = vmatpush3.bf16.msra.mxu0 %v14663_v54  ;;  %v14711_v54 = vld [vmem:[#allocation8 + $0x218] sm:$0xff]  }
 0xc12   :  { %13090 = vmatpush3.bf16.msra.mxu1 %v14664_v30  ;;  %9774 = vmatprep.mubr.bf16.mxu0 %v16616_v6  ;;  %v14712_v30 = vld [vmem:[#allocation8 + $0x298] sm:$0xff]  }
 0xc13   :  { %13051 = vmatprep.subr.bf16.mxu0 %v14665_v4  ;;  %9839 = vmatprep.mubr.bf16.mxu1 %v16620_v40  ;;  %v14713_v4 = vld [vmem:[#allocation8 + $0x250] sm:$0xff]  }
 0xc14   :  { %13091 = vmatprep.subr.bf16.mxu1 %v14666_v63  ;;  %v14714_v63 = vld [vmem:[#allocation8 + $0x2d0] sm:$0xff]  }
 0xc15   :  { %13052 = vmatpush3.bf16.msra.mxu0 %v14667_v33  ;;  %v14715_v33 = vld [vmem:[#allocation8 + $0x210] sm:$0xff]  }
 0xc16   :  { %13092 = vmatpush3.bf16.msra.mxu1 %v14668_v11  ;;  %13053 = vmatprep.subr.bf16.mxu0 %v14669_v1  ;;  %v14716_v11 = vld [vmem:[#allocation8 + $0x290] sm:$0xff]   ;;  %v14717_v1 = vld [vmem:[#allocation8 + $0x248] sm:$0xff]  }
 0xc17   :  { %13093 = vmatprep.subr.bf16.mxu1 %v14670_v28  ;;  %v14718_v28 = vld [vmem:[#allocation8 + $0x2c8] sm:$0xff]  }
 0xc18   :  { %9775 = vmatmul.mubr.bf16.gmra.mxu0 %v16628_v38 }
 0xc19   :  { %9840 = vmatmul.mubr.bf16.gmra.mxu1 %v16632_v43  ;;  %13054 = vmatpush3.bf16.msra.mxu0 %v14671_v20  ;;  %v14719_v20 = vld [vmem:[#allocation8 + $0x208] sm:$0xff]  }
 0xc1a   :  { %13094 = vmatpush3.bf16.msra.mxu1 %v14672_v41  ;;  %9782 = vmatprep.mubr.bf16.mxu0 %v16636_v42  ;;  %v14720_v41 = vld [vmem:[#allocation8 + $0x288] sm:$0xff]  }
 0xc1b   :  { %13055 = vmatprep.subr.bf16.mxu0 %v14673_v9  ;;  %9847 = vmatprep.mubr.bf16.mxu1 %v16640_v3  ;;  %v14721_v9 = vld [vmem:[#allocation8 + $0x240] sm:$0xff]  }
 0xc1c   :  { %13095 = vmatprep.subr.bf16.mxu1 %v14674_v21  ;;  %v14722_v21 = vld [vmem:[#allocation8 + $0x2c0] sm:$0xff]  }
 0xc1d   :  { %13056 = vmatpush3.bf16.msra.mxu0 %v14675_v12  ;;  %v14723_v12 = vld [vmem:[#allocation8 + $0x200] sm:$0xff]  }
 0xc1e   :  { %13096 = vmatpush3.bf16.msra.mxu1 %v14676_v51  ;;  %13057 = vmatprep.subr.bf16.mxu0 %v14677_v16  ;;  %v14724_v51 = vld [vmem:[#allocation8 + $0x280] sm:$0xff]   ;;  %v14725_v16 = vld [vmem:[#allocation8 + $0x378] sm:$0xff]  }
 0xc1f   :  { %13097 = vmatprep.subr.bf16.mxu1 %v14678_v17  ;;  %v14726_v17 = vld [vmem:[#allocation8 + $0x3f8] sm:$0xff]  }
 0xc20   :  { %9783 = vmatmul.mubr.bf16.gmra.mxu0 %v16648_v34 }
 0xc21   :  { %9848 = vmatmul.mubr.bf16.gmra.mxu1 %v16652_v50  ;;  %13058 = vmatpush3.bf16.msra.mxu0 %v14679_v57  ;;  %v14727_v57 = vld [vmem:[#allocation8 + $0x338] sm:$0xff]  }
 0xc22   :  { %13098 = vmatpush3.bf16.msra.mxu1 %v14680_v31  ;;  %9790 = vmatprep.mubr.bf16.mxu0 %v16656_v35  ;;  %v14728_v31 = vld [vmem:[#allocation8 + $0x3b8] sm:$0xff]  }
 0xc23   :  { %13059 = vmatprep.subr.bf16.mxu0 %v14681_v24  ;;  %9855 = vmatprep.mubr.bf16.mxu1 %v16660_v59  ;;  %v14729_v24 = vld [vmem:[#allocation8 + $0x370] sm:$0xff]  }
 0xc24   :  { %13099 = vmatprep.subr.bf16.mxu1 %v14682_v37  ;;  %v14730_v37 = vld [vmem:[#allocation8 + $0x3f0] sm:$0xff]  }
 0xc25   :  { %13060 = vmatpush3.bf16.msra.mxu0 %v14683_v18  ;;  %v14731_v18 = vld [vmem:[#allocation8 + $0x330] sm:$0xff]  }
 0xc26   :  { %13100 = vmatpush3.bf16.msra.mxu1 %v14684_v19  ;;  %13061 = vmatprep.subr.bf16.mxu0 %v14685_v26  ;;  %v14732_v19 = vld [vmem:[#allocation8 + $0x3b0] sm:$0xff]   ;;  %v14733_v26 = vld [vmem:[#allocation8 + $0x368] sm:$0xff]  }
 0xc27   :  { %13101 = vmatprep.subr.bf16.mxu1 %v14686_v7  ;;  %v14734_v7 = vld [vmem:[#allocation8 + $0x3e8] sm:$0xff]  }
 0xc28   :  { %9791 = vmatmul.mubr.bf16.gmra.mxu0 %v16668_v23 }
 0xc29   :  { %9856 = vmatmul.mubr.bf16.gmra.mxu1 %v16672_v22  ;;  %13062 = vmatpush3.bf16.msra.mxu0 %v14687_v36  ;;  %v14735_v36 = vld [vmem:[#allocation8 + $0x328] sm:$0xff]  }
 0xc2a   :  { %13102 = vmatpush3.bf16.msra.mxu1 %v14688_v47  ;;  %10193 = vmatprep.mubr.bf16.mxu0 %v16600_v39  ;;  %v14736_v47 = vld [vmem:[#allocation8 + $0x3a8] sm:$0xff]  }
 0xc2b   :  { %13063 = vmatprep.subr.bf16.mxu0 %v14689_v56  ;;  %10258 = vmatprep.mubr.bf16.mxu1 %v16602_v49  ;;  %v14737_v56 = vld [vmem:[#allocation8 + $0x360] sm:$0xff]  }
 0xc2c   :  { %13103 = vmatprep.subr.bf16.mxu1 %v14690_v60  ;;  %v14738_v60 = vld [vmem:[#allocation8 + $0x3e0] sm:$0xff]  }
 0xc2d   :  { %13064 = vmatpush3.bf16.msra.mxu0 %v14691_v53  ;;  %v14739_v53 = vld [vmem:[#allocation8 + $0x320] sm:$0xff]  }
 0xc2e   :  { %13104 = vmatpush3.bf16.msra.mxu1 %v14692_v55  ;;  %13129 = vmatprep.subr.bf16.mxu0 %v14693_v5  ;;  %v14740_v55 = vld [vmem:[#allocation8 + $0x3a0] sm:$0xff]   ;;  %v14741_v5 = vld [vmem:[#allocation8 + $0x358] sm:$0xff]  }
 0xc2f   :  { %13169 = vmatprep.subr.bf16.mxu1 %v14694_v2  ;;  %v14742_v2 = vld [vmem:[#allocation8 + $0x3d8] sm:$0xff]  }
 0xc30   :  { %10194 = vmatmul.mubr.bf16.vlgmr.msra.gmra.mxu0 %v16608_v48 }
 0xc31   :  { %10259 = vmatmul.mubr.bf16.vlgmr.msra.gmra.mxu1 %v16612_v10  ;;  %13130 = vmatpush3.bf16.msra.mxu0 %v14695_v8  ;;  %v14743_v8 = vld [vmem:[#allocation8 + $0x318] sm:$0xff]  }
 0xc32   :  { %13170 = vmatpush3.bf16.msra.mxu1 %v14696_v25  ;;  %10201 = vmatprep.mubr.bf16.mxu0 %v16616_v6  ;;  %v14744_v25 = vld [vmem:[#allocation8 + $0x398] sm:$0xff]  }
 0xc33   :  { %13131 = vmatprep.subr.bf16.mxu0 %v14697_v45  ;;  %10266 = vmatprep.mubr.bf16.mxu1 %v16620_v40  ;;  %v14745_v45 = vld [vmem:[#allocation8 + $0x350] sm:$0xff]  }
 0xc34   :  { %13171 = vmatprep.subr.bf16.mxu1 %v14698_v27  ;;  %v14746_v27 = vld [vmem:[#allocation8 + $0x3d0] sm:$0xff]  }
 0xc35   :  { %13132 = vmatpush3.bf16.msra.mxu0 %v14699_v58  ;;  %v14747_v58 = vld [vmem:[#allocation8 + $0x310] sm:$0xff]  }
 0xc36   :  { %13172 = vmatpush3.bf16.msra.mxu1 %v14700_v32  ;;  %13133 = vmatprep.subr.bf16.mxu0 %v14701_v46  ;;  %v14748_v32 = vld [vmem:[#allocation8 + $0x390] sm:$0xff]   ;;  %v14749_v46 = vld [vmem:[#allocation8 + $0x348] sm:$0xff]  }
 0xc37   :  { %13173 = vmatprep.subr.bf16.mxu1 %v14702_v44  ;;  %v14750_v44 = vld [vmem:[#allocation8 + $0x3c8] sm:$0xff]  }
 0xc38   :  { %10202 = vmatmul.mubr.bf16.gmra.mxu0 %v16628_v38 }
 0xc39   :  { %10267 = vmatmul.mubr.bf16.gmra.mxu1 %v16632_v43  ;;  %13134 = vmatpush3.bf16.msra.mxu0 %v14703_v61  ;;  %v14751_v61 = vld [vmem:[#allocation8 + $0x308] sm:$0xff]  }
 0xc3a   :  { %13174 = vmatpush3.bf16.msra.mxu1 %v14704_v15  ;;  %10209 = vmatprep.mubr.bf16.mxu0 %v16636_v42  ;;  %v14752_v15 = vld [vmem:[#allocation8 + $0x388] sm:$0xff]  }
 0xc3b   :  { %13135 = vmatprep.subr.bf16.mxu0 %v14705_v52  ;;  %10274 = vmatprep.mubr.bf16.mxu1 %v16640_v3  ;;  %v14753_v52 = vld [vmem:[#allocation8 + $0x340] sm:$0xff]  }
 0xc3c   :  { %13175 = vmatprep.subr.bf16.mxu1 %v14706_v13  ;;  %v14754_v13 = vld [vmem:[#allocation8 + $0x3c0] sm:$0xff]  }
 0xc3d   :  { %13136 = vmatpush3.bf16.msra.mxu0 %v14707_v29  ;;  %v14755_v29 = vld [vmem:[#allocation8 + $0x300] sm:$0xff]  }
 0xc3e   :  { %13176 = vmatpush3.bf16.msra.mxu1 %v14708_v0  ;;  %13137 = vmatprep.subr.bf16.mxu0 %v14709_v62  ;;  %v14756_v0 = vld [vmem:[#allocation8 + $0x380] sm:$0xff]  }
 0xc3f   :  { %13177 = vmatprep.subr.bf16.mxu1 %v14710_v14 }
 0xc40   :  { %10210 = vmatmul.mubr.bf16.gmra.mxu0 %v16648_v34 }
 0xc41   :  { %10275 = vmatmul.mubr.bf16.gmra.mxu1 %v16652_v50  ;;  %13138 = vmatpush3.bf16.msra.mxu0 %v14711_v54 }
 0xc42   :  { %13178 = vmatpush3.bf16.msra.mxu1 %v14712_v30  ;;  %10217 = vmatprep.mubr.bf16.mxu0 %v16656_v35 }
 0xc43   :  { %13139 = vmatprep.subr.bf16.mxu0 %v14713_v4  ;;  %10282 = vmatprep.mubr.bf16.mxu1 %v16660_v59 }
 0xc44   :  { %13179 = vmatprep.subr.bf16.mxu1 %v14714_v63 }
 0xc45   :  { %13140 = vmatpush3.bf16.msra.mxu0 %v14715_v33 }
 0xc46   :  { %13180 = vmatpush3.bf16.msra.mxu1 %v14716_v11  ;;  %13141 = vmatprep.subr.bf16.mxu0 %v14717_v1 }
 0xc47   :  { %13181 = vmatprep.subr.bf16.mxu1 %v14718_v28 }
 0xc48   :  { %10218 = vmatmul.mubr.bf16.gmra.mxu0 %v16668_v23 }
 0xc49   :  { %10283 = vmatmul.mubr.bf16.gmra.mxu1 %v16672_v22  ;;  %13142 = vmatpush3.bf16.msra.mxu0 %v14719_v20 }
 0xc4a   :  { %13182 = vmatpush3.bf16.msra.mxu1 %v14720_v41  ;;  %10620 = vmatprep.mubr.bf16.mxu0 %v16600_v39 }
 0xc4b   :  { %13143 = vmatprep.subr.bf16.mxu0 %v14721_v9  ;;  %10685 = vmatprep.mubr.bf16.mxu1 %v16602_v49 }
 0xc4c   :  { %13183 = vmatprep.subr.bf16.mxu1 %v14722_v21 }
 0xc4d   :  { %13144 = vmatpush3.bf16.msra.mxu0 %v14723_v12 }
 0xc4e   :  { %13184 = vmatpush3.bf16.msra.mxu1 %v14724_v51  ;;  %13209 = vmatprep.subr.bf16.mxu0 %v14725_v16 }
 0xc4f   :  { %13249 = vmatprep.subr.bf16.mxu1 %v14726_v17 }
 0xc50   :  { %10621 = vmatmul.mubr.bf16.vlgmr.msra.gmra.mxu0 %v16608_v48 }
 0xc51   :  { %10686 = vmatmul.mubr.bf16.vlgmr.msra.gmra.mxu1 %v16612_v10  ;;  %13210 = vmatpush3.bf16.msra.mxu0 %v14727_v57 }
 0xc52   :  { %13250 = vmatpush3.bf16.msra.mxu1 %v14728_v31  ;;  %10628 = vmatprep.mubr.bf16.mxu0 %v16616_v6 }
 0xc53   :  { %13211 = vmatprep.subr.bf16.mxu0 %v14729_v24  ;;  %10693 = vmatprep.mubr.bf16.mxu1 %v16620_v40 }
 0xc54   :  { %13251 = vmatprep.subr.bf16.mxu1 %v14730_v37 }
 0xc55   :  { %13212 = vmatpush3.bf16.msra.mxu0 %v14731_v18 }
 0xc56   :  { %13252 = vmatpush3.bf16.msra.mxu1 %v14732_v19  ;;  %13213 = vmatprep.subr.bf16.mxu0 %v14733_v26 }
 0xc57   :  { %13253 = vmatprep.subr.bf16.mxu1 %v14734_v7 }
 0xc58   :  { %10629 = vmatmul.mubr.bf16.gmra.mxu0 %v16628_v38 }
 0xc59   :  { %10694 = vmatmul.mubr.bf16.gmra.mxu1 %v16632_v43  ;;  %13214 = vmatpush3.bf16.msra.mxu0 %v14735_v36 }
 0xc5a   :  { %13254 = vmatpush3.bf16.msra.mxu1 %v14736_v47  ;;  %10636 = vmatprep.mubr.bf16.mxu0 %v16636_v42 }
 0xc5b   :  { %13215 = vmatprep.subr.bf16.mxu0 %v14737_v56  ;;  %10701 = vmatprep.mubr.bf16.mxu1 %v16640_v3 }
 0xc5c   :  { %13255 = vmatprep.subr.bf16.mxu1 %v14738_v60 }
 0xc5d   :  { %13216 = vmatpush3.bf16.msra.mxu0 %v14739_v53 }
 0xc5e   :  { %13256 = vmatpush3.bf16.msra.mxu1 %v14740_v55  ;;  %13217 = vmatprep.subr.bf16.mxu0 %v14741_v5 }
 0xc5f   :  { %13257 = vmatprep.subr.bf16.mxu1 %v14742_v2 }
 0xc60   :  { %10637 = vmatmul.mubr.bf16.gmra.mxu0 %v16648_v34 }
 0xc61   :  { %10702 = vmatmul.mubr.bf16.gmra.mxu1 %v16652_v50  ;;  %13218 = vmatpush3.bf16.msra.mxu0 %v14743_v8 }
 0xc62   :  { %13258 = vmatpush3.bf16.msra.mxu1 %v14744_v25  ;;  %10644 = vmatprep.mubr.bf16.mxu0 %v16656_v35 }
 0xc63   :  { %13219 = vmatprep.subr.bf16.mxu0 %v14745_v45  ;;  %10709 = vmatprep.mubr.bf16.mxu1 %v16660_v59 }
 0xc64   :  { %13259 = vmatprep.subr.bf16.mxu1 %v14746_v27 }
 0xc65   :  { %13220 = vmatpush3.bf16.msra.mxu0 %v14747_v58 }
 0xc66   :  { %13260 = vmatpush3.bf16.msra.mxu1 %v14748_v32  ;;  %13221 = vmatprep.subr.bf16.mxu0 %v14749_v46 }
 0xc67   :  { %13261 = vmatprep.subr.bf16.mxu1 %v14750_v44 }
 0xc68   :  { %10645 = vmatmul.mubr.bf16.gmra.mxu0 %v16668_v23 }
 0xc69   :  { %10710 = vmatmul.mubr.bf16.gmra.mxu1 %v16672_v22  ;;  %13222 = vmatpush3.bf16.msra.mxu0 %v14751_v61 }
 0xc6a   :  { %13262 = vmatpush3.bf16.msra.mxu1 %v14752_v15  ;;  %11047 = vmatprep.mubr.bf16.mxu0 %v16600_v39 }
 0xc6b   :  { %13223 = vmatprep.subr.bf16.mxu0 %v14753_v52  ;;  %11112 = vmatprep.mubr.bf16.mxu1 %v16602_v49 }
 0xc6c   :  { %13263 = vmatprep.subr.bf16.mxu1 %v14754_v13 }
 0xc6d   :  { %13224 = vmatpush3.bf16.msra.mxu0 %v14755_v29 }
 0xc6e   :  { %13264 = vmatpush3.bf16.msra.mxu1 %v14756_v0 }
 0xc70   :  { %11048 = vmatmul.mubr.bf16.vlgmr.msra.gmra.mxu0 %v16608_v48 }
 0xc71   :  { %11113 = vmatmul.mubr.bf16.vlgmr.msra.gmra.mxu1 %v16612_v10  ;;  %11055 = vmatprep.mubr.bf16.mxu0 %v16616_v6 }
 0xc72   :  { %11120 = vmatprep.mubr.bf16.mxu1 %v16620_v40 }
 0xc78   :  { %11056 = vmatmul.mubr.bf16.gmra.mxu0 %v16628_v38 }
 0xc79   :  { %11121 = vmatmul.mubr.bf16.gmra.mxu1 %v16632_v43  ;;  %11063 = vmatprep.mubr.bf16.mxu0 %v16636_v42 }
 0xc7a   :  { %11128 = vmatprep.mubr.bf16.mxu1 %v16640_v3 }
 0xc80   :  { %11064 = vmatmul.mubr.bf16.gmra.mxu0 %v16648_v34 }
 0xc81   :  { %11129 = vmatmul.mubr.bf16.gmra.mxu1 %v16652_v50  ;;  %11071 = vmatprep.mubr.bf16.mxu0 %v16656_v35 }
 0xc82   :  { %11136 = vmatprep.mubr.bf16.mxu1 %v16660_v59 }
 0xc88   :  { %11072 = vmatmul.mubr.bf16.gmra.mxu0 %v16668_v23 }
 0xc89   :  { %11137 = vmatmul.mubr.bf16.gmra.mxu1 %v16672_v22 }
 0xcd0   :  { %v12985_v39 = vpop.f32.mrf.mxu0 }
 0xcd1   :  { %v13025_v49 = vpop.f32.mrf.mxu1 }
 0xcd2   :  { %v12986_v48 = vpop.f32.mrf.mxu0 }
 0xcd3   :  { %v13026_v10 = vpop.f32.mrf.mxu1  ;;  %v12987_v38 = vadd.f32 %v12986_v48, %v12985_v39 }
 0xcd4   :  { %v12988_v6 = vpop.f32.mrf.mxu0  ;;  %v13027_v43 = vadd.f32 %v13026_v10, %v13025_v49 }
 0xcd5   :  { %v13028_v40 = vpop.f32.mrf.mxu1 }
 0xcd6   :  { %v12989_v42 = vpop.f32.mrf.mxu0  ;;  %v9834_v14 = vadd.f32 %v13027_v43, %v12987_v38 }
 0xcd7   :  { %v12990_v3 = vadd.f32 %v12989_v42, %v12988_v6  ;;  %v13029_v34 = vpop.f32.mrf.mxu1 }
 0xcd8   :  { %v13030_v50 = vadd.f32 %v13029_v34, %v13028_v40  ;;  %v12991_v62 = vpop.f32.mrf.mxu0 }
 0xcd9   :  { %v13031_v35 = vpop.f32.mrf.mxu1 }
 0xcda   :  { %v9837_v59 = vadd.f32 %v13030_v50, %v12990_v3  ;;  %v12992_v54 = vpop.f32.mrf.mxu0 }
 0xcdb   :  { %v13032_v23 = vpop.f32.mrf.mxu1  ;;  %v12993_v63 = vadd.f32 %v12992_v54, %v12991_v62  ;;  %v14775_v54 = vld [vmem:[#allocation28 + $0x4] ss:$8 sps:$4 sm:$0xff]  }
 0xcdc   :  { %v12701_v30 = vpack.c.bf16 %v9837_v59, %v9834_v14  ;;  %v12994_v22 = vpop.f32.mrf.mxu0  ;;  %v13033_v33 = vadd.f32 %v13032_v23, %v13031_v35  ;;  %11396 = vmatprep.mubr.bf16.mxu0 %v14775_v54 }
 0xcdd   :  { %v13034_v4 = vpop.f32.mrf.mxu1 }
 0xcde   :  { %12702 = vst [vmem:[#allocation5] sm:$0xff] %v12701_v30   ;;  %v12995_v11 = vpop.f32.mrf.mxu0  ;;  %v9842_v21 = vadd.f32 %v13033_v33, %v12993_v63  ;;  %v14778_v63 = vld [vmem:[#allocation28 + $0x24] ss:$8 sps:$4 sm:$0xff]  }
 0xcdf   :  { %v12996_v1 = vadd.f32 %v12995_v11, %v12994_v22  ;;  %v13035_v28 = vpop.f32.mrf.mxu1  ;;  %11412 = vmatprep.mubr.bf16.mxu1 %v14778_v63 }
 0xce0   :  { %v13036_v20 = vadd.f32 %v13035_v28, %v13034_v4  ;;  %v12997_v41 = vpop.f32.mrf.mxu0 }
 0xce1   :  { %v13037_v9 = vpop.f32.mrf.mxu1 }
 0xce2   :  { %v9845_v12 = vadd.f32 %v13036_v20, %v12996_v1  ;;  %v12998_v51 = vpop.f32.mrf.mxu0 }
 0xce3   :  { %v13038_v16 = vpop.f32.mrf.mxu1  ;;  %v12999_v24 = vadd.f32 %v12998_v51, %v12997_v41 }
 0xce4   :  { %v12706_v17 = vpack.c.bf16 %v9845_v12, %v9842_v21  ;;  %v13000_v57 = vpop.f32.mrf.mxu0  ;;  %v13039_v37 = vadd.f32 %v13038_v16, %v13037_v9 }
 0xce5   :  { %v13040_v31 = vpop.f32.mrf.mxu1 }
 0xce6   :  { %12778 = vst [vmem:[#allocation5 + $0x8] sm:$0xff] %v12706_v17   ;;  %v13001_v18 = vpop.f32.mrf.mxu0  ;;  %v9850_v56 = vadd.f32 %v13039_v37, %v12999_v24 }
 0xce7   :  { %v13002_v19 = vadd.f32 %v13001_v18, %v13000_v57  ;;  %v13041_v26 = vpop.f32.mrf.mxu1 }
 0xce8   :  { %v13042_v7 = vadd.f32 %v13041_v26, %v13040_v31  ;;  %v13003_v36 = vpop.f32.mrf.mxu0 }
 0xce9   :  { %v13043_v47 = vpop.f32.mrf.mxu1 }
 0xcea   :  { %v9853_v60 = vadd.f32 %v13042_v7, %v13002_v19  ;;  %v13004_v53 = vpop.f32.mrf.mxu0 }
 0xceb   :  { %v13044_v55 = vpop.f32.mrf.mxu1  ;;  %v13005_v25 = vadd.f32 %v13004_v53, %v13003_v36 }
 0xcec   :  { %v12711_v5 = vpack.c.bf16 %v9853_v60, %v9850_v56  ;;  %v13006_v2 = vpop.f32.mrf.mxu0  ;;  %v13045_v45 = vadd.f32 %v13044_v55, %v13043_v47 }
 0xced   :  { %v13046_v8 = vpop.f32.mrf.mxu1 }
 0xcee   :  { %12779 = vst [vmem:[#allocation5 + $0x10] sm:$0xff] %v12711_v5   ;;  %v13007_v27 = vpop.f32.mrf.mxu0  ;;  %v9858_v15 = vadd.f32 %v13045_v45, %v13005_v25 }
 0xcef   :  { %v13008_v58 = vadd.f32 %v13007_v27, %v13006_v2  ;;  %v13047_v32 = vpop.f32.mrf.mxu1 }
 0xcf0   :  { %v13048_v46 = vadd.f32 %v13047_v32, %v13046_v8  ;;  %v13065_v44 = vpop.f32.mrf.mxu0 }
 0xcf1   :  { %v13105_v61 = vpop.f32.mrf.mxu1 }
 0xcf2   :  { %v9861_v52 = vadd.f32 %v13048_v46, %v13008_v58  ;;  %v13066_v13 = vpop.f32.mrf.mxu0 }
 0xcf3   :  { %v13106_v29 = vpop.f32.mrf.mxu1  ;;  %v13067_v48 = vadd.f32 %v13066_v13, %v13065_v44 }
 0xcf4   :  { %v12716_v0 = vpack.c.bf16 %v9861_v52, %v9858_v15  ;;  %v13068_v39 = vpop.f32.mrf.mxu0  ;;  %v13107_v10 = vadd.f32 %v13106_v29, %v13105_v61 }
 0xcf5   :  { %v13108_v49 = vpop.f32.mrf.mxu1 }
 0xcf6   :  { %12780 = vst [vmem:[#allocation5 + $0x18] sm:$0xff] %v12716_v0   ;;  %v13069_v6 = vpop.f32.mrf.mxu0  ;;  %v10261_v34 = vadd.f32 %v13107_v10, %v13067_v48 }
 0xcf7   :  { %v13070_v40 = vadd.f32 %v13069_v6, %v13068_v39  ;;  %v13109_v38 = vpop.f32.mrf.mxu1 }
 0xcf8   :  { %v13110_v43 = vadd.f32 %v13109_v38, %v13108_v49  ;;  %v13071_v42 = vpop.f32.mrf.mxu0 }
 0xcf9   :  { %v13111_v3 = vpop.f32.mrf.mxu1 }
 0xcfa   :  { %v10264_v50 = vadd.f32 %v13110_v43, %v13070_v40  ;;  %v13072_v62 = vpop.f32.mrf.mxu0 }
 0xcfb   :  { %v13112_v35 = vpop.f32.mrf.mxu1  ;;  %v13073_v30 = vadd.f32 %v13072_v62, %v13071_v42 }
 0xcfc   :  { %v12721_v14 = vpack.c.bf16 %v10264_v50, %v10261_v34  ;;  %v13074_v59 = vpop.f32.mrf.mxu0  ;;  %v13113_v22 = vadd.f32 %v13112_v35, %v13111_v3 }
 0xcfd   :  { %v13114_v23 = vpop.f32.mrf.mxu1 }
 0xcfe   :  { %12781 = vst [vmem:[#allocation5 + $0x20] sm:$0xff] %v12721_v14   ;;  %v13075_v4 = vpop.f32.mrf.mxu0  ;;  %v10269_v41 = vadd.f32 %v13113_v22, %v13073_v30 }
 0xcff   :  { %v13076_v33 = vadd.f32 %v13075_v4, %v13074_v59  ;;  %v13115_v11 = vpop.f32.mrf.mxu1 }
 0xd00   :  { %v13116_v1 = vadd.f32 %v13115_v11, %v13114_v23  ;;  %v13077_v28 = vpop.f32.mrf.mxu0 }
 0xd01   :  { %v13117_v20 = vpop.f32.mrf.mxu1 }
 0xd02   :  { %v10272_v9 = vadd.f32 %v13116_v1, %v13076_v33  ;;  %v13078_v21 = vpop.f32.mrf.mxu0 }
 0xd03   :  { %v13118_v12 = vpop.f32.mrf.mxu1  ;;  %v13079_v57 = vadd.f32 %v13078_v21, %v13077_v28 }
 0xd04   :  { %v12726_v51 = vpack.c.bf16 %v10272_v9, %v10269_v41  ;;  %v13080_v16 = vpop.f32.mrf.mxu0  ;;  %v13119_v31 = vadd.f32 %v13118_v12, %v13117_v20 }
 0xd05   :  { %v13120_v17 = vpop.f32.mrf.mxu1 }
 0xd06   :  { %12782 = vst [vmem:[#allocation5 + $0x28] sm:$0xff] %v12726_v51   ;;  %v13081_v24 = vpop.f32.mrf.mxu0  ;;  %v10277_v36 = vadd.f32 %v13119_v31, %v13079_v57 }
 0xd07   :  { %v13082_v37 = vadd.f32 %v13081_v24, %v13080_v16  ;;  %v13121_v18 = vpop.f32.mrf.mxu1 }
 0xd08   :  { %v13122_v19 = vadd.f32 %v13121_v18, %v13120_v17  ;;  %v13083_v26 = vpop.f32.mrf.mxu0 }
 0xd09   :  { %v13123_v7 = vpop.f32.mrf.mxu1 }
 0xd0a   :  { %v10280_v47 = vadd.f32 %v13122_v19, %v13082_v37  ;;  %v13084_v56 = vpop.f32.mrf.mxu0 }
 0xd0b   :  { %v13124_v60 = vpop.f32.mrf.mxu1  ;;  %v13085_v2 = vadd.f32 %v13084_v56, %v13083_v26 }
 0xd0c   :  { %v12731_v53 = vpack.c.bf16 %v10280_v47, %v10277_v36  ;;  %v13086_v55 = vpop.f32.mrf.mxu0  ;;  %v13125_v8 = vadd.f32 %v13124_v60, %v13123_v7 }
 0xd0d   :  { %v13126_v5 = vpop.f32.mrf.mxu1 }
 0xd0e   :  { %12783 = vst [vmem:[#allocation5 + $0x30] sm:$0xff] %v12731_v53   ;;  %v13087_v25 = vpop.f32.mrf.mxu0  ;;  %v10285_v44 = vadd.f32 %v13125_v8, %v13085_v2 }
 0xd0f   :  { %v13088_v45 = vadd.f32 %v13087_v25, %v13086_v55  ;;  %v13127_v27 = vpop.f32.mrf.mxu1 }
 0xd10   :  { %v13128_v58 = vadd.f32 %v13127_v27, %v13126_v5  ;;  %v13145_v32 = vpop.f32.mrf.mxu0 }
 0xd11   :  { %v13185_v46 = vpop.f32.mrf.mxu1 }
 0xd12   :  { %v10288_v61 = vadd.f32 %v13128_v58, %v13088_v45  ;;  %v13146_v15 = vpop.f32.mrf.mxu0 }
 0xd13   :  { %v13186_v52 = vpop.f32.mrf.mxu1  ;;  %v13147_v39 = vadd.f32 %v13146_v15, %v13145_v32 }
 0xd14   :  { %v12736_v13 = vpack.c.bf16 %v10288_v61, %v10285_v44  ;;  %v13148_v29 = vpop.f32.mrf.mxu0  ;;  %v13187_v49 = vadd.f32 %v13186_v52, %v13185_v46 }
 0xd15   :  { %v13188_v0 = vpop.f32.mrf.mxu1 }
 0xd16   :  { %12784 = vst [vmem:[#allocation5 + $0x38] sm:$0xff] %v12736_v13   ;;  %v13149_v48 = vpop.f32.mrf.mxu0  ;;  %v10688_v42 = vadd.f32 %v13187_v49, %v13147_v39 }
 0xd17   :  { %v13150_v10 = vadd.f32 %v13149_v48, %v13148_v29  ;;  %v13189_v6 = vpop.f32.mrf.mxu1 }
 0xd18   :  { %v13190_v40 = vadd.f32 %v13189_v6, %v13188_v0  ;;  %v13151_v38 = vpop.f32.mrf.mxu0 }
 0xd19   :  { %v13191_v43 = vpop.f32.mrf.mxu1 }
 0xd1a   :  { %v10691_v3 = vadd.f32 %v13190_v40, %v13150_v10  ;;  %v13152_v34 = vpop.f32.mrf.mxu0 }
 0xd1b   :  { %v13192_v50 = vpop.f32.mrf.mxu1  ;;  %v13153_v59 = vadd.f32 %v13152_v34, %v13151_v38 }
 0xd1c   :  { %v12741_v62 = vpack.c.bf16 %v10691_v3, %v10688_v42  ;;  %v13154_v35 = vpop.f32.mrf.mxu0  ;;  %v13193_v54 = vadd.f32 %v13192_v50, %v13191_v43 }
 0xd1d   :  { %v13194_v14 = vpop.f32.mrf.mxu1 }
 0xd1e   :  { %12785 = vst [vmem:[#allocation5 + $0x40] sm:$0xff] %v12741_v62   ;;  %v13155_v23 = vpop.f32.mrf.mxu0  ;;  %v10696_v11 = vadd.f32 %v13193_v54, %v13153_v59 }
 0xd1f   :  { %v13156_v30 = vadd.f32 %v13155_v23, %v13154_v35  ;;  %v13195_v22 = vpop.f32.mrf.mxu1 }
 0xd20   :  { %v13196_v4 = vadd.f32 %v13195_v22, %v13194_v14  ;;  %v13157_v63 = vpop.f32.mrf.mxu0 }
 0xd21   :  { %v13197_v33 = vpop.f32.mrf.mxu1 }
 0xd22   :  { %v10699_v1 = vadd.f32 %v13196_v4, %v13156_v30  ;;  %v13158_v28 = vpop.f32.mrf.mxu0 }
 0xd23   :  { %v13198_v20 = vpop.f32.mrf.mxu1  ;;  %v13159_v12 = vadd.f32 %v13158_v28, %v13157_v63 }
 0xd24   :  { %v12746_v41 = vpack.c.bf16 %v10699_v1, %v10696_v11  ;;  %v13160_v9 = vpop.f32.mrf.mxu0  ;;  %v13199_v51 = vadd.f32 %v13198_v20, %v13197_v33 }
 0xd25   :  { %v13200_v21 = vpop.f32.mrf.mxu1 }
 0xd26   :  { %12786 = vst [vmem:[#allocation5 + $0x48] sm:$0xff] %v12746_v41   ;;  %v13161_v16 = vpop.f32.mrf.mxu0  ;;  %v10704_v18 = vadd.f32 %v13199_v51, %v13159_v12 }
 0xd27   :  { %v13162_v17 = vadd.f32 %v13161_v16, %v13160_v9  ;;  %v13201_v57 = vpop.f32.mrf.mxu1 }
 0xd28   :  { %v13202_v31 = vadd.f32 %v13201_v57, %v13200_v21  ;;  %v13163_v24 = vpop.f32.mrf.mxu0 }
 0xd29   :  { %v13203_v37 = vpop.f32.mrf.mxu1 }
 0xd2a   :  { %v10707_v19 = vadd.f32 %v13202_v31, %v13162_v17  ;;  %v13164_v26 = vpop.f32.mrf.mxu0 }
 0xd2b   :  { %v13204_v7 = vpop.f32.mrf.mxu1  ;;  %v13165_v60 = vadd.f32 %v13164_v26, %v13163_v24 }
 0xd2c   :  { %v12751_v36 = vpack.c.bf16 %v10707_v19, %v10704_v18  ;;  %v13166_v47 = vpop.f32.mrf.mxu0  ;;  %v13205_v53 = vadd.f32 %v13204_v7, %v13203_v37 }
 0xd2d   :  { %v13206_v56 = vpop.f32.mrf.mxu1 }
 0xd2e   :  { %12787 = vst [vmem:[#allocation5 + $0x50] sm:$0xff] %v12751_v36   ;;  %v13167_v55 = vpop.f32.mrf.mxu0  ;;  %v10712_v27 = vadd.f32 %v13205_v53, %v13165_v60 }
 0xd2f   :  { %v13168_v5 = vadd.f32 %v13167_v55, %v13166_v47  ;;  %v13207_v2 = vpop.f32.mrf.mxu1 }
 0xd30   :  { %v13208_v8 = vadd.f32 %v13207_v2, %v13206_v56  ;;  %v13225_v25 = vpop.f32.mrf.mxu0 }
 0xd31   :  { %v13265_v45 = vpop.f32.mrf.mxu1 }
 0xd32   :  { %v10715_v58 = vadd.f32 %v13208_v8, %v13168_v5  ;;  %v13226_v32 = vpop.f32.mrf.mxu0 }
 0xd33   :  { %v13266_v46 = vpop.f32.mrf.mxu1  ;;  %v13227_v52 = vadd.f32 %v13226_v32, %v13225_v25  ;;  %v14758_v25 = vld [vmem:[#allocation5 + $0x38] sm:$0xff]   ;;  %v14762_v32 = vld [vmem:[#allocation5 + $0x28] sm:$0xff]  }
 0xd34   :  { %v12756_v44 = vpack.c.bf16 %v10715_v58, %v10712_v27  ;;  %v13228_v61 = vpop.f32.mrf.mxu0  ;;  %v13267_v13 = vadd.f32 %v13266_v46, %v13265_v45  ;;  %v14760_v27 = vld [vmem:[#allocation5 + $0x30] sm:$0xff]  }
 0xd35   :  { %v13268_v15 = vpop.f32.mrf.mxu1 }
 0xd36   :  { %12788 = vst [vmem:[#allocation5 + $0x58] sm:$0xff] %v12756_v44   ;;  %v13229_v29 = vpop.f32.mrf.mxu0  ;;  %v11115_v6 = vadd.f32 %v13267_v13, %v13227_v52  ;;  %v14764_v44 = vld [vmem:[#allocation5 + $0x20] sm:$0xff]   ;;  %v14767_v52 = vld [vmem:[#allocation5 + $0x50] sm:$0xff]  }
 0xd37   :  { %v13230_v0 = vadd.f32 %v13229_v29, %v13228_v61  ;;  %v13269_v39 = vpop.f32.mrf.mxu1  ;;  %v14768_v13 = vld [vmem:[#allocation5 + $0x10] sm:$0xff]   ;;  %v14769_v29 = vld [vmem:[#allocation5 + $0x48] sm:$0xff]  }
 0xd38   :  { %v13270_v49 = vadd.f32 %v13269_v39, %v13268_v15  ;;  %v13231_v48 = vpop.f32.mrf.mxu0  ;;  %v14766_v15 = vld [vmem:[#allocation5 + $0x18] sm:$0xff]   ;;  %v14771_v39 = vld [vmem:[#allocation5 + $0x40] sm:$0xff]  }
 0xd39   :  { %v13271_v10 = vpop.f32.mrf.mxu1 }
 0xd3a   :  { %v11118_v40 = vadd.f32 %v13270_v49, %v13230_v0  ;;  %v13232_v38 = vpop.f32.mrf.mxu0  ;;  %v14770_v0 = vld [vmem:[#allocation5 + $0x8] sm:$0xff]  }
 0xd3b   :  { %v13272_v43 = vpop.f32.mrf.mxu1  ;;  %v13233_v50 = vadd.f32 %v13232_v38, %v13231_v48  ;;  %v11191_v49 = vld [vmem:[#allocation28 + $0x30] sm:$0xff] }
 0xd3c   :  { %v12761_v42 = vpack.c.bf16 %v11118_v40, %v11115_v6  ;;  %v13234_v3 = vpop.f32.mrf.mxu0  ;;  %v13273_v62 = vadd.f32 %v13272_v43, %v13271_v10  ;;  %v14772_v48 = vld [vmem:[#allocation5] sm:$0xff]   ;;  %v14779_v40 = vld [vmem:[#allocation28 + $0x14] ss:$8 sps:$4 sm:$0xff]   ;;  %v12596_v38 = vcombine.high %v11191_v49, %v11191_v49 }
 0xd3d   :  { %v13274_v34 = vpop.f32.mrf.mxu1  ;;  %v14765_v61 = vld [vmem:[#allocation5 + $0x58] sm:$0xff]   ;;  %v14782_v43 = vld [vmem:[#allocation28 + $0x10] ss:$8 sps:$4 sm:$0xff]  }
 0xd3e   :  { %12789 = vst [vmem:[#allocation5 + $0x60] sm:$0xff] %v12761_v42   ;;  %v13235_v35 = vpop.f32.mrf.mxu0  ;;  %v11123_v22 = vadd.f32 %v13273_v62, %v13233_v50  ;;  %v14773_v10 = vld [vmem:[#allocation28] ss:$8 sps:$4 sm:$0xff]   ;;  %v12595_v42 = vcombine.low %v11191_v49, %v11191_v49  ;;  %v12588_v50 = vld [vmem:[#allocation30] ss:$0 sm:$0xff] }
 0xd3f   :  { %v13236_v14 = vadd.f32 %v13235_v35, %v13234_v3  ;;  %v13275_v59 = vpop.f32.mrf.mxu1  ;;  %v14776_v6 = vld [vmem:[#allocation28 + $0x20] ss:$8 sps:$4 sm:$0xff]  }
 0xd40   :  { %v13276_v54 = vadd.f32 %v13275_v59, %v13274_v34  ;;  %v13237_v23 = vpop.f32.mrf.mxu0 }
 0xd41   :  { %v13277_v30 = vpop.f32.mrf.mxu1 }
 0xd42   :  { %v11126_v4 = vadd.f32 %v13276_v54, %v13236_v14  ;;  %v13238_v63 = vpop.f32.mrf.mxu0 }
 0xd43   :  { %v13278_v33 = vpop.f32.mrf.mxu1  ;;  %v13239_v20 = vadd.f32 %v13238_v63, %v13237_v23 }
 0xd44   :  { %v12766_v11 = vpack.c.bf16 %v11126_v4, %v11123_v22  ;;  %v13240_v1 = vpop.f32.mrf.mxu0  ;;  %v13279_v41 = vadd.f32 %v13278_v33, %v13277_v30 }
 0xd45   :  { %v13280_v28 = vpop.f32.mrf.mxu1  ;;  %v14763_v46 = vld [vmem:[#allocation5 + $0x60] sm:$0xff]  }
 0xd46   :  { %12790 = vst [vmem:[#allocation5 + $0x68] sm:$0xff] %v12766_v11   ;;  %v13241_v9 = vpop.f32.mrf.mxu0  ;;  %v11131_v57 = vadd.f32 %v13279_v41, %v13239_v20 }
 0xd47   :  { %v13242_v21 = vadd.f32 %v13241_v9, %v13240_v1  ;;  %v13281_v12 = vpop.f32.mrf.mxu1 }
 0xd48   :  { %v13282_v51 = vadd.f32 %v13281_v12, %v13280_v28  ;;  %v13243_v16 = vpop.f32.mrf.mxu0 }
 0xd49   :  { %v13283_v17 = vpop.f32.mrf.mxu1 }
 0xd4a   :  { %v11134_v31 = vadd.f32 %v13282_v51, %v13242_v21  ;;  %v13244_v24 = vpop.f32.mrf.mxu0 }
 0xd4b   :  { %v13284_v37 = vpop.f32.mrf.mxu1  ;;  %v13245_v7 = vadd.f32 %v13244_v24, %v13243_v16 }
 0xd4c   :  { %v12771_v18 = vpack.c.bf16 %v11134_v31, %v11131_v57  ;;  %v13246_v19 = vpop.f32.mrf.mxu0  ;;  %v13285_v36 = vadd.f32 %v13284_v37, %v13283_v17 }
 0xd4d   :  { %v13286_v26 = vpop.f32.mrf.mxu1  ;;  %v14761_v58 = vld [vmem:[#allocation5 + $0x68] sm:$0xff]  }
 0xd4e   :  { %12791 = vst [vmem:[#allocation5 + $0x70] sm:$0xff] %v12771_v18   ;;  %v13247_v47 = vpop.f32.mrf.mxu0  ;;  %v11139_v55 = vadd.f32 %v13285_v36, %v13245_v7 }
 0xd4f   :  { %v13248_v56 = vadd.f32 %v13247_v47, %v13246_v19  ;;  %v13287_v60 = vpop.f32.mrf.mxu1 }
 0xd50   :  { %v13288_v53 = vadd.f32 %v13287_v60, %v13286_v26 }
 0xd52   :  { %v11142_v5 = vadd.f32 %v13288_v53, %v13248_v56 }
 0xd54   :  { %v12776_v2 = vpack.c.bf16 %v11142_v5, %v11139_v55 }
 0xd55   :  { %v14759_v45 = vld [vmem:[#allocation5 + $0x70] sm:$0xff]  }
 0xd56   :  { %12792 = vst [vmem:[#allocation5 + $0x78] sm:$0xff] %v12776_v2  }
 0xd5d   :  { %v14757_v8 = vld [vmem:[#allocation5 + $0x78] sm:$0xff]  }
 0xd5e   :  { %13289 = vmatprep.subr.bf16.mxu0 %v14757_v8  ;;  %13329 = vmatprep.subr.bf16.mxu1 %v14757_v8 }
 0xd5f   :  { %13290 = vmatpush3.bf16.msra.mxu0 %v14758_v25  ;;  %13337 = vmatpush3.bf16.msra.mxu1 %v14758_v25 }
 0xd60   :  { %13291 = vmatprep.subr.bf16.mxu0 %v14759_v45  ;;  %13330 = vmatprep.subr.bf16.mxu1 %v14759_v45 }
 0xd63   :  { %13292 = vmatpush3.bf16.msra.mxu0 %v14760_v27  ;;  %13338 = vmatpush3.bf16.msra.mxu1 %v14760_v27 }
 0xd64   :  { %13293 = vmatprep.subr.bf16.mxu0 %v14761_v58  ;;  %13331 = vmatprep.subr.bf16.mxu1 %v14761_v58 }
 0xd67   :  { %13294 = vmatpush3.bf16.msra.mxu0 %v14762_v32  ;;  %13339 = vmatpush3.bf16.msra.mxu1 %v14762_v32 }
 0xd68   :  { %13295 = vmatprep.subr.bf16.mxu0 %v14763_v46  ;;  %13332 = vmatprep.subr.bf16.mxu1 %v14763_v46 }
 0xd6b   :  { %13296 = vmatpush3.bf16.msra.mxu0 %v14764_v44  ;;  %13340 = vmatpush3.bf16.msra.mxu1 %v14764_v44 }
 0xd6c   :  { %13297 = vmatprep.subr.bf16.mxu0 %v14765_v61  ;;  %13333 = vmatprep.subr.bf16.mxu1 %v14765_v61 }
 0xd6f   :  { %13298 = vmatpush3.bf16.msra.mxu0 %v14766_v15  ;;  %13341 = vmatpush3.bf16.msra.mxu1 %v14766_v15 }
 0xd70   :  { %13299 = vmatprep.subr.bf16.mxu0 %v14767_v52  ;;  %13334 = vmatprep.subr.bf16.mxu1 %v14767_v52 }
 0xd73   :  { %13300 = vmatpush3.bf16.msra.mxu0 %v14768_v13  ;;  %13342 = vmatpush3.bf16.msra.mxu1 %v14768_v13 }
 0xd74   :  { %13301 = vmatprep.subr.bf16.mxu0 %v14769_v29  ;;  %13335 = vmatprep.subr.bf16.mxu1 %v14769_v29 }
 0xd77   :  { %13302 = vmatpush3.bf16.msra.mxu0 %v14770_v0  ;;  %13343 = vmatpush3.bf16.msra.mxu1 %v14770_v0 }
 0xd78   :  { %13303 = vmatprep.subr.bf16.mxu0 %v14771_v39  ;;  %13336 = vmatprep.subr.bf16.mxu1 %v14771_v39 }
 0xd7b   :  { %13304 = vmatpush3.bf16.msra.mxu0 %v14772_v48  ;;  %13344 = vmatpush3.bf16.msra.mxu1 %v14772_v48 }
 0xd7e   :  { %11397 = vmatmul.mubr.bf16.vlgmr.msra.gmra.mxu0 %v14773_v10  ;;  %11413 = vmatmul.mubr.bf16.vlgmr.msra.gmra.mxu1 %v14776_v6 }
 0xd7f   :  { %11404 = vmatprep.mubr.bf16.mxu0 %v14779_v40  ;;  %11420 = vmatprep.mubr.bf16.mxu1 %v12596_v38 }
 0xd86   :  { %11405 = vmatmul.mubr.bf16.gmra.mxu0 %v14782_v43  ;;  %11421 = vmatmul.mubr.bf16.gmra.mxu1 %v12595_v42 }
 0xe3e   :  { %v13305_v3 = vpop.f32.mrf.mxu0  ;;  %v13317_v34 = vpop.f32.mrf.mxu1 }
 0xe40   :  { %v13306_v62 = vpop.f32.mrf.mxu0  ;;  %v13318_v35 = vpop.f32.mrf.mxu1 }
 0xe41   :  { %v13307_v14 = vadd.f32 %v13306_v62, %v13305_v3  ;;  %v13319_v59 = vadd.f32 %v13318_v35, %v13317_v34 }
 0xe42   :  { %v13308_v54 = vpop.f32.mrf.mxu0  ;;  %v13320_v23 = vpop.f32.mrf.mxu1 }
 0xe43   :  { %v11399_v30 = vadd.f32 %v13307_v14, %v12588_v50  ;;  %v11415_v22 = vadd.f32 %v13319_v59, %v12588_v50 }
 0xe44   :  { %v13309_v4 = vpop.f32.mrf.mxu0  ;;  %v13321_v63 = vpop.f32.mrf.mxu1 }
 0xe45   :  { %11428 = vst [vmem:[#allocation31] sm:$0xff] %v11399_v30  ;;  %11432 = vst [vmem:[#allocation31 + $0x20] sm:$0xff] %v11415_v22  ;;  %v13310_v33 = vadd.f32 %v13309_v4, %v13308_v54  ;;  %v13322_v11 = vadd.f32 %v13321_v63, %v13320_v23 }
 0xe46   :  { %v13311_v1 = vpop.f32.mrf.mxu0  ;;  %v13323_v28 = vpop.f32.mrf.mxu1 }
 0xe47   :  { %v11402_v20 = vadd.f32 %v13310_v33, %v12588_v50  ;;  %v11418_v41 = vadd.f32 %v13322_v11, %v12588_v50 }
 0xe48   :  { %v13312_v9 = vpop.f32.mrf.mxu0  ;;  %v13324_v21 = vpop.f32.mrf.mxu1 }
 0xe49   :  { %11429 = vst [vmem:[#allocation31 + $0x8] sm:$0xff] %v11402_v20  ;;  %11433 = vst [vmem:[#allocation31 + $0x28] sm:$0xff] %v11418_v41  ;;  %v13313_v12 = vadd.f32 %v13312_v9, %v13311_v1  ;;  %v13325_v51 = vadd.f32 %v13324_v21, %v13323_v28 }
 0xe4a   :  { %v13314_v16 = vpop.f32.mrf.mxu0  ;;  %v13326_v17 = vpop.f32.mrf.mxu1 }
 0xe4b   :  { %v11407_v57 = vadd.f32 %v13313_v12, %v12588_v50  ;;  %v11423_v31 = vadd.f32 %v13325_v51, %v12588_v50 }
 0xe4c   :  { %v13315_v24 = vpop.f32.mrf.mxu0  ;;  %v13327_v37 = vpop.f32.mrf.mxu1 }
 0xe4d   :  { %11430 = vst [vmem:[#allocation31 + $0x10] sm:$0xff] %v11407_v57  ;;  %11434 = vst [vmem:[#allocation31 + $0x30] sm:$0xff] %v11423_v31  ;;  %v13316_v18 = vadd.f32 %v13315_v24, %v13314_v16 }
 0xe4f   :  { %v11410_v19 = vadd.f32 %v13316_v18, %v12588_v50 }
 0xe51   :  { %11431 = vst [vmem:[#allocation31 + $0x18] sm:$0xff] %v11410_v19 }
 0xe52   :  { %15115 = shalt.err (!%p15112_p0)
}
 0xe53   :  { %11446 = dma.vmem_to_hbm [thread:$0]  %s11441_s25, 896, %s16748_s18, [#allocation12], %s15156_s10, %s15156_s10, %s15157_s23  }
 0xe54   :  { %15144 = dma.done.wait [#allocation12], 896  }
 0xe55   :  { %15145 = vsyncadd [#allocation12], 4294966400 }
 0xe56   :  { %11450 = vsyncpa [#allocation11], 1 }
 0xe57   :  { %11451 = vsyncpa [#allocation14], 1 }
 0xe58   :  { %11452 = vsyncpa [#allocation17], 1 }
 0xe59   :  { %11453 = vsyncpa [#allocation20], 1 }
 0xe5a   :  { %11454 = vsyncpa [#allocation23], 1 }
 0xe5b   :  { %11455 = vsyncpa [#allocation26], 1 }
 0xe5c   :  { %11456 = vsyncpa [#allocation29], 1 }
 0xe5d   :  { %11457 = vsyncpa [#allocation12], 1 }
 0xe5e   :  { %11458 = vsyncmov [#allocation9] }
 0xe61   :  { %s11459_s27 = vpop.sfrf %11458 }
 0xe62   :  { %p12613_p1 = scmp.ne.s32.totalorder %s11459_s27, 0 }
 0xe64   :  { %11463 = shalt.err (%p12613_p1)  }
 0xe65   :  { %11465 = vsyncmov [#allocation9 + $0x1] }
 0xe68   :  { %s11466_s19 = vpop.sfrf %11465 }
 0xe69   :  { %p12614_p2 = scmp.ne.s32.totalorder %s11466_s19, 0 }
 0xe6b   :  { %11470 = shalt.err (%p12614_p2)  }
 0xe6c   :  { %11472 = vsyncmov [#allocation9 + $0x2] }
 0xe6f   :  { %s11473_s18 = vpop.sfrf %11472 }
 0xe70   :  { %p12615_p3 = scmp.ne.s32.totalorder %s11473_s18, 0 }
 0xe72   :  { %11477 = shalt.err (%p12615_p3)  }

</bundles_post_ra>
